<compile_context>
chip_gen: v5e
topology: v5e:2x2
jax: 0.10.0
libtpu: 0.0.40
codegen_flags: <defaults>
</compile_context>

<pallas_src>
import numpy as np
import jax
import jax.numpy as jnp
from jax.experimental import pallas as pl
from jax.experimental.pallas import tpu as pltpu

UP_RATIO = 4
FEAT = 256  # feature-extractor output channels


def _round_up(x, m):
    return (x + m - 1) // m * m


def _generator_kernel(x_ref, w1_ref, w2_ref, b2_ref, w3_ref, b3_ref,
                      w4_ref, b4_ref, w5_ref, b5_ref, o_ref):
    """One grid step = (batch element, N tile).  Channels-first.

    x_ref : (1, 4, TN) f32  (row 3 is the ones channel for the folded layer-1 bias)
    o_ref : (1, 3*R, TN) f32
    wK_ref: (Cout, Cin) bf16 (w1 has the bias column folded in; w4 rows permuted
            replica-major; w5 is the fused block-diagonal (3R, 256R) matrix)
    bK_ref: (Cout, 1) f32
    """
    x = x_ref[0].astype(jnp.bfloat16)                                    # (4, TN)

    # Layer 1: bias folded into the weight (ones channel in x); ReLU on the
    # small (64, TN) f32 accumulator, single cast to bf16.
    h = jnp.dot(w1_ref[...], x, preferred_element_type=jnp.float32)
    h = jnp.maximum(h, 0.0).astype(jnp.bfloat16)                         # (64, TN)

    # Layers 2-4: bf16 epilogue -- cast the f32 MXU accumulator once, bias-add
    # + ReLU at bf16 VALU width, result feeds the next dot directly.
    h = jnp.dot(w2_ref[...], h, preferred_element_type=jnp.float32)
    h = jnp.maximum(h.astype(jnp.bfloat16)
                    + b2_ref[...].astype(jnp.bfloat16), 0.0)             # (128, TN)

    h = jnp.dot(w3_ref[...], h, preferred_element_type=jnp.float32)
    h = jnp.maximum(h.astype(jnp.bfloat16)
                    + b3_ref[...].astype(jnp.bfloat16), 0.0)             # (256, TN)

    e = jnp.dot(w4_ref[...], h, preferred_element_type=jnp.float32)
    e = jnp.maximum(e.astype(jnp.bfloat16)
                    + b4_ref[...].astype(jnp.bfloat16), 0.0)             # (1024, TN)

    # Fused per-replica reconstruction: one (12, 1024) x (1024, TN) matmul.
    c = jnp.dot(w5_ref[...], e, preferred_element_type=jnp.float32)      # (12, TN)
    o_ref[0] = c + b5_ref[...]


def init_generator_params(key, up_ratio=UP_RATIO):
    """Deterministic synthetic parameters (PyTorch Conv1d shapes: W=(Cout,Cin), b=(Cout,))."""
    ks = jax.random.split(key, 10)

    def w(k, shape, scale=0.1):
        return (scale * jax.random.normal(k, shape)).astype(jnp.float32)

    return (
        w(ks[0], (64, 3)),               w(ks[1], (64,)),
        w(ks[2], (128, 64)),             w(ks[3], (128,)),
        w(ks[4], (256, 128)),            w(ks[5], (256,)),
        w(ks[6], (256 * up_ratio, 256)), w(ks[7], (256 * up_ratio,)),
        w(ks[8], (3, 256)),              w(ks[9], (3,)),
    )


def _prepare_params(params, up_ratio=UP_RATIO):
    """Kernel-ready weights: layer-1 bias fold, replica-major permutation,
    fused block-diagonal reconstruction, bf16 weights / f32 column biases."""
    w1, b1, w2, b2, w3, b3, w4, b4, w5, b5 = params

    # Fold the layer-1 bias into the weight (the wrapper appends a ones channel
    # to x); K goes 3 -> 4, still a single MXU K-pass on every generation.
    w1a = jnp.concatenate([w1, b1[:, None]], axis=1)                     # (64, 4)

    # Replica-major row permutation of the expansion weight realises the
    # PyTorch .view(B, 256, R*N):  perm[r*256 + c] = R*c + r.
    c_idx = np.arange(FEAT)
    r_idx = np.arange(up_ratio)
    perm = (up_ratio * c_idx[None, :] + r_idx[:, None]).reshape(-1)
    w4p, b4p = w4[perm, :], b4[perm]

    # Fused reconstruction: block-diagonal (3R, 256R); one matmul for all replicas.
    w5b = jnp.kron(jnp.eye(up_ratio, dtype=w5.dtype), w5)
    b5b = jnp.tile(b5, up_ratio)

    bf = jnp.bfloat16
    return dict(
        w1=w1a.astype(bf),
        w2=w2.astype(bf),  b2=b2.astype(jnp.float32)[:, None],
        w3=w3.astype(bf),  b3=b3.astype(jnp.float32)[:, None],
        w4=w4p.astype(bf), b4=b4p.astype(jnp.float32)[:, None],
        w5=w5b.astype(bf), b5=b5b.astype(jnp.float32)[:, None],
    )


def generator_forward(x, params, up_ratio=UP_RATIO, tile_n=2048,
                      vmem_limit_bytes=48 * 1024 * 1024):
    """x: (B, N, 3) f32 -> (B, up_ratio*N, 3) f32.

    tile_n: points per grid step (multiple of 128).  Default 2048 keeps the
    per-step working set (~20 MiB) well inside the 48 MiB scoped VMEM limit on
    every generation; up to ~3072 on v7x (64 MiB physical VMEM) and up to 4096
    on v5e/v6e if vmem_limit_bytes is raised to ~96 MiB.  Ragged N clamps
    tile_n to round_up(N, 128) so pad columns stay cheap.
    """
    B, N, _ = x.shape
    p = _prepare_params(params, up_ratio)

    tile_n = max(128, _round_up(tile_n, 128))
    tile_n = min(tile_n, _round_up(N, 128))
    # v7x shards the "parallel" grid axes over 2 TensorCores: expose >= 2 grid
    # steps whenever the problem allows it.
    if B * (_round_up(N, tile_n) // tile_n) < 2 and tile_n > 128:
        tile_n = _round_up(tile_n // 2, 128)
    n_pad = _round_up(N, tile_n)

    # Channels-first input with a ones channel appended (layer-1 bias fold);
    # point axis padded to a multiple of the tile.  Pad columns compute garbage
    # that is sliced off below.
    xt = jnp.transpose(x, (0, 2, 1))                                     # (B, 3, N)
    xa = jnp.concatenate([xt, jnp.ones((B, 1, N), xt.dtype)], axis=1)    # (B, 4, N)
    if n_pad != N:
        xa = jnp.pad(xa, ((0, 0), (0, 0), (0, n_pad - N)))

    c_out = 3 * up_ratio
    out_shape = jax.ShapeDtypeStruct((B, c_out, n_pad), jnp.float32)

    consts = (p['w1'], p['w2'], p['b2'], p['w3'], p['b3'],
              p['w4'], p['b4'], p['w5'], p['b5'])

    flops = 2 * B * n_pad * (4 * 64 + 64 * 128 + 128 * 256
                             + 256 * FEAT * up_ratio + FEAT * up_ratio * c_out)
    bytes_accessed = (int(xa.size) * 4 + B * c_out * n_pad * 4
                      + sum(int(a.size) * a.dtype.itemsize for a in consts))

    def call_kernel(single_buffer_weights):
        if single_buffer_weights:
            # Resident blocks (constant index_map) are never re-DMA'd; single
            # buffering reclaims their dead double-buffer VMEM.
            def const_spec(a):
                return pl.BlockSpec(a.shape, lambda b, n: (0, 0),
                                    pipeline_mode=pl.Buffered(1))
        else:
            def const_spec(a):
                return pl.BlockSpec(a.shape, lambda b, n: (0, 0))

        in_specs = [pl.BlockSpec((1, 4, tile_n), lambda b, n: (b, 0, n))]
        in_specs += [const_spec(a) for a in consts]
        out_specs = pl.BlockSpec((1, c_out, tile_n), lambda b, n: (b, 0, n))

        out = pl.pallas_call(
            _generator_kernel,
            out_shape=out_shape,
            grid_spec=pltpu.PrefetchScalarGridSpec(
                num_scalar_prefetch=0,
                grid=(B, n_pad // tile_n),
                in_specs=in_specs,
                out_specs=out_specs,
            ),
            compiler_params=pltpu.CompilerParams(
                dimension_semantics=("parallel", "parallel"),
                vmem_limit_bytes=vmem_limit_bytes,
            ),
            cost_estimate=pl.CostEstimate(flops=flops, transcendentals=0,
                                          bytes_accessed=bytes_accessed),
        )(xa, *consts)
        return jax.block_until_ready(out)

    try:
        out_cn = call_kernel(True)
    except Exception:
        # TODO(synk): pl.Buffered(1) not accepted by this jax build; fall back
        # to the default double-buffered resident weights (<1 MiB extra VMEM).
        out_cn = call_kernel(False)

    # (B, 3R, n_pad) -> (B, R, 3, n_pad) -> (B, R, N, 3) -> (B, R*N, 3)
    out = out_cn.reshape(B, up_ratio, 3, n_pad)
    out = jnp.transpose(out, (0, 1, 3, 2))[:, :, :N, :]
    return out.reshape(B, up_ratio * N, 3)


def generator_reference(x, params, up_ratio=UP_RATIO):
    """Faithful f32 replica of the PyTorch forward (explicit highest precision)."""
    w1, b1, w2, b2, w3, b3, w4, b4, w5, b5 = params

    def conv1d(h, w, b):  # h: (B, Cin, N)
        return jnp.einsum('oc,bcn->bon', w, h,
                          precision=jax.lax.Precision.HIGHEST) + b[None, :, None]

    xt = jnp.transpose(x, (0, 2, 1))
    h = jax.nn.relu(conv1d(xt, w1, b1))
    h = jax.nn.relu(conv1d(h, w2, b2))
    feats = jax.nn.relu(conv1d(h, w3, b3))
    exp = jax.nn.relu(conv1d(feats, w4, b4))
    B, _, N = feats.shape
    exp = exp.reshape(B, FEAT, N * up_ratio)            # the .view()
    coords = conv1d(exp, w5, b5)
    return jnp.transpose(coords, (0, 2, 1))


def generator_reference_matched(x, params, up_ratio=UP_RATIO):
    """Pure-JAX forward that mirrors the kernel's exact compute path
    (bf16 inputs / f32 MXU accumulation / bf16 epilogues / folded layer-1 bias)."""
    p = _prepare_params(params, up_ratio)
    bf = jnp.bfloat16
    B, N, _ = x.shape

    def dot(w, h):
        return jnp.einsum('oc,bcn->bon', w, h, preferred_element_type=jnp.float32)

    xt = jnp.transpose(x, (0, 2, 1)).astype(bf)
    xa = jnp.concatenate([xt, jnp.ones((B, 1, N), bf)], axis=1)          # (B, 4, N)

    h = jnp.maximum(dot(p['w1'], xa), 0.0).astype(bf)
    h = jnp.maximum(dot(p['w2'], h).astype(bf) + p['b2'].astype(bf)[None], 0.0)
    h = jnp.maximum(dot(p['w3'], h).astype(bf) + p['b3'].astype(bf)[None], 0.0)
    e = jnp.maximum(dot(p['w4'], h).astype(bf) + p['b4'].astype(bf)[None], 0.0)
    c = dot(p['w5'], e) + p['b5'][None]                                  # (B, 12, N) f32

    out = c.reshape(B, up_ratio, 3, N)
    return jnp.transpose(out, (0, 1, 3, 2)).reshape(B, up_ratio * N, 3)


if __name__ == "__main__":
    key = jax.random.PRNGKey(0)
    kx, kp, kx2 = jax.random.split(key, 3)
    params = init_generator_params(kp, up_ratio=UP_RATIO)

    # Multi-tile case: B=2, N=256 points, tile_n=128 -> grid (2, 2).
    B, N = 2, 256
    x = jax.random.normal(kx, (B, N, 3), dtype=jnp.float32)
    out = jax.block_until_ready(generator_forward(x, params, tile_n=128))
    assert out.shape == (B, UP_RATIO * N, 3), out.shape

    ref_m = jax.block_until_ready(generator_reference_matched(x, params))
    assert jnp.allclose(out, ref_m, atol=2e-3, rtol=2e-3), \
        f"matched max abs err = {jnp.max(jnp.abs(out - ref_m))}"

    ref_f32 = jax.block_until_ready(generator_reference(x, params))
    assert jnp.allclose(out, ref_f32, atol=5e-2, rtol=5e-2), \
        f"f32 max abs err = {jnp.max(jnp.abs(out - ref_f32))}"

    # Ragged case exercising padding + default tile path: N=40 -> padded to 128.
    B2, N2 = 2, 40
    x2 = jax.random.normal(kx2, (B2, N2, 3), dtype=jnp.float32)
    out2 = jax.block_until_ready(generator_forward(x2, params))
    ref2 = jax.block_until_ready(generator_reference_matched(x2, params))
    assert out2.shape == (B2, UP_RATIO * N2, 3), out2.shape
    assert jnp.allclose(out2, ref2, atol=2e-3, rtol=2e-3), \
        f"padded-case max abs err = {jnp.max(jnp.abs(out2 - ref2))}"

    print("KERNEL_OK")
</pallas_src>

<mosaic_0001>
module attributes {stable_mosaic.version = 11 : i64} {
  func.func @_generator_kernel(%arg0: i32, %arg1: i32, %arg2: memref<1x4x128xf32, #tpu.memory_space<vmem>>, %arg3: memref<64x4xbf16, #tpu.memory_space<vmem>>, %arg4: memref<128x64xbf16, #tpu.memory_space<vmem>>, %arg5: memref<128x1xf32, #tpu.memory_space<vmem>>, %arg6: memref<256x128xbf16, #tpu.memory_space<vmem>>, %arg7: memref<256x1xf32, #tpu.memory_space<vmem>>, %arg8: memref<1024x256xbf16, #tpu.memory_space<vmem>>, %arg9: memref<1024x1xf32, #tpu.memory_space<vmem>>, %arg10: memref<12x1024xbf16, #tpu.memory_space<vmem>>, %arg11: memref<12x1xf32, #tpu.memory_space<vmem>>, %arg12: memref<1x12x128xf32, #tpu.memory_space<vmem>>) attributes {dimension_semantics = [#tpu.dimension_semantics<parallel>, #tpu.dimension_semantics<parallel>], iteration_bounds = array<i64: 2, 2>, scalar_prefetch = 0 : i64, scratch_operands = 0 : i64, tpu.core_type = #tpu.core_type<tc>, window_params = [{transform_indices = @transform_0, window_bounds = array<i64: 1, 4, 128>}, {pipeline_mode = #tpu.pipeline_mode<synchronous>, transform_indices = @transform_1, window_bounds = array<i64: 64, 4>}, {pipeline_mode = #tpu.pipeline_mode<synchronous>, transform_indices = @transform_2, window_bounds = array<i64: 128, 64>}, {pipeline_mode = #tpu.pipeline_mode<synchronous>, transform_indices = @transform_3, window_bounds = array<i64: 128, 1>}, {pipeline_mode = #tpu.pipeline_mode<synchronous>, transform_indices = @transform_4, window_bounds = array<i64: 256, 128>}, {pipeline_mode = #tpu.pipeline_mode<synchronous>, transform_indices = @transform_5, window_bounds = array<i64: 256, 1>}, {pipeline_mode = #tpu.pipeline_mode<synchronous>, transform_indices = @transform_6, window_bounds = array<i64: 1024, 256>}, {pipeline_mode = #tpu.pipeline_mode<synchronous>, transform_indices = @transform_7, window_bounds = array<i64: 1024, 1>}, {pipeline_mode = #tpu.pipeline_mode<synchronous>, transform_indices = @transform_8, window_bounds = array<i64: 12, 1024>}, {pipeline_mode = #tpu.pipeline_mode<synchronous>, transform_indices = @transform_9, window_bounds = array<i64: 12, 1>}, {transform_indices = @transform_10, window_bounds = array<i64: 1, 12, 128>}]} {
    %c0 = arith.constant 0 : index
    %c0_0 = arith.constant 0 : index
    %c0_1 = arith.constant 0 : index
    %0 = vector.load %arg2[%c0, %c0_0, %c0_1] : memref<1x4x128xf32, #tpu.memory_space<vmem>>, vector<1x4x128xf32>
    %1 = vector.shape_cast %0 : vector<1x4x128xf32> to vector<4x128xf32>
    %2 = arith.truncf %1 : vector<4x128xf32> to vector<4x128xbf16>
    %c0_2 = arith.constant 0 : index
    %c0_3 = arith.constant 0 : index
    %3 = vector.load %arg3[%c0_2, %c0_3] : memref<64x4xbf16, #tpu.memory_space<vmem>>, vector<64x4xbf16>
    %cst = arith.constant dense<0.000000e+00> : vector<64x128xf32>
    %4 = tpu.matmul %3, %2, %cst {dimension_numbers = #tpu.dot_dimension_numbers<[1], [0], [0], [1], [0, 0, 1, 1], [], []>} : vector<64x4xbf16>, vector<4x128xbf16>, vector<64x128xf32> -> vector<64x128xf32>
    %cst_4 = arith.constant 0.000000e+00 : f32
    %5 = vector.broadcast %cst_4 : f32 to vector<64x128xf32>
    %6 = arith.maximumf %4, %5 : vector<64x128xf32>
    %7 = arith.truncf %6 : vector<64x128xf32> to vector<64x128xbf16>
    %c0_5 = arith.constant 0 : index
    %c0_6 = arith.constant 0 : index
    %8 = vector.load %arg4[%c0_5, %c0_6] : memref<128x64xbf16, #tpu.memory_space<vmem>>, vector<128x64xbf16>
    %cst_7 = arith.constant dense<0.000000e+00> : vector<128x128xf32>
    %9 = tpu.matmul %8, %7, %cst_7 {dimension_numbers = #tpu.dot_dimension_numbers<[1], [0], [0], [1], [0, 0, 1, 1], [], []>} : vector<128x64xbf16>, vector<64x128xbf16>, vector<128x128xf32> -> vector<128x128xf32>
    %10 = arith.truncf %9 : vector<128x128xf32> to vector<128x128xbf16>
    %c0_8 = arith.constant 0 : index
    %c0_9 = arith.constant 0 : index
    %11 = vector.load %arg5[%c0_8, %c0_9] : memref<128x1xf32, #tpu.memory_space<vmem>>, vector<128x1xf32>
    %12 = arith.truncf %11 : vector<128x1xf32> to vector<128x1xbf16>
    %13 = vector.broadcast %12 : vector<128x1xbf16> to vector<128x128xbf16>
    %14 = arith.addf %10, %13 : vector<128x128xbf16>
    %cst_10 = arith.constant 0.000000e+00 : bf16
    %15 = vector.broadcast %cst_10 : bf16 to vector<128x128xbf16>
    %16 = arith.maximumf %14, %15 : vector<128x128xbf16>
    %c0_11 = arith.constant 0 : index
    %c0_12 = arith.constant 0 : index
    %17 = vector.load %arg6[%c0_11, %c0_12] : memref<256x128xbf16, #tpu.memory_space<vmem>>, vector<256x128xbf16>
    %cst_13 = arith.constant dense<0.000000e+00> : vector<256x128xf32>
    %18 = tpu.matmul %17, %16, %cst_13 {dimension_numbers = #tpu.dot_dimension_numbers<[1], [0], [0], [1], [0, 0, 1, 1], [], []>} : vector<256x128xbf16>, vector<128x128xbf16>, vector<256x128xf32> -> vector<256x128xf32>
    %19 = arith.truncf %18 : vector<256x128xf32> to vector<256x128xbf16>
    %c0_14 = arith.constant 0 : index
    %c0_15 = arith.constant 0 : index
    %20 = vector.load %arg7[%c0_14, %c0_15] : memref<256x1xf32, #tpu.memory_space<vmem>>, vector<256x1xf32>
    %21 = arith.truncf %20 : vector<256x1xf32> to vector<256x1xbf16>
    %22 = vector.broadcast %21 : vector<256x1xbf16> to vector<256x128xbf16>
    %23 = arith.addf %19, %22 : vector<256x128xbf16>
    %cst_16 = arith.constant 0.000000e+00 : bf16
    %24 = vector.broadcast %cst_16 : bf16 to vector<256x128xbf16>
    %25 = arith.maximumf %23, %24 : vector<256x128xbf16>
    %c0_17 = arith.constant 0 : index
    %c0_18 = arith.constant 0 : index
    %26 = vector.load %arg8[%c0_17, %c0_18] : memref<1024x256xbf16, #tpu.memory_space<vmem>>, vector<1024x256xbf16>
    %cst_19 = arith.constant dense<0.000000e+00> : vector<1024x128xf32>
    %27 = tpu.matmul %26, %25, %cst_19 {dimension_numbers = #tpu.dot_dimension_numbers<[1], [0], [0], [1], [0, 0, 1, 1], [], []>} : vector<1024x256xbf16>, vector<256x128xbf16>, vector<1024x128xf32> -> vector<1024x128xf32>
    %28 = arith.truncf %27 : vector<1024x128xf32> to vector<1024x128xbf16>
    %c0_20 = arith.constant 0 : index
    %c0_21 = arith.constant 0 : index
    %29 = vector.load %arg9[%c0_20, %c0_21] : memref<1024x1xf32, #tpu.memory_space<vmem>>, vector<1024x1xf32>
    %30 = arith.truncf %29 : vector<1024x1xf32> to vector<1024x1xbf16>
    %31 = vector.broadcast %30 : vector<1024x1xbf16> to vector<1024x128xbf16>
    %32 = arith.addf %28, %31 : vector<1024x128xbf16>
    %cst_22 = arith.constant 0.000000e+00 : bf16
    %33 = vector.broadcast %cst_22 : bf16 to vector<1024x128xbf16>
    %34 = arith.maximumf %32, %33 : vector<1024x128xbf16>
    %c0_23 = arith.constant 0 : index
    %c0_24 = arith.constant 0 : index
    %35 = vector.load %arg10[%c0_23, %c0_24] : memref<12x1024xbf16, #tpu.memory_space<vmem>>, vector<12x1024xbf16>
    %cst_25 = arith.constant dense<0.000000e+00> : vector<12x128xf32>
    %36 = tpu.matmul %35, %34, %cst_25 {dimension_numbers = #tpu.dot_dimension_numbers<[1], [0], [0], [1], [0, 0, 1, 1], [], []>} : vector<12x1024xbf16>, vector<1024x128xbf16>, vector<12x128xf32> -> vector<12x128xf32>
    %c0_26 = arith.constant 0 : index
    %c0_27 = arith.constant 0 : index
    %37 = vector.load %arg11[%c0_26, %c0_27] : memref<12x1xf32, #tpu.memory_space<vmem>>, vector<12x1xf32>
    %38 = vector.broadcast %37 : vector<12x1xf32> to vector<12x128xf32>
    %39 = arith.addf %36, %38 : vector<12x128xf32>
    %c0_28 = arith.constant 0 : index
    %c0_29 = arith.constant 0 : index
    %c0_30 = arith.constant 0 : index
    %40 = vector.load %arg12[%c0_28, %c0_29, %c0_30] : memref<1x12x128xf32, #tpu.memory_space<vmem>>, vector<1x12x128xf32>
    %41 = vector.shape_cast %40 : vector<1x12x128xf32> to vector<12x128xf32>
    %42 = vector.shape_cast %39 : vector<12x128xf32> to vector<1x12x128xf32>
    tpu.vector_store %arg12[%c0_28, %c0_29, %c0_30], %42 {strides = array<i32>} : memref<1x12x128xf32, #tpu.memory_space<vmem>>, vector<1x12x128xf32>,
    return
  }
  func.func @transform_0(%arg0: i32, %arg1: i32) -> (i32, i32, i32) {
    %c0_i32 = arith.constant 0 : i32
    %c0_i32_0 = arith.constant 0 : i32
    return %arg0, %c0_i32, %arg1 : i32, i32, i32
  }
  func.func @transform_1(%arg0: i32, %arg1: i32) -> (i32, i32) {
    %c0_i32 = arith.constant 0 : i32
    %c0_i32_0 = arith.constant 0 : i32
    %c0_i32_1 = arith.constant 0 : i32
    return %c0_i32, %c0_i32_0 : i32, i32
  }
  func.func @transform_2(%arg0: i32, %arg1: i32) -> (i32, i32) {
    %c0_i32 = arith.constant 0 : i32
    %c0_i32_0 = arith.constant 0 : i32
    %c0_i32_1 = arith.constant 0 : i32
    return %c0_i32, %c0_i32_0 : i32, i32
  }
  func.func @transform_3(%arg0: i32, %arg1: i32) -> (i32, i32) {
    %c0_i32 = arith.constant 0 : i32
    %c0_i32_0 = arith.constant 0 : i32
    %c0_i32_1 = arith.constant 0 : i32
    return %c0_i32, %c0_i32_0 : i32, i32
  }
  func.func @transform_4(%arg0: i32, %arg1: i32) -> (i32, i32) {
    %c0_i32 = arith.constant 0 : i32
    %c0_i32_0 = arith.constant 0 : i32
    %c0_i32_1 = arith.constant 0 : i32
    return %c0_i32, %c0_i32_0 : i32, i32
  }
  func.func @transform_5(%arg0: i32, %arg1: i32) -> (i32, i32) {
    %c0_i32 = arith.constant 0 : i32
    %c0_i32_0 = arith.constant 0 : i32
    %c0_i32_1 = arith.constant 0 : i32
    return %c0_i32, %c0_i32_0 : i32, i32
  }
  func.func @transform_6(%arg0: i32, %arg1: i32) -> (i32, i32) {
    %c0_i32 = arith.constant 0 : i32
    %c0_i32_0 = arith.constant 0 : i32
    %c0_i32_1 = arith.constant 0 : i32
    return %c0_i32, %c0_i32_0 : i32, i32
  }
  func.func @transform_7(%arg0: i32, %arg1: i32) -> (i32, i32) {
    %c0_i32 = arith.constant 0 : i32
    %c0_i32_0 = arith.constant 0 : i32
    %c0_i32_1 = arith.constant 0 : i32
    return %c0_i32, %c0_i32_0 : i32, i32
  }
  func.func @transform_8(%arg0: i32, %arg1: i32) -> (i32, i32) {
    %c0_i32 = arith.constant 0 : i32
    %c0_i32_0 = arith.constant 0 : i32
    %c0_i32_1 = arith.constant 0 : i32
    return %c0_i32, %c0_i32_0 : i32, i32
  }
  func.func @transform_9(%arg0: i32, %arg1: i32) -> (i32, i32) {
    %c0_i32 = arith.constant 0 : i32
    %c0_i32_0 = arith.constant 0 : i32
    %c0_i32_1 = arith.constant 0 : i32
    return %c0_i32, %c0_i32_0 : i32, i32
  }
  func.func @transform_10(%arg0: i32, %arg1: i32) -> (i32, i32, i32) {
    %c0_i32 = arith.constant 0 : i32
    %c0_i32_0 = arith.constant 0 : i32
    return %arg0, %c0_i32, %arg1 : i32, i32, i32
  }
}

module attributes {stable_mosaic.version = 11 : i64} {
  func.func @_generator_kernel(%arg0: i32, %arg1: i32, %arg2: memref<1x4x128xf32, #tpu.memory_space<vmem>>, %arg3: memref<64x4xbf16, #tpu.memory_space<vmem>>, %arg4: memref<128x64xbf16, #tpu.memory_space<vmem>>, %arg5: memref<128x1xf32, #tpu.memory_space<vmem>>, %arg6: memref<256x128xbf16, #tpu.memory_space<vmem>>, %arg7: memref<256x1xf32, #tpu.memory_space<vmem>>, %arg8: memref<1024x256xbf16, #tpu.memory_space<vmem>>, %arg9: memref<1024x1xf32, #tpu.memory_space<vmem>>, %arg10: memref<12x1024xbf16, #tpu.memory_space<vmem>>, %arg11: memref<12x1xf32, #tpu.memory_space<vmem>>, %arg12: memref<1x12x128xf32, #tpu.memory_space<vmem>>) attributes {dimension_semantics = [#tpu.dimension_semantics<parallel>, #tpu.dimension_semantics<parallel>], iteration_bounds = array<i64: 2, 2>, scalar_prefetch = 0 : i64, scratch_operands = 0 : i64, tpu.core_type = #tpu.core_type<tc>, window_params = [{transform_indices = @transform_0, window_bounds = array<i64: 1, 4, 128>}, {pipeline_mode = #tpu.pipeline_mode<synchronous>, transform_indices = @transform_1, window_bounds = array<i64: 64, 4>}, {pipeline_mode = #tpu.pipeline_mode<synchronous>, transform_indices = @transform_2, window_bounds = array<i64: 128, 64>}, {pipeline_mode = #tpu.pipeline_mode<synchronous>, transform_indices = @transform_3, window_bounds = array<i64: 128, 1>}, {pipeline_mode = #tpu.pipeline_mode<synchronous>, transform_indices = @transform_4, window_bounds = array<i64: 256, 128>}, {pipeline_mode = #tpu.pipeline_mode<synchronous>, transform_indices = @transform_5, window_bounds = array<i64: 256, 1>}, {pipeline_mode = #tpu.pipeline_mode<synchronous>, transform_indices = @transform_6, window_bounds = array<i64: 1024, 256>}, {pipeline_mode = #tpu.pipeline_mode<synchronous>, transform_indices = @transform_7, window_bounds = array<i64: 1024, 1>}, {pipeline_mode = #tpu.pipeline_mode<synchronous>, transform_indices = @transform_8, window_bounds = array<i64: 12, 1024>}, {pipeline_mode = #tpu.pipeline_mode<synchronous>, transform_indices = @transform_9, window_bounds = array<i64: 12, 1>}, {transform_indices = @transform_10, window_bounds = array<i64: 1, 12, 128>}]} {
    %c0 = arith.constant 0 : index
    %c0_0 = arith.constant 0 : index
    %c0_1 = arith.constant 0 : index
    %0 = vector.load %arg2[%c0, %c0_0, %c0_1] : memref<1x4x128xf32, #tpu.memory_space<vmem>>, vector<1x4x128xf32>
    %1 = vector.shape_cast %0 : vector<1x4x128xf32> to vector<4x128xf32>
    %2 = arith.truncf %1 : vector<4x128xf32> to vector<4x128xbf16>
    %c0_2 = arith.constant 0 : index
    %c0_3 = arith.constant 0 : index
    %3 = vector.load %arg3[%c0_2, %c0_3] : memref<64x4xbf16, #tpu.memory_space<vmem>>, vector<64x4xbf16>
    %cst = arith.constant dense<0.000000e+00> : vector<64x128xf32>
    %4 = tpu.matmul %3, %2, %cst {dimension_numbers = #tpu.dot_dimension_numbers<[1], [0], [0], [1], [0, 0, 1, 1], [], []>} : vector<64x4xbf16>, vector<4x128xbf16>, vector<64x128xf32> -> vector<64x128xf32>
    %cst_4 = arith.constant 0.000000e+00 : f32
    %5 = vector.broadcast %cst_4 : f32 to vector<64x128xf32>
    %6 = arith.maximumf %4, %5 : vector<64x128xf32>
    %7 = arith.truncf %6 : vector<64x128xf32> to vector<64x128xbf16>
    %c0_5 = arith.constant 0 : index
    %c0_6 = arith.constant 0 : index
    %8 = vector.load %arg4[%c0_5, %c0_6] : memref<128x64xbf16, #tpu.memory_space<vmem>>, vector<128x64xbf16>
    %cst_7 = arith.constant dense<0.000000e+00> : vector<128x128xf32>
    %9 = tpu.matmul %8, %7, %cst_7 {dimension_numbers = #tpu.dot_dimension_numbers<[1], [0], [0], [1], [0, 0, 1, 1], [], []>} : vector<128x64xbf16>, vector<64x128xbf16>, vector<128x128xf32> -> vector<128x128xf32>
    %10 = arith.truncf %9 : vector<128x128xf32> to vector<128x128xbf16>
    %c0_8 = arith.constant 0 : index
    %c0_9 = arith.constant 0 : index
    %11 = vector.load %arg5[%c0_8, %c0_9] : memref<128x1xf32, #tpu.memory_space<vmem>>, vector<128x1xf32>
    %12 = arith.truncf %11 : vector<128x1xf32> to vector<128x1xbf16>
    %13 = vector.broadcast %12 : vector<128x1xbf16> to vector<128x128xbf16>
    %14 = arith.addf %10, %13 : vector<128x128xbf16>
    %cst_10 = arith.constant 0.000000e+00 : bf16
    %15 = vector.broadcast %cst_10 : bf16 to vector<128x128xbf16>
    %16 = arith.maximumf %14, %15 : vector<128x128xbf16>
    %c0_11 = arith.constant 0 : index
    %c0_12 = arith.constant 0 : index
    %17 = vector.load %arg6[%c0_11, %c0_12] : memref<256x128xbf16, #tpu.memory_space<vmem>>, vector<256x128xbf16>
    %cst_13 = arith.constant dense<0.000000e+00> : vector<256x128xf32>
    %18 = tpu.matmul %17, %16, %cst_13 {dimension_numbers = #tpu.dot_dimension_numbers<[1], [0], [0], [1], [0, 0, 1, 1], [], []>} : vector<256x128xbf16>, vector<128x128xbf16>, vector<256x128xf32> -> vector<256x128xf32>
    %19 = arith.truncf %18 : vector<256x128xf32> to vector<256x128xbf16>
    %c0_14 = arith.constant 0 : index
    %c0_15 = arith.constant 0 : index
    %20 = vector.load %arg7[%c0_14, %c0_15] : memref<256x1xf32, #tpu.memory_space<vmem>>, vector<256x1xf32>
    %21 = arith.truncf %20 : vector<256x1xf32> to vector<256x1xbf16>
    %22 = vector.broadcast %21 : vector<256x1xbf16> to vector<256x128xbf16>
    %23 = arith.addf %19, %22 : vector<256x128xbf16>
    %cst_16 = arith.constant 0.000000e+00 : bf16
    %24 = vector.broadcast %cst_16 : bf16 to vector<256x128xbf16>
    %25 = arith.maximumf %23, %24 : vector<256x128xbf16>
    %c0_17 = arith.constant 0 : index
    %c0_18 = arith.constant 0 : index
    %26 = vector.load %arg8[%c0_17, %c0_18] : memref<1024x256xbf16, #tpu.memory_space<vmem>>, vector<1024x256xbf16>
    %cst_19 = arith.constant dense<0.000000e+00> : vector<1024x128xf32>
    %27 = tpu.matmul %26, %25, %cst_19 {dimension_numbers = #tpu.dot_dimension_numbers<[1], [0], [0], [1], [0, 0, 1, 1], [], []>} : vector<1024x256xbf16>, vector<256x128xbf16>, vector<1024x128xf32> -> vector<1024x128xf32>
    %28 = arith.truncf %27 : vector<1024x128xf32> to vector<1024x128xbf16>
    %c0_20 = arith.constant 0 : index
    %c0_21 = arith.constant 0 : index
    %29 = vector.load %arg9[%c0_20, %c0_21] : memref<1024x1xf32, #tpu.memory_space<vmem>>, vector<1024x1xf32>
    %30 = arith.truncf %29 : vector<1024x1xf32> to vector<1024x1xbf16>
    %31 = vector.broadcast %30 : vector<1024x1xbf16> to vector<1024x128xbf16>
    %32 = arith.addf %28, %31 : vector<1024x128xbf16>
    %cst_22 = arith.constant 0.000000e+00 : bf16
    %33 = vector.broadcast %cst_22 : bf16 to vector<1024x128xbf16>
    %34 = arith.maximumf %32, %33 : vector<1024x128xbf16>
    %c0_23 = arith.constant 0 : index
    %c0_24 = arith.constant 0 : index
    %35 = vector.load %arg10[%c0_23, %c0_24] : memref<12x1024xbf16, #tpu.memory_space<vmem>>, vector<12x1024xbf16>
    %cst_25 = arith.constant dense<0.000000e+00> : vector<12x128xf32>
    %36 = tpu.matmul %35, %34, %cst_25 {dimension_numbers = #tpu.dot_dimension_numbers<[1], [0], [0], [1], [0, 0, 1, 1], [], []>} : vector<12x1024xbf16>, vector<1024x128xbf16>, vector<12x128xf32> -> vector<12x128xf32>
    %c0_26 = arith.constant 0 : index
    %c0_27 = arith.constant 0 : index
    %37 = vector.load %arg11[%c0_26, %c0_27] : memref<12x1xf32, #tpu.memory_space<vmem>>, vector<12x1xf32>
    %38 = vector.broadcast %37 : vector<12x1xf32> to vector<12x128xf32>
    %39 = arith.addf %36, %38 : vector<12x128xf32>
    %c0_28 = arith.constant 0 : index
    %c0_29 = arith.constant 0 : index
    %c0_30 = arith.constant 0 : index
    %40 = vector.load %arg12[%c0_28, %c0_29, %c0_30] : memref<1x12x128xf32, #tpu.memory_space<vmem>>, vector<1x12x128xf32>
    %41 = vector.shape_cast %40 : vector<1x12x128xf32> to vector<12x128xf32>
    %42 = vector.shape_cast %39 : vector<12x128xf32> to vector<1x12x128xf32>
    tpu.vector_store %arg12[%c0_28, %c0_29, %c0_30], %42 {strides = array<i32>} : memref<1x12x128xf32, #tpu.memory_space<vmem>>, vector<1x12x128xf32>,
    return
  }
  func.func @transform_0(%arg0: i32, %arg1: i32) -> (i32, i32, i32) {
    %c0_i32 = arith.constant 0 : i32
    %c0_i32_0 = arith.constant 0 : i32
    return %arg0, %c0_i32, %arg1 : i32, i32, i32
  }
  func.func @transform_1(%arg0: i32, %arg1: i32) -> (i32, i32) {
    %c0_i32 = arith.constant 0 : i32
    %c0_i32_0 = arith.constant 0 : i32
    %c0_i32_1 = arith.constant 0 : i32
    return %c0_i32, %c0_i32_0 : i32, i32
  }
  func.func @transform_2(%arg0: i32, %arg1: i32) -> (i32, i32) {
    %c0_i32 = arith.constant 0 : i32
    %c0_i32_0 = arith.constant 0 : i32
    %c0_i32_1 = arith.constant 0 : i32
    return %c0_i32, %c0_i32_0 : i32, i32
  }
  func.func @transform_3(%arg0: i32, %arg1: i32) -> (i32, i32) {
    %c0_i32 = arith.constant 0 : i32
    %c0_i32_0 = arith.constant 0 : i32
    %c0_i32_1 = arith.constant 0 : i32
    return %c0_i32, %c0_i32_0 : i32, i32
  }
  func.func @transform_4(%arg0: i32, %arg1: i32) -> (i32, i32) {
    %c0_i32 = arith.constant 0 : i32
    %c0_i32_0 = arith.constant 0 : i32
    %c0_i32_1 = arith.constant 0 : i32
    return %c0_i32, %c0_i32_0 : i32, i32
  }
  func.func @transform_5(%arg0: i32, %arg1: i32) -> (i32, i32) {
    %c0_i32 = arith.constant 0 : i32
    %c0_i32_0 = arith.constant 0 : i32
    %c0_i32_1 = arith.constant 0 : i32
    return %c0_i32, %c0_i32_0 : i32, i32
  }
  func.func @transform_6(%arg0: i32, %arg1: i32) -> (i32, i32) {
    %c0_i32 = arith.constant 0 : i32
    %c0_i32_0 = arith.constant 0 : i32
    %c0_i32_1 = arith.constant 0 : i32
    return %c0_i32, %c0_i32_0 : i32, i32
  }
  func.func @transform_7(%arg0: i32, %arg1: i32) -> (i32, i32) {
    %c0_i32 = arith.constant 0 : i32
    %c0_i32_0 = arith.constant 0 : i32
    %c0_i32_1 = arith.constant 0 : i32
    return %c0_i32, %c0_i32_0 : i32, i32
  }
  func.func @transform_8(%arg0: i32, %arg1: i32) -> (i32, i32) {
    %c0_i32 = arith.constant 0 : i32
    %c0_i32_0 = arith.constant 0 : i32
    %c0_i32_1 = arith.constant 0 : i32
    return %c0_i32, %c0_i32_0 : i32, i32
  }
  func.func @transform_9(%arg0: i32, %arg1: i32) -> (i32, i32) {
    %c0_i32 = arith.constant 0 : i32
    %c0_i32_0 = arith.constant 0 : i32
    %c0_i32_1 = arith.constant 0 : i32
    return %c0_i32, %c0_i32_0 : i32, i32
  }
  func.func @transform_10(%arg0: i32, %arg1: i32) -> (i32, i32, i32) {
    %c0_i32 = arith.constant 0 : i32
    %c0_i32_0 = arith.constant 0 : i32
    return %arg0, %c0_i32, %arg1 : i32, i32, i32
  }
}

</mosaic_0001>

<bundles_post_ra>
// kernel: tpu_custom_call.1
= control target key start
LH: loop header
LB: loop body
LE: loop exit
PB: predicated region body
PF: predicated region fallthrough
CT: control target
= control target key end

     0   :  { %s6825_s13 = smov 0   ;;  %s6827_s14 = smov 0   ;;  %s9608_s0 = inlined_call_operand.vmem [shape: f32[2,4,256], index: 0, kind: input, shape index: {}]   ;;  %s9609_s1 = inlined_call_operand.vmem [shape: bf16[64,4], index: 1, kind: input, shape index: {}]   ;;  %s9610_s2 = inlined_call_operand.vmem [shape: bf16[128,64], index: 2, kind: input, shape index: {}]   ;;  %s9611_s3 = inlined_call_operand.vmem [shape: f32[128,1], index: 3, kind: input, shape index: {}]   ;;  %s9612_s4 = inlined_call_operand.vmem [shape: bf16[256,128], index: 4, kind: input, shape index: {}]   ;;  %s9613_s5 = inlined_call_operand.vmem [shape: f32[256,1], index: 5, kind: input, shape index: {}]   ;;  %s9614_s6 = inlined_call_operand.vmem [shape: bf16[1024,256], index: 6, kind: input, shape index: {}]   ;;  %s9615_s7 = inlined_call_operand.vmem [shape: f32[1024,1], index: 7, kind: input, shape index: {}]   ;;  %s9616_s8 = inlined_call_operand.vmem [shape: bf16[12,1024], index: 8, kind: input, shape index: {}]   ;;  %s9617_s9 = inlined_call_operand.vmem [shape: f32[12,1], index: 9, kind: input, shape index: {}]   ;;  %s9618_s10 = inlined_call_operand.vmem [shape: f32[2,12,256], index: 10, kind: output, shape index: {}]  }
   0x1   :  { %s6829_s15 = smov 0   ;;  %s6831_s16 = smov 0  }
   0x2   :  { %s6833_s17 = smov 0   ;;  %s6835_s18 = smov 0  }
   0x3   :  { %s6837_s19 = smov 0  }
   0x4 LB: > { %9623 = sst [smem:[#allocation3_spill]] %s6758_s17  ;;  %s29_s20 = sadd.s32 1, %s6758_s17  ;;  %s6766_s19 = sphi %s6837_s19, %s20_s19   ;;  %s6762_s18 = sphi %s6835_s18, %s9819_s18   ;;  %s6758_s17 = sphi %s6833_s17, %s9818_s17   ;;  %s6754_s16 = sphi %s6831_s16, %s9817_s16   ;;  %s6750_s15 = sphi %s6829_s15, %s9816_s15   ;;  %s6746_s14 = sphi %s6827_s14, %s9821_s14   ;;  %s6742_s13 = sphi %s6825_s13, %s9820_s13  }
   0x5   : > { %9624 = sst [smem:[#allocation4_spill]] %s6762_s18  ;;  %p30_p0 = scmp.ge.s32.totalorder %s29_s20, 2 }
   0x6   : > { %s32_s21 = sadd.s32 1, %s6762_s18  ;;  %s5789_s22 = sadd.s32 4294967295, %s6766_s19  }
   0x7   : > { %p268_p1 = scmp.ne.s32.totalorder %s6746_s14, %s6742_s13  ;;  %s9823_s20 = smov (%p30_p0, %s29_s20), 0 }
   0x8   : > { %9625 = sst [smem:[#allocation5_spill]] %s9823_s20  ;;  %s9825_s21 = smov (!%p30_p0, %s32_s21), %s6762_s18 }
   0x9   : > { %s254_s23 = ssub.s32 %s6758_s17, %s9823_s20  ;;  %p269_p2 = scmp.eq.s32.totalorder %s5789_s22, 3 }
   0xa   : > { %p34_p3 = scmp.ge.s32.totalorder %s9825_s21, 2  ;;  %p5793_p4 = scmp.ge.s32.totalorder %s6766_s19, 1 }
   0xb   : > { %p6871_p5 = por %p269_p2, %p268_p1  ;;  %p331_p6 = scmp.lt.s32.totalorder %s6766_s19, 5 }
   0xc   : > { %s9827_s21 = smov (%p34_p3, %s9825_s21), 0  ;;  %s258_s27 = sadd.s32 1, %s6746_s14 }
   0xd   : > { %9627 = sst [smem:[#allocation6_spill]] %s9827_s21  ;;  %p332_p7 = pnand %p5793_p4, %p331_p6 }
   0xe   : > { %s253_s25 = ssub.s32 %s6762_s18, %s9827_s21 }
   0xf   : > { %s255_s26 = sor.u32 %s254_s23, %s253_s25 }
  0x10   : > { %p256_p8 = scmp.eq.s32.totalorder %s255_s26, 0  ;;  %335 = sbr.rel (%p332_p7) target bundleno = 1900 (0x76c), region = 60 }
  0x12   : > { %s6882_s28 = scalar_select %p256_p8, %s6746_s14, %s258_s27  }
  0x14   : > { %9628 = sst [smem:[#allocation7_spill]] %s6882_s28 }
  0x15   : > { %v628_v0 = vld [vmem:[%s9611_s3 + $0x70] sm:$0xff]  ;;  %v626_v1 = vld [vmem:[%s9611_s3 + $0x60] sm:$0xff]  ;;  %p371_p9 = scmp.lt.s32.totalorder %s6754_s16, 1  ;;  %p373_p10 = scmp.lt.s32.totalorder %s6750_s15, 1  ;;  %v6768_v3 = vmov 0   ;;  %v629_v7 = vld [vmem:[%s9611_s3 + $0x78] sm:$0xff] }
  0x16   : > { %v624_v2 = vld [vmem:[%s9611_s3 + $0x50] sm:$0xff]  ;;  %6711 = vset.pattern.permute.xlu2 %v6768_v3  ;;  %6710 = vset.pattern.permute.xlu1 %v6768_v3  ;;  %v644_v4 = vpack.c.bf16 %v628_v0, %v628_v0  ;;  %v642_v5 = vpack.c.bf16 %v626_v1, %v626_v1  ;;  %v627_v8 = vld [vmem:[%s9611_s3 + $0x68] sm:$0xff]  ;;  %v625_v9 = vld [vmem:[%s9611_s3 + $0x58] sm:$0xff]  ;;  %v645_v10 = vpack.c.bf16 %v629_v7, %v629_v7  ;;  %vm423_vm0 = vcmask 1041408  }
  0x17   : > { %v640_v6 = vpack.c.bf16 %v624_v2, %v624_v2  ;;  %6709 = vset.pattern.permute.xlu0 %v6768_v3  ;;  %s372_s23 = scalar_select %p371_p9, %s6754_s16, 1  ;;  %v643_v11 = vpack.c.bf16 %v627_v8, %v627_v8  ;;  %v641_v12 = vpack.c.bf16 %v625_v9, %v625_v9  ;;  %v6472_v16 = vld [vmem:[%s9609_s1 + $0x10] sm:$0xff]  ;;  %vm410_vm1 = vcmask 31744   ;;  %v623_v17 = vld [vmem:[%s9611_s3 + $0x48] sm:$0xff]  ;;  %v622_v18 = vld [vmem:[%s9611_s3 + $0x40] sm:$0xff] }
  0x18   : > { %774 = vperm.xlu0 %6709, %v644_v4   ;;  %756 = vperm.xlu1 %6710, %v642_v5   ;;  %s374_s25 = scalar_select %p373_p10, %s6750_s15, 1  ;;  %v6470_v19 = vld [vmem:[%s9609_s1] sm:$0xff]  ;;  %v620_v20 = vld [vmem:[%s9611_s3 + $0x30] sm:$0xff]  ;;  %v639_v21 = vpack.c.bf16 %v623_v17, %v623_v17  ;;  %v638_v22 = vpack.c.bf16 %v622_v18, %v622_v18  ;;  %v621_v24 = vld [vmem:[%s9611_s3 + $0x38] sm:$0xff]  ;;  %vm524_vm2 = vcmask 523264  }
  0x19   : > { %738 = vperm.xlu2 %6711, %v640_v6   ;;  %s5795_s30 = sshll.u32 %s372_s23, 1  ;;  %v636_v23 = vpack.c.bf16 %v620_v20, %v620_v20  ;;  %v618_v25 = vld [vmem:[%s9611_s3 + $0x20] sm:$0xff]  ;;  %v619_v26 = vld [vmem:[%s9611_s3 + $0x28] sm:$0xff]  ;;  %v637_v27 = vpack.c.bf16 %v621_v24, %v621_v24  ;;  %v6473_v30 = vld [vmem:[%s9609_s1 + $0x18] sm:$0xff] }
  0x1a   : > { %s376_s22 = sadd.s32 %s5795_s30, %s374_s25  ;;  %v634_v28 = vpack.c.bf16 %v618_v25, %v618_v25  ;;  %v635_v29 = vpack.c.bf16 %v619_v26, %v619_v26  ;;  %v617_v31 = vld [vmem:[%s9611_s3 + $0x18] sm:$0xff]  ;;  %v616_v32 = vld [vmem:[%s9611_s3 + $0x10] sm:$0xff]  ;;  %v6471_v33 = vld [vmem:[%s9609_s1 + $0x8] sm:$0xff] }
  0x1b   : > { %s5796_s20 = sshll.u32 %s376_s22, 2  ;;  %v614_v34 = vld [vmem:[%s9611_s3] sm:$0xff]  ;;  %v633_v35 = vpack.c.bf16 %v617_v31, %v617_v31  ;;  %v632_v36 = vpack.c.bf16 %v616_v32, %v616_v32  ;;  %v1157_v38 = vld [vmem:[%s9613_s5 + $0x70] sm:$0xff]  ;;  %v615_v39 = vld [vmem:[%s9611_s3 + $0x8] sm:$0xff] }
  0x1c   : > { %s378_s28 = scalar_lea.vmem %s9608_s0, %s5796_s20  ;;  %v630_v37 = vpack.c.bf16 %v614_v34, %v614_v34  ;;  %v1158_v40 = vld [vmem:[%s9613_s5 + $0x78] sm:$0xff]  ;;  %v1189_v41 = vpack.c.bf16 %v1157_v38, %v1157_v38  ;;  %v631_v42 = vpack.c.bf16 %v615_v39, %v615_v39  ;;  %v1156_v44 = vld [vmem:[%s9613_s5 + $0x68] sm:$0xff]  ;;  %v1155_v45 = vld [vmem:[%s9613_s5 + $0x60] sm:$0xff]  ;;  %s368_s20 = sand.u32 1, %s6742_s13  }
  0x1d   : > { %v380_v13 = vld [vmem:[%s378_s28] sm:$0xf]  ;;  %v1190_v43 = vpack.c.bf16 %v1158_v40, %v1158_v40  ;;  %v1153_v46 = vld [vmem:[%s9613_s5 + $0x50] sm:$0xff]  ;;  %v1188_v47 = vpack.c.bf16 %v1156_v44, %v1156_v44  ;;  %v1187_v48 = vpack.c.bf16 %v1155_v45, %v1155_v45  ;;  %v1154_v51 = vld [vmem:[%s9613_s5 + $0x58] sm:$0xff]  ;;  %s5794_s28 = sshll.u32 %s368_s20, 4  ;;  %s6466_s13 = sshll.u32 (%p6871_p5), %s6754_s16, 2 }
  0x1e   : > { %v381_v14 = vpack.c.bf16 %v380_v13, %v380_v13  ;;  %v1185_v49 = vpack.c.bf16 %v1153_v46, %v1153_v46  ;;  %v1151_v50 = vld [vmem:[%s9613_s5 + $0x40] sm:$0xff]  ;;  %v1152_v52 = vld [vmem:[%s9613_s5 + $0x48] sm:$0xff]  ;;  %v1186_v54 = vpack.c.bf16 %v1154_v51, %v1154_v51  ;;  %v1150_v56 = vld [vmem:[%s9613_s5 + $0x38] sm:$0xff]  ;;  %s370_s21 = scalar_lea.vmem [#allocation2], %s5794_s28  ;;  %s5679_s29 = sadd.s32 (%p6871_p5), %s6750_s15, %s6466_s13 }
  0x1f   : > { %v1183_v53 = vpack.c.bf16 %v1151_v50, %v1151_v50  ;;  %v1184_v55 = vpack.c.bf16 %v1152_v52, %v1152_v52  ;;  %v1149_v57 = vld [vmem:[%s9613_s5 + $0x30] sm:$0xff]  ;;  %v1147_v58 = vld [vmem:[%s9613_s5 + $0x20] sm:$0xff]  ;;  %v1182_v59 = vpack.c.bf16 %v1150_v56, %v1150_v56  ;;  %v1148_v63 = vld [vmem:[%s9613_s5 + $0x28] sm:$0xff]  ;;  %s6467_s30 = sshll.u32 (%p6871_p5), %s5679_s29, 3 }
  0x20   : > { %783 = vperm.xlu0 %6709, %v645_v10   ;;  %765 = vperm.xlu1 %6710, %v643_v11   ;;  %v425_v15 = vsel %vm423_vm0, %v381_v14, 0  ;;  %v1181_v60 = vpack.c.bf16 %v1149_v57, %v1149_v57  ;;  %v1179_v61 = vpack.c.bf16 %v1147_v58, %v1147_v58  ;;  %v1145_v62 = vld [vmem:[%s9613_s5 + $0x10] sm:$0xff]  ;;  %v1146_v0 = vld [vmem:[%s9613_s5 + $0x18] sm:$0xff]  ;;  %v1180_v2 = vpack.c.bf16 %v1148_v63, %v1148_v63  ;;  %v1143_v6 = vld [vmem:[%s9613_s5] sm:$0xff]  ;;  %s5681_s22 = scalar_lea.vmem (%p6871_p5), %s9618_s10, %s6467_s30 }
  0x21   : > { %747 = vperm.xlu2 %6711, %v641_v12   ;;  %6634 = vmatpush.bf16.msra.mxu2 %v425_v15  ;;  %v1177_v1 = vpack.c.bf16 %v1145_v62, %v1145_v62  ;;  %v1178_v3 = vpack.c.bf16 %v1146_v0, %v1146_v0  ;;  %v1174_v4 = vld [vmem:[%s9613_s5 + $0xf8] sm:$0xff]  ;;  %v1173_v5 = vld [vmem:[%s9613_s5 + $0xf0] sm:$0xff]  ;;  %v1175_v9 = vpack.c.bf16 %v1143_v6, %v1143_v6  ;;  %v1171_v10 = vld [vmem:[%s9613_s5 + $0xe0] sm:$0xff] }
  0x22   : > { %434 = vmatpush.bf16.msra.mxu0 %v425_v15  ;;  %v1206_v7 = vpack.c.bf16 %v1174_v4, %v1174_v4  ;;  %v1205_v8 = vpack.c.bf16 %v1173_v5, %v1173_v5  ;;  %v1144_v11 = vld [vmem:[%s9613_s5 + $0x8] sm:$0xff]  ;;  %v1203_v13 = vpack.c.bf16 %v1171_v10, %v1171_v10  ;;  %v1169_v17 = vld [vmem:[%s9613_s5 + $0xd0] sm:$0xff]  ;;  %v1167_v18 = vld [vmem:[%s9613_s5 + $0xc0] sm:$0xff] }
  0x23   : > { %v1172_v12 = vld [vmem:[%s9613_s5 + $0xe8] sm:$0xff]  ;;  %v1176_v14 = vpack.c.bf16 %v1144_v11, %v1144_v11  ;;  %v1201_v20 = vpack.c.bf16 %v1169_v17, %v1169_v17  ;;  %v1166_v24 = vld [vmem:[%s9613_s5 + $0xb8] sm:$0xff]  ;;  %v1159_v34 = vld [vmem:[%s9613_s5 + $0x80] sm:$0xff] }
  0x24   : > { %5815 = vmatmul.msk.bf16.vlgmr.msra.gmra.mxu2 %vm410_vm1, %v6472_v16  ;;  %v1204_v15 = vpack.c.bf16 %v1172_v12, %v1172_v12  ;;  %v1170_v16 = vld [vmem:[%s9613_s5 + $0xd8] sm:$0xff]  ;;  %v3258_v40 = vld [vmem:[%s9615_s7 + $0x8] sm:$0xff]  ;;  %v3261_v46 = vld [vmem:[%s9615_s7 + $0x20] sm:$0xff] }
  0x25   : > { %5813 = vmatmul.msk.bf16.vlgmr.msra.gmra.mxu0 %vm410_vm1, %v6470_v19  ;;  %v1202_v19 = vpack.c.bf16 %v1170_v16, %v1170_v16  ;;  %v3264_v52 = vld [vmem:[%s9615_s7 + $0x38] sm:$0xff]  ;;  %v3270_v4 = vld [vmem:[%s9615_s7 + $0x68] sm:$0xff]  ;;  %v3269_v5 = vld [vmem:[%s9615_s7 + $0x60] sm:$0xff] }
  0x26   : > { %v3268_v62 = vld [vmem:[%s9615_s7 + $0x58] sm:$0xff]  ;;  %v3271_v6 = vld [vmem:[%s9615_s7 + $0x70] sm:$0xff]  ;;  %v3273_v11 = vld [vmem:[%s9615_s7 + $0x80] sm:$0xff] }
  0x27   : > { %v3272_v12 = vld [vmem:[%s9615_s7 + $0x78] sm:$0xff] }
  0x28   : > { %729 = vperm.xlu1 %6710, %v639_v21   ;;  %720 = vperm.xlu0 %6709, %v638_v22   ;;  %v1199_v21 = vpack.c.bf16 %v1167_v18, %v1167_v18  ;;  %v1165_v22 = vld [vmem:[%s9613_s5 + $0xb0] sm:$0xff]  ;;  %v3400_v16 = vpack.c.bf16 %v3272_v12, %v3272_v12 }
  0x29   : > { %702 = vperm.xlu2 %6711, %v636_v23   ;;  %v1168_v23 = vld [vmem:[%s9613_s5 + $0xc8] sm:$0xff]  ;;  %v1197_v25 = vpack.c.bf16 %v1165_v22, %v1165_v22  ;;  %v3275_v22 = vld [vmem:[%s9615_s7 + $0x90] sm:$0xff] }
  0x2a   : > { %v1200_v26 = vpack.c.bf16 %v1168_v23, %v1168_v23 }
  0x30   : > { %711 = vperm.xlu0 %6709, %v637_v27   ;;  %684 = vperm.xlu1 %6710, %v634_v28   ;;  %v1198_v27 = vpack.c.bf16 %v1166_v24, %v1166_v24  ;;  %v1164_v28 = vld [vmem:[%s9613_s5 + $0xa8] sm:$0xff]  ;;  %v3277_v24 = vld [vmem:[%s9615_s7 + $0xa0] sm:$0xff] }
  0x31   : > { %693 = vperm.xlu2 %6711, %v635_v29   ;;  %v1163_v29 = vld [vmem:[%s9613_s5 + $0xa0] sm:$0xff]  ;;  %v1196_v31 = vpack.c.bf16 %v1164_v28, %v1164_v28  ;;  %v3403_v28 = vpack.c.bf16 %v3275_v22, %v3275_v22 }
  0x32   : > { %v1195_v32 = vpack.c.bf16 %v1163_v29, %v1163_v29  ;;  %v3301_v22 = vld [vmem:[%s9615_s7 + $0x160] sm:$0xff] }
  0x34   : > { %5816 = vmatmul.msk.bf16.gmra.mxu2 %vm410_vm1, %v6473_v30  ;;  %v1161_v30 = vld [vmem:[%s9613_s5 + $0x90] sm:$0xff] }
  0x35   : > { %5814 = vmatmul.msk.bf16.gmra.mxu0 %vm410_vm1, %v6471_v33  ;;  %v1193_v33 = vpack.c.bf16 %v1161_v30, %v1161_v30  ;;  %v3405_v30 = vpack.c.bf16 %v3277_v24, %v3277_v24 }
  0x38   : > { %675 = vperm.xlu1 %6710, %v633_v35   ;;  %666 = vperm.xlu0 %6709, %v632_v36   ;;  %v1162_v35 = vld [vmem:[%s9613_s5 + $0x98] sm:$0xff]  ;;  %v1160_v36 = vld [vmem:[%s9613_s5 + $0x88] sm:$0xff] }
  0x39   : > { %648 = vperm.xlu2 %6711, %v630_v37   ;;  %v1191_v37 = vpack.c.bf16 %v1159_v34, %v1159_v34  ;;  %v1194_v38 = vpack.c.bf16 %v1162_v35, %v1162_v35  ;;  %v1192_v39 = vpack.c.bf16 %v1160_v36, %v1160_v36  ;;  %v3279_v34 = vld [vmem:[%s9615_s7 + $0xb0] sm:$0xff]  ;;  %v3278_v35 = vld [vmem:[%s9615_s7 + $0xa8] sm:$0xff]  ;;  %v3280_v36 = vld [vmem:[%s9615_s7 + $0xb8] sm:$0xff] }
  0x40   : > { %1335 = vperm.xlu1 %6710, %v1189_v41   ;;  %657 = vperm.xlu0 %6709, %v631_v42   ;;  %v3257_v41 = vld [vmem:[%s9615_s7] sm:$0xff]  ;;  %v3259_v42 = vld [vmem:[%s9615_s7 + $0x10] sm:$0xff] }
  0x41   : > { %1344 = vperm.xlu2 %6711, %v1190_v43   ;;  %v3386_v43 = vpack.c.bf16 %v3258_v40, %v3258_v40  ;;  %v3385_v44 = vpack.c.bf16 %v3257_v41, %v3257_v41  ;;  %v3387_v45 = vpack.c.bf16 %v3259_v42, %v3259_v42  ;;  %v3407_v40 = vpack.c.bf16 %v3279_v34, %v3279_v34  ;;  %v3305_v34 = vld [vmem:[%s9615_s7 + $0x180] sm:$0xff] }
  0x42   : > { %v3406_v41 = vpack.c.bf16 %v3278_v35, %v3278_v35  ;;  %v3408_v42 = vpack.c.bf16 %v3280_v36, %v3280_v36  ;;  %v3307_v35 = vld [vmem:[%s9615_s7 + $0x190] sm:$0xff] }
  0x48   : > { %1326 = vperm.xlu1 %6710, %v1188_v47   ;;  %1317 = vperm.xlu0 %6709, %v1187_v48   ;;  %v3260_v47 = vld [vmem:[%s9615_s7 + $0x18] sm:$0xff]  ;;  %v3262_v48 = vld [vmem:[%s9615_s7 + $0x28] sm:$0xff] }
  0x49   : > { %1299 = vperm.xlu2 %6711, %v1185_v49   ;;  %v3389_v49 = vpack.c.bf16 %v3261_v46, %v3261_v46  ;;  %v3388_v50 = vpack.c.bf16 %v3260_v47, %v3260_v47  ;;  %v3390_v51 = vpack.c.bf16 %v3262_v48, %v3262_v48  ;;  %v3281_v46 = vld [vmem:[%s9615_s7 + $0xc0] sm:$0xff]  ;;  %v3283_v47 = vld [vmem:[%s9615_s7 + $0xd0] sm:$0xff] }
  0x50   : > { %1281 = vperm.xlu1 %6710, %v1183_v53   ;;  %1308 = vperm.xlu0 %6709, %v1186_v54   ;;  %v3263_v53 = vld [vmem:[%s9615_s7 + $0x30] sm:$0xff]  ;;  %v3265_v54 = vld [vmem:[%s9615_s7 + $0x40] sm:$0xff] }
  0x51   : > { %1290 = vperm.xlu2 %6711, %v1184_v55   ;;  %v3392_v55 = vpack.c.bf16 %v3264_v52, %v3264_v52  ;;  %v3391_v56 = vpack.c.bf16 %v3263_v53, %v3263_v53  ;;  %v3393_v57 = vpack.c.bf16 %v3265_v54, %v3265_v54  ;;  %v3284_v52 = vld [vmem:[%s9615_s7 + $0xd8] sm:$0xff]  ;;  %v3286_v53 = vld [vmem:[%s9615_s7 + $0xe8] sm:$0xff] }
  0x58   : > { %1272 = vperm.xlu1 %6710, %v1182_v59   ;;  %1263 = vperm.xlu0 %6709, %v1181_v60   ;;  %v3267_v60 = vld [vmem:[%s9615_s7 + $0x50] sm:$0xff] }
  0x59   : > { %1245 = vperm.xlu2 %6711, %v1179_v61   ;;  %v3266_v61 = vld [vmem:[%s9615_s7 + $0x48] sm:$0xff]  ;;  %v3395_v63 = vpack.c.bf16 %v3267_v60, %v3267_v60  ;;  %v3289_v60 = vld [vmem:[%s9615_s7 + $0x100] sm:$0xff] }
  0x5a   : > { %v3394_v0 = vpack.c.bf16 %v3266_v61, %v3266_v61 }
  0x60   : > { %1227 = vperm.xlu1 %6710, %v1177_v1   ;;  %1254 = vperm.xlu0 %6709, %v1180_v2   ;;  %v3396_v1 = vpack.c.bf16 %v3268_v62, %v3268_v62 }
  0x61   : > { %1236 = vperm.xlu2 %6711, %v1178_v3  }
  0x68   : > { %1488 = vperm.xlu1 %6710, %v1206_v7   ;;  %1479 = vperm.xlu0 %6709, %v1205_v8   ;;  %v3398_v7 = vpack.c.bf16 %v3270_v4, %v3270_v4  ;;  %v3397_v8 = vpack.c.bf16 %v3269_v5, %v3269_v5 }
  0x69   : > { %1209 = vperm.xlu2 %6711, %v1175_v9   ;;  %v3399_v9 = vpack.c.bf16 %v3271_v6, %v3271_v6  ;;  %v6476_v6 = vld [vmem:[%s9610_s2 + $0x10] sm:$0xff] }
  0x70   : > { %1461 = vperm.xlu1 %6710, %v1203_v13   ;;  %1218 = vperm.xlu0 %6709, %v1176_v14   ;;  %v3274_v14 = vld [vmem:[%s9615_s7 + $0x88] sm:$0xff] }
  0x71   : > { %1470 = vperm.xlu2 %6711, %v1204_v15   ;;  %v3401_v15 = vpack.c.bf16 %v3273_v11, %v3273_v11  ;;  %v3402_v17 = vpack.c.bf16 %v3274_v14, %v3274_v14  ;;  %v3296_v14 = vld [vmem:[%s9615_s7 + $0x138] sm:$0xff] }
  0x78   : > { %1452 = vperm.xlu1 %6710, %v1202_v19   ;;  %1443 = vperm.xlu0 %6709, %v1201_v20  }
  0x79   : > { %1425 = vperm.xlu2 %6711, %v1199_v21   ;;  %v3276_v21 = vld [vmem:[%s9615_s7 + $0x98] sm:$0xff] }
  0x80   : > { %1407 = vperm.xlu1 %6710, %v1197_v25   ;;  %1434 = vperm.xlu0 %6709, %v1200_v26  }
  0x81   : > { %1416 = vperm.xlu2 %6711, %v1198_v27   ;;  %v3404_v27 = vpack.c.bf16 %v3276_v21, %v3276_v21  ;;  %v3299_v21 = vld [vmem:[%s9615_s7 + $0x150] sm:$0xff] }
  0x82   : > { %v3427_v24 = vpack.c.bf16 %v3299_v21, %v3299_v21  ;;  %v3330_v21 = vld [vmem:[%s9615_s7 + $0x248] sm:$0xff] }
  0x88   : > { %1398 = vperm.xlu1 %6710, %v1196_v31   ;;  %1389 = vperm.xlu0 %6709, %v1195_v32  }
  0x89   : > { %1371 = vperm.xlu2 %6711, %v1193_v33  }
  0x90   : > { %1353 = vperm.xlu1 %6710, %v1191_v37   ;;  %1380 = vperm.xlu0 %6709, %v1194_v38  }
  0x91   : > { %1362 = vperm.xlu2 %6711, %v1192_v39  }
  0x98   : > { %3524 = vperm.xlu1 %6710, %v3386_v43   ;;  %3515 = vperm.xlu0 %6709, %v3385_v44   ;;  %v6474_v44 = vld [vmem:[%s9610_s2] sm:$0xff] }
  0x99   : > { %3533 = vperm.xlu2 %6711, %v3387_v45   ;;  %v3282_v45 = vld [vmem:[%s9615_s7 + $0xc8] sm:$0xff] }
  0x9a   : > { %v3410_v48 = vpack.c.bf16 %v3282_v45, %v3282_v45  ;;  %v6479_v45 = vld [vmem:[%s9610_s2 + $0x28] sm:$0xff] }
  0xa0   : > { %3551 = vperm.xlu1 %6710, %v3389_v49   ;;  %3542 = vperm.xlu0 %6709, %v3388_v50   ;;  %v3409_v49 = vpack.c.bf16 %v3281_v46, %v3281_v46  ;;  %v3411_v50 = vpack.c.bf16 %v3283_v47, %v3283_v47  ;;  %v3312_v46 = vld [vmem:[%s9615_s7 + $0x1b8] sm:$0xff]  ;;  %v3311_v47 = vld [vmem:[%s9615_s7 + $0x1b0] sm:$0xff] }
  0xa1   : > { %3560 = vperm.xlu2 %6711, %v3390_v51   ;;  %v3285_v51 = vld [vmem:[%s9615_s7 + $0xe0] sm:$0xff] }
  0xa2   : > { %v7078_v58 = vpop.f32.mrf.mxu0  ;;  %v3413_v54 = vpack.c.bf16 %v3285_v51, %v3285_v51 }
  0xa3   : > { %v456_v37 = vmax.f32 %v7078_v58, 0.0  ;;  %v3288_v58 = vld [vmem:[%s9615_s7 + $0xf8] sm:$0xff] }
  0xa4   : > { %v3416_v61 = vpack.c.bf16 %v3288_v58, %v3288_v58  ;;  %v6480_v58 = vld [vmem:[%s9610_s2 + $0x30] sm:$0xff] }
  0xa7   : > { %v446_v59 = vpop.f32.mrf.mxu2 }
  0xa8   : > { %3578 = vperm.xlu1 %6710, %v3392_v55   ;;  %3569 = vperm.xlu0 %6709, %v3391_v56   ;;  %v460_v29 = vmax.f32 %v446_v59, 0.0  ;;  %v3412_v55 = vpack.c.bf16 %v3284_v52, %v3284_v52  ;;  %v3414_v56 = vpack.c.bf16 %v3286_v53, %v3286_v53  ;;  %v3287_v59 = vld [vmem:[%s9615_s7 + $0xf0] sm:$0xff]  ;;  %v3314_v53 = vld [vmem:[%s9615_s7 + $0x1c8] sm:$0xff] }
  0xa9   : > { %3587 = vperm.xlu2 %6711, %v3393_v57   ;;  %v6475_v57 = vld [vmem:[%s9610_s2 + $0x8] sm:$0xff]  ;;  %v3415_v62 = vpack.c.bf16 %v3287_v59, %v3287_v59  ;;  %v3315_v52 = vld [vmem:[%s9615_s7 + $0x1d0] sm:$0xff] }
  0xaa   : > { %v438_v3 = vpop.f32.mrf.mxu0  ;;  %v3318_v59 = vld [vmem:[%s9615_s7 + $0x1e8] sm:$0xff] }
  0xab   : > { %v457_v38 = vmax.f32 %v438_v3, 0.0 }
  0xad   : > { %v464_v43 = vpack.c.bf16 %v457_v38, %v456_v37  ;;  %v3433_v37 = vpack.c.bf16 %v3305_v34, %v3305_v34  ;;  %v3435_v38 = vpack.c.bf16 %v3307_v35, %v3307_v35  ;;  %v3336_v35 = vld [vmem:[%s9615_s7 + $0x278] sm:$0xff] }
  0xaf   : > { %v448_v2 = vpop.f32.mrf.mxu2 }
  0xb0   : > { %3605 = vperm.xlu1 %6710, %v3395_v63   ;;  %3596 = vperm.xlu0 %6709, %v3394_v0   ;;  %v461_v25 = vmax.f32 %v448_v2, 0.0  ;;  %v3417_v63 = vpack.c.bf16 %v3289_v60, %v3289_v60  ;;  %v3291_v0 = vld [vmem:[%s9615_s7 + $0x110] sm:$0xff]  ;;  %v3292_v2 = vld [vmem:[%s9615_s7 + $0x118] sm:$0xff]  ;;  %v3317_v60 = vld [vmem:[%s9615_s7 + $0x1e0] sm:$0xff] }
  0xb1   : > { %3614 = vperm.xlu2 %6711, %v3396_v1   ;;  %v3290_v1 = vld [vmem:[%s9615_s7 + $0x108] sm:$0xff]  ;;  %v3419_v3 = vpack.c.bf16 %v3291_v0, %v3291_v0  ;;  %v3420_v5 = vpack.c.bf16 %v3292_v2, %v3292_v2  ;;  %v3320_v2 = vld [vmem:[%s9615_s7 + $0x1f8] sm:$0xff] }
  0xb2   : > { %v441_v13 = vpop.f32.mrf.mxu0  ;;  %v466_v33 = vpack.c.bf16 %v461_v25, %v460_v29  ;;  %v3418_v4 = vpack.c.bf16 %v3290_v1, %v3290_v1  ;;  %v3429_v25 = vpack.c.bf16 %v3301_v22, %v3301_v22  ;;  %v3321_v1 = vld [vmem:[%s9615_s7 + $0x200] sm:$0xff] }
  0xb3   : > { %v458_v31 = vmax.f32 %v441_v13, 0.0  ;;  %v3297_v13 = vld [vmem:[%s9615_s7 + $0x140] sm:$0xff] }
  0xb4   : > { %v3329_v22 = vld [vmem:[%s9615_s7 + $0x240] sm:$0xff] }
  0xb7   : > { %v451_v10 = vpop.f32.mrf.mxu2 }
  0xb8   : > { %3632 = vperm.xlu1 %6710, %v3398_v7   ;;  %3623 = vperm.xlu0 %6709, %v3397_v8   ;;  %v462_v19 = vmax.f32 %v451_v10, 0.0  ;;  %v3294_v7 = vld [vmem:[%s9615_s7 + $0x128] sm:$0xff]  ;;  %v3293_v8 = vld [vmem:[%s9615_s7 + $0x120] sm:$0xff] }
  0xb9   : > { %3641 = vperm.xlu2 %6711, %v3399_v9   ;;  %v3295_v9 = vld [vmem:[%s9615_s7 + $0x130] sm:$0xff]  ;;  %v3422_v10 = vpack.c.bf16 %v3294_v7, %v3294_v7  ;;  %v3421_v11 = vpack.c.bf16 %v3293_v8, %v3293_v8  ;;  %v6481_v7 = vld [vmem:[%s9610_s2 + $0x38] sm:$0xff] }
  0xba   : > { %v443_v26 = vpop.f32.mrf.mxu0  ;;  %v3423_v12 = vpack.c.bf16 %v3295_v9, %v3295_v9  ;;  %v3324_v8 = vld [vmem:[%s9615_s7 + $0x218] sm:$0xff]  ;;  %v3323_v9 = vld [vmem:[%s9615_s7 + $0x210] sm:$0xff] }
  0xbb   : > { %v459_v32 = vmax.f32 %v443_v26, 0.0  ;;  %v3303_v26 = vld [vmem:[%s9615_s7 + $0x170] sm:$0xff] }
  0xbc   : > { %v3431_v29 = vpack.c.bf16 %v3303_v26, %v3303_v26 }
  0xbd   : > { %v465_v39 = vpack.c.bf16 %v459_v32, %v458_v31  ;;  %v6478_v32 = vld [vmem:[%s9610_s2 + $0x20] sm:$0xff] }
  0xbf   : > { %v453_v18 = vpop.f32.mrf.mxu2 }
  0xc0   : > { %v463_v20 = vmax.f32 %v453_v18, 0.0  ;;  %3659 = vperm.xlu1 %6710, %v3401_v15   ;;  %3650 = vperm.xlu0 %6709, %v3400_v16   ;;  %v3298_v15 = vld [vmem:[%s9615_s7 + $0x148] sm:$0xff]  ;;  %v3425_v16 = vpack.c.bf16 %v3297_v13, %v3297_v13 }
  0xc1   : > { %3668 = vperm.xlu2 %6711, %v3402_v17   ;;  %v3424_v17 = vpack.c.bf16 %v3296_v14, %v3296_v14  ;;  %v3426_v18 = vpack.c.bf16 %v3298_v15, %v3298_v15  ;;  %v3327_v14 = vld [vmem:[%s9615_s7 + $0x230] sm:$0xff]  ;;  %v3326_v15 = vld [vmem:[%s9615_s7 + $0x228] sm:$0xff] }
  0xc2   : > { %v467_v23 = vpack.c.bf16 %v463_v20, %v462_v19  ;;  %v6477_v19 = vld [vmem:[%s9610_s2 + $0x18] sm:$0xff] }
  0xc3   : > { %v3300_v20 = vld [vmem:[%s9615_s7 + $0x158] sm:$0xff] }
  0xc4   : > { %553 = vmatpush.bf16.msra.mxu1 %v467_v23  ;;  %v3428_v23 = vpack.c.bf16 %v3300_v20, %v3300_v20 }
  0xc8   : > { %3686 = vperm.xlu1 %6710, %v3404_v27   ;;  %3677 = vperm.xlu0 %6709, %v3403_v28   ;;  %v3302_v27 = vld [vmem:[%s9615_s7 + $0x168] sm:$0xff]  ;;  %v3304_v28 = vld [vmem:[%s9615_s7 + $0x178] sm:$0xff] }
  0xc9   : > { %3695 = vperm.xlu2 %6711, %v3405_v30   ;;  %554 = vmatpush.bf16.msra.mxu1 %v466_v33  ;;  %v3430_v30 = vpack.c.bf16 %v3302_v27, %v3302_v27  ;;  %v3432_v31 = vpack.c.bf16 %v3304_v28, %v3304_v28  ;;  %v3306_v33 = vld [vmem:[%s9615_s7 + $0x188] sm:$0xff]  ;;  %v3333_v28 = vld [vmem:[%s9615_s7 + $0x260] sm:$0xff] }
  0xca   : > { %v3434_v36 = vpack.c.bf16 %v3306_v33, %v3306_v33 }
  0xcd   : > { %555 = vmatpush.bf16.msra.mxu1 %v465_v39  ;;  %v3309_v39 = vld [vmem:[%s9615_s7 + $0x1a0] sm:$0xff] }
  0xd0   : > { %3713 = vperm.xlu1 %6710, %v3407_v40   ;;  %3704 = vperm.xlu0 %6709, %v3406_v41   ;;  %v3308_v40 = vld [vmem:[%s9615_s7 + $0x198] sm:$0xff]  ;;  %v3310_v41 = vld [vmem:[%s9615_s7 + $0x1a8] sm:$0xff] }
  0xd1   : > { %3722 = vperm.xlu2 %6711, %v3408_v42   ;;  %556 = vmatpush.bf16.msra.mxu1 %v464_v43  ;;  %v3437_v42 = vpack.c.bf16 %v3309_v39, %v3309_v39  ;;  %v3436_v43 = vpack.c.bf16 %v3308_v40, %v3308_v40 }
  0xd4   : > { %5849 = vmatmul.msk.bf16.vlgmr.msra.gmra.mxu1 %vm524_vm2, %v6474_v44  ;;  %v3438_v44 = vpack.c.bf16 %v3310_v41, %v3310_v41 }
  0xd8   : > { %3740 = vperm.xlu1 %6710, %v3410_v48   ;;  %3731 = vperm.xlu0 %6709, %v3409_v49   ;;  %v3313_v48 = vld [vmem:[%s9615_s7 + $0x1c0] sm:$0xff]  ;;  %v3440_v49 = vpack.c.bf16 %v3312_v46, %v3312_v46 }
  0xd9   : > { %3749 = vperm.xlu2 %6711, %v3411_v50   ;;  %v3439_v50 = vpack.c.bf16 %v3311_v47, %v3311_v47  ;;  %v3441_v51 = vpack.c.bf16 %v3313_v48, %v3313_v48 }
  0xe0   : > { %3767 = vperm.xlu1 %6710, %v3413_v54   ;;  %3758 = vperm.xlu0 %6709, %v3412_v55   ;;  %v3316_v54 = vld [vmem:[%s9615_s7 + $0x1d8] sm:$0xff]  ;;  %v3443_v55 = vpack.c.bf16 %v3315_v52, %v3315_v52 }
  0xe1   : > { %3776 = vperm.xlu2 %6711, %v3414_v56   ;;  %v3442_v56 = vpack.c.bf16 %v3314_v53, %v3314_v53 }
  0xe4   : > { %5850 = vmatmul.msk.bf16.gmra.mxu1 %vm524_vm2, %v6475_v57  ;;  %v3444_v57 = vpack.c.bf16 %v3316_v54, %v3316_v54 }
  0xe8   : > { %3794 = vperm.xlu1 %6710, %v3416_v61   ;;  %3785 = vperm.xlu0 %6709, %v3415_v62   ;;  %v3319_v61 = vld [vmem:[%s9615_s7 + $0x1f0] sm:$0xff]  ;;  %v3446_v62 = vpack.c.bf16 %v3318_v59, %v3318_v59 }
  0xe9   : > { %3803 = vperm.xlu2 %6711, %v3417_v63   ;;  %v3445_v63 = vpack.c.bf16 %v3317_v60, %v3317_v60  ;;  %v3447_v0 = vpack.c.bf16 %v3319_v61, %v3319_v61 }
  0xf0   : > { %3821 = vperm.xlu1 %6710, %v3419_v3   ;;  %3812 = vperm.xlu0 %6709, %v3418_v4   ;;  %v3322_v3 = vld [vmem:[%s9615_s7 + $0x208] sm:$0xff]  ;;  %v3449_v4 = vpack.c.bf16 %v3321_v1, %v3321_v1  ;;  %v3352_v1 = vld [vmem:[%s9615_s7 + $0x2f8] sm:$0xff] }
  0xf1   : > { %3830 = vperm.xlu2 %6711, %v3420_v5   ;;  %v3448_v5 = vpack.c.bf16 %v3320_v2, %v3320_v2 }
  0xf4   : > { %5851 = vmatmul.msk.bf16.gmra.mxu1 %vm524_vm2, %v6476_v6  ;;  %v3450_v6 = vpack.c.bf16 %v3322_v3, %v3322_v3 }
  0xf8   : > { %3848 = vperm.xlu1 %6710, %v3422_v10   ;;  %3839 = vperm.xlu0 %6709, %v3421_v11   ;;  %v3325_v10 = vld [vmem:[%s9615_s7 + $0x220] sm:$0xff]  ;;  %v3452_v11 = vpack.c.bf16 %v3324_v8, %v3324_v8  ;;  %v3348_v8 = vld [vmem:[%s9615_s7 + $0x2d8] sm:$0xff] }
  0xf9   : > { %3857 = vperm.xlu2 %6711, %v3423_v12   ;;  %v3451_v12 = vpack.c.bf16 %v3323_v9, %v3323_v9  ;;  %v3453_v13 = vpack.c.bf16 %v3325_v10, %v3325_v10 }
 0x100   : > { %3875 = vperm.xlu1 %6710, %v3425_v16   ;;  %3866 = vperm.xlu0 %6709, %v3424_v17   ;;  %v3328_v16 = vld [vmem:[%s9615_s7 + $0x238] sm:$0xff]  ;;  %v3455_v17 = vpack.c.bf16 %v3327_v14, %v3327_v14  ;;  %v7394_v14 = vpop.permute.xlu2 %738 }
 0x101   : > { %3884 = vperm.xlu2 %6711, %v3426_v18   ;;  %v3454_v18 = vpack.c.bf16 %v3326_v15, %v3326_v15 }
 0x104   : > { %5852 = vmatmul.msk.bf16.gmra.mxu1 %vm524_vm2, %v6477_v19  ;;  %v3456_v19 = vpack.c.bf16 %v3328_v16, %v3328_v16  ;;  %v3384_v16 = vld [vmem:[%s9615_s7 + $0x3f8] sm:$0xff] }
 0x108   : > { %3902 = vperm.xlu1 %6710, %v3428_v23   ;;  %3893 = vperm.xlu0 %6709, %v3427_v24   ;;  %v3331_v23 = vld [vmem:[%s9615_s7 + $0x250] sm:$0xff]  ;;  %v3458_v24 = vpack.c.bf16 %v3330_v21, %v3330_v21 }
 0x109   : > { %3911 = vperm.xlu2 %6711, %v3429_v25   ;;  %v3457_v25 = vpack.c.bf16 %v3329_v22, %v3329_v22  ;;  %v3459_v26 = vpack.c.bf16 %v3331_v23, %v3331_v23 }
 0x110   : > { %3929 = vperm.xlu1 %6710, %v3431_v29   ;;  %3920 = vperm.xlu0 %6709, %v3430_v30   ;;  %v3332_v29 = vld [vmem:[%s9615_s7 + $0x258] sm:$0xff]  ;;  %v3334_v30 = vld [vmem:[%s9615_s7 + $0x268] sm:$0xff] }
 0x111   : > { %3938 = vperm.xlu2 %6711, %v3432_v31   ;;  %v3461_v31 = vpack.c.bf16 %v3333_v28, %v3333_v28  ;;  %v3462_v33 = vpack.c.bf16 %v3334_v30, %v3334_v30  ;;  %v3381_v28 = vld [vmem:[%s9615_s7 + $0x3e0] sm:$0xff]  ;;  %v3382_v30 = vld [vmem:[%s9615_s7 + $0x3e8] sm:$0xff] }
 0x114   : > { %5853 = vmatmul.msk.bf16.gmra.mxu1 %vm524_vm2, %v6478_v32  ;;  %v3460_v32 = vpack.c.bf16 %v3332_v29, %v3332_v29  ;;  %v3368_v29 = vld [vmem:[%s9615_s7 + $0x378] sm:$0xff] }
 0x118   : > { %3956 = vperm.xlu1 %6710, %v3434_v36   ;;  %3947 = vperm.xlu0 %6709, %v3433_v37   ;;  %v3335_v36 = vld [vmem:[%s9615_s7 + $0x270] sm:$0xff]  ;;  %v3337_v37 = vld [vmem:[%s9615_s7 + $0x280] sm:$0xff] }
 0x119   : > { %3965 = vperm.xlu2 %6711, %v3435_v38   ;;  %v3464_v38 = vpack.c.bf16 %v3336_v35, %v3336_v35  ;;  %v3463_v39 = vpack.c.bf16 %v3335_v36, %v3335_v36  ;;  %v3465_v40 = vpack.c.bf16 %v3337_v37, %v3337_v37  ;;  %v3366_v37 = vld [vmem:[%s9615_s7 + $0x368] sm:$0xff] }
 0x120   : > { %3983 = vperm.xlu1 %6710, %v3437_v42   ;;  %3974 = vperm.xlu0 %6709, %v3436_v43   ;;  %v3339_v42 = vld [vmem:[%s9615_s7 + $0x290] sm:$0xff]  ;;  %v3338_v43 = vld [vmem:[%s9615_s7 + $0x288] sm:$0xff] }
 0x121   : > { %3992 = vperm.xlu2 %6711, %v3438_v44   ;;  %v3340_v44 = vld [vmem:[%s9615_s7 + $0x298] sm:$0xff]  ;;  %v3466_v46 = vpack.c.bf16 %v3338_v43, %v3338_v43  ;;  %v3494_v43 = vpack.c.bf16 %v3366_v37, %v3366_v37 }
 0x122   : > { %v3468_v47 = vpack.c.bf16 %v3340_v44, %v3340_v44 }
 0x124   : > { %5854 = vmatmul.msk.bf16.gmra.mxu1 %vm524_vm2, %v6479_v45  ;;  %v3467_v45 = vpack.c.bf16 %v3339_v42, %v3339_v42 }
 0x128   : > { %4010 = vperm.xlu1 %6710, %v3440_v49   ;;  %4001 = vperm.xlu0 %6709, %v3439_v50   ;;  %v3342_v49 = vld [vmem:[%s9615_s7 + $0x2a8] sm:$0xff]  ;;  %v3341_v50 = vld [vmem:[%s9615_s7 + $0x2a0] sm:$0xff] }
 0x129   : > { %4019 = vperm.xlu2 %6711, %v3441_v51   ;;  %v3343_v51 = vld [vmem:[%s9615_s7 + $0x2b0] sm:$0xff]  ;;  %v3470_v52 = vpack.c.bf16 %v3342_v49, %v3342_v49  ;;  %v3469_v53 = vpack.c.bf16 %v3341_v50, %v3341_v50  ;;  %v3380_v49 = vld [vmem:[%s9615_s7 + $0x3d8] sm:$0xff] }
 0x12a   : > { %v3471_v54 = vpack.c.bf16 %v3343_v51, %v3343_v51  ;;  %v3364_v50 = vld [vmem:[%s9615_s7 + $0x358] sm:$0xff] }
 0x130   : > { %4037 = vperm.xlu1 %6710, %v3443_v55   ;;  %4028 = vperm.xlu0 %6709, %v3442_v56   ;;  %v3345_v56 = vld [vmem:[%s9615_s7 + $0x2c0] sm:$0xff] }
 0x131   : > { %4046 = vperm.xlu2 %6711, %v3444_v57   ;;  %v3344_v57 = vld [vmem:[%s9615_s7 + $0x2b8] sm:$0xff]  ;;  %v3473_v59 = vpack.c.bf16 %v3345_v56, %v3345_v56 }
 0x132   : > { %v3472_v60 = vpack.c.bf16 %v3344_v57, %v3344_v57  ;;  %v3492_v57 = vpack.c.bf16 %v3364_v50, %v3364_v50 }
 0x134   : > { %5855 = vmatmul.msk.bf16.gmra.mxu1 %vm524_vm2, %v6480_v58  ;;  %v3346_v58 = vld [vmem:[%s9615_s7 + $0x2c8] sm:$0xff] }
 0x135   : > { %v3474_v61 = vpack.c.bf16 %v3346_v58, %v3346_v58 }
 0x138   : > { %4064 = vperm.xlu1 %6710, %v3446_v62   ;;  %4055 = vperm.xlu0 %6709, %v3445_v63   ;;  %v3351_v63 = vld [vmem:[%s9615_s7 + $0x2f0] sm:$0xff] }
 0x139   : > { %4073 = vperm.xlu2 %6711, %v3447_v0   ;;  %v3347_v0 = vld [vmem:[%s9615_s7 + $0x2d0] sm:$0xff]  ;;  %v3479_v2 = vpack.c.bf16 %v3351_v63, %v3351_v63 }
 0x13a   : > { %v3475_v3 = vpack.c.bf16 %v3347_v0, %v3347_v0 }
 0x140   : > { %4091 = vperm.xlu1 %6710, %v3449_v4   ;;  %4082 = vperm.xlu0 %6709, %v3448_v5   ;;  %v3480_v4 = vpack.c.bf16 %v3352_v1, %v3352_v1 }
 0x141   : > { %4100 = vperm.xlu2 %6711, %v3450_v6   ;;  %v3350_v6 = vld [vmem:[%s9615_s7 + $0x2e8] sm:$0xff] }
 0x142   : > { %v3478_v9 = vpack.c.bf16 %v3350_v6, %v3350_v6 }
 0x144   : > { %5856 = vmatmul.msk.bf16.gmra.mxu1 %vm524_vm2, %v6481_v7  ;;  %v3349_v7 = vld [vmem:[%s9615_s7 + $0x2e0] sm:$0xff] }
 0x145   : > { %v3477_v10 = vpack.c.bf16 %v3349_v7, %v3349_v7  ;;  %v3375_v7 = vld [vmem:[%s9615_s7 + $0x3b0] sm:$0xff] }
 0x148   : > { %4118 = vperm.xlu1 %6710, %v3452_v11   ;;  %4109 = vperm.xlu0 %6709, %v3451_v12   ;;  %v7390_v11 = vpop.permute.xlu0 %774  ;;  %v3476_v12 = vpack.c.bf16 %v3348_v8, %v3348_v8  ;;  %v3362_v8 = vld [vmem:[%s9615_s7 + $0x348] sm:$0xff] }
 0x149   : > { %4127 = vperm.xlu2 %6711, %v3453_v13   ;;  %v7392_v13 = vpop.permute.xlu1 %756 }
 0x150   : > { %4145 = vperm.xlu1 %6710, %v3455_v17   ;;  %4136 = vperm.xlu0 %6709, %v3454_v18   ;;  %v3383_v17 = vld [vmem:[%s9615_s7 + $0x3f0] sm:$0xff]  ;;  %v7407_v23 = vpop.permute.xlu0 %783 }
 0x151   : > { %4154 = vperm.xlu2 %6711, %v3456_v19   ;;  %v7302_v20 = vpop.f32.mrf.mxu1  ;;  %v3367_v18 = vld [vmem:[%s9615_s7 + $0x370] sm:$0xff]  ;;  %v3512_v19 = vpack.c.bf16 %v3384_v16, %v3384_v16  ;;  %v3511_v21 = vpack.c.bf16 %v3383_v17, %v3383_v17  ;;  %v6769_v17 = vmov 839922192  }
 0x152   : > { %v3495_v22 = vpack.c.bf16 %v3367_v18, %v3367_v18  ;;  %v652_v18 = vunpack.c.l.s4 %v6769_v17 }
 0x158   : > { %4172 = vperm.xlu1 %6710, %v3458_v24   ;;  %4163 = vperm.xlu0 %6709, %v3457_v25   ;;  %v7409_v24 = vpop.permute.xlu1 %765  ;;  %v7411_v25 = vpop.permute.xlu2 %747 }
 0x159   : > { %4181 = vperm.xlu2 %6711, %v3459_v26   ;;  %v7313_v27 = vpop.f32.mrf.mxu1  ;;  %v7424_v35 = vpop.permute.xlu0 %720 }
 0x160   : > { %4199 = vperm.xlu1 %6710, %v3461_v31   ;;  %4190 = vperm.xlu0 %6709, %v3460_v32   ;;  %v3509_v31 = vpack.c.bf16 %v3381_v28, %v3381_v28  ;;  %v3496_v32 = vpack.c.bf16 %v3368_v29, %v3368_v29  ;;  %v7439_v42 = vpop.permute.xlu2 %702  ;;  %v3360_v29 = vld [vmem:[%s9615_s7 + $0x338] sm:$0xff] }
 0x161   : > { %4208 = vperm.xlu2 %6711, %v3462_v33   ;;  %v7324_v34 = vpop.f32.mrf.mxu1  ;;  %v3510_v33 = vpack.c.bf16 %v3382_v30, %v3382_v30  ;;  %v7452_v51 = vpop.permute.xlu0 %711  ;;  %v3359_v30 = vld [vmem:[%s9615_s7 + $0x330] sm:$0xff]  ;;  %v3488_v37 = vpack.c.bf16 %v3360_v29, %v3360_v29 }
 0x168   : > { %4226 = vperm.xlu1 %6710, %v3464_v38   ;;  %4217 = vperm.xlu0 %6709, %v3463_v39   ;;  %v3365_v38 = vld [vmem:[%s9615_s7 + $0x360] sm:$0xff]  ;;  %v7434_v39 = vpop.permute.xlu1 %729  ;;  %v7456_v56 = vpop.permute.xlu2 %693 }
 0x169   : > { %4235 = vperm.xlu2 %6711, %v3465_v40   ;;  %v7335_v41 = vpop.f32.mrf.mxu1  ;;  %v3379_v40 = vld [vmem:[%s9615_s7 + $0x3d0] sm:$0xff]  ;;  %v3493_v44 = vpack.c.bf16 %v3365_v38, %v3365_v38  ;;  %v7469_v1 = vpop.permute.xlu0 %666  ;;  %v3487_v38 = vpack.c.bf16 %v3359_v30, %v3359_v30 }
 0x170   : > { %4253 = vperm.xlu1 %6710, %v3467_v45   ;;  %4244 = vperm.xlu0 %6709, %v3466_v46   ;;  %v3507_v45 = vpack.c.bf16 %v3379_v40, %v3379_v40 }
 0x171   : > { %4262 = vperm.xlu2 %6711, %v3468_v47   ;;  %v7346_v48 = vpop.f32.mrf.mxu1  ;;  %v3363_v47 = vld [vmem:[%s9615_s7 + $0x350] sm:$0xff] }
 0x178   : > { %4280 = vperm.xlu1 %6710, %v3470_v52   ;;  %4271 = vperm.xlu0 %6709, %v3469_v53   ;;  %v7454_v52 = vpop.permute.xlu1 %684  ;;  %v3491_v53 = vpack.c.bf16 %v3363_v47, %v3363_v47 }
 0x179   : > { %4289 = vperm.xlu2 %6711, %v3471_v54   ;;  %v7357_v55 = vpop.f32.mrf.mxu1  ;;  %v3508_v54 = vpack.c.bf16 %v3380_v49, %v3380_v49 }
 0x180   : > { %4307 = vperm.xlu1 %6710, %v3473_v59   ;;  %4298 = vperm.xlu0 %6709, %v3472_v60   ;;  %v3378_v59 = vld [vmem:[%s9615_s7 + $0x3c8] sm:$0xff]  ;;  %v3377_v60 = vld [vmem:[%s9615_s7 + $0x3c0] sm:$0xff] }
 0x181   : > { %4316 = vperm.xlu2 %6711, %v3474_v61   ;;  %v7368_v62 = vpop.f32.mrf.mxu1  ;;  %v3361_v61 = vld [vmem:[%s9615_s7 + $0x340] sm:$0xff]  ;;  %v3506_v63 = vpack.c.bf16 %v3378_v59, %v3378_v59  ;;  %v3505_v0 = vpack.c.bf16 %v3377_v60, %v3377_v60 }
 0x188   : > { %4361 = vperm.xlu1 %6710, %v3479_v2   ;;  %4325 = vperm.xlu0 %6709, %v3475_v3   ;;  %v3489_v2 = vpack.c.bf16 %v3361_v61, %v3361_v61  ;;  %v7471_v3 = vpop.permute.xlu1 %675 }
 0x189   : > { %4370 = vperm.xlu2 %6711, %v3480_v4   ;;  %v7379_v5 = vpop.f32.mrf.mxu1  ;;  %v7473_v4 = vpop.permute.xlu2 %648 }
 0x190   : > { %4352 = vperm.xlu1 %6710, %v3478_v9   ;;  %4343 = vperm.xlu0 %6709, %v3477_v10   ;;  %v3376_v9 = vld [vmem:[%s9615_s7 + $0x3b8] sm:$0xff]  ;;  %v3503_v10 = vpack.c.bf16 %v3375_v7, %v3375_v7 }
 0x191   : > { %4334 = vperm.xlu2 %6711, %v3476_v12   ;;  %v7396_v15 = vpop.f32.mrf.mxu1  ;;  %v3490_v12 = vpack.c.bf16 %v3362_v8, %v3362_v8  ;;  %v3504_v16 = vpack.c.bf16 %v3376_v9, %v3376_v9 }
 0x198   : > { %4658 = vperm.xlu1 %6710, %v3512_v19   ;;  %4649 = vperm.xlu0 %6709, %v3511_v21   ;;  %v7484_v19 = vpop.permute.xlu0 %657  ;;  %v7486_v21 = vpop.permute.xlu1 %1335 }
 0x199   : > { %4505 = vperm.xlu2 %6711, %v3495_v22   ;;  %v7413_v26 = vpop.f32.mrf.mxu1  ;;  %v7488_v22 = vpop.permute.xlu2 %1344 }
 0x1a0   : > { %4631 = vperm.xlu1 %6710, %v3509_v31   ;;  %4514 = vperm.xlu0 %6709, %v3496_v32   ;;  %v3373_v31 = vld [vmem:[%s9615_s7 + $0x3a0] sm:$0xff]  ;;  %v7499_v32 = vunpack.c.0.s8 %v652_v18  ;;  %v7523_v60 = vpop.permute.xlu1 %1326 }
 0x1a1   : > { %4640 = vperm.xlu2 %6711, %v3510_v33   ;;  %v7426_v36 = vpop.f32.mrf.mxu1 }
 0x1a2   : > { %v780_v40 = vperm.slane %v7390_v11, %v7499_v32  ;;  %v762_v47 = vperm.slane %v7392_v13, %v7499_v32  ;;  %v789_v49 = vperm.slane %v7407_v23, %v7499_v32  ;;  %v3357_v11 = vld [vmem:[%s9615_s7 + $0x320] sm:$0xff]  ;;  %v608_v7 = vpack.c.bf16 %v7426_v36, %v7426_v36 }
 0x1a3   : > { %v3485_v8 = vpack.c.bf16 %v3357_v11, %v3357_v11  ;;  %v726_v36 = vperm.slane %v7424_v35, %v7499_v32  ;;  %v3372_v35 = vld [vmem:[%s9615_s7 + $0x398] sm:$0xff]  ;;  %v699_v11 = vperm.slane %v7456_v56, %v7499_v32 }
 0x1a4   : > { %v820_v13 = vunpack.c.l.bf16 %v780_v40 }
 0x1a8   : > { %4496 = vperm.xlu1 %6710, %v3494_v43   ;;  %4487 = vperm.xlu0 %6709, %v3493_v44   ;;  %v3501_v43 = vpack.c.bf16 %v3373_v31, %v3373_v31  ;;  %v771_v44 = vperm.slane %v7409_v24, %v7499_v32  ;;  %v744_v24 = vperm.slane %v7394_v14, %v7499_v32 }
 0x1a9   : > { %4613 = vperm.xlu2 %6711, %v3507_v45   ;;  %v7441_v46 = vpop.f32.mrf.mxu1 }
 0x1aa   : > { %v819_v59 = vunpack.c.l.bf16 %v771_v44  ;;  %v609_v61 = vpack.c.bf16 %v7441_v46, %v7441_v46  ;;  %v735_v46 = vperm.slane %v7434_v39, %v7499_v32 }
 0x1ac   : > { %v801_v29 = vunpack.c.l.bf16 %v609_v61  ;;  %v815_v44 = vunpack.c.l.bf16 %v735_v46 }
 0x1b0   : > { %4469 = vperm.xlu1 %6710, %v3491_v53   ;;  %4622 = vperm.xlu0 %6709, %v3508_v54   ;;  %v753_v54 = vperm.slane %v7411_v25, %v7499_v32  ;;  %v3358_v25 = vld [vmem:[%s9615_s7 + $0x328] sm:$0xff] }
 0x1b1   : > { %4478 = vperm.xlu2 %6711, %v3492_v57   ;;  %v7458_v58 = vpop.f32.mrf.mxu1  ;;  %v7518_v57 = vpop.permute.xlu0 %1317  ;;  %v3486_v18 = vpack.c.bf16 %v3358_v25, %v3358_v25 }
 0x1b2   : > { %v610_v50 = vpack.c.bf16 %v7458_v58, %v7458_v58  ;;  %v3374_v58 = vld [vmem:[%s9615_s7 + $0x3a8] sm:$0xff]  ;;  %v817_v17 = vunpack.c.l.bf16 %v753_v54 }
 0x1b4   : > { %v802_v9 = vunpack.c.l.bf16 %v610_v50  ;;  %v3371_v50 = vld [vmem:[%s9615_s7 + $0x390] sm:$0xff] }
 0x1b5   : > { %v3499_v56 = vpack.c.bf16 %v3371_v50, %v3371_v50 }
 0x1b8   : > { %4604 = vperm.xlu1 %6710, %v3506_v63   ;;  %4595 = vperm.xlu0 %6709, %v3505_v0   ;;  %v818_v0 = vunpack.c.l.bf16 %v762_v47 }
 0x1b9   : > { %4451 = vperm.xlu2 %6711, %v3489_v2   ;;  %v590_v6 = vpop.f32.mrf.mxu1  ;;  %v821_v2 = vunpack.c.l.bf16 %v789_v49  ;;  %v7559_v54 = vpop.permute.xlu0 %1308 }
 0x1ba   : > { %v611_v45 = vpack.c.bf16 %v590_v6, %v590_v6  ;;  %v7530_v6 = vpop.permute.xlu2 %1299  ;;  %v834_v40 = vadd.f32 %v818_v0, %v802_v9 }
 0x1bc   : > { %v803_v63 = vunpack.c.l.bf16 %v611_v45  ;;  %v605_v45 = vpack.c.bf16 %v7379_v5, %v7379_v5  ;;  %v708_v5 = vperm.slane %v7439_v42, %v7499_v32  ;;  %v882_v61 = vmax.f32 %v834_v40, 0.0 }
 0x1bd   : > { %v603_v42 = vpack.c.bf16 %v7357_v55, %v7357_v55 }
 0x1be   : > { %v835_v31 = vadd.f32 %v819_v59, %v803_v63  ;;  %v3500_v63 = vpack.c.bf16 %v3372_v35, %v3372_v35  ;;  %v599_v35 = vpack.c.bf16 %v7313_v27, %v7313_v27 }
 0x1c0   : > { %4577 = vperm.xlu1 %6710, %v3503_v10   ;;  %4460 = vperm.xlu0 %6709, %v3490_v12   ;;  %v883_v49 = vmax.f32 %v835_v31, 0.0  ;;  %v3370_v31 = vld [vmem:[%s9615_s7 + $0x388] sm:$0xff] }
 0x1c1   : > { %4586 = vperm.xlu2 %6711, %v3504_v16   ;;  %v593_v28 = vpop.f32.mrf.mxu1  ;;  %v3502_v16 = vpack.c.bf16 %v3374_v58, %v3374_v58 }
 0x1c2   : > { %v612_v33 = vpack.c.bf16 %v593_v28, %v593_v28  ;;  %v607_v28 = vpack.c.bf16 %v7413_v26, %v7413_v26  ;;  %v717_v26 = vperm.slane %v7452_v51, %v7499_v32  ;;  %v833_v51 = vadd.f32 %v817_v17, %v801_v29  ;;  %v7565_v25 = vpop.permute.xlu2 %1290 }
 0x1c3   : > { %v795_v29 = vunpack.c.l.bf16 %v603_v42 }
 0x1c4   : > { %v804_v53 = vunpack.c.l.bf16 %v612_v33  ;;  %v816_v33 = vunpack.c.l.bf16 %v744_v24  ;;  %v799_v47 = vunpack.c.l.bf16 %v607_v28  ;;  %v814_v24 = vunpack.c.l.bf16 %v726_v36 }
 0x1c5   : > { %v601_v28 = vpack.c.bf16 %v7335_v41, %v7335_v41 }
 0x1c6   : > { %v836_v10 = vadd.f32 %v820_v13, %v804_v53  ;;  %v3355_v53 = vld [vmem:[%s9615_s7 + $0x310] sm:$0xff]  ;;  %v604_v13 = vpack.c.bf16 %v7368_v62, %v7368_v62  ;;  %v831_v9 = vadd.f32 %v815_v44, %v799_v47  ;;  %v812_v62 = vunpack.c.l.bf16 %v708_v5 }
 0x1c7   : > { %v3483_v0 = vpack.c.bf16 %v3355_v53, %v3355_v53 }
 0x1c8   : > { %4442 = vperm.xlu1 %6710, %v3488_v37   ;;  %4433 = vperm.xlu0 %6709, %v3487_v38   ;;  %v606_v37 = vpack.c.bf16 %v7396_v15, %v7396_v15  ;;  %v800_v38 = vunpack.c.l.bf16 %v608_v7  ;;  %v892_v7 = vpack.c.bf16 %v883_v49, %v882_v61  ;;  %v796_v17 = vunpack.c.l.bf16 %v604_v13 }
 0x1c9   : > { %4559 = vperm.xlu2 %6711, %v3501_v43   ;;  %v595_v23 = vpop.f32.mrf.mxu1  ;;  %v884_v43 = vmax.f32 %v836_v10, 0.0  ;;  %v690_v10 = vperm.slane %v7454_v52, %v7499_v32  ;;  %v3369_v52 = vld [vmem:[%s9615_s7 + $0x380] sm:$0xff]  ;;  %v791_v61 = vunpack.c.l.bf16 %v599_v35 }
 0x1ca   : > { %v613_v14 = vpack.c.bf16 %v595_v23, %v595_v23  ;;  %v7563_v23 = vpop.permute.xlu1 %1281  ;;  %v798_v58 = vunpack.c.l.bf16 %v606_v37  ;;  %v832_v59 = vadd.f32 %v816_v33, %v800_v38  ;;  %v672_v37 = vperm.slane %v7469_v1, %v7499_v32 }
 0x1cb   : > { %v810_v36 = vunpack.c.l.bf16 %v690_v10  ;;  %v600_v38 = vpack.c.bf16 %v7324_v34, %v7324_v34  ;;  %v3497_v44 = vpack.c.bf16 %v3369_v52, %v3369_v52  ;;  %v793_v1 = vunpack.c.l.bf16 %v601_v28 }
 0x1cc   : > { %v805_v12 = vunpack.c.l.bf16 %v613_v14  ;;  %v813_v14 = vunpack.c.l.bf16 %v717_v26  ;;  %v830_v46 = vadd.f32 %v814_v24, %v798_v58  ;;  %v880_v55 = vmax.f32 %v832_v59, 0.0  ;;  %v3354_v59 = vld [vmem:[%s9615_s7 + $0x308] sm:$0xff] }
 0x1cd   : > { %v663_v26 = vperm.slane %v7484_v19, %v7499_v32  ;;  %v808_v5 = vunpack.c.l.bf16 %v672_v37  ;;  %v598_v19 = vpack.c.bf16 %v7302_v20, %v7302_v20  ;;  %v792_v24 = vunpack.c.l.bf16 %v600_v38  ;;  %v6486_v37 = vld [vmem:[%s9612_s4 + $0x20] sm:$0xff]  ;;  %v6487_v38 = vld [vmem:[%s9612_s4 + $0x28] sm:$0xff] }
 0x1ce   : > { %v837_v30 = vadd.f32 %v821_v2, %v805_v12  ;;  %v797_v2 = vunpack.c.l.bf16 %v605_v45  ;;  %v681_v12 = vperm.slane %v7471_v3, %v7499_v32  ;;  %v7592_v45 = vpop.permute.xlu0 %1263 }
 0x1cf   : > { %v807_v58 = vunpack.c.l.bf16 %v663_v26 }
 0x1d0   : > { %4415 = vperm.xlu1 %6710, %v3485_v8   ;;  %4568 = vperm.xlu0 %6709, %v3502_v16   ;;  %v885_v39 = vmax.f32 %v837_v30, 0.0  ;;  %v881_v8 = vmax.f32 %v833_v51, 0.0  ;;  %v602_v16 = vpack.c.bf16 %v7346_v48, %v7346_v48  ;;  %v879_v30 = vmax.f32 %v831_v9, 0.0  ;;  %v3356_v48 = vld [vmem:[%s9615_s7 + $0x318] sm:$0xff] }
 0x1d1   : > { %4424 = vperm.xlu2 %6711, %v3486_v18   ;;  %v811_v18 = vunpack.c.l.bf16 %v699_v11  ;;  %v829_v33 = vadd.f32 %v813_v14, %v797_v2  ;;  %v809_v41 = vunpack.c.l.bf16 %v681_v12  ;;  %v3484_v47 = vpack.c.bf16 %v3356_v48, %v3356_v48  ;;  %v7600_v11 = vpop.permute.xlu2 %1245  ;;  %v3353_v14 = vld [vmem:[%s9615_s7 + $0x300] sm:$0xff] }
 0x1d2   : > { %v893_v15 = vpack.c.bf16 %v885_v39, %v884_v43  ;;  %v891_v3 = vpack.c.bf16 %v881_v8, %v880_v55  ;;  %v794_v40 = vunpack.c.l.bf16 %v602_v16  ;;  %v828_v43 = vadd.f32 %v812_v62, %v796_v17  ;;  %v7596_v49 = vpop.permute.xlu1 %1272  ;;  %v5505_v62 = vld [vmem:[%s9617_s9] sm:$0xff] }
 0x1d3   : > { %v878_v39 = vmax.f32 %v830_v46, 0.0  ;;  %v877_v34 = vmax.f32 %v829_v33, 0.0  ;;  %v827_v53 = vadd.f32 %v811_v18, %v795_v29  ;;  %v654_v51 = vperm.slane %v7473_v4, %v7499_v32  ;;  %v6482_v48 = vld [vmem:[%s9612_s4] sm:$0xff]  ;;  %v6483_v33 = vld [vmem:[%s9612_s4 + $0x8] sm:$0xff] }
 0x1d4   : > { %1022 = vmatpush.bf16.msrb.mxu2 %v893_v15  ;;  %v3498_v15 = vpack.c.bf16 %v3370_v31, %v3370_v31  ;;  %v826_v13 = vadd.f32 %v810_v36, %v794_v40  ;;  %v876_v27 = vmax.f32 %v828_v43, 0.0  ;;  %v825_v20 = vadd.f32 %v809_v41, %v793_v1  ;;  %v6484_v36 = vld [vmem:[%s9612_s4 + $0x10] sm:$0xff]  ;;  %v6485_v41 = vld [vmem:[%s9612_s4 + $0x18] sm:$0xff] }
 0x1d5   : > { %v890_v50 = vpack.c.bf16 %v879_v30, %v878_v39  ;;  %v806_v42 = vunpack.c.l.bf16 %v654_v51  ;;  %v3481_v8 = vpack.c.bf16 %v3353_v14, %v3353_v14  ;;  %v823_v12 = vadd.f32 %v807_v58, %v791_v61  ;;  %v5506_v30 = vld [vmem:[%s9617_s9 + $0x8] sm:$0xf]  ;;  %v6488_v40 = vld [vmem:[%s9612_s4 + $0x30] sm:$0xff]  ;;  %v6489_v43 = vld [vmem:[%s9612_s4 + $0x38] sm:$0xff] }
 0x1d6   : > { %v889_v4 = vpack.c.bf16 %v877_v34, %v876_v27  ;;  %v874_v2 = vmax.f32 %v826_v13, 0.0  ;;  %v873_v10 = vmax.f32 %v825_v20, 0.0  ;;  %v7613_v16 = vpop.permute.xlu0 %1254  ;;  %v6490_v39 = vld [vmem:[%s9612_s4 + $0x40] sm:$0xff] }
 0x1d7   : > { %v871_v52 = vmax.f32 %v823_v12, 0.0 }
 0x1d8   : > { %1023 = vmatpush.bf16.msrb.mxu2 %v892_v7  ;;  %4550 = vperm.xlu1 %6710, %v3500_v63   ;;  %v875_v63 = vmax.f32 %v827_v53, 0.0  ;;  %v3482_v7 = vpack.c.bf16 %v3354_v59, %v3354_v59 }
 0x1d9   : > { %4541 = vperm.xlu0 %6709, %v3499_v56   ;;  %4397 = vperm.xlu2 %6711, %v3483_v0   ;;  %v790_v56 = vunpack.c.l.bf16 %v598_v19  ;;  %v824_v0 = vadd.f32 %v808_v5, %v792_v24  ;;  %v1237_v18 = vpop.permute.xlu2 %1236  ;;  %v6491_v5 = vld [vmem:[%s9612_s4 + $0x48] sm:$0xff] }
 0x1da   : > { %v888_v9 = vpack.c.bf16 %v875_v63, %v874_v2  ;;  %v1228_v17 = vpop.permute.xlu1 %1227  ;;  %v1242_v20 = vperm.slane %v1237_v18, %v7499_v32  ;;  %v1251_v18 = vperm.slane %v7600_v11, %v7499_v32 }
 0x1db   : > { %v822_v46 = vadd.f32 %v806_v42, %v790_v56  ;;  %v872_v55 = vmax.f32 %v824_v0, 0.0  ;;  %v1233_v14 = vperm.slane %v1228_v17, %v7499_v32 }
 0x1dc   : > { %1024 = vmatpush.bf16.msrb.mxu2 %v891_v3 }
 0x1dd   : > { %v887_v28 = vpack.c.bf16 %v873_v10, %v872_v55  ;;  %v870_v29 = vmax.f32 %v822_v46, 0.0  ;;  %v1529_v0 = vunpack.c.l.bf16 %v1233_v14 }
 0x1de   : > { %v7621_v31 = vpop.permute.xlu0 %1479 }
 0x1df   : > { %v886_v3 = vpack.c.bf16 %v871_v52, %v870_v29  ;;  %v1260_v52 = vperm.slane %v7613_v16, %v7499_v32  ;;  %v1269_v16 = vperm.slane %v7592_v45, %v7499_v32 }
 0x1e0   : > { %1025 = vmatpush.bf16.msrb.mxu2 %v890_v50  ;;  %4523 = vperm.xlu1 %6710, %v3497_v44  }
 0x1e1   : > { %4406 = vperm.xlu0 %6709, %v3484_v47   ;;  %4532 = vperm.xlu2 %6711, %v3498_v15   ;;  %v1210_v35 = vpop.permute.xlu2 %1209 }
 0x1e2   : > { %v1215_v47 = vperm.slane %v1210_v35, %v7499_v32 }
 0x1e4   : > { %1026 = vmatpush.bf16.msrb.mxu2 %v889_v4  ;;  %v1527_v53 = vunpack.c.l.bf16 %v1215_v47 }
 0x1e6   : > { %v1219_v15 = vpop.permute.xlu0 %1218 }
 0x1e7   : > { %v1224_v1 = vperm.slane %v1219_v15, %v7499_v32  ;;  %v1533_v15 = vunpack.c.l.bf16 %v1269_v16 }
 0x1e8   : > { %1027 = vmatpush.bf16.msrb.mxu2 %v888_v9  ;;  %4388 = vperm.xlu1 %6710, %v3482_v7   ;;  %v6492_v7 = vld [vmem:[%s9612_s4 + $0x50] sm:$0xff] }
 0x1e9   : > { %4379 = vperm.xlu0 %6709, %v3481_v8   ;;  %5509 = vperm.xlu2 %6711, %v5505_v62   ;;  %v1528_v19 = vunpack.c.l.bf16 %v1224_v1  ;;  %v1530_v8 = vunpack.c.l.bf16 %v1242_v20  ;;  %v6497_v20 = vld [vmem:[%s9612_s4 + $0x78] sm:$0xff] }
 0x1ec   : > { %1028 = vmatpush.bf16.msrb.mxu2 %v887_v28 }
 0x1f0   : > { %1029 = vmatpush.bf16.msrb.mxu2 %v886_v3 }
 0x1f1   : > { %5514 = vperm.xlu0 %6709, %v5506_v30   ;;  %v1531_v30 = vunpack.c.l.bf16 %v1251_v18 }
 0x1f3   : > { %1030 = vmatmul.bf16.vlgmr.msrb.gmra.mxu2 %v6482_v48 }
 0x203   : > { %1035 = vmatmul.bf16.gmra.mxu2 %v6483_v33  ;;  %v6493_v33 = vld [vmem:[%s9612_s4 + $0x58] sm:$0xff] }
 0x213   : > { %1040 = vmatmul.bf16.gmra.mxu2 %v6484_v36  ;;  %v1532_v36 = vunpack.c.l.bf16 %v1260_v52 }
 0x223   : > { %1045 = vmatmul.bf16.gmra.mxu2 %v6485_v41 }
 0x233   : > { %1050 = vmatmul.bf16.gmra.mxu2 %v6486_v37 }
 0x243   : > { %1055 = vmatmul.bf16.gmra.mxu2 %v6487_v38 }
 0x253   : > { %1060 = vmatmul.bf16.gmra.mxu2 %v6488_v40 }
 0x263   : > { %1065 = vmatmul.bf16.gmra.mxu2 %v6489_v43 }
 0x273   : > { %1070 = vmatmul.bf16.gmra.mxu2 %v6490_v39 }
 0x276   : > { %v1031_v44 = vpop.f32.mrf.mxu2 }
 0x277   : > { %v1111_v26 = vpack.c.bf16 %v1031_v44, %v1031_v44 }
 0x279   : > { %v1495_v50 = vunpack.c.l.bf16 %v1111_v26  ;;  %v1278_v26 = vperm.slane %v7596_v49, %v7499_v32  ;;  %v6495_v49 = vld [vmem:[%s9612_s4 + $0x68] sm:$0xff] }
 0x27b   : > { %v1559_v24 = vadd.f32 %v1527_v53, %v1495_v50  ;;  %v6494_v50 = vld [vmem:[%s9612_s4 + $0x60] sm:$0xff] }
 0x27d   : > { %v1655_v58 = vmax.f32 %v1559_v24, 0.0 }
 0x27e   : > { %v1033_v34 = vpop.f32.mrf.mxu2 }
 0x27f   : > { %v1112_v51 = vpack.c.bf16 %v1033_v34, %v1033_v34  ;;  %v1534_v34 = vunpack.c.l.bf16 %v1278_v26 }
 0x281   : > { %v1496_v13 = vunpack.c.l.bf16 %v1112_v51 }
 0x283   : > { %v1560_v27 = vadd.f32 %v1528_v19, %v1496_v13  ;;  %1075 = vmatmul.bf16.gmra.mxu2 %v6491_v5 }
 0x285   : > { %v1656_v59 = vmax.f32 %v1560_v27, 0.0 }
 0x286   : > { %v1036_v61 = vpop.f32.mrf.mxu2 }
 0x287   : > { %v7652_v4 = vpack.c.bf16 %v1656_v59, %v1655_v58  ;;  %v1113_v63 = vpack.c.bf16 %v1036_v61, %v1036_v61  ;;  %v6496_v61 = vld [vmem:[%s9612_s4 + $0x70] sm:$0xff] }
 0x289   : > { %v1497_v42 = vunpack.c.l.bf16 %v1113_v63 }
 0x28b   : > { %v1561_v9 = vadd.f32 %v1529_v0, %v1497_v42  ;;  %v1341_v0 = vperm.slane %v7486_v21, %v7499_v32  ;;  %v1314_v21 = vperm.slane %v7559_v54, %v7499_v32 }
 0x28d   : > { %v1657_v12 = vmax.f32 %v1561_v9, 0.0 }
 0x28e   : > { %v1038_v56 = vpop.f32.mrf.mxu2 }
 0x28f   : > { %v1114_v2 = vpack.c.bf16 %v1038_v56, %v1038_v56 }
 0x291   : > { %v1498_v62 = vunpack.c.l.bf16 %v1114_v2 }
 0x293   : > { %v1562_v10 = vadd.f32 %v1530_v8, %v1498_v62  ;;  %1080 = vmatmul.bf16.gmra.mxu2 %v6492_v7  ;;  %v1350_v7 = vperm.slane %v7488_v22, %v7499_v32  ;;  %v1332_v8 = vperm.slane %v7523_v60, %v7499_v32  ;;  %v1305_v60 = vperm.slane %v7530_v6, %v7499_v32 }
 0x295   : > { %v1658_v46 = vmax.f32 %v1562_v10, 0.0  ;;  %v1323_v10 = vperm.slane %v7518_v57, %v7499_v32  ;;  %v1542_v52 = vunpack.c.l.bf16 %v1350_v7  ;;  %v1537_v26 = vunpack.c.l.bf16 %v1305_v60  ;;  %v1471_v60 = vpop.permute.xlu2 %1470 }
 0x296   : > { %v1041_v55 = vpop.f32.mrf.mxu2 }
 0x297   : > { %v7659_v28 = vpack.c.bf16 %v1658_v46, %v1657_v12  ;;  %v1115_v17 = vpack.c.bf16 %v1041_v55, %v1041_v55  ;;  %v1541_v46 = vunpack.c.l.bf16 %v1341_v0 }
 0x299   : > { %v1499_v29 = vunpack.c.l.bf16 %v1115_v17 }
 0x29b   : > { %v1563_v41 = vadd.f32 %v1531_v30, %v1499_v29  ;;  %v1540_v29 = vunpack.c.l.bf16 %v1332_v8 }
 0x29d   : > { %v1659_v40 = vmax.f32 %v1563_v41, 0.0 }
 0x29e   : > { %v1043_v3 = vpop.f32.mrf.mxu2 }
 0x29f   : > { %v1116_v48 = vpack.c.bf16 %v1043_v3, %v1043_v3 }
 0x2a1   : > { %v1500_v37 = vunpack.c.l.bf16 %v1116_v48 }
 0x2a3   : > { %v1564_v38 = vadd.f32 %v1532_v36, %v1500_v37  ;;  %1085 = vmatmul.bf16.gmra.mxu2 %v6493_v33  ;;  %v1539_v33 = vunpack.c.l.bf16 %v1323_v10 }
 0x2a5   : > { %v1660_v43 = vmax.f32 %v1564_v38, 0.0  ;;  %v1296_v38 = vperm.slane %v7565_v25, %v7499_v32 }
 0x2a6   : > { %v1046_v39 = vpop.f32.mrf.mxu2 }
 0x2a7   : > { %v7668_v11 = vpack.c.bf16 %v1660_v43, %v1659_v40  ;;  %v1117_v44 = vpack.c.bf16 %v1046_v39, %v1046_v39  ;;  %v1538_v40 = vunpack.c.l.bf16 %v1314_v21  ;;  %v6131_v21 = vld [vmem:[%s9614_s6 + $0x1a0] sm:$0xf] }
 0x2a9   : > { %v1501_v35 = vunpack.c.l.bf16 %v1117_v44 }
 0x2ab   : > { %v1565_v53 = vadd.f32 %v1533_v15, %v1501_v35  ;;  %v1287_v35 = vperm.slane %v7563_v23, %v7499_v32 }
 0x2ad   : > { %v1661_v19 = vmax.f32 %v1565_v53, 0.0 }
 0x2ae   : > { %v1048_v47 = vpop.f32.mrf.mxu2 }
 0x2af   : > { %v1118_v1 = vpack.c.bf16 %v1048_v47, %v1048_v47 }
 0x2b1   : > { %v1502_v51 = vunpack.c.l.bf16 %v1118_v1 }
 0x2b3   : > { %v1566_v5 = vadd.f32 %v1534_v34, %v1502_v51  ;;  %1090 = vmatmul.bf16.gmra.mxu2 %v6494_v50  ;;  %v1536_v34 = vunpack.c.l.bf16 %v1296_v38 }
 0x2b5   : > { %v1662_v24 = vmax.f32 %v1566_v5, 0.0  ;;  %v1535_v5 = vunpack.c.l.bf16 %v1287_v35  ;;  %v1485_v35 = vperm.slane %v7621_v31, %v7499_v32 }
 0x2b6   : > { %v1051_v13 = vpop.f32.mrf.mxu2 }
 0x2b7   : > { %v7677_v45 = vpack.c.bf16 %v1662_v24, %v1661_v19  ;;  %v1119_v43 = vpack.c.bf16 %v1051_v13, %v1051_v13 }
 0x2b9   : > { %v1503_v53 = vunpack.c.l.bf16 %v1119_v43 }
 0x2be   : > { %v1053_v27 = vpop.f32.mrf.mxu2 }
 0x2bf   : > { %v1120_v36 = vpack.c.bf16 %v1053_v27, %v1053_v27  ;;  %v1567_v27 = vadd.f32 %v1535_v5, %v1503_v53  ;;  %v1557_v5 = vunpack.c.l.bf16 %v1485_v35 }
 0x2c1   : > { %v1504_v6 = vunpack.c.l.bf16 %v1120_v36 }
 0x2c3   : > { %1095 = vmatmul.bf16.gmra.mxu2 %v6495_v49  ;;  %v1568_v19 = vadd.f32 %v1536_v34, %v1504_v6 }
 0x2c6   : > { %v1056_v58 = vpop.f32.mrf.mxu2 }
 0x2c7   : > { %v1121_v3 = vpack.c.bf16 %v1056_v58, %v1056_v58  ;;  %v1664_v58 = vmax.f32 %v1568_v19, 0.0 }
 0x2c9   : > { %v1505_v39 = vunpack.c.l.bf16 %v1121_v3  ;;  %v6551_v3 = vld [vmem:[%s9614_s6 + $0x1a4] sm:$0xf0] }
 0x2cb   : > { %v1569_v51 = vadd.f32 %v1537_v26, %v1505_v39 }
 0x2cd   : > { %v1665_v49 = vmax.f32 %v1569_v51, 0.0 }
 0x2ce   : > { %v1058_v59 = vpop.f32.mrf.mxu2 }
 0x2cf   : > { %v1122_v55 = vpack.c.bf16 %v1058_v59, %v1058_v59 }
 0x2d1   : > { %v1506_v57 = vunpack.c.l.bf16 %v1122_v55  ;;  %v6123_v55 = vld [vmem:[%s9614_s6 + $0x190] sm:$0xf] }
 0x2d3   : > { %1100 = vmatmul.bf16.gmra.mxu2 %v6496_v61  ;;  %v1570_v15 = vadd.f32 %v1538_v40, %v1506_v57  ;;  %v1663_v61 = vmax.f32 %v1567_v27, 0.0  ;;  %v1444_v57 = vpop.permute.xlu0 %1443  ;;  %v7768_v40 = vpop.permute.xlu2 %1425 }
 0x2d5   : > { %v1666_v24 = vmax.f32 %v1570_v15, 0.0 }
 0x2d6   : > { %v1061_v63 = vpop.f32.mrf.mxu2 }
 0x2d7   : > { %v1123_v9 = vpack.c.bf16 %v1061_v63, %v1061_v63  ;;  %v1692_v59 = vpack.c.bf16 %v1666_v24, %v1665_v49  ;;  %v1691_v63 = vpack.c.bf16 %v1664_v58, %v1663_v61 }
 0x2d9   : > { %v1507_v22 = vunpack.c.l.bf16 %v1123_v9 }
 0x2db   : > { %v1571_v44 = vadd.f32 %v1539_v33, %v1507_v22  ;;  %v1489_v22 = vpop.permute.xlu1 %1488  ;;  %v1435_v6 = vpop.permute.xlu0 %1434 }
 0x2dc   : > { %v1417_v19 = vpop.permute.xlu2 %1416 }
 0x2dd   : > { %v1667_v25 = vmax.f32 %v1571_v44, 0.0 }
 0x2de   : > { %v1063_v14 = vpop.f32.mrf.mxu2 }
 0x2df   : > { %v1124_v2 = vpack.c.bf16 %v1063_v14, %v1063_v14 }
 0x2e1   : > { %v1508_v17 = vunpack.c.l.bf16 %v1124_v2  ;;  %v6545_v2 = vld [vmem:[%s9614_s6 + $0x174] sm:$0xf0] }
 0x2e3   : > { %1105 = vmatmul.bf16.gmra.mxu2 %v6497_v20  ;;  %v1572_v41 = vadd.f32 %v1540_v29, %v1508_v17  ;;  %v6549_v17 = vld [vmem:[%s9614_s6 + $0x194] sm:$0xf0]  ;;  %v1462_v33 = vpop.permute.xlu1 %1461 }
 0x2e4   : > { %v1467_v51 = vperm.slane %v1462_v33, %v7499_v32 }
 0x2e5   : > { %v1668_v1 = vmax.f32 %v1572_v41, 0.0  ;;  %v6139_v41 = vld [vmem:[%s9614_s6 + $0x1b0] sm:$0xf] }
 0x2e6   : > { %v1066_v42 = vpop.f32.mrf.mxu2 }
 0x2e7   : > { %v1125_v56 = vpack.c.bf16 %v1066_v42, %v1066_v42  ;;  %v1693_v13 = vpack.c.bf16 %v1668_v1, %v1667_v25  ;;  %v6099_v42 = vld [vmem:[%s9614_s6 + $0x160] sm:$0xf]  ;;  %v1476_v1 = vperm.slane %v1471_v60, %v7499_v32  ;;  %v1431_v60 = vperm.slane %v7768_v40, %v7499_v32  ;;  %v6501_v40 = vld [vmem:[%s9614_s6 + $0x14] sm:$0xf0] }
 0x2e9   : > { %v1509_v62 = vunpack.c.l.bf16 %v1125_v56  ;;  %v6543_v56 = vld [vmem:[%s9614_s6 + $0x164] sm:$0xf0]  ;;  %v1556_v49 = vunpack.c.l.bf16 %v1476_v1  ;;  %v1551_v35 = vunpack.c.l.bf16 %v1431_v60 }
 0x2ea   : > { %v6100_v0 = vor.u32 %v6543_v56, %v6099_v42 }
 0x2eb   : > { %v1573_v30 = vadd.f32 %v1541_v46, %v1509_v62  ;;  %v6547_v62 = vld [vmem:[%s9614_s6 + $0x184] sm:$0xf0]  ;;  %v1453_v39 = vpop.permute.xlu1 %1452 }
 0x2ec   : > { %v1458_v31 = vperm.slane %v1453_v39, %v7499_v32  ;;  %v5931_v39 = vld [vmem:[%s9614_s6 + $0x10] sm:$0xf] }
 0x2ed   : > { %v1669_v54 = vmax.f32 %v1573_v30, 0.0  ;;  %v6132_v30 = vor.u32 %v6551_v3, %v6131_v21  ;;  %v1390_v21 = vpop.permute.xlu0 %1389 }
 0x2ee   : > { %v1068_v12 = vpop.f32.mrf.mxu2 }
 0x2ef   : > { %v1126_v18 = vpack.c.bf16 %v1068_v12, %v1068_v12 }
 0x2f1   : > { %v1510_v48 = vunpack.c.l.bf16 %v1126_v18  ;;  %v6124_v18 = vor.u32 %v6549_v17, %v6123_v55  ;;  %v1554_v17 = vunpack.c.l.bf16 %v1458_v31 }
 0x2f3   : > { %v1574_v37 = vadd.f32 %v1542_v52, %v1510_v48 }
 0x2f5   : > { %v1670_v16 = vmax.f32 %v1574_v37, 0.0  ;;  %v6553_v37 = vld [vmem:[%s9614_s6 + $0x1b4] sm:$0xf0] }
 0x2f6   : > { %v7704_v47 = vpop.f32.mrf.mxu2  ;;  %v6140_v38 = vor.u32 %v6553_v37, %v6139_v41 }
 0x2f7   : > { %v1694_v50 = vpack.c.bf16 %v1670_v16, %v1669_v54  ;;  %v5923_v54 = vld [vmem:[%s9614_s6] sm:$0xf]  ;;  %v6499_v16 = vld [vmem:[%s9614_s6 + $0x4] sm:$0xf0] }
 0x2f8   : > { %v5924_v26 = vor.u32 %v6499_v16, %v5923_v54 }
 0x2f9   : > { %2471 = vmatpush.bf16.msra.mxu2 %v1694_v50  ;;  %6635 = vmatpush.bf16.msra.mxu3 %v1694_v50  ;;  %v1494_v50 = vperm.slane %v1489_v22, %v7499_v32 }
 0x2fb   : > { %v1558_v58 = vunpack.c.l.bf16 %v1494_v50 }
 0x2fd   : > { %2472 = vmatpush.bf16.msra.mxu2 %v1693_v13  ;;  %6636 = vmatpush.bf16.msra.mxu3 %v1693_v13 }
 0x2fe   : > { %v7706_v23 = vpop.f32.mrf.mxu2 }
 0x301   : > { %2473 = vmatpush.bf16.msra.mxu2 %v1692_v59  ;;  %6637 = vmatpush.bf16.msra.mxu3 %v1692_v59  ;;  %v1408_v59 = vpop.permute.xlu1 %1407 }
 0x305   : > { %2474 = vmatpush.bf16.msra.mxu2 %v1691_v63  ;;  %6638 = vmatpush.bf16.msra.mxu3 %v1691_v63 }
 0x306   : > { %v7708_v14 = vpop.f32.mrf.mxu2 }
 0x309   : > { %2475 = vmatpush.bf16.msra.mxu2 %v7677_v45  ;;  %6639 = vmatpush.bf16.msra.mxu3 %v7677_v45 }
 0x30d   : > { %2476 = vmatpush.bf16.msra.mxu2 %v7668_v11  ;;  %6640 = vmatpush.bf16.msra.mxu3 %v7668_v11 }
 0x30e   : > { %v7714_v20 = vpop.f32.mrf.mxu2 }
 0x311   : > { %2477 = vmatpush.bf16.msra.mxu2 %v7659_v28  ;;  %6641 = vmatpush.bf16.msra.mxu3 %v7659_v28  ;;  %v6107_v28 = vld [vmem:[%s9614_s6 + $0x170] sm:$0xf] }
 0x312   : > { %v6108_v7 = vor.u32 %v6545_v2, %v6107_v28  ;;  %v6555_v28 = vld [vmem:[%s9614_s6 + $0x1c4] sm:$0xf0]  ;;  %v1555_v2 = vunpack.c.l.bf16 %v1467_v51 }
 0x315   : > { %2478 = vmatpush.bf16.msra.mxu2 %v7652_v4  ;;  %6642 = vmatpush.bf16.msra.mxu3 %v7652_v4  ;;  %v6115_v4 = vld [vmem:[%s9614_s6 + $0x180] sm:$0xf] }
 0x316   : > { %v7726_v11 = vpop.f32.mrf.mxu2  ;;  %v6116_v10 = vor.u32 %v6547_v62, %v6115_v4 }
 0x318   : > { %2589 = vmatmul.bf16.vlgmr.msra.gmra.mxu3 %v6100_v0  ;;  %2479 = vmatmul.bf16.vlgmr.msra.gmra.mxu2 %v5924_v26  ;;  %v6147_v0 = vld [vmem:[%s9614_s6 + $0x1c0] sm:$0xf]  ;;  %v5932_v26 = vor.u32 %v6501_v40, %v5931_v39 }
 0x31e   : > { %v7728_v45 = vpop.f32.mrf.mxu2 }
 0x326   : > { %v7736_v8 = vpop.f32.mrf.mxu2 }
 0x328   : > { %2594 = vmatmul.bf16.gmra.mxu3 %v6108_v7  ;;  %v1449_v7 = vperm.slane %v1444_v57, %v7499_v32  ;;  %2484 = vmatmul.bf16.gmra.mxu2 %v5932_v26 }
 0x32a   : > { %v1553_v33 = vunpack.c.l.bf16 %v1449_v7  ;;  %v6557_v7 = vld [vmem:[%s9614_s6 + $0x1d4] sm:$0xf0] }
 0x32e   : > { %v7738_v9 = vpop.f32.mrf.mxu2 }
 0x336   : > { %v7746_v12 = vpop.f32.mrf.mxu2 }
 0x338   : > { %2599 = vmatmul.bf16.gmra.mxu3 %v6116_v10 }
 0x33e   : > { %v7748_v46 = vpop.f32.mrf.mxu2 }
 0x33f   : > { %v1136_v4 = vpack.c.bf16 %v7748_v46, %v7748_v46  ;;  %v1134_v46 = vpack.c.bf16 %v7738_v9, %v7738_v9  ;;  %v1372_v9 = vpop.permute.xlu2 %1371 }
 0x341   : > { %v1518_v1 = vunpack.c.l.bf16 %v1134_v46 }
 0x346   : > { %v1096_v52 = vpop.f32.mrf.mxu2 }
 0x347   : > { %v1137_v61 = vpack.c.bf16 %v1096_v52, %v1096_v52  ;;  %v1135_v52 = vpack.c.bf16 %v7746_v12, %v7746_v12 }
 0x348   : > { %2604 = vmatmul.bf16.gmra.mxu3 %v6124_v18  ;;  %v1440_v18 = vperm.slane %v1435_v6, %v7499_v32  ;;  %v1413_v6 = vperm.slane %v1408_v59, %v7499_v32 }
 0x349   : > { %v1521_v3 = vunpack.c.l.bf16 %v1137_v61 }
 0x34a   : > { %v1552_v12 = vunpack.c.l.bf16 %v1440_v18 }
 0x34b   : > { %v1585_v54 = vadd.f32 %v1553_v33, %v1521_v3 }
 0x34e   : > { %v1098_v29 = vpop.f32.mrf.mxu2 }
 0x34f   : > { %v1138_v24 = vpack.c.bf16 %v1098_v29, %v1098_v29  ;;  %v6148_v29 = vor.u32 %v6555_v28, %v6147_v0 }
 0x351   : > { %v1522_v62 = vunpack.c.l.bf16 %v1138_v24 }
 0x353   : > { %v1586_v37 = vadd.f32 %v1554_v17, %v1522_v62 }
 0x356   : > { %v1101_v48 = vpop.f32.mrf.mxu2 }
 0x357   : > { %v1139_v34 = vpack.c.bf16 %v1101_v48, %v1101_v48 }
 0x358   : > { %2609 = vmatmul.bf16.gmra.mxu3 %v6132_v30 }
 0x359   : > { %v1523_v63 = vunpack.c.l.bf16 %v1139_v34  ;;  %v1682_v34 = vmax.f32 %v1586_v37, 0.0 }
 0x35b   : > { %v1587_v22 = vadd.f32 %v1555_v2, %v1523_v63 }
 0x35d   : > { %v1683_v16 = vmax.f32 %v1587_v22, 0.0 }
 0x35e   : > { %v1103_v36 = vpop.f32.mrf.mxu2 }
 0x35f   : > { %v1140_v15 = vpack.c.bf16 %v1103_v36, %v1103_v36  ;;  %v1520_v36 = vunpack.c.l.bf16 %v1136_v4  ;;  %v1377_v4 = vperm.slane %v1372_v9, %v7499_v32 }
 0x361   : > { %v1524_v13 = vunpack.c.l.bf16 %v1140_v15  ;;  %v1399_v15 = vpop.permute.xlu1 %1398  ;;  %v1545_v46 = vunpack.c.l.bf16 %v1377_v4 }
 0x363   : > { %v1588_v55 = vadd.f32 %v1556_v49, %v1524_v13  ;;  %v1681_v13 = vmax.f32 %v1585_v54, 0.0  ;;  %v1130_v49 = vpack.c.bf16 %v7714_v20, %v7714_v20  ;;  %v6155_v20 = vld [vmem:[%s9614_s6 + $0x1d0] sm:$0xf] }
 0x364   : > { %v6156_v3 = vor.u32 %v6557_v7, %v6155_v20  ;;  %v6507_v20 = vld [vmem:[%s9614_s6 + $0x44] sm:$0xf0] }
 0x365   : > { %v1684_v41 = vmax.f32 %v1588_v55, 0.0  ;;  %v1700_v59 = vpack.c.bf16 %v1682_v34, %v1681_v13  ;;  %v1514_v55 = vunpack.c.l.bf16 %v1130_v49  ;;  %v6559_v34 = vld [vmem:[%s9614_s6 + $0x1e4] sm:$0xf0]  ;;  %v6505_v13 = vld [vmem:[%s9614_s6 + $0x34] sm:$0xf0] }
 0x366   : > { %v1106_v43 = vpop.f32.mrf.mxu2 }
 0x367   : > { %v1141_v44 = vpack.c.bf16 %v1106_v43, %v1106_v43  ;;  %v1133_v43 = vpack.c.bf16 %v7736_v8, %v7736_v8  ;;  %v1132_v8 = vpack.c.bf16 %v7728_v45, %v7728_v45  ;;  %v1701_v50 = vpack.c.bf16 %v1684_v41, %v1683_v16 }
 0x368   : > { %2614 = vmatmul.bf16.gmra.mxu3 %v6140_v38  ;;  %v1422_v38 = vperm.slane %v1417_v19, %v7499_v32  ;;  %v1395_v45 = vperm.slane %v1390_v21, %v7499_v32  ;;  %v1127_v21 = vpack.c.bf16 %v7704_v47, %v7704_v47  ;;  %v5939_v47 = vld [vmem:[%s9614_s6 + $0x20] sm:$0xf] }
 0x369   : > { %v1525_v53 = vunpack.c.l.bf16 %v1141_v44  ;;  %v1519_v44 = vunpack.c.l.bf16 %v1135_v52  ;;  %v1517_v19 = vunpack.c.l.bf16 %v1133_v43  ;;  %v1516_v31 = vunpack.c.l.bf16 %v1132_v8  ;;  %v1354_v22 = vpop.permute.xlu1 %1353 }
 0x36a   : > { %v1550_v51 = vunpack.c.l.bf16 %v1422_v38  ;;  %v1547_v62 = vunpack.c.l.bf16 %v1395_v45  ;;  %v1511_v38 = vunpack.c.l.bf16 %v1127_v21 }
 0x36b   : > { %v1589_v42 = vadd.f32 %v1557_v5, %v1525_v53  ;;  %v1584_v53 = vadd.f32 %v1552_v12, %v1520_v36  ;;  %v1131_v5 = vpack.c.bf16 %v7726_v11, %v7726_v11  ;;  %v1583_v24 = vadd.f32 %v1551_v35, %v1519_v44  ;;  %v6503_v12 = vld [vmem:[%s9614_s6 + $0x24] sm:$0xf0] }
 0x36c   : > { %v1582_v63 = vadd.f32 %v1550_v51, %v1518_v1  ;;  %v1129_v11 = vpack.c.bf16 %v7708_v14, %v7708_v14  ;;  %v1363_v14 = vpop.permute.xlu2 %1362  ;;  %v5940_v9 = vor.u32 %v6503_v12, %v5939_v47  ;;  %v5925_v51 = vld [vmem:[%s9614_s6 + $0x8] sm:$0xf0] }
 0x36d   : > { %v1685_v30 = vmax.f32 %v1589_v42, 0.0  ;;  %v1680_v61 = vmax.f32 %v1584_v53, 0.0  ;;  %v1515_v0 = vunpack.c.l.bf16 %v1131_v5  ;;  %v1679_v2 = vmax.f32 %v1583_v24, 0.0  ;;  %v6498_v53 = vld [vmem:[%s9614_s6 + $0x4] sm:$0xf] }
 0x36e   : > { %v1108_v25 = vpop.f32.mrf.mxu2  ;;  %v1678_v18 = vmax.f32 %v1582_v63, 0.0  ;;  %2489 = vmatmul.bf16.gmra.mxu2 %v5940_v9  ;;  %v5947_v24 = vld [vmem:[%s9614_s6 + $0x30] sm:$0xf]  ;;  %v5933_v63 = vld [vmem:[%s9614_s6 + $0x18] sm:$0xf0] }
 0x36f   : > { %v1142_v27 = vpack.c.bf16 %v1108_v25, %v1108_v25  ;;  %v1404_v25 = vperm.slane %v1399_v15, %v7499_v32  ;;  %v1699_v17 = vpack.c.bf16 %v1680_v61, %v1679_v2  ;;  %v1579_v60 = vadd.f32 %v1547_v62, %v1515_v0  ;;  %v6500_v61 = vld [vmem:[%s9614_s6 + $0x14] sm:$0xf]  ;;  %v5955_v2 = vld [vmem:[%s9614_s6 + $0x40] sm:$0xf]  ;;  %v6511_v9 = vld [vmem:[%s9614_s6 + $0x64] sm:$0xf0] }
 0x370   : > { %v5936_v0 = vor.u32 %v6500_v61, %v5933_v63  ;;  %v5956_v7 = vor.u32 %v6507_v20, %v5955_v2  ;;  %v6203_v61 = vld [vmem:[%s9614_s6 + $0x230] sm:$0xf]  ;;  %v6569_v63 = vld [vmem:[%s9614_s6 + $0x234] sm:$0xf0] }
 0x371   : > { %v1526_v56 = vunpack.c.l.bf16 %v1142_v27  ;;  %v1549_v27 = vunpack.c.l.bf16 %v1413_v6  ;;  %v1548_v42 = vunpack.c.l.bf16 %v1404_v25  ;;  %v1675_v40 = vmax.f32 %v1579_v60, 0.0 }
 0x373   : > { %v1590_v10 = vadd.f32 %v1558_v58, %v1526_v56  ;;  %v1381_v58 = vpop.permute.xlu0 %1380  ;;  %v1581_v28 = vadd.f32 %v1549_v27, %v1517_v19  ;;  %v1580_v52 = vadd.f32 %v1548_v42, %v1516_v31  ;;  %v5928_v19 = vor.u32 %v6498_v53, %v5925_v51  ;;  %v6171_v31 = vld [vmem:[%s9614_s6 + $0x1f0] sm:$0xf] }
 0x374   : > { %v1386_v56 = vperm.slane %v1381_v58, %v7499_v32  ;;  %v5948_v27 = vor.u32 %v6505_v13, %v5947_v24  ;;  %v7860_v58 = vpop.permute.xlu1 %3524  ;;  %v6513_v24 = vld [vmem:[%s9614_s6 + $0x74] sm:$0xf0] }
 0x375   : > { %v1686_v48 = vmax.f32 %v1590_v10, 0.0  ;;  %v1128_v10 = vpack.c.bf16 %v7706_v23, %v7706_v23  ;;  %v1677_v33 = vmax.f32 %v1581_v28, 0.0  ;;  %v1359_v23 = vperm.slane %v1354_v22, %v7499_v32 }
 0x376   : > { %v1676_v41 = vmax.f32 %v1580_v52, 0.0 }
 0x377   : > { %v1702_v57 = vpack.c.bf16 %v1686_v48, %v1685_v30  ;;  %v1546_v30 = vunpack.c.l.bf16 %v1386_v56  ;;  %v1513_v48 = vunpack.c.l.bf16 %v1129_v11  ;;  %v1512_v36 = vunpack.c.l.bf16 %v1128_v10 }
 0x378   : > { %2619 = vmatmul.bf16.gmra.mxu3 %v6148_v29  ;;  %v1368_v29 = vperm.slane %v1363_v14, %v7499_v32  ;;  %v1543_v44 = vunpack.c.l.bf16 %v1359_v23  ;;  %v1697_v54 = vpack.c.bf16 %v1676_v41, %v1675_v40  ;;  %v6179_v14 = vld [vmem:[%s9614_s6 + $0x200] sm:$0xf]  ;;  %v6504_v41 = vld [vmem:[%s9614_s6 + $0x34] sm:$0xf] }
 0x379   : > { %2800 = vmatpush.bf16.msrb.mxu0 %v1702_v57  ;;  %6643 = vmatpush.bf16.msrb.mxu1 %v1702_v57  ;;  %v1698_v57 = vpack.c.bf16 %v1678_v18, %v1677_v33  ;;  %v1578_v37 = vadd.f32 %v1546_v30, %v1514_v55  ;;  %v1577_v39 = vadd.f32 %v1545_v46, %v1513_v48  ;;  %v6563_v55 = vld [vmem:[%s9614_s6 + $0x204] sm:$0xf0]  ;;  %v5941_v18 = vld [vmem:[%s9614_s6 + $0x28] sm:$0xf0]  ;;  %v5963_v30 = vld [vmem:[%s9614_s6 + $0x50] sm:$0xf] }
 0x37a   : > { %v1544_v43 = vunpack.c.l.bf16 %v1368_v29  ;;  %v1575_v35 = vadd.f32 %v1543_v44, %v1511_v38  ;;  %v6180_v29 = vor.u32 %v6563_v55, %v6179_v14  ;;  %v6509_v48 = vld [vmem:[%s9614_s6 + $0x54] sm:$0xf0]  ;;  %v5971_v40 = vld [vmem:[%s9614_s6 + $0x60] sm:$0xf] }
 0x37b   : > { %v1674_v16 = vmax.f32 %v1578_v37, 0.0  ;;  %v1673_v6 = vmax.f32 %v1577_v39, 0.0  ;;  %v7856_v45 = vpop.permute.xlu0 %3515  ;;  %v5964_v60 = vor.u32 %v6509_v48, %v5963_v30  ;;  %v5949_v37 = vld [vmem:[%s9614_s6 + $0x38] sm:$0xf0]  ;;  %v5972_v44 = vor.u32 %v6511_v9, %v5971_v40 }
 0x37c   : > { %v1576_v26 = vadd.f32 %v1544_v43, %v1512_v36  ;;  %v1671_v1 = vmax.f32 %v1575_v35, 0.0  ;;  %v7878_v28 = vpop.permute.xlu1 %3551  ;;  %v6187_v36 = vld [vmem:[%s9614_s6 + $0x210] sm:$0xf]  ;;  %v5952_v39 = vor.u32 %v6504_v41, %v5949_v37  ;;  %v6510_v41 = vld [vmem:[%s9614_s6 + $0x64] sm:$0xf] }
 0x37d   : > { %2801 = vmatpush.bf16.msrb.mxu0 %v1701_v50  ;;  %6644 = vmatpush.bf16.msrb.mxu1 %v1701_v50  ;;  %v1696_v8 = vpack.c.bf16 %v1674_v16, %v1673_v6  ;;  %v6163_v50 = vld [vmem:[%s9614_s6 + $0x1e0] sm:$0xf]  ;;  %v5973_v37 = vld [vmem:[%s9614_s6 + $0x68] sm:$0xf0] }
 0x37e   : > { %v1672_v15 = vmax.f32 %v1576_v26, 0.0  ;;  %v6164_v5 = vor.u32 %v6559_v34, %v6163_v50  ;;  %2494 = vmatmul.bf16.gmra.mxu2 %v5948_v27  ;;  %v6195_v6 = vld [vmem:[%s9614_s6 + $0x220] sm:$0xf] }
 0x380   : > { %v1695_v25 = vpack.c.bf16 %v1672_v15, %v1671_v1  ;;  %v6506_v15 = vld [vmem:[%s9614_s6 + $0x44] sm:$0xf]  ;;  %v5957_v1 = vld [vmem:[%s9614_s6 + $0x48] sm:$0xf0] }
 0x381   : > { %2802 = vmatpush.bf16.msrb.mxu0 %v1700_v59  ;;  %6645 = vmatpush.bf16.msrb.mxu1 %v1700_v59  ;;  %v6561_v59 = vld [vmem:[%s9614_s6 + $0x1f4] sm:$0xf0]  ;;  %v5960_v51 = vor.u32 %v6506_v15, %v5957_v1 }
 0x382   : > { %v6172_v11 = vor.u32 %v6561_v59, %v6171_v31 }
 0x383   : > { %v7876_v56 = vpop.permute.xlu0 %3542 }
 0x384   : > { %v7890_v10 = vpop.permute.xlu1 %3578 }
 0x385   : > { %2803 = vmatpush.bf16.msrb.mxu0 %v1699_v17  ;;  %6646 = vmatpush.bf16.msrb.mxu1 %v1699_v17  ;;  %v6502_v17 = vld [vmem:[%s9614_s6 + $0x24] sm:$0xf] }
 0x386   : > { %v5944_v21 = vor.u32 %v6502_v17, %v5941_v18 }
 0x388   : > { %2624 = vmatmul.bf16.gmra.mxu3 %v6156_v3  ;;  %v7906_v3 = vpop.permute.xlu2 %3533 }
 0x389   : > { %2804 = vmatpush.bf16.msrb.mxu0 %v1698_v57  ;;  %6647 = vmatpush.bf16.msrb.mxu1 %v1698_v57  ;;  %v6565_v57 = vld [vmem:[%s9614_s6 + $0x214] sm:$0xf0] }
 0x38a   : > { %v6188_v43 = vor.u32 %v6565_v57, %v6187_v36  ;;  %v6211_v36 = vld [vmem:[%s9614_s6 + $0x240] sm:$0xf]  ;;  %v6571_v57 = vld [vmem:[%s9614_s6 + $0x244] sm:$0xf0] }
 0x38b   : > { %v7888_v62 = vpop.permute.xlu0 %3569  ;;  %v6212_v9 = vor.u32 %v6571_v57, %v6211_v36 }
 0x38c   : > { %v7916_v33 = vpop.permute.xlu1 %3605 }
 0x38d   : > { %2805 = vmatpush.bf16.msrb.mxu0 %v1697_v54  ;;  %6648 = vmatpush.bf16.msrb.mxu1 %v1697_v54 }
 0x38e   : > { %2499 = vmatmul.bf16.gmra.mxu2 %v5956_v7  ;;  %v6204_v7 = vor.u32 %v6569_v63, %v6203_v61  ;;  %v6219_v61 = vld [vmem:[%s9614_s6 + $0x250] sm:$0xf] }
 0x390   : > { %v7920_v23 = vpop.permute.xlu2 %3560 }
 0x391   : > { %2806 = vmatpush.bf16.msrb.mxu0 %v1696_v8  ;;  %6649 = vmatpush.bf16.msrb.mxu1 %v1696_v8  ;;  %v6567_v8 = vld [vmem:[%s9614_s6 + $0x224] sm:$0xf0] }
 0x392   : > { %v6196_v53 = vor.u32 %v6567_v8, %v6195_v6 }
 0x393   : > { %v7908_v22 = vpop.permute.xlu0 %3596 }
 0x394   : > { %v7938_v12 = vpop.permute.xlu1 %3632 }
 0x395   : > { %2807 = vmatpush.bf16.msrb.mxu0 %v1695_v25  ;;  %6650 = vmatpush.bf16.msrb.mxu1 %v1695_v25 }
 0x398   : > { %2629 = vmatmul.bf16.gmra.mxu3 %v6164_v5  ;;  %2808 = vmatmul.bf16.vlgmr.msrb.gmra.mxu0 %v5928_v19  ;;  %v7946_v54 = vpop.permute.xlu2 %3587  ;;  %v5979_v19 = vld [vmem:[%s9614_s6 + $0x70] sm:$0xf] }
 0x399   : > { %v5980_v13 = vor.u32 %v6513_v24, %v5979_v19  ;;  %v5995_v19 = vld [vmem:[%s9614_s6 + $0x90] sm:$0xf]  ;;  %v6517_v24 = vld [vmem:[%s9614_s6 + $0x94] sm:$0xf0] }
 0x39a   : > { %v5996_v63 = vor.u32 %v6517_v24, %v5995_v19  ;;  %v6519_v19 = vld [vmem:[%s9614_s6 + $0xa4] sm:$0xf0] }
 0x39b   : > { %v7858_v49 = vpop.f32.mrf.mxu3  ;;  %v7934_v38 = vpop.permute.xlu0 %3623 }
 0x39c   : > { %9629 = vst [vmem:[#allocation8_spill] sm:$0xff] %v7858_v49  ;;  %v7952_v35 = vpop.permute.xlu1 %3659 }
 0x39e   : > { %2504 = vmatmul.bf16.gmra.mxu2 %v5964_v60  ;;  %v2480_v60 = vpop.f32.mrf.mxu2 }
 0x3a0   : > { %v7968_v34 = vpop.permute.xlu2 %3614 }
 0x3a3   : > { %v7874_v42 = vpop.f32.mrf.mxu3  ;;  %v7950_v26 = vpop.permute.xlu0 %3650 }
 0x3a4   : > { %9630 = vst [vmem:[#allocation9_spill] sm:$0xff] %v7874_v42  ;;  %v7972_v5 = vpop.permute.xlu1 %3686 }
 0x3a6   : > { %v2482_v8 = vpop.f32.mrf.mxu2 }
 0x3a8   : > { %2634 = vmatmul.bf16.gmra.mxu3 %v6172_v11  ;;  %2813 = vmatmul.bf16.gmra.mxu0 %v5936_v0  ;;  %v7982_v31 = vpop.permute.xlu2 %3641  ;;  %v6508_v11 = vld [vmem:[%s9614_s6 + $0x54] sm:$0xf]  ;;  %v5965_v0 = vld [vmem:[%s9614_s6 + $0x58] sm:$0xf0] }
 0x3a9   : > { %v5968_v14 = vor.u32 %v6508_v11, %v5965_v0  ;;  %v6573_v11 = vld [vmem:[%s9614_s6 + $0x254] sm:$0xf0]  ;;  %v6512_v0 = vld [vmem:[%s9614_s6 + $0x74] sm:$0xf] }
 0x3ab   : > { %v7886_v4 = vpop.f32.mrf.mxu3  ;;  %v7970_v25 = vpop.permute.xlu0 %3677 }
 0x3ac   : > { %9631 = vst [vmem:[#allocation10_spill] sm:$0xff] %v7886_v4  ;;  %v7998_v2 = vpop.permute.xlu1 %3713 }
 0x3ae   : > { %2509 = vmatmul.bf16.gmra.mxu2 %v5972_v44  ;;  %v5976_v44 = vor.u32 %v6510_v41, %v5973_v37 }
 0x3b0   : > { %v8002_v55 = vpop.permute.xlu2 %3668 }
 0x3b3   : > { %v7904_v52 = vpop.f32.mrf.mxu3  ;;  %v7984_v59 = vpop.permute.xlu0 %3704 }
 0x3b4   : > { %9632 = vst [vmem:[#allocation11_spill] sm:$0xff] %v7904_v52  ;;  %v8014_v30 = vpop.permute.xlu1 %3740 }
 0x3b8   : > { %2639 = vmatmul.bf16.gmra.mxu3 %v6180_v29  ;;  %2818 = vmatmul.bf16.gmra.mxu0 %v5944_v21  ;;  %v5987_v29 = vld [vmem:[%s9614_s6 + $0x80] sm:$0xf]  ;;  %v6515_v21 = vld [vmem:[%s9614_s6 + $0x84] sm:$0xf0] }
 0x3b9   : > { %v5988_v48 = vor.u32 %v6515_v21, %v5987_v29  ;;  %v6220_v29 = vor.u32 %v6573_v11, %v6219_v61  ;;  %v6227_v61 = vld [vmem:[%s9614_s6 + $0x260] sm:$0xf]  ;;  %v6575_v11 = vld [vmem:[%s9614_s6 + $0x264] sm:$0xf0] }
 0x3bb   : > { %v7918_v46 = vpop.f32.mrf.mxu3  ;;  %v8004_v17 = vpop.permute.xlu0 %3731 }
 0x3bc   : > { %9633 = vst [vmem:[#allocation12_spill] sm:$0xff] %v7918_v46  ;;  %v8034_v6 = vpop.permute.xlu1 %3767  ;;  %v3539_v46 = vperm.slane %v7906_v3, %v7499_v32  ;;  %v6580_v3 = vld [vmem:[%s9614_s6 + $0x294] sm:$0xf] }
 0x3be   : > { %2514 = vmatmul.bf16.gmra.mxu2 %v5980_v13 }
 0x3c3   : > { %v7936_v47 = vpop.f32.mrf.mxu3  ;;  %v8032_v40 = vpop.permute.xlu0 %3758 }
 0x3c4   : > { %9634 = vst [vmem:[#allocation13_spill] sm:$0xff] %v7936_v47  ;;  %v8050_v13 = vpop.permute.xlu1 %3794 }
 0x3c8   : > { %2644 = vmatmul.bf16.gmra.mxu3 %v6188_v43  ;;  %2823 = vmatmul.bf16.gmra.mxu0 %v5952_v39  ;;  %v8028_v43 = vpop.permute.xlu2 %3695 }
 0x3cb   : > { %v7948_v16 = vpop.f32.mrf.mxu3 }
 0x3cc   : > { %9635 = vst [vmem:[#allocation14_spill] sm:$0xff] %v7948_v16  ;;  %v8072_v41 = vpop.permute.xlu1 %3821 }
 0x3ce   : > { %2519 = vmatmul.bf16.gmra.mxu2 %v5988_v48 }
 0x3d0   : > { %v8038_v1 = vpop.permute.xlu2 %3722 }
 0x3d3   : > { %v7966_v50 = vpop.f32.mrf.mxu3 }
 0x3d4   : > { %9636 = vst [vmem:[#allocation15_spill] sm:$0xff] %v7966_v50 }
 0x3d8   : > { %2649 = vmatmul.bf16.gmra.mxu3 %v6196_v53  ;;  %2828 = vmatmul.bf16.gmra.mxu0 %v5960_v51  ;;  %v8040_v53 = vpop.permute.xlu0 %3785  ;;  %v8042_v51 = vpop.f32.mrf.mxu2 }
 0x3d9   : > { %v8066_v48 = vpop.permute.xlu2 %3749 }
 0x3db   : > { %v7980_v27 = vpop.f32.mrf.mxu3 }
 0x3dc   : > { %9637 = vst [vmem:[#allocation16_spill] sm:$0xff] %v7980_v27 }
 0x3de   : > { %2524 = vmatmul.bf16.gmra.mxu2 %v5996_v63 }
 0x3e0   : > { %v8068_v36 = vpop.f32.mrf.mxu2  ;;  %v8070_v57 = vpop.permute.xlu0 %3812 }
 0x3e1   : > { %v8084_v24 = vpop.permute.xlu2 %3776 }
 0x3e3   : > { %v8000_v20 = vpop.f32.mrf.mxu3 }
 0x3e4   : > { %9638 = vst [vmem:[#allocation17_spill] sm:$0xff] %v8000_v20 }
 0x3e8   : > { %2654 = vmatmul.bf16.gmra.mxu3 %v6204_v7  ;;  %2833 = vmatmul.bf16.gmra.mxu0 %v5968_v14  ;;  %v5981_v7 = vld [vmem:[%s9614_s6 + $0x78] sm:$0xf0] }
 0x3e9   : > { %v5984_v21 = vor.u32 %v6512_v0, %v5981_v7  ;;  %v6514_v0 = vld [vmem:[%s9614_s6 + $0x84] sm:$0xf]  ;;  %v5989_v7 = vld [vmem:[%s9614_s6 + $0x88] sm:$0xf0]  ;;  %v8108_v50 = vpop.permute.xlu2 %3803 }
 0x3eb   : > { %v8006_v18 = vpop.f32.mrf.mxu3 }
 0x3ec   : > { %9639 = vst [vmem:[#allocation18_spill] sm:$0xff] %v8006_v18 }
 0x3f3   : > { %v8030_v39 = vpop.f32.mrf.mxu3 }
 0x3f4   : > { %9640 = vst [vmem:[#allocation19_spill] sm:$0xff] %v8030_v39 }
 0x3f8   : > { %2659 = vmatmul.bf16.gmra.mxu3 %v6212_v9  ;;  %2838 = vmatmul.bf16.gmra.mxu0 %v5976_v44  ;;  %v8076_v9 = vpop.f32.mrf.mxu2  ;;  %v6003_v44 = vld [vmem:[%s9614_s6 + $0xa0] sm:$0xf] }
 0x3f9   : > { %v6004_v63 = vor.u32 %v6519_v19, %v6003_v44  ;;  %v6228_v44 = vor.u32 %v6575_v11, %v6227_v61  ;;  %v5992_v19 = vor.u32 %v6514_v0, %v5989_v7  ;;  %v6578_v61 = vld [vmem:[%s9614_s6 + $0x284] sm:$0xf] }
 0x3fb   : > { %v8036_v15 = vpop.f32.mrf.mxu3  ;;  %2529 = vmatmul.bf16.gmra.mxu2 %v6004_v63 }
 0x3fc   : > { %9641 = vst [vmem:[#allocation20_spill] sm:$0xff] %v8036_v15  ;;  %v3521_v15 = vperm.slane %v7856_v45, %v7499_v32  ;;  %v6245_v45 = vld [vmem:[%s9614_s6 + $0x288] sm:$0xf0] }
 0x3fe   : > { %v4793_v27 = vunpack.c.l.bf16 %v3521_v15  ;;  %v3530_v15 = vperm.slane %v7860_v58, %v7499_v32 }
 0x400   : > { %v8106_v18 = vpop.f32.mrf.mxu2 }
 0x403   : > { %v8064_v14 = vpop.f32.mrf.mxu3 }
 0x404   : > { %9642 = vst [vmem:[#allocation21_spill] sm:$0xff] %v8064_v14 }
 0x408   : > { %2664 = vmatmul.bf16.gmra.mxu3 %v6220_v29  ;;  %2843 = vmatmul.bf16.gmra.mxu0 %v5984_v21  ;;  %v8098_v29 = vpop.permute.xlu0 %3839  ;;  %v8124_v7 = vpop.f32.mrf.mxu2 }
 0x40b   : > { %v8074_v37 = vpop.f32.mrf.mxu3 }
 0x40c   : > { %9643 = vst [vmem:[#allocation22_spill] sm:$0xff] %v8074_v37  ;;  %v8102_v37 = vpop.permute.xlu1 %3848 }
 0x413   : > { %v8100_v21 = vpop.f32.mrf.mxu3 }
 0x414   : > { %9644 = vst [vmem:[#allocation23_spill] sm:$0xff] %v8100_v21  ;;  %v8122_v0 = vpop.permute.xlu1 %3875 }
 0x415   : > { %v2809_v14 = vpop.f32.mrf.mxu0  ;;  %9647 = vst [vmem:[#allocation26_spill] sm:$0xff] %v8122_v0 }
 0x416   : > { %v2810_v39 = vadd.f32 %v2809_v14, %v2480_v60  ;;  %v8118_v60 = vpop.permute.xlu0 %3866 }
 0x417   : > { %9646 = vst [vmem:[#allocation25_spill] sm:$0xff] %v8118_v60 }
 0x418   : > { %v3129_v20 = vpack.c.bf16 %v2810_v39, %v2810_v39  ;;  %2669 = vmatmul.bf16.gmra.mxu3 %v6228_v44  ;;  %2848 = vmatmul.bf16.gmra.mxu0 %v5992_v19  ;;  %v6248_v39 = vor.u32 %v6578_v61, %v6245_v45  ;;  %v6011_v44 = vld [vmem:[%s9614_s6 + $0xb0] sm:$0xf]  ;;  %v6521_v19 = vld [vmem:[%s9614_s6 + $0xb4] sm:$0xf0]  ;;  %v6516_v61 = vld [vmem:[%s9614_s6 + $0x94] sm:$0xf] }
 0x419   : > { %v6012_v58 = vor.u32 %v6521_v19, %v6011_v44  ;;  %v5997_v45 = vld [vmem:[%s9614_s6 + $0x98] sm:$0xf0] }
 0x41a   : > { %v4665_v63 = vunpack.c.l.bf16 %v3129_v20  ;;  %3008 = vmatmul.bf16.vlgmr.msrb.gmra.mxu1 %v6248_v39  ;;  %v4794_v39 = vunpack.c.l.bf16 %v3530_v15  ;;  %v6000_v21 = vor.u32 %v6516_v61, %v5997_v45  ;;  %v8153_v15 = vpop.f32.mrf.mxu2 }
 0x41b   : > { %v8110_v16 = vpop.f32.mrf.mxu3  ;;  %2534 = vmatmul.bf16.gmra.mxu2 %v6012_v58 }
 0x41c   : > { %9645 = vst [vmem:[#allocation24_spill] sm:$0xff] %v8110_v16  ;;  %v4921_v14 = vadd.f32 %v4793_v27, %v4665_v63  ;;  %v6235_v63 = vld [vmem:[%s9614_s6 + $0x270] sm:$0xf]  ;;  %v8146_v16 = vpop.permute.xlu2 %3830 }
 0x41d   : > { %v2811_v11 = vpop.f32.mrf.mxu0 }
 0x41e   : > { %v2812_v20 = vadd.f32 %v2811_v11, %v2482_v8  ;;  %v6577_v8 = vld [vmem:[%s9614_s6 + $0x274] sm:$0xf0]  ;;  %v8150_v52 = vpop.permute.xlu0 %3893  ;;  %v5305_v4 = vmax.f32 %v4921_v14, 0.0 }
 0x41f   : > { %v6236_v19 = vor.u32 %v6577_v8, %v6235_v63  ;;  %9649 = vst [vmem:[#allocation28_spill] sm:$0xff] %v8150_v52  ;;  %v4795_v63 = vunpack.c.l.bf16 %v3539_v46 }
 0x420   : > { %v3130_v27 = vpack.c.bf16 %v2812_v20, %v2812_v20 }
 0x422   : > { %v4666_v11 = vunpack.c.l.bf16 %v3130_v27  ;;  %v8155_v27 = vpop.permute.xlu1 %3902  ;;  %v8172_v46 = vpop.f32.mrf.mxu2 }
 0x423   : > { %v8144_v20 = vpop.f32.mrf.mxu3  ;;  %9650 = vst [vmem:[#allocation29_spill] sm:$0xff] %v8155_v27 }
 0x424   : > { %9648 = vst [vmem:[#allocation27_spill] sm:$0xff] %v8144_v20  ;;  %v4922_v44 = vadd.f32 %v4794_v39, %v4666_v11  ;;  %v6523_v11 = vld [vmem:[%s9614_s6 + $0xc4] sm:$0xf0]  ;;  %v3557_v20 = vperm.slane %v7878_v28, %v7499_v32  ;;  %v6582_v28 = vld [vmem:[%s9614_s6 + $0x2a4] sm:$0xf] }
 0x425   : > { %v2814_v47 = vpop.f32.mrf.mxu0 }
 0x426   : > { %v5306_v42 = vmax.f32 %v4922_v44, 0.0  ;;  %v2815_v49 = vadd.f32 %v2814_v47, %v8042_v51  ;;  %v6253_v47 = vld [vmem:[%s9614_s6 + $0x298] sm:$0xf0]  ;;  %v8180_v44 = vpop.permute.xlu0 %3920 }
 0x427   : > { %v6256_v14 = vor.u32 %v6580_v3, %v6253_v47  ;;  %9652 = vst [vmem:[#allocation31_spill] sm:$0xff] %v8180_v44 }
 0x428   : > { %v3131_v58 = vpack.c.bf16 %v2815_v49, %v2815_v49  ;;  %2674 = vmatmul.bf16.gmra.mxu3 %v6236_v19  ;;  %2853 = vmatmul.bf16.gmra.mxu0 %v6000_v21  ;;  %v8157_v39 = vpack.c.bf16 %v5306_v42, %v5305_v4  ;;  %v3548_v49 = vperm.slane %v7876_v56, %v7499_v32  ;;  %v8169_v42 = vpop.permute.xlu2 %3857  ;;  %v6019_v21 = vld [vmem:[%s9614_s6 + $0xc0] sm:$0xf] }
 0x429   : > { %v6243_v56 = vld [vmem:[%s9614_s6 + $0x280] sm:$0xf] }
 0x42a   : > { %v4667_v8 = vunpack.c.l.bf16 %v3131_v58  ;;  %3013 = vmatmul.bf16.gmra.mxu1 %v6256_v14  ;;  %v6020_v58 = vor.u32 %v6523_v11, %v6019_v21  ;;  %v4796_v3 = vunpack.c.l.bf16 %v3548_v49  ;;  %v8194_v47 = vpop.permute.xlu1 %3929  ;;  %v8201_v0 = vpop.f32.mrf.mxu2 }
 0x42b   : > { %v8159_v61 = vpop.f32.mrf.mxu3  ;;  %9653 = vst [vmem:[#allocation32_spill] sm:$0xff] %v8194_v47 }
 0x42c   : > { %9651 = vst [vmem:[#allocation30_spill] sm:$0xff] %v8159_v61  ;;  %v4923_v51 = vadd.f32 %v4795_v63, %v4667_v8  ;;  %v6518_v63 = vld [vmem:[%s9614_s6 + $0xa4] sm:$0xf]  ;;  %v6005_v8 = vld [vmem:[%s9614_s6 + $0xa8] sm:$0xf0]  ;;  %2539 = vmatmul.bf16.gmra.mxu2 %v6020_v58  ;;  %v4797_v58 = vunpack.c.l.bf16 %v3557_v20  ;;  %v3566_v20 = vperm.slane %v7920_v23, %v7499_v32 }
 0x42d   : > { %v2816_v45 = vpop.f32.mrf.mxu0  ;;  %v6008_v11 = vor.u32 %v6518_v63, %v6005_v8  ;;  %v6581_v23 = vld [vmem:[%s9614_s6 + $0x294] sm:$0xf0] }
 0x42e   : > { %v2817_v4 = vadd.f32 %v2816_v45, %v8068_v36  ;;  %v6579_v36 = vld [vmem:[%s9614_s6 + $0x284] sm:$0xf0]  ;;  %v5307_v44 = vmax.f32 %v4923_v51, 0.0 }
 0x42f   : > { %v6244_v21 = vor.u32 %v6579_v36, %v6243_v56  ;;  %v8207_v56 = vpop.permute.xlu0 %3947 }
 0x430   : > { %v3132_v19 = vpack.c.bf16 %v2817_v4, %v2817_v4  ;;  %v8203_v49 = vpop.permute.xlu2 %3884  ;;  %9656 = vst [vmem:[#allocation35_spill] sm:$0xff] %v8207_v56 }
 0x431   : > { %9655 = vst [vmem:[#allocation34_spill] sm:$0xff] %v8203_v49 }
 0x432   : > { %v4668_v14 = vunpack.c.l.bf16 %v3132_v19  ;;  %v8222_v8 = vpop.f32.mrf.mxu2 }
 0x433   : > { %v8196_v45 = vpop.f32.mrf.mxu3 }
 0x434   : > { %9654 = vst [vmem:[#allocation33_spill] sm:$0xff] %v8196_v45  ;;  %v4924_v4 = vadd.f32 %v4796_v3, %v4668_v14  ;;  %v6027_v3 = vld [vmem:[%s9614_s6 + $0xd0] sm:$0xf] }
 0x435   : > { %v2819_v61 = vpop.f32.mrf.mxu0 }
 0x436   : > { %v5308_v27 = vmax.f32 %v4924_v4, 0.0  ;;  %v2820_v52 = vadd.f32 %v2819_v61, %v8076_v9  ;;  %v6261_v9 = vld [vmem:[%s9614_s6 + $0x2a8] sm:$0xf0]  ;;  %v8217_v61 = vpop.permute.xlu1 %3956  ;;  %v6251_v4 = vld [vmem:[%s9614_s6 + $0x290] sm:$0xf] }
 0x437   : > { %9658 = vst [vmem:[#allocation37_spill] sm:$0xff] %v8217_v61  ;;  %v6264_v51 = vor.u32 %v6582_v28, %v6261_v9 }
 0x438   : > { %v3133_v47 = vpack.c.bf16 %v2820_v52, %v2820_v52  ;;  %2679 = vmatmul.bf16.gmra.mxu3 %v6244_v21  ;;  %2858 = vmatmul.bf16.gmra.mxu0 %v6008_v11  ;;  %v8205_v19 = vpack.c.bf16 %v5308_v27, %v5307_v44  ;;  %v6013_v11 = vld [vmem:[%s9614_s6 + $0xb8] sm:$0xf0] }
 0x43a   : > { %v4669_v36 = vunpack.c.l.bf16 %v3133_v47  ;;  %3018 = vmatmul.bf16.gmra.mxu1 %v6264_v51  ;;  %v6525_v47 = vld [vmem:[%s9614_s6 + $0xd4] sm:$0xf0]  ;;  %v8246_v51 = vpop.permute.xlu0 %3974 }
 0x43b   : > { %v8209_v63 = vpop.f32.mrf.mxu3  ;;  %v6028_v21 = vor.u32 %v6525_v47, %v6027_v3  ;;  %9661 = vst [vmem:[#allocation40_spill] sm:$0xff] %v8246_v51 }
 0x43c   : > { %9657 = vst [vmem:[#allocation36_spill] sm:$0xff] %v8209_v63  ;;  %v4925_v52 = vadd.f32 %v4797_v58, %v4669_v36  ;;  %v4798_v58 = vunpack.c.l.bf16 %v3566_v20  ;;  %v8242_v36 = vpop.permute.xlu2 %3911  ;;  %v3575_v63 = vperm.slane %v7888_v62, %v7499_v32  ;;  %v6584_v62 = vld [vmem:[%s9614_s6 + $0x2b4] sm:$0xf] }
 0x43d   : > { %v2821_v27 = vpop.f32.mrf.mxu0  ;;  %9659 = vst [vmem:[#allocation38_spill] sm:$0xff] %v8242_v36  ;;  %2544 = vmatmul.bf16.gmra.mxu2 %v6028_v21  ;;  %v8253_v36 = vpop.f32.mrf.mxu2 }
 0x43e   : > { %v2822_v44 = vadd.f32 %v2821_v27, %v8106_v18  ;;  %v6520_v18 = vld [vmem:[%s9614_s6 + $0xb4] sm:$0xf]  ;;  %v8250_v45 = vpop.permute.xlu1 %3983  ;;  %v5309_v61 = vmax.f32 %v4925_v52, 0.0  ;;  %v6269_v52 = vld [vmem:[%s9614_s6 + $0x2b8] sm:$0xf0] }
 0x43f   : > { %v6016_v3 = vor.u32 %v6520_v18, %v6013_v11  ;;  %9662 = vst [vmem:[#allocation41_spill] sm:$0xff] %v8250_v45  ;;  %v6272_v11 = vor.u32 %v6584_v62, %v6269_v52 }
 0x440   : > { %v3134_v14 = vpack.c.bf16 %v2822_v44, %v2822_v44  ;;  %v6252_v44 = vor.u32 %v6581_v23, %v6251_v4 }
 0x442   : > { %v4670_v28 = vunpack.c.l.bf16 %v3134_v14 }
 0x443   : > { %v8244_v9 = vpop.f32.mrf.mxu3 }
 0x444   : > { %9660 = vst [vmem:[#allocation39_spill] sm:$0xff] %v8244_v9  ;;  %v4926_v27 = vadd.f32 %v4798_v58, %v4670_v28  ;;  %v4799_v58 = vunpack.c.l.bf16 %v3575_v63  ;;  %v8269_v63 = vpop.permute.xlu0 %4001 }
 0x445   : > { %v2824_v47 = vpop.f32.mrf.mxu0  ;;  %9665 = vst [vmem:[#allocation44_spill] sm:$0xff] %v8269_v63 }
 0x446   : > { %v5310_v56 = vmax.f32 %v4926_v27, 0.0  ;;  %v2825_v20 = vadd.f32 %v2824_v47, %v8124_v7  ;;  %v8265_v7 = vpop.permute.xlu2 %3938  ;;  %v8272_v27 = vpop.f32.mrf.mxu2 }
 0x447   : > { %9664 = vst [vmem:[#allocation43_spill] sm:$0xff] %v8265_v7  ;;  %v8280_v47 = vpop.permute.xlu1 %4010 }
 0x448   : > { %v3135_v14 = vpack.c.bf16 %v2825_v20, %v2825_v20  ;;  %2684 = vmatmul.bf16.gmra.mxu3 %v6252_v44  ;;  %2863 = vmatmul.bf16.gmra.mxu0 %v6016_v3  ;;  %v8255_v21 = vpack.c.bf16 %v5310_v56, %v5309_v61  ;;  %v3584_v56 = vperm.slane %v7890_v10, %v7499_v32  ;;  %v6035_v44 = vld [vmem:[%s9614_s6 + $0xe0] sm:$0xf]  ;;  %v6527_v3 = vld [vmem:[%s9614_s6 + $0xe4] sm:$0xf0] }
 0x449   : > { %9666 = vst [vmem:[#allocation45_spill] sm:$0xff] %v8280_v47  ;;  %v6259_v10 = vld [vmem:[%s9614_s6 + $0x2a0] sm:$0xf] }
 0x44a   : > { %v4671_v4 = vunpack.c.l.bf16 %v3135_v14  ;;  %3023 = vmatmul.bf16.gmra.mxu1 %v6272_v11  ;;  %v6036_v14 = vor.u32 %v6527_v3, %v6035_v44  ;;  %v4800_v62 = vunpack.c.l.bf16 %v3584_v56 }
 0x44b   : > { %v8257_v23 = vpop.f32.mrf.mxu3 }
 0x44c   : > { %9663 = vst [vmem:[#allocation42_spill] sm:$0xff] %v8257_v23  ;;  %v4927_v18 = vadd.f32 %v4799_v58, %v4671_v4  ;;  %v6522_v58 = vld [vmem:[%s9614_s6 + $0xc4] sm:$0xf]  ;;  %v6021_v4 = vld [vmem:[%s9614_s6 + $0xc8] sm:$0xf0]  ;;  %v3593_v23 = vperm.slane %v7946_v54, %v7499_v32  ;;  %v8303_v56 = vpop.permute.xlu0 %4028 }
 0x44d   : > { %v2826_v28 = vpop.f32.mrf.mxu0  ;;  %2549 = vmatmul.bf16.gmra.mxu2 %v6036_v14  ;;  %v6024_v44 = vor.u32 %v6522_v58, %v6021_v4  ;;  %9669 = vst [vmem:[#allocation48_spill] sm:$0xff] %v8303_v56 }
 0x44e   : > { %v2827_v61 = vadd.f32 %v2826_v28, %v8153_v15  ;;  %v6583_v15 = vld [vmem:[%s9614_s6 + $0x2a4] sm:$0xf0]  ;;  %v8298_v9 = vpop.permute.xlu2 %3965  ;;  %v5311_v47 = vmax.f32 %v4927_v18, 0.0  ;;  %v8301_v51 = vpop.f32.mrf.mxu2  ;;  %v6586_v18 = vld [vmem:[%s9614_s6 + $0x2c4] sm:$0xf] }
 0x44f   : > { %9668 = vst [vmem:[#allocation47_spill] sm:$0xff] %v8298_v9 }
 0x450   : > { %v3136_v20 = vpack.c.bf16 %v2827_v61, %v2827_v61  ;;  %v6260_v61 = vor.u32 %v6583_v15, %v6259_v10  ;;  %v4801_v10 = vunpack.c.l.bf16 %v3593_v23  ;;  %v8307_v15 = vpop.permute.xlu1 %4037 }
 0x451   : > { %9670 = vst [vmem:[#allocation49_spill] sm:$0xff] %v8307_v15 }
 0x452   : > { %v4672_v52 = vunpack.c.l.bf16 %v3136_v20 }
 0x453   : > { %v8294_v11 = vpop.f32.mrf.mxu3 }
 0x454   : > { %9667 = vst [vmem:[#allocation46_spill] sm:$0xff] %v8294_v11  ;;  %v4928_v28 = vadd.f32 %v4800_v62, %v4672_v52  ;;  %v6529_v52 = vld [vmem:[%s9614_s6 + $0xf4] sm:$0xf0] }
 0x455   : > { %v2829_v3 = vpop.f32.mrf.mxu0 }
 0x456   : > { %v5312_v63 = vmax.f32 %v4928_v28, 0.0  ;;  %v2830_v45 = vadd.f32 %v2829_v3, %v8172_v46  ;;  %v6277_v46 = vld [vmem:[%s9614_s6 + $0x2c8] sm:$0xf0]  ;;  %v8326_v28 = vpop.permute.xlu2 %3992 }
 0x457   : > { %9672 = vst [vmem:[#allocation51_spill] sm:$0xff] %v8326_v28 }
 0x458   : > { %v3137_v20 = vpack.c.bf16 %v2830_v45, %v2830_v45  ;;  %2689 = vmatmul.bf16.gmra.mxu3 %v6260_v61  ;;  %2868 = vmatmul.bf16.gmra.mxu0 %v6024_v44  ;;  %v8305_v14 = vpack.c.bf16 %v5312_v63, %v5311_v47  ;;  %v6280_v45 = vor.u32 %v6586_v18, %v6277_v46  ;;  %v6043_v47 = vld [vmem:[%s9614_s6 + $0xf0] sm:$0xf]  ;;  %v8342_v18 = vpop.permute.xlu0 %4055 }
 0x459   : > { %v3602_v63 = vperm.slane %v7908_v22, %v7499_v32  ;;  %v6267_v44 = vld [vmem:[%s9614_s6 + $0x2b0] sm:$0xf]  ;;  %v6044_v3 = vor.u32 %v6529_v52, %v6043_v47  ;;  %v6585_v22 = vld [vmem:[%s9614_s6 + $0x2b4] sm:$0xf0]  ;;  %9673 = vst [vmem:[#allocation52_spill] sm:$0xff] %v8342_v18 }
 0x45a   : > { %v4673_v58 = vunpack.c.l.bf16 %v3137_v20  ;;  %3028 = vmatmul.bf16.gmra.mxu1 %v6280_v45  ;;  %v6029_v20 = vld [vmem:[%s9614_s6 + $0xd8] sm:$0xf0]  ;;  %v6268_v47 = vor.u32 %v6585_v22, %v6267_v44 }
 0x45b   : > { %v8309_v54 = vpop.f32.mrf.mxu3  ;;  %v6285_v44 = vld [vmem:[%s9614_s6 + $0x2d8] sm:$0xf0] }
 0x45c   : > { %9671 = vst [vmem:[#allocation50_spill] sm:$0xff] %v8309_v54  ;;  %v4929_v4 = vadd.f32 %v4801_v10, %v4673_v58  ;;  %v8340_v10 = vpop.f32.mrf.mxu2  ;;  %v4802_v58 = vunpack.c.l.bf16 %v3602_v63 }
 0x45d   : > { %v2831_v62 = vpop.f32.mrf.mxu0  ;;  %2554 = vmatmul.bf16.gmra.mxu2 %v6044_v3  ;;  %v6588_v3 = vld [vmem:[%s9614_s6 + $0x2d4] sm:$0xf] }
 0x45e   : > { %v2832_v23 = vadd.f32 %v2831_v62, %v8201_v0  ;;  %v6524_v0 = vld [vmem:[%s9614_s6 + $0xd4] sm:$0xf]  ;;  %v8346_v62 = vpop.permute.xlu1 %4064  ;;  %v5313_v11 = vmax.f32 %v4929_v4, 0.0  ;;  %v8352_v63 = vpop.permute.xlu2 %4019  ;;  %v6288_v22 = vor.u32 %v6588_v3, %v6285_v44 }
 0x45f   : > { %9675 = vst [vmem:[#allocation54_spill] sm:$0xff] %v8346_v62  ;;  %v6032_v52 = vor.u32 %v6524_v0, %v6029_v20  ;;  %v6531_v20 = vld [vmem:[%s9614_s6 + $0x104] sm:$0xf0] }
 0x460   : > { %v3138_v61 = vpack.c.bf16 %v2832_v23, %v2832_v23  ;;  %9676 = vst [vmem:[#allocation55_spill] sm:$0xff] %v8352_v63  ;;  %v8364_v4 = vpop.permute.xlu0 %4082 }
 0x461   : > { %9678 = vst [vmem:[#allocation57_spill] sm:$0xff] %v8364_v4 }
 0x462   : > { %v4674_v46 = vunpack.c.l.bf16 %v3138_v61 }
 0x463   : > { %v8344_v45 = vpop.f32.mrf.mxu3 }
 0x464   : > { %9674 = vst [vmem:[#allocation53_spill] sm:$0xff] %v8344_v45  ;;  %v4930_v23 = vadd.f32 %v4802_v58, %v4674_v46  ;;  %v8356_v61 = vpop.f32.mrf.mxu2  ;;  %v6275_v58 = vld [vmem:[%s9614_s6 + $0x2c0] sm:$0xf] }
 0x465   : > { %v8348_v54 = vpop.f32.mrf.mxu0 }
 0x466   : > { %v5314_v15 = vmax.f32 %v4930_v23, 0.0  ;;  %v6587_v23 = vld [vmem:[%s9614_s6 + $0x2c4] sm:$0xf0]  ;;  %v8388_v44 = vpop.permute.xlu2 %4046 }
 0x467   : > { %9681 = vst [vmem:[#allocation60_spill] sm:$0xff] %v8388_v44 }
 0x468   : > { %2694 = vmatmul.bf16.gmra.mxu3 %v6268_v47  ;;  %2873 = vmatmul.bf16.gmra.mxu0 %v6032_v52  ;;  %v8350_v56 = vpack.c.bf16 %v5314_v15, %v5313_v11  ;;  %v8366_v11 = vpop.permute.xlu1 %4091  ;;  %v6051_v15 = vld [vmem:[%s9614_s6 + $0x100] sm:$0xf]  ;;  %v6526_v47 = vld [vmem:[%s9614_s6 + $0xe4] sm:$0xf]  ;;  %v6037_v52 = vld [vmem:[%s9614_s6 + $0xe8] sm:$0xf0]  ;;  %v8392_v45 = vpop.permute.xlu0 %4109 }
 0x469   : > { %9679 = vst [vmem:[#allocation58_spill] sm:$0xff] %v8366_v11  ;;  %v6052_v46 = vor.u32 %v6531_v20, %v6051_v15 }
 0x46a   : > { %3033 = vmatmul.bf16.gmra.mxu1 %v6288_v22  ;;  %v6276_v22 = vor.u32 %v6587_v23, %v6275_v58  ;;  %9682 = vst [vmem:[#allocation61_spill] sm:$0xff] %v8392_v45  ;;  %v6293_v58 = vld [vmem:[%s9614_s6 + $0x2e8] sm:$0xf0]  ;;  %v6045_v45 = vld [vmem:[%s9614_s6 + $0xf8] sm:$0xf0] }
 0x46b   : > { %v8354_v18 = vpop.f32.mrf.mxu3 }
 0x46c   : > { %9677 = vst [vmem:[#allocation56_spill] sm:$0xff] %v8354_v18  ;;  %v6040_v18 = vor.u32 %v6526_v47, %v6037_v52  ;;  %v8390_v20 = vpop.f32.mrf.mxu2 }
 0x46d   : > { %v2836_v0 = vpop.f32.mrf.mxu0  ;;  %2559 = vmatmul.bf16.gmra.mxu2 %v6052_v46  ;;  %v6590_v46 = vld [vmem:[%s9614_s6 + $0x2e4] sm:$0xf] }
 0x46e   : > { %v6296_v23 = vor.u32 %v6590_v46, %v6293_v58  ;;  %v6283_v46 = vld [vmem:[%s9614_s6 + $0x2d0] sm:$0xf] }
 0x470   : > { %v8394_v11 = vpop.permute.xlu1 %4118 }
 0x471   : > { %9683 = vst [vmem:[#allocation62_spill] sm:$0xff] %v8394_v11  ;;  %v6589_v11 = vld [vmem:[%s9614_s6 + $0x2d4] sm:$0xf0] }
 0x472   : > { %v6284_v62 = vor.u32 %v6589_v11, %v6283_v46 }
 0x473   : > { %v8386_v3 = vpop.f32.mrf.mxu3 }
 0x474   : > { %9680 = vst [vmem:[#allocation59_spill] sm:$0xff] %v8386_v3  ;;  %v8404_v52 = vpop.f32.mrf.mxu2  ;;  %v8406_v3 = vpop.permute.xlu2 %4073 }
 0x475   : > { %v2839_v15 = vpop.f32.mrf.mxu0  ;;  %9685 = vst [vmem:[#allocation64_spill] sm:$0xff] %v8406_v3 }
 0x478   : > { %2699 = vmatmul.bf16.gmra.mxu3 %v6276_v22  ;;  %2878 = vmatmul.bf16.gmra.mxu0 %v6040_v18  ;;  %v6059_v18 = vld [vmem:[%s9614_s6 + $0x110] sm:$0xf]  ;;  %v6533_v22 = vld [vmem:[%s9614_s6 + $0x114] sm:$0xf0]  ;;  %v8428_v3 = vpop.permute.xlu1 %4145 }
 0x479   : > { %v6060_v58 = vor.u32 %v6533_v22, %v6059_v18  ;;  %9687 = vst [vmem:[#allocation66_spill] sm:$0xff] %v8428_v3  ;;  %v2840_v3 = vadd.f32 %v2839_v15, %v8272_v27 }
 0x47a   : > { %3038 = vmatmul.bf16.gmra.mxu1 %v6296_v23  ;;  %v6528_v23 = vld [vmem:[%s9614_s6 + $0xf4] sm:$0xf] }
 0x47b   : > { %v8396_v4 = vpop.f32.mrf.mxu3  ;;  %v6048_v44 = vor.u32 %v6528_v23, %v6045_v45  ;;  %v6592_v45 = vld [vmem:[%s9614_s6 + $0x2f4] sm:$0xf]  ;;  %v3141_v46 = vpack.c.bf16 %v2840_v3, %v2840_v3 }
 0x47c   : > { %9684 = vst [vmem:[#allocation63_spill] sm:$0xff] %v8396_v4  ;;  %v8414_v4 = vpop.permute.xlu0 %4136  ;;  %v8432_v22 = vpop.f32.mrf.mxu2 }
 0x47d   : > { %v2841_v47 = vpop.f32.mrf.mxu0  ;;  %9686 = vst [vmem:[#allocation65_spill] sm:$0xff] %v8414_v4  ;;  %2564 = vmatmul.bf16.gmra.mxu2 %v6060_v58  ;;  %v8435_v28 = vpop.permute.xlu2 %4100 }
 0x47e   : > { %9689 = vst [vmem:[#allocation68_spill] sm:$0xff] %v8435_v28  ;;  %v2842_v9 = vadd.f32 %v2841_v47, %v8301_v51  ;;  %v3647_v51 = vperm.slane %v7982_v31, %v7499_v32  ;;  %v3656_v47 = vperm.slane %v7950_v26, %v7499_v32 }
 0x483   : > { %v8430_v4 = vpop.f32.mrf.mxu3 }
 0x484   : > { %9688 = vst [vmem:[#allocation67_spill] sm:$0xff] %v8430_v4  ;;  %v8438_v7 = vpop.permute.xlu0 %4163  ;;  %v2837_v4 = vadd.f32 %v2836_v0, %v8253_v36  ;;  %v3638_v36 = vperm.slane %v7938_v12, %v7499_v32  ;;  %v8458_v15 = vpop.f32.mrf.mxu2  ;;  %v6067_v12 = vld [vmem:[%s9614_s6 + $0x120] sm:$0xf] }
 0x485   : > { %v2844_v18 = vpop.f32.mrf.mxu0  ;;  %9690 = vst [vmem:[#allocation69_spill] sm:$0xff] %v8438_v7 }
 0x486   : > { %v2845_v63 = vadd.f32 %v2844_v18, %v8340_v10  ;;  %v6301_v10 = vld [vmem:[%s9614_s6 + $0x2f8] sm:$0xf0]  ;;  %v3140_v18 = vpack.c.bf16 %v2837_v4, %v2837_v4  ;;  %v4806_v4 = vunpack.c.l.bf16 %v3638_v36  ;;  %v3611_v36 = vperm.slane %v7916_v33, %v7499_v32 }
 0x487   : > { %v6304_v27 = vor.u32 %v6592_v45, %v6301_v10  ;;  %v6591_v10 = vld [vmem:[%s9614_s6 + $0x2e4] sm:$0xf0] }
 0x488   : > { %2704 = vmatmul.bf16.gmra.mxu3 %v6284_v62  ;;  %2883 = vmatmul.bf16.gmra.mxu0 %v6048_v44  ;;  %v3143_v58 = vpack.c.bf16 %v2845_v63, %v2845_v63  ;;  %v8452_v62 = vpop.permute.xlu1 %4172  ;;  %v3142_v44 = vpack.c.bf16 %v2842_v9, %v2842_v9  ;;  %v2835_v63 = vadd.f32 %v8348_v54, %v8222_v8  ;;  %v6535_v8 = vld [vmem:[%s9614_s6 + $0x124] sm:$0xf0]  ;;  %v4807_v54 = vunpack.c.l.bf16 %v3647_v51  ;;  %v6530_v51 = vld [vmem:[%s9614_s6 + $0x104] sm:$0xf] }
 0x489   : > { %9692 = vst [vmem:[#allocation71_spill] sm:$0xff] %v8452_v62  ;;  %v3629_v9 = vperm.slane %v7934_v38, %v7499_v32  ;;  %v6068_v3 = vor.u32 %v6535_v8, %v6067_v12  ;;  %v3620_v38 = vperm.slane %v7968_v34, %v7499_v32  ;;  %v4676_v8 = vunpack.c.l.bf16 %v3140_v18 }
 0x48a   : > { %v4679_v23 = vunpack.c.l.bf16 %v3143_v58  ;;  %3043 = vmatmul.bf16.gmra.mxu1 %v6304_v27  ;;  %v4678_v45 = vunpack.c.l.bf16 %v3142_v44  ;;  %v3139_v58 = vpack.c.bf16 %v2835_v63, %v2835_v63  ;;  %v6053_v44 = vld [vmem:[%s9614_s6 + $0x108] sm:$0xf0]  ;;  %v4808_v27 = vunpack.c.l.bf16 %v3656_v47 }
 0x48b   : > { %v8442_v11 = vpop.f32.mrf.mxu3  ;;  %v4805_v63 = vunpack.c.l.bf16 %v3629_v9  ;;  %v6056_v60 = vor.u32 %v6530_v51, %v6053_v44  ;;  %v4804_v47 = vunpack.c.l.bf16 %v3620_v38 }
 0x48c   : > { %9691 = vst [vmem:[#allocation70_spill] sm:$0xff] %v8442_v11  ;;  %v4935_v12 = vadd.f32 %v4807_v54, %v4679_v23  ;;  %v8491_v62 = vpop.permute.xlu0 %4190  ;;  %v4934_v7 = vadd.f32 %v4806_v4, %v4678_v45  ;;  %v4675_v23 = vunpack.c.l.bf16 %v3139_v58 }
 0x48d   : > { %v2846_v0 = vpop.f32.mrf.mxu0  ;;  %2569 = vmatmul.bf16.gmra.mxu2 %v6068_v3  ;;  %9695 = vst [vmem:[#allocation74_spill] sm:$0xff] %v8491_v62  ;;  %v4803_v62 = vunpack.c.l.bf16 %v3611_v36  ;;  %v4932_v45 = vadd.f32 %v4804_v47, %v4676_v8  ;;  %v6075_v47 = vld [vmem:[%s9614_s6 + $0x130] sm:$0xf] }
 0x48e   : > { %v2847_v31 = vadd.f32 %v2846_v0, %v8356_v61  ;;  %v6291_v61 = vld [vmem:[%s9614_s6 + $0x2e0] sm:$0xf]  ;;  %v8485_v0 = vpop.permute.xlu2 %4127  ;;  %v5319_v9 = vmax.f32 %v4935_v12, 0.0  ;;  %v5318_v4 = vmax.f32 %v4934_v7, 0.0  ;;  %v6309_v7 = vld [vmem:[%s9614_s6 + $0x308] sm:$0xf0] }
 0x48f   : > { %9693 = vst [vmem:[#allocation72_spill] sm:$0xff] %v8485_v0  ;;  %v6292_v49 = vor.u32 %v6591_v10, %v6291_v61 }
 0x490   : > { %v3144_v26 = vpack.c.bf16 %v2847_v31, %v2847_v31  ;;  %v4677_v31 = vunpack.c.l.bf16 %v3141_v46  ;;  %v3665_v46 = vperm.slane %v7952_v35, %v7499_v32  ;;  %v8497_v3 = vpop.permute.xlu1 %4199  ;;  %v4931_v35 = vadd.f32 %v4803_v62, %v4675_v23 }
 0x491   : > { %9696 = vst [vmem:[#allocation75_spill] sm:$0xff] %v8497_v3 }
 0x492   : > { %v4680_v34 = vunpack.c.l.bf16 %v3144_v26  ;;  %v8495_v26 = vpop.f32.mrf.mxu2  ;;  %v4933_v33 = vadd.f32 %v4805_v63, %v4677_v31  ;;  %v4809_v38 = vunpack.c.l.bf16 %v3665_v46  ;;  %v5315_v63 = vmax.f32 %v4931_v35, 0.0  ;;  %v6537_v46 = vld [vmem:[%s9614_s6 + $0x134] sm:$0xf0] }
 0x493   : > { %v8489_v11 = vpop.f32.mrf.mxu3 }
 0x494   : > { %9694 = vst [vmem:[#allocation73_spill] sm:$0xff] %v8489_v11  ;;  %v4936_v28 = vadd.f32 %v4808_v27, %v4680_v34  ;;  %v5317_v58 = vmax.f32 %v4933_v33, 0.0  ;;  %v3674_v34 = vperm.slane %v8002_v55, %v7499_v32  ;;  %v8516_v36 = vpop.permute.xlu0 %4217  ;;  %v6299_v55 = vld [vmem:[%s9614_s6 + $0x2f0] sm:$0xf] }
 0x495   : > { %v2849_v54 = vpop.f32.mrf.mxu0  ;;  %9699 = vst [vmem:[#allocation78_spill] sm:$0xff] %v8516_v36  ;;  %v3719_v36 = vperm.slane %v7998_v2, %v7499_v32 }
 0x496   : > { %v5320_v18 = vmax.f32 %v4936_v28, 0.0  ;;  %v2850_v11 = vadd.f32 %v2849_v54, %v8390_v20  ;;  %v6594_v28 = vld [vmem:[%s9614_s6 + $0x304] sm:$0xf]  ;;  %v8510_v20 = vpop.permute.xlu2 %4154 }
 0x497   : > { %v8502_v27 = vpop.f32.mrf.mxu1  ;;  %9698 = vst [vmem:[#allocation77_spill] sm:$0xff] %v8510_v20  ;;  %v6312_v62 = vor.u32 %v6594_v28, %v6309_v7 }
 0x498   : > { %v5440_v61 = vpack.c.bf16 %v5320_v18, %v5319_v9  ;;  %v3145_v10 = vpack.c.bf16 %v2850_v11, %v2850_v11  ;;  %2709 = vmatmul.bf16.gmra.mxu3 %v6292_v49  ;;  %2888 = vmatmul.bf16.gmra.mxu0 %v6056_v60  ;;  %v5316_v60 = vmax.f32 %v4932_v45, 0.0  ;;  %v5439_v11 = vpack.c.bf16 %v5318_v4, %v5317_v58  ;;  %v8525_v23 = vpop.permute.xlu1 %4226  ;;  %v6532_v18 = vld [vmem:[%s9614_s6 + $0x114] sm:$0xf]  ;;  %v6061_v45 = vld [vmem:[%s9614_s6 + $0x118] sm:$0xf0] }
 0x499   : > { %9700 = vst [vmem:[#allocation79_spill] sm:$0xff] %v8525_v23  ;;  %v6076_v9 = vor.u32 %v6537_v46, %v6075_v47  ;;  %v4810_v4 = vunpack.c.l.bf16 %v3674_v34 }
 0x49a   : > { %v4681_v51 = vunpack.c.l.bf16 %v3145_v10  ;;  %5557 = vmatpush.bf16.msra.mxu0 %v5440_v61  ;;  %v8512_v12 = vpop.f32.mrf.mxu2  ;;  %3048 = vmatmul.bf16.gmra.mxu1 %v6312_v62  ;;  %v5438_v33 = vpack.c.bf16 %v5316_v60, %v5315_v63  ;;  %v3683_v60 = vperm.slane %v7970_v25, %v7499_v32 }
 0x49b   : > { %v8500_v44 = vpop.f32.mrf.mxu3 }
 0x49c   : > { %9697 = vst [vmem:[#allocation76_spill] sm:$0xff] %v8500_v44  ;;  %v4937_v49 = vadd.f32 %v4809_v38, %v4681_v51  ;;  %v6064_v51 = vor.u32 %v6532_v18, %v6061_v45  ;;  %v8551_v63 = vpop.permute.xlu0 %4244  ;;  %v4811_v46 = vunpack.c.l.bf16 %v3683_v60 }
 0x49d   : > { %v2851_v31 = vpop.f32.mrf.mxu0  ;;  %2574 = vmatmul.bf16.gmra.mxu2 %v6076_v9 }
 0x49e   : > { %v2852_v8 = vadd.f32 %v2851_v31, %v8404_v52  ;;  %5558 = vmatpush.bf16.msra.mxu0 %v5439_v11  ;;  %v6593_v52 = vld [vmem:[%s9614_s6 + $0x2f4] sm:$0xf0]  ;;  %v8547_v11 = vpop.permute.xlu2 %4181  ;;  %v5321_v62 = vmax.f32 %v4937_v49, 0.0 }
 0x49f   : > { %v8541_v38 = vpop.f32.mrf.mxu1  ;;  %v6300_v58 = vor.u32 %v6593_v52, %v6299_v55  ;;  %9702 = vst [vmem:[#allocation81_spill] sm:$0xff] %v8547_v11 }
 0x4a0   : > { %v3146_v54 = vpack.c.bf16 %v2852_v8, %v2852_v8 }
 0x4a2   : > { %v4682_v61 = vunpack.c.l.bf16 %v3146_v54  ;;  %5559 = vmatpush.bf16.msra.mxu0 %v5438_v33  ;;  %v8543_v7 = vpop.f32.mrf.mxu2  ;;  %v8555_v54 = vpop.permute.xlu1 %4253 }
 0x4a3   : > { %v8539_v10 = vpop.f32.mrf.mxu3 }
 0x4a4   : > { %9701 = vst [vmem:[#allocation80_spill] sm:$0xff] %v8539_v10  ;;  %v4938_v35 = vadd.f32 %v4810_v4, %v4682_v61  ;;  %v6083_v4 = vld [vmem:[%s9614_s6 + $0x140] sm:$0xf]  ;;  %v6539_v61 = vld [vmem:[%s9614_s6 + $0x144] sm:$0xf0] }
 0x4a5   : > { %v2854_v28 = vpop.f32.mrf.mxu0 }
 0x4a6   : > { %v5322_v31 = vmax.f32 %v4938_v35, 0.0  ;;  %v2855_v34 = vadd.f32 %v2854_v28, %v8432_v22  ;;  %5560 = vmatpush.bf16.msra.mxu0 %v8350_v56  ;;  %v6596_v56 = vld [vmem:[%s9614_s6 + $0x314] sm:$0xf]  ;;  %v6317_v22 = vld [vmem:[%s9614_s6 + $0x318] sm:$0xf0]  ;;  %v8580_v35 = vpop.permute.xlu2 %4208 }
 0x4a7   : > { %v8560_v49 = vpop.f32.mrf.mxu1  ;;  %v6320_v9 = vor.u32 %v6596_v56, %v6317_v22  ;;  %9704 = vst [vmem:[#allocation83_spill] sm:$0xff] %v8580_v35  ;;  %v6069_v28 = vld [vmem:[%s9614_s6 + $0x128] sm:$0xf0] }
 0x4a8   : > { %v3147_v8 = vpack.c.bf16 %v2855_v34, %v2855_v34  ;;  %2714 = vmatmul.bf16.gmra.mxu3 %v6300_v58  ;;  %2893 = vmatmul.bf16.gmra.mxu0 %v6064_v51  ;;  %v8553_v47 = vpack.c.bf16 %v5322_v31, %v5321_v62  ;;  %v6084_v51 = vor.u32 %v6539_v61, %v6083_v4  ;;  %v8594_v62 = vpop.permute.xlu0 %4271 }
 0x4aa   : > { %v4683_v33 = vunpack.c.l.bf16 %v3147_v8  ;;  %5561 = vmatpush.bf16.msra.mxu0 %v8305_v14  ;;  %v8568_v18 = vpop.f32.mrf.mxu2  ;;  %v3692_v14 = vperm.slane %v7972_v5, %v7499_v32  ;;  %3053 = vmatmul.bf16.gmra.mxu1 %v6320_v9  ;;  %v6307_v5 = vld [vmem:[%s9614_s6 + $0x300] sm:$0xf] }
 0x4ab   : > { %v8558_v25 = vpop.f32.mrf.mxu3 }
 0x4ac   : > { %9703 = vst [vmem:[#allocation82_spill] sm:$0xff] %v8558_v25  ;;  %v4939_v55 = vadd.f32 %v4811_v46, %v4683_v33  ;;  %v4812_v60 = vunpack.c.l.bf16 %v3692_v14  ;;  %v8601_v46 = vpop.permute.xlu1 %4280  ;;  %v3701_v14 = vperm.slane %v8028_v43, %v7499_v32  ;;  %v6598_v43 = vld [vmem:[%s9614_s6 + $0x324] sm:$0xf] }
 0x4ad   : > { %v2856_v52 = vpop.f32.mrf.mxu0  ;;  %2579 = vmatmul.bf16.gmra.mxu2 %v6084_v51 }
 0x4ae   : > { %v2857_v45 = vadd.f32 %v2856_v52, %v8458_v15  ;;  %5562 = vmatpush.bf16.msra.mxu0 %v8255_v21  ;;  %v6595_v21 = vld [vmem:[%s9614_s6 + $0x304] sm:$0xf0]  ;;  %v6534_v15 = vld [vmem:[%s9614_s6 + $0x124] sm:$0xf]  ;;  %v4813_v51 = vunpack.c.l.bf16 %v3701_v14 }
 0x4af   : > { %v8599_v8 = vpop.f32.mrf.mxu1  ;;  %v6308_v56 = vor.u32 %v6595_v21, %v6307_v5  ;;  %v6072_v22 = vor.u32 %v6534_v15, %v6069_v28  ;;  %v4236_v5 = vpop.permute.xlu2 %4235 }
 0x4b0   : > { %v3148_v58 = vpack.c.bf16 %v2857_v45, %v2857_v45  ;;  %v5323_v45 = vmax.f32 %v4939_v55, 0.0 }
 0x4b2   : > { %v4684_v31 = vunpack.c.l.bf16 %v3148_v58  ;;  %5563 = vmatpush.bf16.msra.mxu0 %v8205_v19  ;;  %v8603_v52 = vpop.f32.mrf.mxu2 }
 0x4b3   : > { %v8597_v34 = vpop.f32.mrf.mxu3 }
 0x4b4   : > { %9705 = vst [vmem:[#allocation84_spill] sm:$0xff] %v8597_v34  ;;  %v4940_v33 = vadd.f32 %v4812_v60, %v4684_v31 }
 0x4b5   : > { %v2859_v9 = vpop.f32.mrf.mxu0 }
 0x4b6   : > { %v5324_v4 = vmax.f32 %v4940_v33, 0.0  ;;  %v2860_v19 = vadd.f32 %v2859_v9, %v8495_v26  ;;  %5564 = vmatpush.bf16.msra.mxu0 %v8157_v39  ;;  %v6325_v26 = vld [vmem:[%s9614_s6 + $0x328] sm:$0xf0]  ;;  %v8619_v39 = vpop.permute.xlu0 %4298  ;;  %v8626_v9 = vpop.permute.xlu1 %4307 }
 0x4b7   : > { %v8611_v28 = vpop.f32.mrf.mxu1  ;;  %v6328_v31 = vor.u32 %v6598_v43, %v6325_v26 }
 0x4b8   : > { %v3149_v61 = vpack.c.bf16 %v2860_v19, %v2860_v19  ;;  %2719 = vmatmul.bf16.gmra.mxu3 %v6308_v56  ;;  %2898 = vmatmul.bf16.gmra.mxu0 %v6072_v22  ;;  %v8609_v58 = vpack.c.bf16 %v5324_v4, %v5323_v45  ;;  %v3710_v22 = vperm.slane %v7984_v59, %v7499_v32  ;;  %v6091_v4 = vld [vmem:[%s9614_s6 + $0x150] sm:$0xf] }
 0x4ba   : > { %v4685_v21 = vunpack.c.l.bf16 %v3149_v61  ;;  %v8622_v56 = vpop.f32.mrf.mxu2  ;;  %3058 = vmatmul.bf16.gmra.mxu1 %v6328_v31  ;;  %v6315_v61 = vld [vmem:[%s9614_s6 + $0x310] sm:$0xf]  ;;  %v4814_v43 = vunpack.c.l.bf16 %v3710_v22 }
 0x4bb   : > { %v2680_v15 = vpop.f32.mrf.mxu3 }
 0x4bc   : > { %v4941_v55 = vadd.f32 %v4813_v51, %v4685_v21  ;;  %v3010_v60 = vadd.f32 %v8502_v27, %v2680_v15  ;;  %v6541_v27 = vld [vmem:[%s9614_s6 + $0x154] sm:$0xf0]  ;;  %v4241_v51 = vperm.slane %v4236_v5, %v7499_v32  ;;  %v6536_v21 = vld [vmem:[%s9614_s6 + $0x134] sm:$0xf]  ;;  %v6077_v15 = vld [vmem:[%s9614_s6 + $0x138] sm:$0xf0] }
 0x4bd   : > { %v2861_v33 = vpop.f32.mrf.mxu0  ;;  %v6092_v59 = vor.u32 %v6541_v27, %v6091_v4  ;;  %v6080_v23 = vor.u32 %v6536_v21, %v6077_v15 }
 0x4be   : > { %v2862_v14 = vadd.f32 %v2861_v33, %v8512_v12  ;;  %v3209_v45 = vpack.c.bf16 %v3010_v60, %v3010_v60  ;;  %v6597_v12 = vld [vmem:[%s9614_s6 + $0x314] sm:$0xf0]  ;;  %v4250_v60 = vperm.slane %v8551_v63, %v7499_v32  ;;  %v4873_v22 = vunpack.c.l.bf16 %v4241_v51  ;;  %v8659_v25 = vpop.permute.xlu0 %4325 }
 0x4bf   : > { %2584 = vmatmul.bf16.gmra.mxu2 %v6092_v59  ;;  %v8650_v33 = vpop.f32.mrf.mxu1  ;;  %v6316_v34 = vor.u32 %v6597_v12, %v6315_v61  ;;  %v5325_v63 = vmax.f32 %v4941_v55, 0.0  ;;  %v4815_v51 = vunpack.c.l.bf16 %v3719_v36 }
 0x4c0   : > { %v3150_v19 = vpack.c.bf16 %v2862_v14, %v2862_v14  ;;  %v4745_v31 = vunpack.c.l.bf16 %v3209_v45  ;;  %v8652_v14 = vpop.permute.xlu2 %4262 }
 0x4c2   : > { %v4686_v26 = vunpack.c.l.bf16 %v3150_v19  ;;  %v8657_v59 = vpop.f32.mrf.mxu2  ;;  %v5001_v3 = vadd.f32 %v4873_v22, %v4745_v31 }
 0x4c3   : > { %v2682_v5 = vpop.f32.mrf.mxu3 }
 0x4c4   : > { %v4942_v4 = vadd.f32 %v4814_v43, %v4686_v26  ;;  %v3012_v27 = vadd.f32 %v8541_v38, %v2682_v5  ;;  %v4874_v43 = vunpack.c.l.bf16 %v4250_v60  ;;  %v8662_v26 = vpop.permute.xlu1 %4361  ;;  %v5385_v15 = vmax.f32 %v5001_v3, 0.0 }
 0x4c5   : > { %v2864_v19 = vpop.f32.mrf.mxu0  ;;  %v3728_v3 = vperm.slane %v8038_v1, %v7499_v32  ;;  %v6599_v1 = vld [vmem:[%s9614_s6 + $0x324] sm:$0xf0] }
 0x4c6   : > { %v5326_v45 = vmax.f32 %v4942_v4, 0.0  ;;  %v3210_v10 = vpack.c.bf16 %v3012_v27, %v3012_v27  ;;  %v2865_v35 = vadd.f32 %v2864_v19, %v8543_v7  ;;  %v6600_v7 = vld [vmem:[%s9614_s6 + $0x334] sm:$0xf] }
 0x4c7   : > { %v8666_v55 = vpop.f32.mrf.mxu1 }
 0x4c8   : > { %v4746_v38 = vunpack.c.l.bf16 %v3210_v10  ;;  %v3151_v61 = vpack.c.bf16 %v2865_v35, %v2865_v35  ;;  %2724 = vmatmul.bf16.gmra.mxu3 %v6316_v34  ;;  %2903 = vmatmul.bf16.gmra.mxu0 %v6080_v23  ;;  %v8664_v2 = vpack.c.bf16 %v5326_v45, %v5325_v63  ;;  %v6333_v10 = vld [vmem:[%s9614_s6 + $0x338] sm:$0xf0]  ;;  %v8679_v4 = vpop.permute.xlu2 %4289  ;;  %v8684_v63 = vpop.permute.xlu0 %4343 }
 0x4c9   : > { %v6336_v60 = vor.u32 %v6600_v7, %v6333_v10 }
 0x4ca   : > { %v5002_v12 = vadd.f32 %v4874_v43, %v4746_v38  ;;  %v4687_v21 = vunpack.c.l.bf16 %v3151_v61  ;;  %v8675_v31 = vpop.f32.mrf.mxu2  ;;  %v4259_v43 = vperm.slane %v8555_v54, %v7499_v32  ;;  %v6085_v38 = vld [vmem:[%s9614_s6 + $0x148] sm:$0xf0]  ;;  %v4816_v61 = vunpack.c.l.bf16 %v3728_v3 }
 0x4cb   : > { %v2685_v5 = vpop.f32.mrf.mxu3  ;;  %3063 = vmatmul.bf16.gmra.mxu1 %v6336_v60  ;;  %v3737_v60 = vperm.slane %v8004_v17, %v7499_v32 }
 0x4cc   : > { %v5386_v35 = vmax.f32 %v5002_v12, 0.0  ;;  %v4943_v34 = vadd.f32 %v4815_v51, %v4687_v21  ;;  %v3015_v23 = vadd.f32 %v8560_v49, %v2685_v5  ;;  %v6323_v49 = vld [vmem:[%s9614_s6 + $0x320] sm:$0xf]  ;;  %v8700_v51 = vpop.permute.xlu1 %4352  ;;  %v4268_v21 = vperm.slane %v8652_v14, %v7499_v32 }
 0x4cd   : > { %v2866_v36 = vpop.f32.mrf.mxu0  ;;  %v4817_v17 = vunpack.c.l.bf16 %v3737_v60 }
 0x4ce   : > { %v2867_v27 = vadd.f32 %v2866_v36, %v8568_v18  ;;  %v8682_v22 = vpack.c.bf16 %v5386_v35, %v5385_v15  ;;  %v3211_v19 = vpack.c.bf16 %v3015_v23, %v3015_v23  ;;  %v6538_v18 = vld [vmem:[%s9614_s6 + $0x144] sm:$0xf]  ;;  %v6324_v35 = vor.u32 %v6599_v1, %v6323_v49 }
 0x4cf   : > { %v8704_v5 = vpop.f32.mrf.mxu1  ;;  %v6088_v23 = vor.u32 %v6538_v18, %v6085_v38  ;;  %v4875_v36 = vunpack.c.l.bf16 %v4259_v43  ;;  %v4876_v20 = vunpack.c.l.bf16 %v4268_v21 }
 0x4d0   : > { %v3152_v45 = vpack.c.bf16 %v2867_v27, %v2867_v27  ;;  %v4747_v54 = vunpack.c.l.bf16 %v3211_v19  ;;  %v8712_v0 = vpop.permute.xlu2 %4316  ;;  %v8716_v43 = vpop.permute.xlu0 %4649 }
 0x4d1   : > { %9706 = vst [vmem:[#allocation85_spill] sm:$0xff] %v8716_v43 }
 0x4d2   : > { %v4688_v12 = vunpack.c.l.bf16 %v3152_v45  ;;  %v8709_v27 = vpop.f32.mrf.mxu2  ;;  %v5327_v45 = vmax.f32 %v4943_v34, 0.0  ;;  %v5003_v19 = vadd.f32 %v4875_v36, %v4747_v54 }
 0x4d3   : > { %v2687_v15 = vpop.f32.mrf.mxu3 }
 0x4d4   : > { %v4944_v7 = vadd.f32 %v4816_v61, %v4688_v12  ;;  %v3017_v10 = vadd.f32 %v8599_v8, %v2687_v15  ;;  %v5387_v34 = vmax.f32 %v5003_v19, 0.0  ;;  %v8726_v21 = vpop.permute.xlu1 %4658 }
 0x4d5   : > { %v2869_v3 = vpop.f32.mrf.mxu0  ;;  %9707 = vst [vmem:[#allocation86_spill] sm:$0xff] %v8726_v21 }
 0x4d6   : > { %v5328_v44 = vmax.f32 %v4944_v7, 0.0  ;;  %v3212_v11 = vpack.c.bf16 %v3017_v10, %v3017_v10  ;;  %v2870_v14 = vadd.f32 %v2869_v3, %v8603_v52  ;;  %v6602_v52 = vld [vmem:[%s9614_s6 + $0x344] sm:$0xf]  ;;  %v3746_v10 = vperm.slane %v8014_v30, %v7499_v32 }
 0x4d7   : > { %v8718_v12 = vpop.f32.mrf.mxu1  ;;  %v4277_v30 = vperm.slane %v8594_v62, %v7499_v32 }
 0x4d8   : > { %v4748_v61 = vunpack.c.l.bf16 %v3212_v11  ;;  %v3153_v8 = vpack.c.bf16 %v2870_v14, %v2870_v14  ;;  %2729 = vmatmul.bf16.gmra.mxu3 %v6324_v35  ;;  %2908 = vmatmul.bf16.gmra.mxu0 %v6088_v23  ;;  %v8714_v49 = vpack.c.bf16 %v5328_v44, %v5327_v45  ;;  %v6341_v11 = vld [vmem:[%s9614_s6 + $0x348] sm:$0xf0]  ;;  %v6331_v45 = vld [vmem:[%s9614_s6 + $0x330] sm:$0xf]  ;;  %v6093_v14 = vld [vmem:[%s9614_s6 + $0x158] sm:$0xf0]  ;;  %v4818_v19 = vunpack.c.l.bf16 %v3746_v10  ;;  %v8756_v62 = vpop.permute.xlu0 %4514 }
 0x4d9   : > { %9708 = vst [vmem:[#allocation87_spill] sm:$0xff] %v8756_v62 }
 0x4da   : > { %v5004_v1 = vadd.f32 %v4876_v20, %v4748_v61  ;;  %v4689_v18 = vunpack.c.l.bf16 %v3153_v8  ;;  %v6344_v20 = vor.u32 %v6602_v52, %v6341_v11  ;;  %v8732_v23 = vpop.f32.mrf.mxu2  ;;  %v8750_v61 = vpop.permute.xlu2 %4370 }
 0x4db   : > { %v2690_v38 = vpop.f32.mrf.mxu3 }
 0x4dc   : > { %v5388_v44 = vmax.f32 %v5004_v1, 0.0  ;;  %v4945_v54 = vadd.f32 %v4817_v17, %v4689_v18  ;;  %v3020_v15 = vadd.f32 %v8611_v28, %v2690_v38  ;;  %3068 = vmatmul.bf16.gmra.mxu1 %v6344_v20  ;;  %v6601_v28 = vld [vmem:[%s9614_s6 + $0x334] sm:$0xf0]  ;;  %v4286_v17 = vperm.slane %v8601_v46, %v7499_v32 }
 0x4dd   : > { %v2871_v7 = vpop.f32.mrf.mxu0  ;;  %v6332_v18 = vor.u32 %v6601_v28, %v6331_v45 }
 0x4de   : > { %v2872_v35 = vadd.f32 %v2871_v7, %v8622_v56  ;;  %v8734_v60 = vpack.c.bf16 %v5388_v44, %v5387_v34  ;;  %v3213_v36 = vpack.c.bf16 %v3020_v15, %v3020_v15  ;;  %v6540_v56 = vld [vmem:[%s9614_s6 + $0x154] sm:$0xf]  ;;  %v4877_v15 = vunpack.c.l.bf16 %v4277_v30  ;;  %v8759_v7 = vpop.permute.xlu1 %4631 }
 0x4df   : > { %v8754_v34 = vpop.f32.mrf.mxu1  ;;  %v6096_v44 = vor.u32 %v6540_v56, %v6093_v14  ;;  %9709 = vst [vmem:[#allocation88_spill] sm:$0xff] %v8759_v7  ;;  %v5329_v10 = vmax.f32 %v4945_v54, 0.0  ;;  %v4878_v21 = vunpack.c.l.bf16 %v4286_v17  ;;  %v3755_v30 = vperm.slane %v8066_v48, %v7499_v32 }
 0x4e0   : > { %v3154_v3 = vpack.c.bf16 %v2872_v35, %v2872_v35  ;;  %v4749_v38 = vunpack.c.l.bf16 %v3213_v36  ;;  %v3764_v48 = vperm.slane %v8032_v40, %v7499_v32  ;;  %v6603_v40 = vld [vmem:[%s9614_s6 + $0x344] sm:$0xf0] }
 0x4e2   : > { %v4690_v8 = vunpack.c.l.bf16 %v3154_v3  ;;  %v5005_v45 = vadd.f32 %v4877_v15, %v4749_v38  ;;  %v8762_v43 = vpop.f32.mrf.mxu2 }
 0x4e3   : > { %v2692_v1 = vpop.f32.mrf.mxu3 }
 0x4e4   : > { %v4946_v52 = vadd.f32 %v4818_v19, %v4690_v8  ;;  %v3022_v11 = vadd.f32 %v8650_v33, %v2692_v1  ;;  %v6349_v19 = vld [vmem:[%s9614_s6 + $0x358] sm:$0xf0]  ;;  %v8776_v8 = vpop.permute.xlu2 %4334  ;;  %v5389_v17 = vmax.f32 %v5005_v45, 0.0  ;;  %v6101_v45 = vld [vmem:[%s9614_s6 + $0x168] sm:$0xf0] }
 0x4e5   : > { %v2874_v20 = vpop.f32.mrf.mxu0 }
 0x4e6   : > { %v5330_v35 = vmax.f32 %v4946_v52, 0.0  ;;  %v3214_v3 = vpack.c.bf16 %v3022_v11, %v3022_v11  ;;  %v2875_v46 = vadd.f32 %v2874_v20, %v8657_v59  ;;  %v6604_v59 = vld [vmem:[%s9614_s6 + $0x354] sm:$0xf]  ;;  %v8781_v52 = vpop.permute.xlu0 %4487  ;;  %v4819_v20 = vunpack.c.l.bf16 %v3755_v30 }
 0x4e7   : > { %v8768_v54 = vpop.f32.mrf.mxu1  ;;  %9710 = vst [vmem:[#allocation89_spill] sm:$0xff] %v8781_v52 }
 0x4e8   : > { %v4750_v28 = vunpack.c.l.bf16 %v3214_v3  ;;  %2734 = vmatmul.bf16.gmra.mxu3 %v6332_v18  ;;  %2913 = vmatmul.bf16.gmra.mxu0 %v6096_v44  ;;  %v8764_v36 = vpack.c.bf16 %v5330_v35, %v5329_v10  ;;  %v3155_v56 = vpack.c.bf16 %v2875_v46, %v2875_v46  ;;  %v6352_v18 = vor.u32 %v6604_v59, %v6349_v19  ;;  %v8786_v10 = vpop.permute.xlu1 %4496 }
 0x4e9   : > { %9711 = vst [vmem:[#allocation90_spill] sm:$0xff] %v8786_v10  ;;  %v4295_v46 = vperm.slane %v8679_v4, %v7499_v32 }
 0x4ea   : > { %v5006_v33 = vadd.f32 %v4878_v21, %v4750_v28  ;;  %v4691_v11 = vunpack.c.l.bf16 %v3155_v56  ;;  %v4820_v28 = vunpack.c.l.bf16 %v3764_v48  ;;  %v8802_v30 = vpop.f32.mrf.mxu2 }
 0x4eb   : > { %v2695_v14 = vpop.f32.mrf.mxu3 }
 0x4ec   : > { %v5390_v1 = vmax.f32 %v5006_v33, 0.0  ;;  %v3025_v21 = vadd.f32 %v8666_v55, %v2695_v14  ;;  %3073 = vmatmul.bf16.gmra.mxu1 %v6352_v18  ;;  %v6339_v55 = vld [vmem:[%s9614_s6 + $0x340] sm:$0xf]  ;;  %v4947_v33 = vadd.f32 %v4819_v20, %v4691_v11  ;;  %v4304_v14 = vperm.slane %v8619_v39, %v7499_v32  ;;  %v8809_v7 = vpop.permute.xlu2 %4505 }
 0x4ed   : > { %v2876_v38 = vpop.f32.mrf.mxu0  ;;  %v6340_v19 = vor.u32 %v6603_v40, %v6339_v55  ;;  %9712 = vst [vmem:[#allocation91_spill] sm:$0xff] %v8809_v7 }
 0x4ee   : > { %v2877_v44 = vadd.f32 %v2876_v38, %v8675_v31  ;;  %v8784_v15 = vpack.c.bf16 %v5390_v1, %v5389_v17  ;;  %v3215_v35 = vpack.c.bf16 %v3025_v21, %v3025_v21  ;;  %v6542_v31 = vld [vmem:[%s9614_s6 + $0x164] sm:$0xf]  ;;  %v4879_v38 = vunpack.c.l.bf16 %v4295_v46  ;;  %v8812_v39 = vpop.permute.xlu0 %4622 }
 0x4ef   : > { %v8806_v17 = vpop.f32.mrf.mxu1  ;;  %v6104_v18 = vor.u32 %v6542_v31, %v6101_v45  ;;  %v5331_v48 = vmax.f32 %v4947_v33, 0.0  ;;  %v4880_v62 = vunpack.c.l.bf16 %v4304_v14  ;;  %9713 = vst [vmem:[#allocation92_spill] sm:$0xff] %v8812_v39  ;;  %v3773_v45 = vperm.slane %v8034_v6, %v7499_v32 }
 0x4f0   : > { %v3156_v3 = vpack.c.bf16 %v2877_v44, %v2877_v44  ;;  %v4751_v4 = vunpack.c.l.bf16 %v3215_v35 }
 0x4f2   : > { %v4692_v56 = vunpack.c.l.bf16 %v3156_v3  ;;  %v5007_v55 = vadd.f32 %v4879_v38, %v4751_v4 }
 0x4f3   : > { %v2697_v59 = vpop.f32.mrf.mxu3 }
 0x4f4   : > { %v4948_v1 = vadd.f32 %v4820_v28, %v4692_v56  ;;  %v3027_v21 = vadd.f32 %v8704_v5, %v2697_v59  ;;  %v8816_v5 = vpop.permute.xlu1 %4469  ;;  %v6357_v56 = vld [vmem:[%s9614_s6 + $0x368] sm:$0xf0]  ;;  %v5391_v14 = vmax.f32 %v5007_v55, 0.0 }
 0x4f5   : > { %v2879_v44 = vpop.f32.mrf.mxu0  ;;  %9714 = vst [vmem:[#allocation93_spill] sm:$0xff] %v8816_v5 }
 0x4f6   : > { %v5332_v11 = vmax.f32 %v4948_v1, 0.0  ;;  %v3216_v20 = vpack.c.bf16 %v3027_v21, %v3027_v21  ;;  %v2880_v3 = vadd.f32 %v2879_v44, %v8709_v27  ;;  %v6606_v27 = vld [vmem:[%s9614_s6 + $0x364] sm:$0xf]  ;;  %v3782_v1 = vperm.slane %v8084_v24, %v7499_v32  ;;  %v6544_v24 = vld [vmem:[%s9614_s6 + $0x174] sm:$0xf]  ;;  %v8852_v55 = vpop.permute.xlu0 %4595 }
 0x4f7   : > { %v8820_v33 = vpop.f32.mrf.mxu1  ;;  %v6360_v4 = vor.u32 %v6606_v27, %v6357_v56  ;;  %v4821_v44 = vunpack.c.l.bf16 %v3773_v45  ;;  %9716 = vst [vmem:[#allocation95_spill] sm:$0xff] %v8852_v55 }
 0x4f8   : > { %v4752_v40 = vunpack.c.l.bf16 %v3216_v20  ;;  %2739 = vmatmul.bf16.gmra.mxu3 %v6340_v19  ;;  %2918 = vmatmul.bf16.gmra.mxu0 %v6104_v18  ;;  %v8814_v35 = vpack.c.bf16 %v5332_v11, %v5331_v48  ;;  %v3157_v31 = vpack.c.bf16 %v2880_v3, %v2880_v3  ;;  %v8838_v48 = vpop.permute.xlu2 %4640  ;;  %v6605_v20 = vld [vmem:[%s9614_s6 + $0x354] sm:$0xf0]  ;;  %v4822_v3 = vunpack.c.l.bf16 %v3782_v1 }
 0x4f9   : > { %9715 = vst [vmem:[#allocation94_spill] sm:$0xff] %v8838_v48  ;;  %v3809_v48 = vperm.slane %v8108_v50, %v7499_v32  ;;  %v6610_v50 = vld [vmem:[%s9614_s6 + $0x384] sm:$0xf] }
 0x4fa   : > { %v5008_v46 = vadd.f32 %v4880_v62, %v4752_v40  ;;  %v8831_v62 = vpop.f32.mrf.mxu2  ;;  %v4693_v21 = vunpack.c.l.bf16 %v3157_v31 }
 0x4fb   : > { %v2700_v28 = vpop.f32.mrf.mxu3 }
 0x4fc   : > { %v5392_v59 = vmax.f32 %v5008_v46, 0.0  ;;  %v8829_v19 = vadd.f32 %v8718_v12, %v2700_v28  ;;  %3078 = vmatmul.bf16.gmra.mxu1 %v6360_v4  ;;  %v6347_v12 = vld [vmem:[%s9614_s6 + $0x350] sm:$0xf]  ;;  %v4949_v40 = vadd.f32 %v4821_v44, %v4693_v21  ;;  %v8858_v28 = vpop.permute.xlu1 %4604 }
 0x4fd   : > { %v2881_v6 = vpop.f32.mrf.mxu0  ;;  %9717 = vst [vmem:[#allocation96_spill] sm:$0xff] %v8858_v28  ;;  %v6348_v56 = vor.u32 %v6605_v20, %v6347_v12  ;;  %v6608_v12 = vld [vmem:[%s9614_s6 + $0x374] sm:$0xf]  ;;  %v6365_v20 = vld [vmem:[%s9614_s6 + $0x378] sm:$0xf0] }
 0x4fe   : > { %v2882_v18 = vadd.f32 %v2881_v6, %v8732_v23  ;;  %v8836_v38 = vpack.c.bf16 %v5392_v59, %v5391_v14  ;;  %v6109_v23 = vld [vmem:[%s9614_s6 + $0x178] sm:$0xf0]  ;;  %v5333_v4 = vmax.f32 %v4949_v40, 0.0  ;;  %v3800_v40 = vperm.slane %v8050_v13, %v7499_v32  ;;  %v6546_v13 = vld [vmem:[%s9614_s6 + $0x184] sm:$0xf] }
 0x4ff   : > { %v8856_v45 = vpop.f32.mrf.mxu1  ;;  %v6112_v14 = vor.u32 %v6544_v24, %v6109_v23  ;;  %v8875_v24 = vpop.permute.xlu0 %4460  ;;  %v6368_v23 = vor.u32 %v6608_v12, %v6365_v20 }
 0x500   : > { %v3158_v11 = vpack.c.bf16 %v2882_v18, %v2882_v18  ;;  %v8861_v21 = vpop.permute.xlu2 %4613 }
 0x501   : > { %9718 = vst [vmem:[#allocation97_spill] sm:$0xff] %v8861_v21 }
 0x502   : > { %v4694_v46 = vunpack.c.l.bf16 %v3158_v11  ;;  %v2562_v39 = vpop.f32.mrf.mxu2 }
 0x503   : > { %v8854_v31 = vpop.f32.mrf.mxu3 }
 0x504   : > { %v4950_v27 = vadd.f32 %v4822_v3, %v4694_v46  ;;  %v8879_v46 = vpop.permute.xlu1 %4577 }
 0x505   : > { %v2884_v59 = vpop.f32.mrf.mxu0  ;;  %9719 = vst [vmem:[#allocation98_spill] sm:$0xff] %v8879_v46 }
 0x506   : > { %v5334_v6 = vmax.f32 %v4950_v27, 0.0  ;;  %v2885_v18 = vadd.f32 %v2884_v59, %v8762_v43  ;;  %v3791_v43 = vperm.slane %v8040_v53, %v7499_v32 }
 0x507   : > { %v8865_v55 = vpop.f32.mrf.mxu1  ;;  %v8902_v46 = vpop.permute.xlu0 %4433 }
 0x508   : > { %2744 = vmatmul.bf16.gmra.mxu3 %v6348_v56  ;;  %2923 = vmatmul.bf16.gmra.mxu0 %v6112_v14  ;;  %v5447_v1 = vpack.c.bf16 %v5334_v6, %v5333_v4  ;;  %v3159_v44 = vpack.c.bf16 %v2885_v18, %v2885_v18  ;;  %v4823_v14 = vunpack.c.l.bf16 %v3791_v43  ;;  %v6355_v4 = vld [vmem:[%s9614_s6 + $0x360] sm:$0xf]  ;;  %v6607_v6 = vld [vmem:[%s9614_s6 + $0x364] sm:$0xf0]  ;;  %v4824_v18 = vunpack.c.l.bf16 %v3800_v40  ;;  %v8898_v28 = vpop.permute.xlu2 %4478 }
 0x509   : > { %9720 = vst [vmem:[#allocation99_spill] sm:$0xff] %v8898_v28 }
 0x50a   : > { %v4695_v27 = vunpack.c.l.bf16 %v3159_v44  ;;  %v2565_v53 = vpop.f32.mrf.mxu2 }
 0x50b   : > { %v8863_v11 = vpop.f32.mrf.mxu3 }
 0x50c   : > { %3083 = vmatmul.bf16.gmra.mxu1 %v6368_v23  ;;  %v4951_v44 = vadd.f32 %v4823_v14, %v4695_v27  ;;  %v8905_v27 = vpop.permute.xlu1 %4442 }
 0x50d   : > { %v2886_v3 = vpop.f32.mrf.mxu0 }
 0x50e   : > { %v2887_v56 = vadd.f32 %v2886_v3, %v8802_v30  ;;  %v6117_v30 = vld [vmem:[%s9614_s6 + $0x188] sm:$0xf0]  ;;  %v6356_v3 = vor.u32 %v6607_v6, %v6355_v4  ;;  %v5335_v7 = vmax.f32 %v4951_v44, 0.0  ;;  %v4825_v4 = vunpack.c.l.bf16 %v3809_v48 }
 0x50f   : > { %v8896_v43 = vpop.f32.mrf.mxu1  ;;  %v3818_v48 = vperm.slane %v8070_v57, %v7499_v32  ;;  %v6548_v57 = vld [vmem:[%s9614_s6 + $0x194] sm:$0xf] }
 0x510   : > { %v3160_v59 = vpack.c.bf16 %v2887_v56, %v2887_v56  ;;  %v6120_v56 = vor.u32 %v6546_v13, %v6117_v30 }
 0x512   : > { %v4696_v12 = vunpack.c.l.bf16 %v3160_v59  ;;  %v2567_v13 = vpop.f32.mrf.mxu2 }
 0x513   : > { %v8894_v20 = vpop.f32.mrf.mxu3 }
 0x514   : > { %v4952_v23 = vadd.f32 %v4824_v18, %v4696_v12  ;;  %v8917_v12 = vpop.permute.xlu2 %4451 }
 0x515   : > { %v2889_v21 = vpop.f32.mrf.mxu0 }
 0x516   : > { %v5336_v10 = vmax.f32 %v4952_v23, 0.0  ;;  %v2890_v40 = vadd.f32 %v2889_v21, %v8831_v62  ;;  %v6373_v62 = vld [vmem:[%s9614_s6 + $0x388] sm:$0xf0]  ;;  %v8919_v23 = vpop.permute.xlu0 %4568 }
 0x517   : > { %v8907_v18 = vpop.f32.mrf.mxu1  ;;  %9721 = vst [vmem:[#allocation100_spill] sm:$0xff] %v8919_v23  ;;  %v3827_v23 = vperm.slane %v8072_v41, %v7499_v32 }
 0x518   : > { %v5448_v14 = vpack.c.bf16 %v5336_v10, %v5335_v7  ;;  %v3161_v59 = vpack.c.bf16 %v2890_v40, %v2890_v40  ;;  %2749 = vmatmul.bf16.gmra.mxu3 %v6356_v3  ;;  %2928 = vmatmul.bf16.gmra.mxu0 %v6120_v56  ;;  %v6376_v7 = vor.u32 %v6610_v50, %v6373_v62  ;;  %v6363_v56 = vld [vmem:[%s9614_s6 + $0x370] sm:$0xf]  ;;  %v6609_v40 = vld [vmem:[%s9614_s6 + $0x374] sm:$0xf0] }
 0x519   : > { %v6364_v62 = vor.u32 %v6609_v40, %v6363_v56  ;;  %v4827_v56 = vunpack.c.l.bf16 %v3827_v23  ;;  %v3836_v23 = vperm.slane %v8146_v16, %v7499_v32  ;;  %v6371_v16 = vld [vmem:[%s9614_s6 + $0x380] sm:$0xf] }
 0x51a   : > { %v4697_v6 = vunpack.c.l.bf16 %v3161_v59  ;;  %5571 = vmatpush.bf16.msra.mxu1 %v5448_v14  ;;  %v8933_v14 = vpop.permute.xlu1 %4415 }
 0x51b   : > { %v2710_v30 = vpop.f32.mrf.mxu3 }
 0x51c   : > { %v4953_v21 = vadd.f32 %v4825_v4, %v4697_v6  ;;  %3088 = vmatmul.bf16.gmra.mxu1 %v6376_v7  ;;  %v8945_v5 = vpop.permute.xlu2 %4586 }
 0x51d   : > { %v2891_v10 = vpop.f32.mrf.mxu0 }
 0x51e   : > { %v2892_v44 = vadd.f32 %v2891_v10, %v2562_v39  ;;  %5572 = vmatpush.bf16.msra.mxu1 %v5447_v1  ;;  %v6125_v39 = vld [vmem:[%s9614_s6 + $0x198] sm:$0xf0]  ;;  %v4826_v1 = vunpack.c.l.bf16 %v3818_v48  ;;  %v5337_v52 = vmax.f32 %v4953_v21, 0.0  ;;  %v8947_v40 = vpop.permute.xlu0 %4541 }
 0x51f   : > { %v8936_v6 = vpop.f32.mrf.mxu1  ;;  %v6128_v7 = vor.u32 %v6548_v57, %v6125_v39 }
 0x520   : > { %v3162_v3 = vpack.c.bf16 %v2892_v44, %v2892_v44  ;;  %v8938_v44 = vpop.f32.mrf.mxu2 }
 0x522   : > { %v4698_v59 = vunpack.c.l.bf16 %v3162_v3  ;;  %5573 = vmatpush.bf16.msra.mxu1 %v8814_v35  ;;  %v8950_v41 = vpop.permute.xlu1 %4550 }
 0x523   : > { %v2712_v4 = vpop.f32.mrf.mxu3 }
 0x524   : > { %v4954_v50 = vadd.f32 %v4826_v1, %v4698_v59 }
 0x525   : > { %v2894_v10 = vpop.f32.mrf.mxu0 }
 0x526   : > { %v5338_v28 = vmax.f32 %v4954_v50, 0.0  ;;  %v2895_v48 = vadd.f32 %v2894_v10, %v2565_v53  ;;  %5574 = vmatpush.bf16.msra.mxu1 %v8764_v36 }
 0x527   : > { %v8953_v36 = vpop.f32.mrf.mxu1 }
 0x528   : > { %v3163_v3 = vpack.c.bf16 %v2895_v48, %v2895_v48  ;;  %2754 = vmatmul.bf16.gmra.mxu3 %v6364_v62  ;;  %2933 = vmatmul.bf16.gmra.mxu0 %v6128_v7  ;;  %v8943_v35 = vpack.c.bf16 %v5338_v28, %v5337_v52  ;;  %v6612_v52 = vld [vmem:[%s9614_s6 + $0x394] sm:$0xf]  ;;  %v6381_v28 = vld [vmem:[%s9614_s6 + $0x398] sm:$0xf0]  ;;  %v3040_v62 = vadd.f32 %v8820_v33, %v2710_v30  ;;  %v8968_v7 = vpop.f32.mrf.mxu2  ;;  %v6550_v33 = vld [vmem:[%s9614_s6 + $0x1a4] sm:$0xf] }
 0x529   : > { %v6384_v59 = vor.u32 %v6612_v52, %v6381_v28  ;;  %v3854_v30 = vperm.slane %v8102_v37, %v7499_v32  ;;  %v3863_v37 = vperm.slane %v8169_v42, %v7499_v32 }
 0x52a   : > { %v4699_v57 = vunpack.c.l.bf16 %v3163_v3  ;;  %5575 = vmatpush.bf16.msra.mxu1 %v8714_v49  ;;  %v3042_v49 = vadd.f32 %v8856_v45, %v2712_v4  ;;  %v6611_v45 = vld [vmem:[%s9614_s6 + $0x384] sm:$0xf0]  ;;  %v4828_v4 = vunpack.c.l.bf16 %v3836_v23  ;;  %v3845_v3 = vperm.slane %v8098_v29, %v7499_v32 }
 0x52b   : > { %v2715_v39 = vpop.f32.mrf.mxu3  ;;  %v3221_v52 = vpack.c.bf16 %v3040_v62, %v3040_v62  ;;  %v6372_v23 = vor.u32 %v6611_v45, %v6371_v16  ;;  %v9004_v62 = vpop.permute.xlu1 %4523 }
 0x52c   : > { %v4955_v21 = vadd.f32 %v4827_v56, %v4699_v57  ;;  %v3045_v53 = vadd.f32 %v8865_v55, %v2715_v39  ;;  %v4376_v55 = vperm.slane %v8750_v61, %v7499_v32  ;;  %3093 = vmatmul.bf16.gmra.mxu1 %v6384_v59  ;;  %v4367_v61 = vperm.slane %v8662_v26, %v7499_v32  ;;  %v8991_v39 = vpop.permute.xlu2 %4559 }
 0x52d   : > { %v2896_v1 = vpop.f32.mrf.mxu0  ;;  %v4358_v26 = vperm.slane %v8700_v51, %v7499_v32  ;;  %v4349_v51 = vperm.slane %v8684_v63, %v7499_v32  ;;  %v4757_v63 = vunpack.c.l.bf16 %v3221_v52  ;;  %v4331_v52 = vperm.slane %v8659_v25, %v7499_v32  ;;  %v6389_v25 = vld [vmem:[%s9614_s6 + $0x3a8] sm:$0xf0] }
 0x52e   : > { %v2897_v50 = vadd.f32 %v2896_v1, %v2567_v13  ;;  %5576 = vmatpush.bf16.msra.mxu1 %v8664_v2  ;;  %v3223_v10 = vpack.c.bf16 %v3045_v53, %v3045_v53  ;;  %v3222_v2 = vpack.c.bf16 %v3042_v49, %v3042_v49  ;;  %v6133_v13 = vld [vmem:[%s9614_s6 + $0x1a8] sm:$0xf0]  ;;  %v4888_v56 = vunpack.c.l.bf16 %v4376_v55  ;;  %v8995_v49 = vpop.permute.xlu0 %4406 }
 0x52f   : > { %v3037_v53 = vadd.f32 %v8806_v17, %v8894_v20  ;;  %v6136_v55 = vor.u32 %v6550_v33, %v6133_v13  ;;  %v5339_v16 = vmax.f32 %v4955_v21, 0.0  ;;  %v4829_v21 = vunpack.c.l.bf16 %v3845_v3 }
 0x530   : > { %v3164_v48 = vpack.c.bf16 %v2897_v50, %v2897_v50  ;;  %v4759_v1 = vunpack.c.l.bf16 %v3223_v10  ;;  %v8998_v50 = vpop.f32.mrf.mxu1  ;;  %v4758_v17 = vunpack.c.l.bf16 %v3222_v2  ;;  %v4340_v2 = vperm.slane %v8776_v8, %v7499_v32 }
 0x531   : > { %v3220_v33 = vpack.c.bf16 %v3037_v53, %v3037_v53 }
 0x532   : > { %v4700_v57 = vunpack.c.l.bf16 %v3164_v48  ;;  %5577 = vmatpush.bf16.msra.mxu1 %v8609_v58  ;;  %v4887_v58 = vunpack.c.l.bf16 %v4367_v61  ;;  %v3035_v48 = vadd.f32 %v8768_v54, %v8863_v11  ;;  %v3032_v61 = vadd.f32 %v8754_v34, %v8854_v31 }
 0x533   : > { %v2717_v28 = vpop.f32.mrf.mxu3  ;;  %v4322_v34 = vperm.slane %v8712_v0, %v7499_v32  ;;  %v6614_v0 = vld [vmem:[%s9614_s6 + $0x3a4] sm:$0xf] }
 0x534   : > { %v4956_v59 = vadd.f32 %v4828_v4, %v4700_v57  ;;  %v3047_v29 = vadd.f32 %v8896_v43, %v2717_v28  ;;  %v4886_v43 = vunpack.c.l.bf16 %v4358_v26  ;;  %v5015_v13 = vadd.f32 %v4887_v58, %v4759_v1 }
 0x535   : > { %v2899_v20 = vpop.f32.mrf.mxu0  ;;  %v3219_v28 = vpack.c.bf16 %v3035_v48, %v3035_v48  ;;  %v4756_v1 = vunpack.c.l.bf16 %v3220_v33  ;;  %v3217_v48 = vpack.c.bf16 %v8829_v19, %v8829_v19  ;;  %v4883_v33 = vunpack.c.l.bf16 %v4331_v52 }
 0x536   : > { %v5340_v45 = vmax.f32 %v4956_v59, 0.0  ;;  %v3224_v10 = vpack.c.bf16 %v3047_v29, %v3047_v29  ;;  %v2900_v4 = vadd.f32 %v2899_v20, %v8938_v44  ;;  %5578 = vmatpush.bf16.msra.mxu1 %v8553_v47  ;;  %v4885_v44 = vunpack.c.l.bf16 %v4349_v51  ;;  %v9014_v47 = vpop.f32.mrf.mxu2 }
 0x537   : > { %v5014_v31 = vadd.f32 %v4886_v43, %v4758_v17  ;;  %v5399_v29 = vmax.f32 %v5015_v13, 0.0  ;;  %v4755_v17 = vunpack.c.l.bf16 %v3219_v28  ;;  %v4753_v28 = vunpack.c.l.bf16 %v3217_v48 }
 0x538   : > { %v4760_v57 = vunpack.c.l.bf16 %v3224_v10  ;;  %v3165_v54 = vpack.c.bf16 %v2900_v4, %v2900_v4  ;;  %2759 = vmatmul.bf16.gmra.mxu3 %v6372_v23  ;;  %2938 = vmatmul.bf16.gmra.mxu0 %v6136_v55  ;;  %v9010_v11 = vpack.c.bf16 %v5340_v45, %v5339_v16  ;;  %v3218_v23 = vpack.c.bf16 %v3032_v61, %v3032_v61  ;;  %v9023_v51 = vpop.f32.mrf.mxu1  ;;  %v9035_v45 = vpop.permute.xlu2 %4424 }
 0x539   : > { %v5013_v59 = vadd.f32 %v4885_v44, %v4757_v63  ;;  %v6392_v16 = vor.u32 %v6614_v0, %v6389_v25  ;;  %v4380_v10 = vpop.permute.xlu0 %4379  ;;  %v5398_v4 = vmax.f32 %v5014_v31, 0.0  ;;  %v4882_v44 = vunpack.c.l.bf16 %v4322_v34 }
 0x53a   : > { %v5016_v26 = vadd.f32 %v4888_v56, %v4760_v57  ;;  %v4701_v53 = vunpack.c.l.bf16 %v3165_v54  ;;  %v4884_v56 = vunpack.c.l.bf16 %v4340_v2  ;;  %v4754_v63 = vunpack.c.l.bf16 %v3218_v23  ;;  %v4389_v57 = vpop.permute.xlu1 %4388  ;;  %v6613_v2 = vld [vmem:[%s9614_s6 + $0x394] sm:$0xf0] }
 0x53b   : > { %v2720_v3 = vpop.f32.mrf.mxu3  ;;  %v5397_v54 = vmax.f32 %v5013_v59, 0.0  ;;  %v5011_v31 = vadd.f32 %v4883_v33, %v4755_v17  ;;  %v4830_v52 = vunpack.c.l.bf16 %v3854_v30  ;;  %v4394_v34 = vperm.slane %v4389_v57, %v7499_v32 }
 0x53c   : > { %v5400_v55 = vmax.f32 %v5016_v26, 0.0  ;;  %v9020_v8 = vadd.f32 %v4829_v21, %v4701_v53  ;;  %v3050_v58 = vadd.f32 %v8907_v18, %v2720_v3  ;;  %v4313_v18 = vperm.slane %v8626_v9, %v7499_v32  ;;  %3098 = vmatmul.bf16.gmra.mxu1 %v6392_v16  ;;  %v6379_v9 = vld [vmem:[%s9614_s6 + $0x390] sm:$0xf]  ;;  %v6552_v26 = vld [vmem:[%s9614_s6 + $0x1b4] sm:$0xf] }
 0x53d   : > { %v2901_v20 = vpop.f32.mrf.mxu0  ;;  %v5012_v13 = vadd.f32 %v4884_v56, %v4756_v1  ;;  %v6141_v53 = vld [vmem:[%s9614_s6 + $0x1b8] sm:$0xf0]  ;;  %v5479_v59 = vpack.c.bf16 %v5398_v4, %v5397_v54  ;;  %v5010_v3 = vadd.f32 %v4882_v44, %v4754_v63  ;;  %v4890_v63 = vunpack.c.l.bf16 %v4394_v34 }
 0x53e   : > { %v5480_v43 = vpack.c.bf16 %v5400_v55, %v5399_v29  ;;  %v2902_v61 = vadd.f32 %v2901_v20, %v8968_v7  ;;  %v3225_v19 = vpack.c.bf16 %v3050_v58, %v3050_v58  ;;  %v4385_v7 = vperm.slane %v4380_v10, %v7499_v32  ;;  %v2577_v0 = vpop.f32.mrf.mxu2 }
 0x53f   : > { %v4881_v23 = vunpack.c.l.bf16 %v4313_v18  ;;  %v5396_v29 = vmax.f32 %v5012_v13, 0.0  ;;  %v6380_v58 = vor.u32 %v6613_v2, %v6379_v9  ;;  %v6144_v17 = vor.u32 %v6552_v26, %v6141_v53 }
 0x540   : > { %v3166_v21 = vpack.c.bf16 %v2902_v61, %v2902_v61  ;;  %5627 = vmatpush.bf16.msrb.mxu2 %v5480_v43  ;;  %v4761_v25 = vunpack.c.l.bf16 %v3225_v19  ;;  %v9056_v20 = vpop.f32.mrf.mxu1  ;;  %v4889_v30 = vunpack.c.l.bf16 %v4385_v7  ;;  %v5395_v18 = vmax.f32 %v5011_v31, 0.0  ;;  %v4398_v57 = vpop.permute.xlu2 %4397 }
 0x541   : > { %v5009_v16 = vadd.f32 %v4881_v23, %v4753_v28  ;;  %v5341_v4 = vmax.f32 %v9020_v8, 0.0  ;;  %v5394_v13 = vmax.f32 %v5010_v3, 0.0  ;;  %v4831_v2 = vunpack.c.l.bf16 %v3863_v37 }
 0x542   : > { %v4702_v1 = vunpack.c.l.bf16 %v3166_v21  ;;  %v5017_v54 = vadd.f32 %v4889_v30, %v4761_v25  ;;  %v4403_v7 = vperm.slane %v4398_v57, %v7499_v32  ;;  %v6387_v30 = vld [vmem:[%s9614_s6 + $0x3a0] sm:$0xf] }
 0x543   : > { %v2722_v55 = vpop.f32.mrf.mxu3  ;;  %v5393_v9 = vmax.f32 %v5009_v16, 0.0  ;;  %v6615_v16 = vld [vmem:[%s9614_s6 + $0x3a4] sm:$0xf0] }
 0x544   : > { %v4958_v56 = vadd.f32 %v4830_v52, %v4702_v1  ;;  %v3052_v48 = vadd.f32 %v8936_v6, %v2722_v55  ;;  %5628 = vmatpush.bf16.msrb.mxu2 %v5479_v59  ;;  %v5478_v6 = vpack.c.bf16 %v5396_v29, %v5395_v18  ;;  %v5401_v31 = vmax.f32 %v5017_v54, 0.0  ;;  %v6616_v1 = vld [vmem:[%s9614_s6 + $0x3b4] sm:$0xf]  ;;  %v6397_v59 = vld [vmem:[%s9614_s6 + $0x3b8] sm:$0xf0]  ;;  %v9722_v55 = vld [vmem:[#allocation25_spill] sm:$0xff] }
 0x545   : > { %v2904_v10 = vpop.f32.mrf.mxu0  ;;  %v6400_v29 = vor.u32 %v6616_v1, %v6397_v59  ;;  %v6149_v18 = vld [vmem:[%s9614_s6 + $0x1c8] sm:$0xf0]  ;;  %v9723_v54 = vld [vmem:[#allocation26_spill] sm:$0xff] }
 0x546   : > { %v5342_v43 = vmax.f32 %v4958_v56, 0.0  ;;  %v3226_v61 = vpack.c.bf16 %v3052_v48, %v3052_v48  ;;  %v2905_v33 = vadd.f32 %v2904_v10, %v9014_v47  ;;  %v5477_v47 = vpack.c.bf16 %v5394_v13, %v5393_v9  ;;  %v2580_v3 = vpop.f32.mrf.mxu2 }
 0x547   : > { %v4891_v48 = vunpack.c.l.bf16 %v4403_v7  ;;  %v6388_v13 = vor.u32 %v6615_v16, %v6387_v30 }
 0x548   : > { %v4762_v19 = vunpack.c.l.bf16 %v3226_v61  ;;  %v3167_v21 = vpack.c.bf16 %v2905_v33, %v2905_v33  ;;  %2764 = vmatmul.bf16.gmra.mxu3 %v6380_v58  ;;  %2943 = vmatmul.bf16.gmra.mxu0 %v6144_v17  ;;  %v9062_v42 = vpack.c.bf16 %v5342_v43, %v5341_v4  ;;  %v9066_v23 = vpop.f32.mrf.mxu1  ;;  %v3872_v58 = vperm.slane %v9722_v55, %v7499_v32  ;;  %v6618_v55 = vld [vmem:[%s9614_s6 + $0x3c4] sm:$0xf] }
 0x549   : > { %5629 = vmatpush.bf16.msrb.mxu2 %v5478_v6  ;;  %v4412_v61 = vperm.slane %v8995_v49, %v7499_v32 }
 0x54a   : > { %v5018_v44 = vadd.f32 %v4890_v63, %v4762_v19  ;;  %v4703_v8 = vunpack.c.l.bf16 %v3167_v21  ;;  %v4832_v10 = vunpack.c.l.bf16 %v3872_v58  ;;  %v3881_v19 = vperm.slane %v9723_v54, %v7499_v32 }
 0x54b   : > { %v2725_v28 = vpop.f32.mrf.mxu3  ;;  %v4892_v49 = vunpack.c.l.bf16 %v4412_v61 }
 0x54c   : > { %v5402_v26 = vmax.f32 %v5018_v44, 0.0  ;;  %v4959_v53 = vadd.f32 %v4831_v2, %v4703_v8  ;;  %v3055_v52 = vadd.f32 %v8953_v36, %v2725_v28  ;;  %3103 = vmatmul.bf16.gmra.mxu1 %v6400_v29 }
 0x54d   : > { %5630 = vmatpush.bf16.msrb.mxu2 %v5477_v47  ;;  %v2906_v34 = vpop.f32.mrf.mxu0 }
 0x54e   : > { %v3227_v25 = vpack.c.bf16 %v3055_v52, %v3055_v52  ;;  %v2907_v56 = vadd.f32 %v2906_v34, %v2577_v0  ;;  %v9076_v36 = vpack.c.bf16 %v5402_v26, %v5401_v31  ;;  %v6554_v0 = vld [vmem:[%s9614_s6 + $0x1c4] sm:$0xf]  ;;  %v5343_v9 = vmax.f32 %v4959_v53, 0.0  ;;  %v2582_v7 = vpop.f32.mrf.mxu2 }
 0x54f   : > { %v6152_v6 = vor.u32 %v6554_v0, %v6149_v18  ;;  %v4833_v31 = vunpack.c.l.bf16 %v3881_v19  ;;  %v6395_v0 = vld [vmem:[%s9614_s6 + $0x3b0] sm:$0xf] }
 0x550   : > { %v4763_v17 = vunpack.c.l.bf16 %v3227_v25  ;;  %v3168_v37 = vpack.c.bf16 %v2907_v56, %v2907_v56  ;;  %v9094_v57 = vpop.f32.mrf.mxu1  ;;  %v9724_v25 = vld [vmem:[#allocation34_spill] sm:$0xff] }
 0x551   : > { %5631 = vmatpush.bf16.msrb.mxu2 %v8836_v38  ;;  %v3890_v56 = vperm.slane %v9724_v25, %v7499_v32 }
 0x552   : > { %v5019_v4 = vadd.f32 %v4891_v48, %v4763_v17  ;;  %v4704_v43 = vunpack.c.l.bf16 %v3168_v37 }
 0x553   : > { %v2727_v33 = vpop.f32.mrf.mxu3 }
 0x554   : > { %v4960_v38 = vadd.f32 %v4832_v10, %v4704_v43  ;;  %v3057_v63 = vadd.f32 %v8998_v50, %v2727_v33  ;;  %v5403_v1 = vmax.f32 %v5019_v4, 0.0  ;;  %v6556_v10 = vld [vmem:[%s9614_s6 + $0x1d4] sm:$0xf]  ;;  %v6157_v4 = vld [vmem:[%s9614_s6 + $0x1d8] sm:$0xf0]  ;;  %v4834_v43 = vunpack.c.l.bf16 %v3890_v56 }
 0x555   : > { %5632 = vmatpush.bf16.msrb.mxu2 %v8784_v15  ;;  %v2909_v21 = vpop.f32.mrf.mxu0  ;;  %v4421_v15 = vperm.slane %v8933_v14, %v7499_v32  ;;  %v6160_v19 = vor.u32 %v6556_v10, %v6157_v4  ;;  %v6558_v10 = vld [vmem:[%s9614_s6 + $0x1e4] sm:$0xf]  ;;  %v6165_v4 = vld [vmem:[%s9614_s6 + $0x1e8] sm:$0xf0] }
 0x556   : > { %v5344_v2 = vmax.f32 %v4960_v38, 0.0  ;;  %v3228_v44 = vpack.c.bf16 %v3057_v63, %v3057_v63  ;;  %v2910_v8 = vadd.f32 %v2909_v21, %v2580_v3  ;;  %v2585_v18 = vpop.f32.mrf.mxu2  ;;  %v4430_v38 = vperm.slane %v9035_v45, %v7499_v32 }
 0x557   : > { %v4893_v37 = vunpack.c.l.bf16 %v4421_v15 }
 0x558   : > { %v4764_v28 = vunpack.c.l.bf16 %v3228_v44  ;;  %v3169_v47 = vpack.c.bf16 %v2910_v8, %v2910_v8  ;;  %2769 = vmatmul.bf16.gmra.mxu3 %v6388_v13  ;;  %2948 = vmatmul.bf16.gmra.mxu0 %v6152_v6  ;;  %v9099_v50 = vpack.c.bf16 %v5344_v2, %v5343_v9 }
 0x559   : > { %5633 = vmatpush.bf16.msrb.mxu2 %v8734_v60  ;;  %v9105_v29 = vpop.f32.mrf.mxu1  ;;  %v6405_v60 = vld [vmem:[%s9614_s6 + $0x3c8] sm:$0xf0] }
 0x55a   : > { %v5020_v26 = vadd.f32 %v4892_v49, %v4764_v28  ;;  %v4705_v52 = vunpack.c.l.bf16 %v3169_v47  ;;  %v6408_v14 = vor.u32 %v6618_v55, %v6405_v60  ;;  %v4894_v49 = vunpack.c.l.bf16 %v4430_v38  ;;  %v6620_v55 = vld [vmem:[%s9614_s6 + $0x3d4] sm:$0xf]  ;;  %v6413_v60 = vld [vmem:[%s9614_s6 + $0x3d8] sm:$0xf0] }
 0x55b   : > { %v2730_v53 = vpop.f32.mrf.mxu3  ;;  %v6416_v56 = vor.u32 %v6620_v55, %v6413_v60 }
 0x55c   : > { %v5404_v59 = vmax.f32 %v5020_v26, 0.0  ;;  %v4961_v34 = vadd.f32 %v4833_v31, %v4705_v52  ;;  %v3060_v3 = vadd.f32 %v9023_v51, %v2730_v53  ;;  %3108 = vmatmul.bf16.gmra.mxu1 %v6408_v14  ;;  %v9725_v26 = vld [vmem:[#allocation28_spill] sm:$0xff]  ;;  %v4439_v53 = vperm.slane %v8902_v46, %v7499_v32 }
 0x55d   : > { %5634 = vmatpush.bf16.msrb.mxu2 %v8682_v22  ;;  %v2911_v58 = vpop.f32.mrf.mxu0  ;;  %v6617_v22 = vld [vmem:[%s9614_s6 + $0x3b4] sm:$0xf0] }
 0x55e   : > { %v3229_v48 = vpack.c.bf16 %v3060_v3, %v3060_v3  ;;  %v2912_v17 = vadd.f32 %v2911_v58, %v2582_v7  ;;  %v9116_v51 = vpack.c.bf16 %v5404_v59, %v5403_v1  ;;  %v6396_v54 = vor.u32 %v6617_v22, %v6395_v0  ;;  %v2587_v15 = vpop.f32.mrf.mxu2  ;;  %v9726_v58 = vld [vmem:[#allocation29_spill] sm:$0xff] }
 0x55f   : > { %v5345_v2 = vmax.f32 %v4961_v34, 0.0  ;;  %v3908_v14 = vperm.slane %v9726_v58, %v7499_v32  ;;  %v6619_v22 = vld [vmem:[%s9614_s6 + $0x3c4] sm:$0xf0]  ;;  %v6622_v58 = vld [vmem:[%s9614_s6 + $0x3e4] sm:$0xf] }
 0x560   : > { %v4765_v30 = vunpack.c.l.bf16 %v3229_v48  ;;  %v3170_v16 = vpack.c.bf16 %v2912_v17, %v2912_v17 }
 0x561   : > { %v9133_v21 = vpop.f32.mrf.mxu1 }
 0x562   : > { %v5021_v61 = vadd.f32 %v4893_v37, %v4765_v30  ;;  %v4706_v33 = vunpack.c.l.bf16 %v3170_v16  ;;  %v4895_v30 = vunpack.c.l.bf16 %v4439_v53 }
 0x563   : > { %v2732_v63 = vpop.f32.mrf.mxu3 }
 0x564   : > { %v4962_v13 = vadd.f32 %v4834_v43, %v4706_v33  ;;  %v3062_v6 = vadd.f32 %v9056_v20, %v2732_v63  ;;  %v3899_v20 = vperm.slane %v9725_v26, %v7499_v32  ;;  %v5405_v1 = vmax.f32 %v5021_v61, 0.0 }
 0x565   : > { %v2914_v9 = vpop.f32.mrf.mxu0  ;;  %v4836_v43 = vunpack.c.l.bf16 %v3908_v14  ;;  %v4448_v63 = vperm.slane %v8905_v27, %v7499_v32  ;;  %v6421_v14 = vld [vmem:[%s9614_s6 + $0x3e8] sm:$0xf0] }
 0x566   : > { %v5346_v44 = vmax.f32 %v4962_v13, 0.0  ;;  %v3230_v8 = vpack.c.bf16 %v3062_v6, %v3062_v6  ;;  %v2915_v7 = vadd.f32 %v2914_v9, %v2585_v18  ;;  %v6403_v18 = vld [vmem:[%s9614_s6 + $0x3c0] sm:$0xf]  ;;  %v6168_v9 = vor.u32 %v6558_v10, %v6165_v4  ;;  %v6411_v10 = vld [vmem:[%s9614_s6 + $0x3d0] sm:$0xf] }
 0x567   : > { %v6621_v4 = vld [vmem:[%s9614_s6 + $0x3d4] sm:$0xf0] }
 0x568   : > { %v4766_v28 = vunpack.c.l.bf16 %v3230_v8  ;;  %2774 = vmatmul.bf16.gmra.mxu3 %v6396_v54  ;;  %2953 = vmatmul.bf16.gmra.mxu0 %v6160_v19  ;;  %v9135_v47 = vpack.c.bf16 %v5346_v44, %v5345_v2  ;;  %v3171_v31 = vpack.c.bf16 %v2915_v7, %v2915_v7  ;;  %v6404_v19 = vor.u32 %v6619_v22, %v6403_v18 }
 0x569   : > { %v9142_v3 = vpop.f32.mrf.mxu1 }
 0x56a   : > { %v5022_v45 = vadd.f32 %v4894_v49, %v4766_v28  ;;  %v4707_v46 = vunpack.c.l.bf16 %v3171_v31  ;;  %v9727_v28 = vld [vmem:[#allocation8_spill] sm:$0xff]  ;;  %v4896_v31 = vunpack.c.l.bf16 %v4448_v63 }
 0x56b   : > { %v2735_v52 = vpop.f32.mrf.mxu3 }
 0x56c   : > { %v5406_v59 = vmax.f32 %v5022_v45, 0.0  ;;  %v3065_v34 = vadd.f32 %v9066_v23, %v2735_v52  ;;  %3113 = vmatmul.bf16.gmra.mxu1 %v6416_v56  ;;  %v4835_v23 = vunpack.c.l.bf16 %v3899_v20 }
 0x56d   : > { %v2916_v25 = vpop.f32.mrf.mxu0 }
 0x56e   : > { %v3231_v48 = vpack.c.bf16 %v3065_v34, %v3065_v34  ;;  %v2917_v17 = vadd.f32 %v2916_v25, %v2587_v15  ;;  %v9152_v37 = vpack.c.bf16 %v5406_v59, %v5405_v1  ;;  %v4963_v61 = vadd.f32 %v4835_v23, %v4707_v46  ;;  %v9729_v25 = vld [vmem:[#allocation31_spill] sm:$0xff]  ;;  %v9730_v23 = vld [vmem:[#allocation9_spill] sm:$0xff] }
 0x56f   : > { %v4457_v1 = vperm.slane %v8917_v12, %v7499_v32  ;;  %v3926_v56 = vperm.slane %v9729_v25, %v7499_v32 }
 0x570   : > { %v4767_v16 = vunpack.c.l.bf16 %v3231_v48  ;;  %v3172_v0 = vpack.c.bf16 %v2917_v17, %v2917_v17  ;;  %v5347_v8 = vmax.f32 %v4963_v61, 0.0  ;;  %v6424_v48 = vor.u32 %v6622_v58, %v6421_v14  ;;  %v6173_v61 = vld [vmem:[%s9614_s6 + $0x1f8] sm:$0xf0] }
 0x571   : > { %v9169_v2 = vpop.f32.mrf.mxu1 }
 0x572   : > { %v5023_v33 = vadd.f32 %v4895_v30, %v4767_v16  ;;  %v4708_v38 = vunpack.c.l.bf16 %v3172_v0  ;;  %v4897_v0 = vunpack.c.l.bf16 %v4457_v1 }
 0x573   : > { %v2737_v13 = vpop.f32.mrf.mxu3 }
 0x574   : > { %v4964_v6 = vadd.f32 %v4836_v43, %v4708_v38  ;;  %v3067_v54 = vadd.f32 %v9094_v57, %v2737_v13  ;;  %v9728_v57 = vld [vmem:[#allocation38_spill] sm:$0xff]  ;;  %v5407_v59 = vmax.f32 %v5023_v33, 0.0  ;;  %v4838_v33 = vunpack.c.l.bf16 %v3926_v56 }
 0x575   : > { %v2919_v44 = vpop.f32.mrf.mxu0  ;;  %v3917_v15 = vperm.slane %v9728_v57, %v7499_v32  ;;  %v6560_v43 = vld [vmem:[%s9614_s6 + $0x1f4] sm:$0xf] }
 0x576   : > { %v5348_v7 = vmax.f32 %v4964_v6, 0.0  ;;  %v3232_v49 = vpack.c.bf16 %v3067_v54, %v3067_v54  ;;  %v2920_v45 = vadd.f32 %v2919_v44, %v9727_v28  ;;  %v4466_v6 = vperm.slane %v8875_v24, %v7499_v32 }
 0x577   : > { %v4837_v16 = vunpack.c.l.bf16 %v3917_v15  ;;  %v6412_v44 = vor.u32 %v6621_v4, %v6411_v10 }
 0x578   : > { %v4768_v26 = vunpack.c.l.bf16 %v3232_v49  ;;  %2779 = vmatmul.bf16.gmra.mxu3 %v6404_v19  ;;  %2958 = vmatmul.bf16.gmra.mxu0 %v6168_v9  ;;  %v9172_v20 = vpack.c.bf16 %v5348_v7, %v5347_v8  ;;  %v3173_v52 = vpack.c.bf16 %v2920_v45, %v2920_v45  ;;  %v6176_v8 = vor.u32 %v6560_v43, %v6173_v61 }
 0x579   : > { %v9179_v60 = vpop.f32.mrf.mxu1 }
 0x57a   : > { %v5024_v27 = vadd.f32 %v4896_v31, %v4768_v26  ;;  %v4709_v12 = vunpack.c.l.bf16 %v3173_v52  ;;  %v9731_v26 = vld [vmem:[#allocation10_spill] sm:$0xff]  ;;  %v4898_v52 = vunpack.c.l.bf16 %v4466_v6 }
 0x57b   : > { %v2740_v53 = vpop.f32.mrf.mxu3 }
 0x57c   : > { %v5408_v34 = vmax.f32 %v5024_v27, 0.0  ;;  %v3070_v55 = vadd.f32 %v9105_v29, %v2740_v53  ;;  %3118 = vmatmul.bf16.gmra.mxu1 %v6424_v48  ;;  %v4965_v38 = vadd.f32 %v4837_v16, %v4709_v12  ;;  %v6429_v48 = vld [vmem:[%s9614_s6 + $0x3f8] sm:$0xf0] }
 0x57d   : > { %v2921_v46 = vpop.f32.mrf.mxu0  ;;  %v9734_v12 = vld [vmem:[#allocation43_spill] sm:$0xff] }
 0x57e   : > { %v3233_v17 = vpack.c.bf16 %v3070_v55, %v3070_v55  ;;  %v2922_v30 = vadd.f32 %v2921_v46, %v9730_v23  ;;  %v9190_v29 = vpack.c.bf16 %v5408_v34, %v5407_v59  ;;  %v5349_v28 = vmax.f32 %v4965_v38, 0.0  ;;  %v9733_v34 = vld [vmem:[#allocation93_spill] sm:$0xff]  ;;  %v6624_v46 = vld [vmem:[%s9614_s6 + $0x3f4] sm:$0xf] }
 0x57f   : > { %v4475_v55 = vperm.slane %v9733_v34, %v7499_v32  ;;  %v6623_v38 = vld [vmem:[%s9614_s6 + $0x3e4] sm:$0xf0] }
 0x580   : > { %v4769_v18 = vunpack.c.l.bf16 %v3233_v17  ;;  %v3174_v22 = vpack.c.bf16 %v2922_v30, %v2922_v30  ;;  %v3944_v17 = vperm.slane %v9734_v12, %v7499_v32  ;;  %v6432_v30 = vor.u32 %v6624_v46, %v6429_v48  ;;  %v9739_v12 = vld [vmem:[#allocation89_spill] sm:$0xff] }
 0x581   : > { %v9207_v7 = vpop.f32.mrf.mxu1  ;;  %v4899_v4 = vunpack.c.l.bf16 %v4475_v55 }
 0x582   : > { %v5025_v63 = vadd.f32 %v4897_v0, %v4769_v18  ;;  %v4710_v13 = vunpack.c.l.bf16 %v3174_v22  ;;  %v9735_v18 = vld [vmem:[#allocation11_spill] sm:$0xff]  ;;  %v4840_v6 = vunpack.c.l.bf16 %v3944_v17  ;;  %v4493_v17 = vperm.slane %v9739_v12, %v7499_v32 }
 0x583   : > { %v2742_v54 = vpop.f32.mrf.mxu3 }
 0x584   : > { %v4966_v19 = vadd.f32 %v4838_v33, %v4710_v13  ;;  %v3072_v9 = vadd.f32 %v9133_v21, %v2742_v54  ;;  %v9732_v21 = vld [vmem:[#allocation32_spill] sm:$0xff]  ;;  %v5409_v58 = vmax.f32 %v5025_v63, 0.0  ;;  %v6181_v13 = vld [vmem:[%s9614_s6 + $0x208] sm:$0xf0] }
 0x585   : > { %v2924_v49 = vpop.f32.mrf.mxu0  ;;  %v3935_v1 = vperm.slane %v9732_v21, %v7499_v32  ;;  %v6419_v33 = vld [vmem:[%s9614_s6 + $0x3e0] sm:$0xf]  ;;  %v6562_v63 = vld [vmem:[%s9614_s6 + $0x204] sm:$0xf] }
 0x586   : > { %v5350_v45 = vmax.f32 %v4966_v19, 0.0  ;;  %v3234_v31 = vpack.c.bf16 %v3072_v9, %v3072_v9  ;;  %v2925_v27 = vadd.f32 %v2924_v49, %v9731_v26  ;;  %v6184_v26 = vor.u32 %v6562_v63, %v6181_v13 }
 0x587   : > { %v4839_v10 = vunpack.c.l.bf16 %v3935_v1  ;;  %v4901_v13 = vunpack.c.l.bf16 %v4493_v17 }
 0x588   : > { %v4770_v57 = vunpack.c.l.bf16 %v3234_v31  ;;  %2784 = vmatmul.bf16.gmra.mxu3 %v6412_v44  ;;  %2963 = vmatmul.bf16.gmra.mxu0 %v6176_v8  ;;  %v9210_v15 = vpack.c.bf16 %v5350_v45, %v5349_v28  ;;  %v3175_v53 = vpack.c.bf16 %v2925_v27, %v2925_v27  ;;  %v9736_v44 = vld [vmem:[#allocation99_spill] sm:$0xff]  ;;  %v6420_v31 = vor.u32 %v6623_v38, %v6419_v33  ;;  %v9741_v33 = vld [vmem:[#allocation13_spill] sm:$0xff] }
 0x589   : > { %v9217_v56 = vpop.f32.mrf.mxu1  ;;  %v4484_v8 = vperm.slane %v9736_v44, %v7499_v32 }
 0x58a   : > { %v5026_v24 = vadd.f32 %v4898_v52, %v4770_v57  ;;  %v4711_v16 = vunpack.c.l.bf16 %v3175_v53  ;;  %v9737_v52 = vld [vmem:[#allocation35_spill] sm:$0xff] }
 0x58b   : > { %v2745_v59 = vpop.f32.mrf.mxu3  ;;  %v3953_v57 = vperm.slane %v9737_v52, %v7499_v32  ;;  %v4900_v55 = vunpack.c.l.bf16 %v4484_v8 }
 0x58c   : > { %v5410_v14 = vmax.f32 %v5026_v24, 0.0  ;;  %v3075_v25 = vadd.f32 %v9142_v3, %v2745_v59  ;;  %3123 = vmatmul.bf16.gmra.mxu1 %v6432_v30  ;;  %v4967_v54 = vadd.f32 %v4839_v10, %v4711_v16  ;;  %v9738_v59 = vld [vmem:[#allocation12_spill] sm:$0xff] }
 0x58d   : > { %v2926_v23 = vpop.f32.mrf.mxu0 }
 0x58e   : > { %v3235_v0 = vpack.c.bf16 %v3075_v25, %v3075_v25  ;;  %v2927_v22 = vadd.f32 %v2926_v23, %v9735_v18  ;;  %v9228_v3 = vpack.c.bf16 %v5410_v14, %v5409_v58  ;;  %v5351_v53 = vmax.f32 %v4967_v54, 0.0 }
 0x590   : > { %v4771_v43 = vunpack.c.l.bf16 %v3235_v0  ;;  %v3176_v61 = vpack.c.bf16 %v2927_v22, %v2927_v22 }
 0x591   : > { %v9245_v27 = vpop.f32.mrf.mxu1 }
 0x592   : > { %v5027_v19 = vadd.f32 %v4899_v4, %v4771_v43  ;;  %v4712_v9 = vunpack.c.l.bf16 %v3176_v61  ;;  %v9740_v4 = vld [vmem:[#allocation37_spill] sm:$0xff] }
 0x593   : > { %v2747_v49 = vpop.f32.mrf.mxu3  ;;  %v3962_v43 = vperm.slane %v9740_v4, %v7499_v32 }
 0x594   : > { %v4968_v28 = vadd.f32 %v4840_v6, %v4712_v9  ;;  %v3077_v45 = vadd.f32 %v9169_v2, %v2747_v49  ;;  %v4841_v2 = vunpack.c.l.bf16 %v3953_v57  ;;  %v5411_v30 = vmax.f32 %v5027_v19, 0.0  ;;  %v6625_v19 = vld [vmem:[%s9614_s6 + $0x3f4] sm:$0xf0]  ;;  %v6564_v9 = vld [vmem:[%s9614_s6 + $0x214] sm:$0xf] }
 0x595   : > { %v2929_v24 = vpop.f32.mrf.mxu0  ;;  %v4842_v44 = vunpack.c.l.bf16 %v3962_v43  ;;  %v9746_v43 = vld [vmem:[#allocation40_spill] sm:$0xff] }
 0x596   : > { %v5352_v21 = vmax.f32 %v4968_v28, 0.0  ;;  %v3236_v1 = vpack.c.bf16 %v3077_v45, %v3077_v45  ;;  %v2930_v34 = vadd.f32 %v2929_v24, %v9738_v59  ;;  %v9742_v28 = vld [vmem:[#allocation90_spill] sm:$0xff] }
 0x597   : > { %v4502_v45 = vperm.slane %v9742_v28, %v7499_v32 }
 0x598   : > { %v5456_v58 = vpack.c.bf16 %v5352_v21, %v5351_v53  ;;  %v4772_v14 = vunpack.c.l.bf16 %v3236_v1  ;;  %v3177_v25 = vpack.c.bf16 %v2930_v34, %v2930_v34  ;;  %2789 = vmatmul.bf16.gmra.mxu3 %v6420_v31  ;;  %2968 = vmatmul.bf16.gmra.mxu0 %v6184_v26  ;;  %v9743_v53 = vld [vmem:[#allocation47_spill] sm:$0xff] }
 0x599   : > { %v9253_v22 = vpop.f32.mrf.mxu1  ;;  %v3971_v21 = vperm.slane %v9743_v53, %v7499_v32 }
 0x59a   : > { %v5028_v46 = vadd.f32 %v4900_v55, %v4772_v14  ;;  %v4713_v48 = vunpack.c.l.bf16 %v3177_v25  ;;  %5585 = vmatpush.bf16.msrb.mxu1 %v5456_v58  ;;  %v9744_v14 = vld [vmem:[#allocation14_spill] sm:$0xff]  ;;  %v4902_v25 = vunpack.c.l.bf16 %v4502_v45 }
 0x59b   : > { %v2750_v23 = vpop.f32.mrf.mxu3 }
 0x59c   : > { %v5412_v16 = vmax.f32 %v5028_v46, 0.0  ;;  %v4969_v0 = vadd.f32 %v4841_v2, %v4713_v48  ;;  %v3080_v18 = vadd.f32 %v9179_v60, %v2750_v23  ;;  %v6427_v60 = vld [vmem:[%s9614_s6 + $0x3f0] sm:$0xf]  ;;  %v4843_v48 = vunpack.c.l.bf16 %v3971_v21  ;;  %v9745_v23 = vld [vmem:[#allocation91_spill] sm:$0xff] }
 0x59d   : > { %v2931_v10 = vpop.f32.mrf.mxu0  ;;  %v6428_v57 = vor.u32 %v6625_v19, %v6427_v60 }
 0x59e   : > { %v3237_v61 = vpack.c.bf16 %v3080_v18, %v3080_v18  ;;  %v2932_v38 = vadd.f32 %v2931_v10, %v9741_v33  ;;  %5586 = vmatpush.bf16.msrb.mxu1 %v9210_v15  ;;  %v9259_v63 = vpack.c.bf16 %v5412_v16, %v5411_v30  ;;  %v6189_v15 = vld [vmem:[%s9614_s6 + $0x218] sm:$0xf0]  ;;  %v5353_v34 = vmax.f32 %v4969_v0, 0.0 }
 0x59f   : > { %v6192_v24 = vor.u32 %v6564_v9, %v6189_v15  ;;  %v4511_v30 = vperm.slane %v9745_v23, %v7499_v32  ;;  %v6197_v9 = vld [vmem:[%s9614_s6 + $0x228] sm:$0xf0] }
 0x5a0   : > { %v4773_v6 = vunpack.c.l.bf16 %v3237_v61  ;;  %v3178_v54 = vpack.c.bf16 %v2932_v38, %v2932_v38  ;;  %v3980_v61 = vperm.slane %v9746_v43, %v7499_v32  ;;  %v9747_v38 = vld [vmem:[#allocation15_spill] sm:$0xff] }
 0x5a1   : > { %v9279_v59 = vpop.f32.mrf.mxu1 }
 0x5a2   : > { %v5029_v8 = vadd.f32 %v4901_v13, %v4773_v6  ;;  %v4714_v49 = vunpack.c.l.bf16 %v3178_v54  ;;  %5587 = vmatpush.bf16.msrb.mxu1 %v9172_v20  ;;  %v4903_v54 = vunpack.c.l.bf16 %v4511_v30  ;;  %v4844_v15 = vunpack.c.l.bf16 %v3980_v61 }
 0x5a3   : > { %v2752_v31 = vpop.f32.mrf.mxu3 }
 0x5a4   : > { %v4970_v26 = vadd.f32 %v4842_v44, %v4714_v49  ;;  %v3082_v52 = vadd.f32 %v9207_v7, %v2752_v31  ;;  %v5413_v0 = vmax.f32 %v5029_v8, 0.0  ;;  %v9748_v49 = vld [vmem:[#allocation87_spill] sm:$0xff] }
 0x5a5   : > { %v2934_v1 = vpop.f32.mrf.mxu0  ;;  %v4520_v28 = vperm.slane %v9748_v49, %v7499_v32 }
 0x5a6   : > { %v5354_v55 = vmax.f32 %v4970_v26, 0.0  ;;  %v3238_v58 = vpack.c.bf16 %v3082_v52, %v3082_v52  ;;  %v2935_v20 = vadd.f32 %v2934_v1, %v9744_v14  ;;  %5588 = vmatpush.bf16.msrb.mxu1 %v9135_v47  ;;  %v9749_v52 = vld [vmem:[#allocation41_spill] sm:$0xff] }
 0x5a8   : > { %v4774_v2 = vunpack.c.l.bf16 %v3238_v58  ;;  %v3179_v46 = vpack.c.bf16 %v2935_v20, %v2935_v20  ;;  %2794 = vmatmul.bf16.gmra.mxu3 %v6428_v57  ;;  %2973 = vmatmul.bf16.gmra.mxu0 %v6192_v24  ;;  %v9283_v7 = vpack.c.bf16 %v5354_v55, %v5353_v34  ;;  %v3989_v57 = vperm.slane %v9749_v52, %v7499_v32  ;;  %v9750_v34 = vld [vmem:[#allocation16_spill] sm:$0xff]  ;;  %v9754_v52 = vld [vmem:[#allocation18_spill] sm:$0xff] }
 0x5aa   : > { %v5030_v12 = vadd.f32 %v4902_v25, %v4774_v2  ;;  %v4715_v17 = vunpack.c.l.bf16 %v3179_v46  ;;  %5589 = vmatpush.bf16.msrb.mxu1 %v9099_v50  ;;  %v9295_v50 = vpop.f32.mrf.mxu1 }
 0x5ab   : > { %v2755_v16 = vpop.f32.mrf.mxu3 }
 0x5ac   : > { %v5414_v18 = vmax.f32 %v5030_v12, 0.0  ;;  %v4971_v10 = vadd.f32 %v4843_v48, %v4715_v17  ;;  %v3085_v47 = vadd.f32 %v9217_v56, %v2755_v16  ;;  %v6566_v56 = vld [vmem:[%s9614_s6 + $0x224] sm:$0xf] }
 0x5ad   : > { %v2936_v4 = vpop.f32.mrf.mxu0  ;;  %v6200_v26 = vor.u32 %v6566_v56, %v6197_v9 }
 0x5ae   : > { %v3239_v33 = vpack.c.bf16 %v3085_v47, %v3085_v47  ;;  %v2937_v13 = vadd.f32 %v2936_v4, %v9747_v38  ;;  %5590 = vmatpush.bf16.msrb.mxu1 %v9062_v42  ;;  %v9293_v6 = vpack.c.bf16 %v5414_v18, %v5413_v0  ;;  %v5355_v53 = vmax.f32 %v4971_v10, 0.0  ;;  %v9752_v10 = vld [vmem:[#allocation17_spill] sm:$0xff]  ;;  %v4533_v4 = vpop.permute.xlu2 %4532  ;;  %v6568_v38 = vld [vmem:[%s9614_s6 + $0x234] sm:$0xf] }
 0x5b0   : > { %v4775_v60 = vunpack.c.l.bf16 %v3239_v33  ;;  %v3180_v19 = vpack.c.bf16 %v2937_v13, %v2937_v13  ;;  %v4529_v33 = vperm.slane %v9004_v62, %v7499_v32 }
 0x5b2   : > { %v5031_v44 = vadd.f32 %v4903_v54, %v4775_v60  ;;  %v4716_v8 = vunpack.c.l.bf16 %v3180_v19  ;;  %5591 = vmatpush.bf16.msrb.mxu1 %v9010_v11  ;;  %v4904_v11 = vunpack.c.l.bf16 %v4520_v28  ;;  %v9313_v25 = vpop.f32.mrf.mxu1  ;;  %v4538_v60 = vperm.slane %v4533_v4, %v7499_v32  ;;  %v6570_v4 = vld [vmem:[%s9614_s6 + $0x244] sm:$0xf] }
 0x5b3   : > { %v2757_v42 = vpop.f32.mrf.mxu3  ;;  %v4905_v49 = vunpack.c.l.bf16 %v4529_v33  ;;  %v4556_v33 = vperm.slane %v8950_v41, %v7499_v32 }
 0x5b4   : > { %v4972_v45 = vadd.f32 %v4844_v15, %v4716_v8  ;;  %v3087_v31 = vadd.f32 %v9245_v27, %v2757_v42  ;;  %v4845_v27 = vunpack.c.l.bf16 %v3989_v57  ;;  %v5415_v12 = vmax.f32 %v5031_v44, 0.0  ;;  %v9753_v8 = vld [vmem:[#allocation44_spill] sm:$0xff] }
 0x5b5   : > { %v2939_v24 = vpop.f32.mrf.mxu0  ;;  %v4007_v42 = vperm.slane %v9753_v8, %v7499_v32 }
 0x5b6   : > { %v5356_v21 = vmax.f32 %v4972_v45, 0.0  ;;  %v3240_v1 = vpack.c.bf16 %v3087_v31, %v3087_v31  ;;  %v2940_v55 = vadd.f32 %v2939_v24, %v9750_v34  ;;  %5592 = vmatpush.bf16.msrb.mxu1 %v8943_v35  ;;  %v9751_v35 = vld [vmem:[#allocation51_spill] sm:$0xff]  ;;  %v4906_v24 = vunpack.c.l.bf16 %v4538_v60 }
 0x5b7   : > { %v3998_v0 = vperm.slane %v9751_v35, %v7499_v32 }
 0x5b8   : > { %v4776_v58 = vunpack.c.l.bf16 %v3240_v1  ;;  %v3181_v14 = vpack.c.bf16 %v2940_v55, %v2940_v55  ;;  %2978 = vmatmul.bf16.gmra.mxu0 %v6200_v26  ;;  %v9311_v20 = vpack.c.bf16 %v5356_v21, %v5355_v53  ;;  %v4847_v55 = vunpack.c.l.bf16 %v4007_v42  ;;  %v9758_v42 = vld [vmem:[#allocation20_spill] sm:$0xff] }
 0x5b9   : > { %v4846_v13 = vunpack.c.l.bf16 %v3998_v0 }
 0x5ba   : > { %v5032_v2 = vadd.f32 %v4904_v11, %v4776_v58  ;;  %v4717_v46 = vunpack.c.l.bf16 %v3181_v14  ;;  %v9330_v56 = vpop.f32.mrf.mxu1 }
 0x5bb   : > { %v2760_v48 = vpop.f32.mrf.mxu3 }
 0x5bc   : > { %v5416_v17 = vmax.f32 %v5032_v2, 0.0  ;;  %v4973_v23 = vadd.f32 %v4845_v27, %v4717_v46  ;;  %v3090_v30 = vadd.f32 %v9253_v22, %v2760_v48  ;;  %v6205_v22 = vld [vmem:[%s9614_s6 + $0x238] sm:$0xf0] }
 0x5bd   : > { %v2941_v16 = vpop.f32.mrf.mxu0  ;;  %v6208_v62 = vor.u32 %v6568_v38, %v6205_v22 }
 0x5be   : > { %v9318_v18 = vpack.c.bf16 %v5416_v17, %v5415_v12  ;;  %v2942_v47 = vadd.f32 %v2941_v16, %v9752_v10  ;;  %v3241_v43 = vpack.c.bf16 %v3090_v30, %v3090_v30  ;;  %v5357_v45 = vmax.f32 %v4973_v23, 0.0  ;;  %v9755_v17 = vld [vmem:[#allocation45_spill] sm:$0xff]  ;;  %v9756_v30 = vld [vmem:[#allocation19_spill] sm:$0xff] }
 0x5bf   : > { %v4016_v23 = vperm.slane %v9755_v17, %v7499_v32 }
 0x5c0   : > { %v3182_v61 = vpack.c.bf16 %v2942_v47, %v2942_v47  ;;  %v4777_v9 = vunpack.c.l.bf16 %v3241_v43  ;;  %v4547_v47 = vperm.slane %v8947_v40, %v7499_v32  ;;  %v9757_v40 = vld [vmem:[#allocation55_spill] sm:$0xff] }
 0x5c1   : > { %v4848_v43 = vunpack.c.l.bf16 %v4016_v23  ;;  %v4565_v23 = vperm.slane %v8991_v39, %v7499_v32 }
 0x5c2   : > { %v4718_v54 = vunpack.c.l.bf16 %v3182_v61  ;;  %v5033_v53 = vadd.f32 %v4905_v49, %v4777_v9  ;;  %v3101_v12 = vpop.f32.mrf.mxu1  ;;  %v4907_v9 = vunpack.c.l.bf16 %v4547_v47  ;;  %v9761_v47 = vld [vmem:[#allocation100_spill] sm:$0xff] }
 0x5c3   : > { %v2762_v19 = vpop.f32.mrf.mxu3  ;;  %v4909_v39 = vunpack.c.l.bf16 %v4565_v23 }
 0x5c4   : > { %v4974_v15 = vadd.f32 %v4846_v13, %v4718_v54  ;;  %v3092_v44 = vadd.f32 %v9279_v59, %v2762_v19  ;;  %v5417_v14 = vmax.f32 %v5033_v53, 0.0  ;;  %v4025_v19 = vperm.slane %v9757_v40, %v7499_v32  ;;  %v9762_v40 = vld [vmem:[#allocation22_spill] sm:$0xff] }
 0x5c5   : > { %v2944_v28 = vpop.f32.mrf.mxu0 }
 0x5c6   : > { %v5358_v31 = vmax.f32 %v4974_v15, 0.0  ;;  %v3242_v26 = vpack.c.bf16 %v3092_v44, %v3092_v44  ;;  %v2945_v57 = vadd.f32 %v2944_v28, %v9754_v52  ;;  %v4908_v28 = vunpack.c.l.bf16 %v4556_v33 }
 0x5c8   : > { %v4778_v21 = vunpack.c.l.bf16 %v3242_v26  ;;  %v3183_v1 = vpack.c.bf16 %v2945_v57, %v2945_v57  ;;  %2983 = vmatmul.bf16.gmra.mxu0 %v6208_v62  ;;  %v9336_v34 = vpack.c.bf16 %v5358_v31, %v5357_v45 }
 0x5ca   : > { %v5034_v59 = vadd.f32 %v4906_v24, %v4778_v21  ;;  %v4719_v11 = vunpack.c.l.bf16 %v3183_v1  ;;  %v3104_v45 = vpop.f32.mrf.mxu1 }
 0x5cb   : > { %v2765_v58 = vpop.f32.mrf.mxu3 }
 0x5cc   : > { %v5418_v27 = vmax.f32 %v5034_v59, 0.0  ;;  %v4975_v2 = vadd.f32 %v4847_v55, %v4719_v11  ;;  %v3095_v46 = vadd.f32 %v9295_v50, %v2765_v58  ;;  %v6213_v50 = vld [vmem:[%s9614_s6 + $0x248] sm:$0xf0]  ;;  %v9759_v58 = vld [vmem:[#allocation48_spill] sm:$0xff] }
 0x5cd   : > { %v2946_v48 = vpop.f32.mrf.mxu0  ;;  %v6216_v60 = vor.u32 %v6570_v4, %v6213_v50  ;;  %v4574_v4 = vperm.slane %v9761_v47, %v7499_v32  ;;  %v4592_v47 = vperm.slane %v8945_v5, %v7499_v32 }
 0x5ce   : > { %v2947_v16 = vadd.f32 %v2946_v48, %v9756_v30  ;;  %v9342_v35 = vpack.c.bf16 %v5418_v27, %v5417_v14  ;;  %v3243_v0 = vpack.c.bf16 %v3095_v46, %v3095_v46  ;;  %v5359_v44 = vmax.f32 %v4975_v2, 0.0  ;;  %v9760_v27 = vld [vmem:[#allocation21_spill] sm:$0xff]  ;;  %v6572_v30 = vld [vmem:[%s9614_s6 + $0x254] sm:$0xf] }
 0x5cf   : > { %v4034_v14 = vperm.slane %v9759_v58, %v7499_v32 }
 0x5d0   : > { %v3184_v10 = vpack.c.bf16 %v2947_v16, %v2947_v16  ;;  %v4779_v22 = vunpack.c.l.bf16 %v3243_v0 }
 0x5d1   : > { %v4850_v0 = vunpack.c.l.bf16 %v4034_v14 }
 0x5d2   : > { %v4720_v61 = vunpack.c.l.bf16 %v3184_v10  ;;  %v5035_v31 = vadd.f32 %v4907_v9, %v4779_v22  ;;  %v3106_v16 = vpop.f32.mrf.mxu1  ;;  %v4910_v9 = vunpack.c.l.bf16 %v4574_v4 }
 0x5d3   : > { %v2767_v38 = vpop.f32.mrf.mxu3 }
 0x5d4   : > { %v4976_v13 = vadd.f32 %v4848_v43, %v4720_v61  ;;  %v3097_v54 = vadd.f32 %v9313_v25, %v2767_v38  ;;  %v4849_v25 = vunpack.c.l.bf16 %v4025_v19  ;;  %v5419_v21 = vmax.f32 %v5035_v31, 0.0 }
 0x5d5   : > { %v2949_v15 = vpop.f32.mrf.mxu0 }
 0x5d6   : > { %v5360_v62 = vmax.f32 %v4976_v13, 0.0  ;;  %v3244_v8 = vpack.c.bf16 %v3097_v54, %v3097_v54  ;;  %v2950_v49 = vadd.f32 %v2949_v15, %v9758_v42 }
 0x5d8   : > { %v4780_v41 = vunpack.c.l.bf16 %v3244_v8  ;;  %v3185_v26 = vpack.c.bf16 %v2950_v49, %v2950_v49  ;;  %2988 = vmatmul.bf16.gmra.mxu0 %v6216_v60  ;;  %v9358_v52 = vpack.c.bf16 %v5360_v62, %v5359_v44  ;;  %v6437_v49 = vld [vmem:[%s9616_s8 + $0x20] sm:$0x30] }
 0x5da   : > { %v5036_v57 = vadd.f32 %v4908_v28, %v4780_v41  ;;  %v4721_v24 = vunpack.c.l.bf16 %v3185_v26  ;;  %v3109_v31 = vpop.f32.mrf.mxu1  ;;  %v9763_v26 = vld [vmem:[#allocation49_spill] sm:$0xff] }
 0x5db   : > { %v2770_v53 = vpop.f32.mrf.mxu3 }
 0x5dc   : > { %v5420_v1 = vmax.f32 %v5036_v57, 0.0  ;;  %v4977_v55 = vadd.f32 %v4849_v25, %v4721_v24  ;;  %v3100_v59 = vadd.f32 %v9330_v56, %v2770_v53  ;;  %v6221_v56 = vld [vmem:[%s9614_s6 + $0x258] sm:$0xf0]  ;;  %v4043_v25 = vperm.slane %v9763_v26, %v7499_v32 }
 0x5dd   : > { %v2951_v11 = vpop.f32.mrf.mxu0  ;;  %v6224_v38 = vor.u32 %v6572_v30, %v6221_v56  ;;  %v6229_v30 = vld [vmem:[%s9614_s6 + $0x268] sm:$0xf0] }
 0x5de   : > { %v2952_v2 = vadd.f32 %v2951_v11, %v9760_v27  ;;  %v9364_v46 = vpack.c.bf16 %v5420_v1, %v5419_v21  ;;  %v3245_v48 = vpack.c.bf16 %v3100_v59, %v3100_v59  ;;  %v5361_v13 = vmax.f32 %v4977_v55, 0.0  ;;  %v9764_v1 = vld [vmem:[#allocation60_spill] sm:$0xff]  ;;  %v9765_v11 = vld [vmem:[#allocation23_spill] sm:$0xff] }
 0x5df   : > { %v4052_v55 = vperm.slane %v9764_v1, %v7499_v32  ;;  %v4851_v27 = vunpack.c.l.bf16 %v4043_v25 }
 0x5e0   : > { %v3186_v17 = vpack.c.bf16 %v2952_v2, %v2952_v2  ;;  %v4781_v43 = vunpack.c.l.bf16 %v3245_v48 }
 0x5e1   : > { %v4852_v56 = vunpack.c.l.bf16 %v4052_v55 }
 0x5e2   : > { %v4722_v10 = vunpack.c.l.bf16 %v3186_v17  ;;  %v5037_v15 = vadd.f32 %v4909_v39, %v4781_v43  ;;  %v9766_v17 = vld [vmem:[#allocation98_spill] sm:$0xff] }
 0x5e3   : > { %v2772_v50 = vpop.f32.mrf.mxu3  ;;  %v4583_v23 = vperm.slane %v9766_v17, %v7499_v32  ;;  %v6576_v17 = vld [vmem:[%s9614_s6 + $0x274] sm:$0xf] }
 0x5e4   : > { %v4978_v61 = vadd.f32 %v4850_v0, %v4722_v10  ;;  %v3102_v33 = vadd.f32 %v3101_v12, %v2772_v50  ;;  %v6626_v12 = vld [vmem:[%s9616_s8 + $0x4] sm:$0xf]  ;;  %v5421_v57 = vmax.f32 %v5037_v15, 0.0 }
 0x5e5   : > { %v2954_v22 = vpop.f32.mrf.mxu0  ;;  %v6440_v41 = vor.u32 %v6626_v12, %v6437_v49  ;;  %v6631_v12 = vld [vmem:[%s9616_s8 + $0x24] sm:$0x30] }
 0x5e6   : > { %v5362_v54 = vmax.f32 %v4978_v61, 0.0  ;;  %v3246_v60 = vpack.c.bf16 %v3102_v33, %v3102_v33  ;;  %v2955_v19 = vadd.f32 %v2954_v22, %v9762_v40  ;;  %v9402_v22 = vpop.f32.mrf.mxu1  ;;  %v9767_v40 = vld [vmem:[#allocation24_spill] sm:$0xff] }
 0x5e7   : > { %5579 = vmatmul.bf16.vlgmr.msra.gmra.mxu1 %v6440_v41  ;;  %v9768_v41 = vld [vmem:[#allocation52_spill] sm:$0xff] }
 0x5e8   : > { %v4782_v44 = vunpack.c.l.bf16 %v3246_v60  ;;  %2993 = vmatmul.bf16.gmra.mxu0 %v6224_v38  ;;  %v9377_v62 = vpack.c.bf16 %v5362_v54, %v5361_v13  ;;  %v3187_v42 = vpack.c.bf16 %v2955_v19, %v2955_v19  ;;  %v4911_v38 = vunpack.c.l.bf16 %v4583_v23 }
 0x5e9   : > { %v4061_v26 = vperm.slane %v9768_v41, %v7499_v32 }
 0x5ea   : > { %v5038_v8 = vadd.f32 %v4910_v9, %v4782_v44  ;;  %v4723_v59 = vunpack.c.l.bf16 %v3187_v42  ;;  %v4912_v9 = vunpack.c.l.bf16 %v4592_v47 }
 0x5eb   : > { %v2775_v28 = vpop.f32.mrf.mxu3 }
 0x5ec   : > { %v5422_v24 = vmax.f32 %v5038_v8, 0.0  ;;  %v3105_v53 = vadd.f32 %v3104_v45, %v2775_v28  ;;  %v6574_v45 = vld [vmem:[%s9614_s6 + $0x264] sm:$0xf]  ;;  %v4979_v0 = vadd.f32 %v4851_v27, %v4723_v59  ;;  %v9770_v59 = vld [vmem:[#allocation27_spill] sm:$0xff] }
 0x5ed   : > { %v2956_v21 = vpop.f32.mrf.mxu0  ;;  %v6232_v33 = vor.u32 %v6574_v45, %v6229_v30 }
 0x5ee   : > { %v2957_v58 = vadd.f32 %v2956_v21, %v9765_v11  ;;  %v9390_v14 = vpack.c.bf16 %v5422_v24, %v5421_v57  ;;  %v3247_v2 = vpack.c.bf16 %v3105_v53, %v3105_v53  ;;  %v5363_v13 = vmax.f32 %v4979_v0, 0.0  ;;  %v9769_v21 = vld [vmem:[#allocation54_spill] sm:$0xff]  ;;  %v9422_v27 = vpop.f32.mrf.mxu1 }
 0x5ef   : > { %v4070_v1 = vperm.slane %v9769_v21, %v7499_v32 }
 0x5f0   : > { %v3188_v48 = vpack.c.bf16 %v2957_v58, %v2957_v58  ;;  %v4783_v50 = vunpack.c.l.bf16 %v3247_v2  ;;  %v4853_v2 = vunpack.c.l.bf16 %v4061_v26 }
 0x5f1   : > { %v4854_v23 = vunpack.c.l.bf16 %v4070_v1 }
 0x5f2   : > { %v4724_v10 = vunpack.c.l.bf16 %v3188_v48  ;;  %v5039_v15 = vadd.f32 %v4911_v38, %v4783_v50 }
 0x5f3   : > { %v2777_v4 = vpop.f32.mrf.mxu3 }
 0x5f4   : > { %v4980_v43 = vadd.f32 %v4852_v56, %v4724_v10  ;;  %v3107_v61 = vadd.f32 %v3106_v16, %v2777_v4  ;;  %v6443_v16 = vld [vmem:[%s9616_s8 + $0x8] sm:$0xf]  ;;  %v5423_v25 = vmax.f32 %v5039_v15, 0.0 }
 0x5f5   : > { %v2959_v39 = vpop.f32.mrf.mxu0  ;;  %v6444_v28 = vor.u32 %v6631_v12, %v6443_v16  ;;  %v6435_v12 = vld [vmem:[%s9616_s8] sm:$0xf] }
 0x5f6   : > { %v5364_v54 = vmax.f32 %v4980_v43, 0.0  ;;  %v3248_v60 = vpack.c.bf16 %v3107_v61, %v3107_v61  ;;  %v2960_v19 = vadd.f32 %v2959_v39, %v9767_v40  ;;  %v9771_v43 = vld [vmem:[#allocation30_spill] sm:$0xff]  ;;  %v9433_v38 = vpop.f32.mrf.mxu1 }
 0x5f7   : > { %5593 = vmatmul.bf16.vlgmr.msrb.gmra.mxu1 %v6444_v28 }
 0x5f8   : > { %v4784_v44 = vunpack.c.l.bf16 %v3248_v60  ;;  %2998 = vmatmul.bf16.gmra.mxu0 %v6232_v33  ;;  %v9405_v8 = vpack.c.bf16 %v5364_v54, %v5363_v13  ;;  %v3189_v42 = vpack.c.bf16 %v2960_v19, %v2960_v19  ;;  %v9772_v54 = vld [vmem:[#allocation64_spill] sm:$0xff]  ;;  %v9773_v19 = vld [vmem:[#allocation57_spill] sm:$0xff] }
 0x5f9   : > { %v4079_v60 = vperm.slane %v9772_v54, %v7499_v32 }
 0x5fa   : > { %v5040_v5 = vadd.f32 %v4912_v9, %v4784_v44  ;;  %v4725_v55 = vunpack.c.l.bf16 %v3189_v42  ;;  %v4088_v9 = vperm.slane %v9773_v19, %v7499_v32  ;;  %v9774_v44 = vld [vmem:[#allocation33_spill] sm:$0xff] }
 0x5fb   : > { %v2780_v49 = vpop.f32.mrf.mxu3  ;;  %v4855_v42 = vunpack.c.l.bf16 %v4079_v60 }
 0x5fc   : > { %v5424_v57 = vmax.f32 %v5040_v5, 0.0  ;;  %v9415_v24 = vadd.f32 %v3109_v31, %v2780_v49  ;;  %v6237_v31 = vld [vmem:[%s9614_s6 + $0x278] sm:$0xf0]  ;;  %v4981_v45 = vadd.f32 %v4853_v2, %v4725_v55  ;;  %v6630_v49 = vld [vmem:[%s9616_s8 + $0x1c] sm:$0x30]  ;;  %v4856_v28 = vunpack.c.l.bf16 %v4088_v9  ;;  %v9775_v55 = vld [vmem:[#allocation58_spill] sm:$0xff] }
 0x5fd   : > { %v2961_v53 = vpop.f32.mrf.mxu0  ;;  %v6240_v10 = vor.u32 %v6576_v17, %v6237_v31  ;;  %v6436_v21 = vor.u32 %v6630_v49, %v6435_v12  ;;  %v9780_v12 = vld [vmem:[#allocation42_spill] sm:$0xff] }
 0x5fe   : > { %v2962_v11 = vadd.f32 %v2961_v53, %v9770_v59  ;;  %v9420_v58 = vpack.c.bf16 %v5424_v57, %v5423_v25  ;;  %v5365_v4 = vmax.f32 %v4981_v45, 0.0  ;;  %v3119_v57 = vpop.f32.mrf.mxu1  ;;  %v4097_v59 = vperm.slane %v9775_v55, %v7499_v32 }
 0x600   : > { %v3190_v48 = vpack.c.bf16 %v2962_v11, %v2962_v11  ;;  %v4857_v45 = vunpack.c.l.bf16 %v4097_v59 }
 0x602   : > { %v4726_v30 = vunpack.c.l.bf16 %v3190_v48  ;;  %v9776_v48 = vld [vmem:[#allocation36_spill] sm:$0xff] }
 0x603   : > { %v9430_v56 = vpop.f32.mrf.mxu3 }
 0x604   : > { %v4982_v0 = vadd.f32 %v4854_v23, %v4726_v30 }
 0x605   : > { %v2964_v47 = vpop.f32.mrf.mxu0 }
 0x606   : > { %v5366_v50 = vmax.f32 %v4982_v0, 0.0  ;;  %v2965_v61 = vadd.f32 %v2964_v47, %v9771_v43 }
 0x608   : > { %3003 = vmatmul.bf16.gmra.mxu0 %v6240_v10  ;;  %v5463_v33 = vpack.c.bf16 %v5366_v50, %v5365_v4  ;;  %v3191_v39 = vpack.c.bf16 %v2965_v61, %v2965_v61  ;;  %v3121_v4 = vpop.f32.mrf.mxu1  ;;  %v9777_v50 = vld [vmem:[#allocation68_spill] sm:$0xff]  ;;  %v9778_v61 = vld [vmem:[#allocation39_spill] sm:$0xff] }
 0x609   : > { %v4106_v43 = vperm.slane %v9777_v50, %v7499_v32 }
 0x60a   : > { %v4727_v15 = vunpack.c.l.bf16 %v3191_v39 }
 0x60b   : > { %v9435_v13 = vpop.f32.mrf.mxu3  ;;  %v4858_v60 = vunpack.c.l.bf16 %v4106_v43  ;;  %v9785_v43 = vld [vmem:[#allocation72_spill] sm:$0xff] }
 0x60c   : > { %v4983_v41 = vadd.f32 %v4855_v42, %v4727_v15 }
 0x60d   : > { %v2966_v40 = vpop.f32.mrf.mxu0 }
 0x60e   : > { %v2967_v5 = vadd.f32 %v2966_v40, %v9774_v44  ;;  %v5367_v11 = vmax.f32 %v4983_v41, 0.0  ;;  %v9779_v44 = vld [vmem:[#allocation61_spill] sm:$0xff] }
 0x610   : > { %v3192_v16 = vpack.c.bf16 %v2967_v5, %v2967_v5  ;;  %v4115_v5 = vperm.slane %v9779_v44, %v7499_v32 }
 0x612   : > { %v4728_v26 = vunpack.c.l.bf16 %v3192_v16 }
 0x613   : > { %v2787_v25 = vpop.f32.mrf.mxu3 }
 0x614   : > { %v4984_v53 = vadd.f32 %v4856_v28, %v4728_v26  ;;  %v3124_v28 = vpop.f32.mrf.mxu1  ;;  %v4859_v26 = vunpack.c.l.bf16 %v4115_v5 }
 0x615   : > { %v2969_v1 = vpop.f32.mrf.mxu0 }
 0x616   : > { %v5368_v2 = vmax.f32 %v4984_v53, 0.0  ;;  %v2970_v17 = vadd.f32 %v2969_v1, %v9776_v48  ;;  %v9782_v48 = vld [vmem:[#allocation94_spill] sm:$0xff] }
 0x618   : > { %v5464_v31 = vpack.c.bf16 %v5368_v2, %v5367_v11  ;;  %v3193_v23 = vpack.c.bf16 %v2970_v17, %v2970_v17  ;;  %5565 = vmatmul.bf16.vlgmr.msra.gmra.mxu0 %v6436_v21  ;;  %v9781_v11 = vld [vmem:[#allocation62_spill] sm:$0xff]  ;;  %v4646_v17 = vperm.slane %v9782_v48, %v7499_v32 }
 0x619   : > { %v4124_v2 = vperm.slane %v9781_v11, %v7499_v32 }
 0x61a   : > { %v4729_v30 = vunpack.c.l.bf16 %v3193_v23  ;;  %5599 = vmatpush.bf16.msra.mxu1 %v5464_v31  ;;  %v9784_v23 = vld [vmem:[#allocation85_spill] sm:$0xff] }
 0x61b   : > { %v2790_v0 = vpop.f32.mrf.mxu3 }
 0x61c   : > { %v4985_v10 = vadd.f32 %v4857_v45, %v4729_v30  ;;  %v4655_v45 = vperm.slane %v9784_v23, %v7499_v32  ;;  %v3120_v30 = vadd.f32 %v3119_v57, %v2790_v0  ;;  %v3126_v50 = vpop.f32.mrf.mxu1  ;;  %v6445_v57 = vld [vmem:[%s9616_s8 + $0x28] sm:$0x30] }
 0x61d   : > { %v2971_v47 = vpop.f32.mrf.mxu0 }
 0x61e   : > { %v2972_v39 = vadd.f32 %v2971_v47, %v9778_v61  ;;  %5600 = vmatpush.bf16.msra.mxu1 %v5463_v33  ;;  %v5369_v42 = vmax.f32 %v4985_v10, 0.0  ;;  %v3117_v47 = vadd.f32 %v9433_v38, %v2787_v25  ;;  %v4133_v61 = vperm.slane %v9785_v43, %v7499_v32  ;;  %v9786_v38 = vld [vmem:[#allocation86_spill] sm:$0xff] }
 0x61f   : > { %v4664_v25 = vperm.slane %v9786_v38, %v7499_v32  ;;  %v4919_v0 = vunpack.c.l.bf16 %v4655_v45  ;;  %v3249_v43 = vpack.c.bf16 %v9415_v24, %v9415_v24  ;;  %v9792_v38 = vld [vmem:[#allocation65_spill] sm:$0xff] }
 0x620   : > { %v3194_v54 = vpack.c.bf16 %v2972_v39, %v2972_v39  ;;  %v4860_v39 = vunpack.c.l.bf16 %v4124_v2 }
 0x622   : > { %v4730_v40 = vunpack.c.l.bf16 %v3194_v54  ;;  %5601 = vmatpush.bf16.msra.mxu1 %v9405_v8  ;;  %v4918_v54 = vunpack.c.l.bf16 %v4646_v17 }
 0x623   : > { %v2792_v19 = vpop.f32.mrf.mxu3 }
 0x624   : > { %v4986_v9 = vadd.f32 %v4858_v60, %v4730_v40  ;;  %v3122_v55 = vadd.f32 %v3121_v4, %v2792_v19  ;;  %v3115_v40 = vadd.f32 %v9422_v27, %v9435_v13  ;;  %v3253_v19 = vpack.c.bf16 %v3120_v30, %v3120_v30 }
 0x625   : > { %v2974_v15 = vpop.f32.mrf.mxu0  ;;  %v4920_v13 = vunpack.c.l.bf16 %v4664_v25  ;;  %v4142_v25 = vperm.slane %v9792_v38, %v7499_v32 }
 0x626   : > { %v5370_v16 = vmax.f32 %v4986_v9, 0.0  ;;  %v2975_v49 = vadd.f32 %v2974_v15, %v9780_v12  ;;  %5602 = vmatpush.bf16.msra.mxu1 %v9377_v62  ;;  %v9783_v62 = vld [vmem:[#allocation46_spill] sm:$0xff]  ;;  %v3254_v4 = vpack.c.bf16 %v3122_v55, %v3122_v55  ;;  %v9787_v15 = vld [vmem:[#allocation88_spill] sm:$0xff]  ;;  %v3252_v12 = vpack.c.bf16 %v3117_v47, %v3117_v47 }
 0x627   : > { %v9789_v55 = vld [vmem:[#allocation92_spill] sm:$0xff]  ;;  %v3251_v11 = vpack.c.bf16 %v3115_v40, %v3115_v40  ;;  %v4789_v2 = vunpack.c.l.bf16 %v3253_v19 }
 0x628   : > { %v3195_v41 = vpack.c.bf16 %v2975_v49, %v2975_v49  ;;  %v9459_v33 = vpack.c.bf16 %v5370_v16, %v5369_v42  ;;  %v3112_v16 = vadd.f32 %v9402_v22, %v9430_v56  ;;  %v4790_v49 = vunpack.c.l.bf16 %v3254_v4  ;;  %v9791_v4 = vld [vmem:[#allocation96_spill] sm:$0xff] }
 0x629   : > { %v4788_v30 = vunpack.c.l.bf16 %v3252_v12 }
 0x62a   : > { %v4731_v53 = vunpack.c.l.bf16 %v3195_v41  ;;  %5603 = vmatpush.bf16.msra.mxu1 %v9358_v52  ;;  %v3250_v45 = vpack.c.bf16 %v3112_v16, %v3112_v16  ;;  %v4785_v16 = vunpack.c.l.bf16 %v3249_v43  ;;  %v9797_v43 = vld [vmem:[#allocation77_spill] sm:$0xff] }
 0x62b   : > { %v2795_v8 = vpop.f32.mrf.mxu3 }
 0x62c   : > { %v4987_v21 = vadd.f32 %v4859_v26, %v4731_v53  ;;  %v3125_v1 = vadd.f32 %v3124_v28, %v2795_v8  ;;  %v4786_v19 = vunpack.c.l.bf16 %v3250_v45 }
 0x62d   : > { %v2976_v59 = vpop.f32.mrf.mxu0 }
 0x62e   : > { %v2977_v31 = vadd.f32 %v2976_v59, %v9783_v62  ;;  %5604 = vmatpush.bf16.msra.mxu1 %v9336_v34  ;;  %v3255_v52 = vpack.c.bf16 %v3125_v1, %v3125_v1  ;;  %v6627_v34 = vld [vmem:[%s9616_s8 + $0xc] sm:$0xf]  ;;  %v5371_v26 = vmax.f32 %v4987_v21, 0.0  ;;  %v9788_v1 = vld [vmem:[#allocation50_spill] sm:$0xff]  ;;  %v4628_v59 = vperm.slane %v9789_v55, %v7499_v32 }
 0x62f   : > { %v6448_v41 = vor.u32 %v6627_v34, %v6445_v57  ;;  %v4861_v62 = vunpack.c.l.bf16 %v4133_v61  ;;  %v9790_v21 = vld [vmem:[#allocation97_spill] sm:$0xff] }
 0x630   : > { %v3196_v10 = vpack.c.bf16 %v2977_v31, %v2977_v31  ;;  %v4791_v44 = vunpack.c.l.bf16 %v3255_v52  ;;  %v4619_v31 = vperm.slane %v9790_v21, %v7499_v32  ;;  %v4916_v47 = vunpack.c.l.bf16 %v4628_v59  ;;  %v9796_v21 = vld [vmem:[#allocation56_spill] sm:$0xff] }
 0x632   : > { %v4732_v60 = vunpack.c.l.bf16 %v3196_v10  ;;  %5605 = vmatpush.bf16.msra.mxu1 %v9311_v20  ;;  %v4637_v20 = vperm.slane %v9787_v15, %v7499_v32  ;;  %v5047_v48 = vadd.f32 %v4919_v0, %v4791_v44  ;;  %v4915_v0 = vunpack.c.l.bf16 %v4619_v31 }
 0x633   : > { %v2797_v9 = vpop.f32.mrf.mxu3  ;;  %v5044_v15 = vadd.f32 %v4916_v47, %v4788_v30 }
 0x634   : > { %v4988_v5 = vadd.f32 %v4860_v39, %v4732_v60  ;;  %v3127_v42 = vadd.f32 %v3126_v50, %v2797_v9  ;;  %v4917_v23 = vunpack.c.l.bf16 %v4637_v20  ;;  %v4610_v50 = vperm.slane %v9791_v4, %v7499_v32 }
 0x635   : > { %v2979_v28 = vpop.f32.mrf.mxu0  ;;  %v4787_v39 = vunpack.c.l.bf16 %v3251_v11  ;;  %v5431_v61 = vmax.f32 %v5047_v48, 0.0  ;;  %v9795_v11 = vld [vmem:[#allocation66_spill] sm:$0xff] }
 0x636   : > { %v5372_v53 = vmax.f32 %v4988_v5, 0.0  ;;  %v3256_v8 = vpack.c.bf16 %v3127_v42, %v3127_v42  ;;  %v2980_v27 = vadd.f32 %v2979_v28, %v9788_v1  ;;  %5606 = vmatpush.bf16.msra.mxu1 %v9283_v7  ;;  %v5046_v7 = vadd.f32 %v4918_v54, %v4790_v49  ;;  %v9793_v54 = vld [vmem:[#allocation95_spill] sm:$0xff]  ;;  %v9794_v5 = vld [vmem:[#allocation53_spill] sm:$0xff] }
 0x637   : > { %v5045_v60 = vadd.f32 %v4917_v23, %v4789_v2  ;;  %v4601_v40 = vperm.slane %v9793_v54, %v7499_v32  ;;  %v4914_v24 = vunpack.c.l.bf16 %v4610_v50  ;;  %v5043_v12 = vadd.f32 %v4915_v0, %v4787_v39  ;;  %v9799_v54 = vld [vmem:[#allocation69_spill] sm:$0xff] }
 0x638   : > { %v4792_v17 = vunpack.c.l.bf16 %v3256_v8  ;;  %v3197_v22 = vpack.c.bf16 %v2980_v27, %v2980_v27  ;;  %v9492_v56 = vpack.c.bf16 %v5372_v53, %v5371_v26  ;;  %v5430_v20 = vmax.f32 %v5046_v7, 0.0 }
 0x639   : > { %5607 = vmatmul.bf16.vlgmr.msra.gmra.mxu1 %v6448_v41  ;;  %v5429_v49 = vmax.f32 %v5045_v60, 0.0  ;;  %v4862_v41 = vunpack.c.l.bf16 %v4142_v25  ;;  %v5042_v26 = vadd.f32 %v4914_v24, %v4786_v19  ;;  %v4913_v53 = vunpack.c.l.bf16 %v4601_v40  ;;  %v9798_v60 = vld [vmem:[#allocation59_spill] sm:$0xff] }
 0x63a   : > { %v5048_v52 = vadd.f32 %v4920_v13, %v4792_v17  ;;  %v4733_v10 = vunpack.c.l.bf16 %v3197_v22  ;;  %v5428_v8 = vmax.f32 %v5044_v15, 0.0  ;;  %v5427_v55 = vmax.f32 %v5043_v12, 0.0  ;;  %v9800_v15 = vld [vmem:[#allocation63_spill] sm:$0xff] }
 0x63b   : > { %v5495_v27 = vpack.c.bf16 %v5430_v20, %v5429_v49  ;;  %v5041_v13 = vadd.f32 %v4913_v53, %v4785_v16  ;;  %v4151_v2 = vperm.slane %v9795_v11, %v7499_v32  ;;  %v5426_v48 = vmax.f32 %v5042_v26, 0.0  ;;  %v9802_v49 = vld [vmem:[#allocation67_spill] sm:$0xff] }
 0x63c   : > { %v5432_v34 = vmax.f32 %v5048_v52, 0.0  ;;  %v4989_v57 = vadd.f32 %v4861_v62, %v4733_v10  ;;  %v5494_v23 = vpack.c.bf16 %v5428_v8, %v5427_v55  ;;  %v4160_v39 = vperm.slane %v9797_v43, %v7499_v32 }
 0x63d   : > { %v2981_v9 = vpop.f32.mrf.mxu0  ;;  %v5425_v45 = vmax.f32 %v5041_v13, 0.0  ;;  %v4863_v52 = vunpack.c.l.bf16 %v4151_v2  ;;  %v4169_v40 = vperm.slane %v9799_v54, %v7499_v32  ;;  %v9803_v13 = vld [vmem:[#allocation70_spill] sm:$0xff]  ;;  %v9804_v2 = vld [vmem:[#allocation81_spill] sm:$0xff] }
 0x63e   : > { %v5496_v44 = vpack.c.bf16 %v5432_v34, %v5431_v61  ;;  %v2982_v42 = vadd.f32 %v2981_v9, %v9794_v5  ;;  %v5373_v22 = vmax.f32 %v4989_v57, 0.0  ;;  %v4864_v57 = vunpack.c.l.bf16 %v4160_v39  ;;  %v9807_v39 = vld [vmem:[#allocation76_spill] sm:$0xff] }
 0x63f   : > { %v5493_v47 = vpack.c.bf16 %v5426_v48, %v5425_v45 }
 0x640   : > { %v3198_v28 = vpack.c.bf16 %v2982_v42, %v2982_v42  ;;  %5655 = vmatpush.bf16.msra.mxu2 %v5496_v44  ;;  %v4865_v42 = vunpack.c.l.bf16 %v4169_v40 }
 0x642   : > { %v4734_v1 = vunpack.c.l.bf16 %v3198_v28 }
 0x644   : > { %v4990_v59 = vadd.f32 %v4862_v41, %v4734_v1  ;;  %5656 = vmatpush.bf16.msra.mxu2 %v5495_v27 }
 0x645   : > { %v2984_v17 = vpop.f32.mrf.mxu0 }
 0x646   : > { %v5374_v62 = vmax.f32 %v4990_v59, 0.0  ;;  %v2985_v31 = vadd.f32 %v2984_v17, %v9796_v21  ;;  %v9805_v17 = vld [vmem:[#allocation74_spill] sm:$0xff]  ;;  %v9806_v21 = vld [vmem:[#allocation73_spill] sm:$0xff] }
 0x648   : > { %v3199_v30 = vpack.c.bf16 %v2985_v31, %v2985_v31  ;;  %5657 = vmatpush.bf16.msra.mxu2 %v5494_v23  ;;  %v9508_v7 = vpack.c.bf16 %v5374_v62, %v5373_v22  ;;  %v4196_v22 = vperm.slane %v9805_v17, %v7499_v32 }
 0x64a   : > { %v4735_v10 = vunpack.c.l.bf16 %v3199_v30  ;;  %v4868_v30 = vunpack.c.l.bf16 %v4196_v22 }
 0x64c   : > { %v4991_v4 = vadd.f32 %v4863_v52, %v4735_v10  ;;  %5658 = vmatpush.bf16.msra.mxu2 %v5493_v47 }
 0x64d   : > { %v2986_v50 = vpop.f32.mrf.mxu0 }
 0x64e   : > { %v2987_v61 = vadd.f32 %v2986_v50, %v9798_v60  ;;  %v5375_v19 = vmax.f32 %v4991_v4, 0.0 }
 0x650   : > { %v3200_v34 = vpack.c.bf16 %v2987_v61, %v2987_v61  ;;  %5659 = vmatpush.bf16.msra.mxu2 %v9420_v58 }
 0x652   : > { %v4736_v38 = vunpack.c.l.bf16 %v3200_v34 }
 0x654   : > { %v4992_v25 = vadd.f32 %v4864_v57, %v4736_v38  ;;  %5660 = vmatpush.bf16.msra.mxu2 %v9390_v14  ;;  %v9801_v14 = vld [vmem:[#allocation71_spill] sm:$0xff] }
 0x655   : > { %v2989_v0 = vpop.f32.mrf.mxu0  ;;  %v4178_v12 = vperm.slane %v9801_v14, %v7499_v32  ;;  %v9808_v57 = vld [vmem:[#allocation75_spill] sm:$0xff] }
 0x656   : > { %v5376_v9 = vmax.f32 %v4992_v25, 0.0  ;;  %v2990_v20 = vadd.f32 %v2989_v0, %v9800_v15  ;;  %v4205_v38 = vperm.slane %v9808_v57, %v7499_v32  ;;  %v9809_v0 = vld [vmem:[#allocation83_spill] sm:$0xff]  ;;  %v5515_v57 = vpop.permute.xlu0 %5514 }
 0x657   : > { %v4866_v26 = vunpack.c.l.bf16 %v4178_v12  ;;  %v4214_v54 = vperm.slane %v9809_v0, %v7499_v32 }
 0x658   : > { %v3201_v44 = vpack.c.bf16 %v2990_v20, %v2990_v20  ;;  %5661 = vmatpush.bf16.msra.mxu2 %v9364_v46  ;;  %v9519_v5 = vpack.c.bf16 %v5376_v9, %v5375_v19  ;;  %v9810_v19 = vld [vmem:[#allocation80_spill] sm:$0xff]  ;;  %v4869_v15 = vunpack.c.l.bf16 %v4205_v38 }
 0x65a   : > { %v4737_v58 = vunpack.c.l.bf16 %v3201_v44  ;;  %v4870_v44 = vunpack.c.l.bf16 %v4214_v54 }
 0x65c   : > { %v4993_v24 = vadd.f32 %v4865_v42, %v4737_v58  ;;  %5662 = vmatpush.bf16.msra.mxu2 %v9342_v35  ;;  %v4187_v35 = vperm.slane %v9804_v2, %v7499_v32 }
 0x65d   : > { %v2991_v16 = vpop.f32.mrf.mxu0 }
 0x65e   : > { %v2992_v28 = vadd.f32 %v2991_v16, %v9802_v49  ;;  %v5377_v27 = vmax.f32 %v4993_v24, 0.0  ;;  %v4867_v23 = vunpack.c.l.bf16 %v4187_v35  ;;  %v9811_v49 = vld [vmem:[#allocation82_spill] sm:$0xff] }
 0x660   : > { %v3202_v41 = vpack.c.bf16 %v2992_v28, %v2992_v28 }
 0x662   : > { %v4738_v53 = vunpack.c.l.bf16 %v3202_v41 }
 0x664   : > { %v4994_v8 = vadd.f32 %v4866_v26, %v4738_v53  ;;  %v9812_v53 = vld [vmem:[#allocation78_spill] sm:$0xff] }
 0x665   : > { %v2994_v1 = vpop.f32.mrf.mxu0 }
 0x666   : > { %v5378_v46 = vmax.f32 %v4994_v8, 0.0  ;;  %v2995_v55 = vadd.f32 %v2994_v1, %v9803_v13  ;;  %v4223_v8 = vperm.slane %v9812_v53, %v7499_v32 }
 0x668   : > { %v5469_v59 = vpack.c.bf16 %v5378_v46, %v5377_v27  ;;  %v3203_v11 = vpack.c.bf16 %v2995_v55, %v2995_v55  ;;  %v9813_v27 = vld [vmem:[#allocation79_spill] sm:$0xff]  ;;  %v9814_v55 = vld [vmem:[#allocation84_spill] sm:$0xff]  ;;  %v4871_v2 = vunpack.c.l.bf16 %v4223_v8 }
 0x669   : > { %v4232_v46 = vperm.slane %v9813_v27, %v7499_v32 }
 0x66a   : > { %v4739_v62 = vunpack.c.l.bf16 %v3203_v11 }
 0x66c   : > { %v4995_v52 = vadd.f32 %v4867_v23, %v4739_v62  ;;  %v6628_v62 = vld [vmem:[%s9616_s8 + $0x14] sm:$0xf] }
 0x66d   : > { %v2996_v48 = vpop.f32.mrf.mxu0 }
 0x66e   : > { %v2997_v31 = vadd.f32 %v2996_v48, %v9806_v21  ;;  %v5379_v50 = vmax.f32 %v4995_v52, 0.0  ;;  %v4872_v48 = vunpack.c.l.bf16 %v4232_v46  ;;  %v6453_v21 = vld [vmem:[%s9616_s8 + $0x30] sm:$0x30]  ;;  %v6629_v52 = vld [vmem:[%s9616_s8 + $0x1c] sm:$0xf] }
 0x670   : > { %v3204_v45 = vpack.c.bf16 %v2997_v31, %v2997_v31  ;;  %v6456_v31 = vor.u32 %v6628_v62, %v6453_v21 }
 0x672   : > { %v4740_v10 = vunpack.c.l.bf16 %v3204_v45  ;;  %5635 = vmatmul.bf16.vlgmr.msrb.gmra.mxu2 %v6456_v31 }
 0x674   : > { %v4996_v47 = vadd.f32 %v4868_v30, %v4740_v10  ;;  %v6461_v10 = vld [vmem:[%s9616_s8 + $0x38] sm:$0x30] }
 0x675   : > { %v2999_v4 = vpop.f32.mrf.mxu0 }
 0x676   : > { %v5380_v43 = vmax.f32 %v4996_v47, 0.0  ;;  %v3000_v60 = vadd.f32 %v2999_v4, %v9807_v39  ;;  %v6464_v47 = vor.u32 %v6629_v52, %v6461_v10  ;;  %v6632_v4 = vld [vmem:[%s9616_s8 + $0x2c] sm:$0x30] }
 0x678   : > { %v5470_v61 = vpack.c.bf16 %v5380_v43, %v5379_v50  ;;  %v3205_v34 = vpack.c.bf16 %v3000_v60, %v3000_v60 }
 0x67a   : > { %v4741_v40 = vunpack.c.l.bf16 %v3205_v34 }
 0x67c   : > { %v4997_v42 = vadd.f32 %v4869_v15, %v4741_v40 }
 0x67d   : > { %v3001_v25 = vpop.f32.mrf.mxu0 }
 0x67e   : > { %v3002_v9 = vadd.f32 %v3001_v25, %v9810_v19  ;;  %v5381_v14 = vmax.f32 %v4997_v42, 0.0 }
 0x680   : > { %v3206_v20 = vpack.c.bf16 %v3002_v9, %v3002_v9 }
 0x682   : > { %v4742_v58 = vunpack.c.l.bf16 %v3206_v20  ;;  %5663 = vmatmul.bf16.vlgmr.msra.gmra.mxu2 %v6464_v47 }
 0x684   : > { %v4998_v24 = vadd.f32 %v4870_v44, %v4742_v58 }
 0x685   : > { %v3004_v16 = vpop.f32.mrf.mxu0 }
 0x686   : > { %v5382_v12 = vmax.f32 %v4998_v24, 0.0  ;;  %v3005_v28 = vadd.f32 %v3004_v16, %v9811_v49 }
 0x688   : > { %v5471_v41 = vpack.c.bf16 %v5382_v12, %v5381_v14  ;;  %v3207_v26 = vpack.c.bf16 %v3005_v28, %v3005_v28 }
 0x68a   : > { %v4743_v13 = vunpack.c.l.bf16 %v3207_v26 }
 0x68c   : > { %v4999_v17 = vadd.f32 %v4871_v2, %v4743_v13 }
 0x68d   : > { %v3006_v1 = vpop.f32.mrf.mxu0 }
 0x68e   : > { %v3007_v11 = vadd.f32 %v3006_v1, %v9814_v55  ;;  %v5383_v32 = vmax.f32 %v4999_v17, 0.0 }
 0x690   : > { %v3208_v35 = vpack.c.bf16 %v3007_v11, %v3007_v11 }
 0x692   : > { %v4744_v22 = vunpack.c.l.bf16 %v3208_v35 }
 0x694   : > { %v5000_v23 = vadd.f32 %v4872_v48, %v4744_v22 }
 0x696   : > { %v5384_v45 = vmax.f32 %v5000_v23, 0.0 }
 0x698   : > { %v5472_v30 = vpack.c.bf16 %v5384_v45, %v5383_v32 }
 0x69a   : > { %5613 = vmatpush.bf16.msrb.mxu1 %v5472_v30 }
 0x69e   : > { %5614 = vmatpush.bf16.msrb.mxu1 %v5471_v41 }
 0x6a2   : > { %5615 = vmatpush.bf16.msrb.mxu1 %v5470_v61 }
 0x6a6   : > { %5616 = vmatpush.bf16.msrb.mxu1 %v5469_v59  ;;  %v6451_v59 = vld [vmem:[%s9616_s8 + $0x10] sm:$0xf] }
 0x6a7   : > { %v6452_v50 = vor.u32 %v6632_v4, %v6451_v59 }
 0x6aa   : > { %5617 = vmatpush.bf16.msrb.mxu1 %v9519_v5  ;;  %v5510_v5 = vpop.permute.xlu2 %5509 }
 0x6ae   : > { %5618 = vmatpush.bf16.msrb.mxu1 %v9508_v7 }
 0x6b2   : > { %5619 = vmatpush.bf16.msrb.mxu1 %v9492_v56  ;;  %v6459_v56 = vld [vmem:[%s9616_s8 + $0x18] sm:$0xf] }
 0x6b6   : > { %5620 = vmatpush.bf16.msrb.mxu1 %v9459_v33 }
 0x6b9   : > { %5621 = vmatmul.bf16.vlgmr.msrb.gmra.mxu1 %v6452_v50 }
 0x6ba   : > { %5641 = vmatpush.bf16.msra.mxu1 %v9318_v18  ;;  %v6633_v18 = vld [vmem:[%s9616_s8 + $0x34] sm:$0x30] }
 0x6bb   : > { %v6460_v33 = vor.u32 %v6633_v18, %v6459_v56 }
 0x6be   : > { %5642 = vmatpush.bf16.msra.mxu1 %v9293_v6 }
 0x6c2   : > { %5643 = vmatpush.bf16.msra.mxu1 %v9259_v63  ;;  %v5580_v63 = vpop.f32.mrf.mxu1 }
 0x6c6   : > { %5644 = vmatpush.bf16.msra.mxu1 %v9228_v3 }
 0x6ca   : > { %5645 = vmatpush.bf16.msra.mxu1 %v9190_v29  ;;  %v5582_v3 = vpop.f32.mrf.mxu1 }
 0x6ce   : > { %5646 = vmatpush.bf16.msra.mxu1 %v9152_v37 }
 0x6d2   : > { %5647 = vmatpush.bf16.msra.mxu1 %v9116_v51  ;;  %v5594_v6 = vpop.f32.mrf.mxu1  ;;  %v5566_v51 = vpop.f32.mrf.mxu0 }
 0x6d3   : > { %v5567_v60 = vadd.f32 %v5566_v51, %v5510_v5 }
 0x6d5   : > { %v5581_v61 = vadd.f32 %v5580_v63, %v5567_v60 }
 0x6d6   : > { %5648 = vmatpush.bf16.msra.mxu1 %v9076_v36 }
 0x6d7   : > { %v5595_v38 = vadd.f32 %v5594_v6, %v5581_v61 }
 0x6d9   : > { %5649 = vmatmul.bf16.vlgmr.msra.gmra.mxu1 %v6460_v33 }
 0x6da   : > { %v5596_v29 = vpop.f32.mrf.mxu1  ;;  %v5568_v34 = vpop.f32.mrf.mxu0 }
 0x6db   : > { %v5569_v25 = vadd.f32 %v5568_v34, %v5515_v57 }
 0x6dd   : > { %v5583_v40 = vadd.f32 %v5582_v3, %v5569_v25 }
 0x6df   : > { %v5597_v9 = vadd.f32 %v5596_v29, %v5583_v40 }
 0x6e2   : > { %v5608_v7 = vpop.f32.mrf.mxu1 }
 0x6e3   : > { %v5609_v54 = vadd.f32 %v5608_v7, %v5595_v38 }
 0x6ea   : > { %v5610_v37 = vpop.f32.mrf.mxu1 }
 0x6eb   : > { %v5611_v42 = vadd.f32 %v5610_v37, %v5597_v9 }
 0x6f5   : > { %v5636_v39 = vpop.f32.mrf.mxu2 }
 0x6fd   : > { %v5638_v36 = vpop.f32.mrf.mxu2 }
 0x705   : > { %v5664_v44 = vpop.f32.mrf.mxu2 }
 0x70d   : > { %v5666_v28 = vpop.f32.mrf.mxu2 }
 0x736   : > { %v5622_v43 = vpop.f32.mrf.mxu1 }
 0x737   : > { %v5623_v19 = vadd.f32 %v5622_v43, %v5609_v54 }
 0x739   : > { %v5637_v15 = vadd.f32 %v5636_v39, %v5623_v19 }
 0x73e   : > { %v5624_v0 = vpop.f32.mrf.mxu1 }
 0x73f   : > { %v5625_v24 = vadd.f32 %v5624_v0, %v5611_v42 }
 0x741   : > { %v5639_v14 = vadd.f32 %v5638_v36, %v5625_v24 }
 0x756   : > { %v5650_v20 = vpop.f32.mrf.mxu1 }
 0x757   : > { %v5651_v58 = vadd.f32 %v5650_v20, %v5637_v15 }
 0x759   : > { %v5665_v16 = vadd.f32 %v5664_v44, %v5651_v58 }
 0x75b   : > { %5669 = vst [vmem:[%s370_s21] sm:$0xff] %v5665_v16 }
 0x75e   : > { %v5652_v12 = vpop.f32.mrf.mxu1 }
 0x75f   : > { %v5653_v49 = vadd.f32 %v5652_v12, %v5639_v14  ;;  %5677 = sbr.rel (!%p6871_p5) target bundleno = 1900 (0x76c), region = 64 }
 0x761   : > { %v5667_v41 = vadd.f32 %v5666_v28, %v5653_v49 }
 0x762   : > { %v5712_v26 = vld [vmem:[%s370_s21] sm:$0xff] (%p6871_p5) }
 0x763   : > { %5670 = vst [vmem:[%s370_s21 + $0x8] sm:$0xf] %v5667_v41 }
 0x764   : > { %5713 = vst [vmem:[%s5681_s22] sm:$0xff] %v5712_v26 }
 0x76a   : > { %v5714_v53 = vld [vmem:[%s370_s21 + $0x8] sm:$0xff] }
 0x76b   : > { %5715 = vst [vmem:[%s5681_s22 + $0x10] sm:$0xff] %v5714_v53 }
 0x76c PF: > { %s20_s19 = sadd.s32 1, %s6766_s19   ;;  %s9815_s24 = sld [smem:[#allocation7_spill]] }
 0x76d   : > { %p17_p11 = scmp.ge.s32.totalorder %s20_s19, 6   ;;  %s9816_s15 = sld [smem:[#allocation3_spill]] }
 0x76e   : > { %s9817_s16 = sld [smem:[#allocation4_spill]]  ;;  %s9820_s13 = smov %s6746_s14 }
 0x76f   : > { %s9818_s17 = sld [smem:[#allocation5_spill]]  ;;  %19 = sbr.rel (!%p17_p11) target bundleno = 4 (0x4), region = 128 }
 0x770   : > { %s9819_s18 = sld [smem:[#allocation6_spill]] }
 0x772   : > { %s9821_s14 = smov %s9815_s24 }

// kernel: tpu_custom_call.1
= control target key start
LH: loop header
LB: loop body
LE: loop exit
PB: predicated region body
PF: predicated region fallthrough
CT: control target
= control target key end

     0   :  { %s6825_s13 = smov 0   ;;  %s6827_s14 = smov 0   ;;  %s9608_s0 = inlined_call_operand.vmem [shape: f32[2,4,256], index: 0, kind: input, shape index: {}]   ;;  %s9609_s1 = inlined_call_operand.vmem [shape: bf16[64,4], index: 1, kind: input, shape index: {}]   ;;  %s9610_s2 = inlined_call_operand.vmem [shape: bf16[128,64], index: 2, kind: input, shape index: {}]   ;;  %s9611_s3 = inlined_call_operand.vmem [shape: f32[128,1], index: 3, kind: input, shape index: {}]   ;;  %s9612_s4 = inlined_call_operand.vmem [shape: bf16[256,128], index: 4, kind: input, shape index: {}]   ;;  %s9613_s5 = inlined_call_operand.vmem [shape: f32[256,1], index: 5, kind: input, shape index: {}]   ;;  %s9614_s6 = inlined_call_operand.vmem [shape: bf16[1024,256], index: 6, kind: input, shape index: {}]   ;;  %s9615_s7 = inlined_call_operand.vmem [shape: f32[1024,1], index: 7, kind: input, shape index: {}]   ;;  %s9616_s8 = inlined_call_operand.vmem [shape: bf16[12,1024], index: 8, kind: input, shape index: {}]   ;;  %s9617_s9 = inlined_call_operand.vmem [shape: f32[12,1], index: 9, kind: input, shape index: {}]   ;;  %s9618_s10 = inlined_call_operand.vmem [shape: f32[2,12,256], index: 10, kind: output, shape index: {}]  }
   0x1   :  { %s6829_s15 = smov 0   ;;  %s6831_s16 = smov 0  }
   0x2   :  { %s6833_s17 = smov 0   ;;  %s6835_s18 = smov 0  }
   0x3   :  { %s6837_s19 = smov 0  }
   0x4 LB: > { %9623 = sst [smem:[#allocation3_spill]] %s6758_s17  ;;  %s29_s20 = sadd.s32 1, %s6758_s17  ;;  %s6766_s19 = sphi %s6837_s19, %s20_s19   ;;  %s6762_s18 = sphi %s6835_s18, %s9819_s18   ;;  %s6758_s17 = sphi %s6833_s17, %s9818_s17   ;;  %s6754_s16 = sphi %s6831_s16, %s9817_s16   ;;  %s6750_s15 = sphi %s6829_s15, %s9816_s15   ;;  %s6746_s14 = sphi %s6827_s14, %s9821_s14   ;;  %s6742_s13 = sphi %s6825_s13, %s9820_s13  }
   0x5   : > { %9624 = sst [smem:[#allocation4_spill]] %s6762_s18  ;;  %p30_p0 = scmp.ge.s32.totalorder %s29_s20, 2 }
   0x6   : > { %s32_s21 = sadd.s32 1, %s6762_s18  ;;  %s5789_s22 = sadd.s32 4294967295, %s6766_s19  }
   0x7   : > { %p268_p1 = scmp.ne.s32.totalorder %s6746_s14, %s6742_s13  ;;  %s9823_s20 = smov (%p30_p0, %s29_s20), 0 }
   0x8   : > { %9625 = sst [smem:[#allocation5_spill]] %s9823_s20  ;;  %s9825_s21 = smov (!%p30_p0, %s32_s21), %s6762_s18 }
   0x9   : > { %s254_s23 = ssub.s32 %s6758_s17, %s9823_s20  ;;  %p269_p2 = scmp.eq.s32.totalorder %s5789_s22, 3 }
   0xa   : > { %p34_p3 = scmp.ge.s32.totalorder %s9825_s21, 2  ;;  %p5793_p4 = scmp.ge.s32.totalorder %s6766_s19, 1 }
   0xb   : > { %p6871_p5 = por %p269_p2, %p268_p1  ;;  %p331_p6 = scmp.lt.s32.totalorder %s6766_s19, 5 }
   0xc   : > { %s9827_s21 = smov (%p34_p3, %s9825_s21), 0  ;;  %s258_s27 = sadd.s32 1, %s6746_s14 }
   0xd   : > { %9627 = sst [smem:[#allocation6_spill]] %s9827_s21  ;;  %p332_p7 = pnand %p5793_p4, %p331_p6 }
   0xe   : > { %s253_s25 = ssub.s32 %s6762_s18, %s9827_s21 }
   0xf   : > { %s255_s26 = sor.u32 %s254_s23, %s253_s25 }
  0x10   : > { %p256_p8 = scmp.eq.s32.totalorder %s255_s26, 0  ;;  %335 = sbr.rel (%p332_p7) target bundleno = 1900 (0x76c), region = 60 }
  0x12   : > { %s6882_s28 = scalar_select %p256_p8, %s6746_s14, %s258_s27  }
  0x14   : > { %9628 = sst [smem:[#allocation7_spill]] %s6882_s28 }
  0x15   : > { %v628_v0 = vld [vmem:[%s9611_s3 + $0x70] sm:$0xff]  ;;  %v626_v1 = vld [vmem:[%s9611_s3 + $0x60] sm:$0xff]  ;;  %p371_p9 = scmp.lt.s32.totalorder %s6754_s16, 1  ;;  %p373_p10 = scmp.lt.s32.totalorder %s6750_s15, 1  ;;  %v6768_v3 = vmov 0   ;;  %v629_v7 = vld [vmem:[%s9611_s3 + $0x78] sm:$0xff] }
  0x16   : > { %v624_v2 = vld [vmem:[%s9611_s3 + $0x50] sm:$0xff]  ;;  %6711 = vset.pattern.permute.xlu2 %v6768_v3  ;;  %6710 = vset.pattern.permute.xlu1 %v6768_v3  ;;  %v644_v4 = vpack.c.bf16 %v628_v0, %v628_v0  ;;  %v642_v5 = vpack.c.bf16 %v626_v1, %v626_v1  ;;  %v627_v8 = vld [vmem:[%s9611_s3 + $0x68] sm:$0xff]  ;;  %v625_v9 = vld [vmem:[%s9611_s3 + $0x58] sm:$0xff]  ;;  %v645_v10 = vpack.c.bf16 %v629_v7, %v629_v7  ;;  %vm423_vm0 = vcmask 1041408  }
  0x17   : > { %v640_v6 = vpack.c.bf16 %v624_v2, %v624_v2  ;;  %6709 = vset.pattern.permute.xlu0 %v6768_v3  ;;  %s372_s23 = scalar_select %p371_p9, %s6754_s16, 1  ;;  %v643_v11 = vpack.c.bf16 %v627_v8, %v627_v8  ;;  %v641_v12 = vpack.c.bf16 %v625_v9, %v625_v9  ;;  %v6472_v16 = vld [vmem:[%s9609_s1 + $0x10] sm:$0xff]  ;;  %vm410_vm1 = vcmask 31744   ;;  %v623_v17 = vld [vmem:[%s9611_s3 + $0x48] sm:$0xff]  ;;  %v622_v18 = vld [vmem:[%s9611_s3 + $0x40] sm:$0xff] }
  0x18   : > { %774 = vperm.xlu0 %6709, %v644_v4   ;;  %756 = vperm.xlu1 %6710, %v642_v5   ;;  %s374_s25 = scalar_select %p373_p10, %s6750_s15, 1  ;;  %v6470_v19 = vld [vmem:[%s9609_s1] sm:$0xff]  ;;  %v620_v20 = vld [vmem:[%s9611_s3 + $0x30] sm:$0xff]  ;;  %v639_v21 = vpack.c.bf16 %v623_v17, %v623_v17  ;;  %v638_v22 = vpack.c.bf16 %v622_v18, %v622_v18  ;;  %v621_v24 = vld [vmem:[%s9611_s3 + $0x38] sm:$0xff]  ;;  %vm524_vm2 = vcmask 523264  }
  0x19   : > { %738 = vperm.xlu2 %6711, %v640_v6   ;;  %s5795_s30 = sshll.u32 %s372_s23, 1  ;;  %v636_v23 = vpack.c.bf16 %v620_v20, %v620_v20  ;;  %v618_v25 = vld [vmem:[%s9611_s3 + $0x20] sm:$0xff]  ;;  %v619_v26 = vld [vmem:[%s9611_s3 + $0x28] sm:$0xff]  ;;  %v637_v27 = vpack.c.bf16 %v621_v24, %v621_v24  ;;  %v6473_v30 = vld [vmem:[%s9609_s1 + $0x18] sm:$0xff] }
  0x1a   : > { %s376_s22 = sadd.s32 %s5795_s30, %s374_s25  ;;  %v634_v28 = vpack.c.bf16 %v618_v25, %v618_v25  ;;  %v635_v29 = vpack.c.bf16 %v619_v26, %v619_v26  ;;  %v617_v31 = vld [vmem:[%s9611_s3 + $0x18] sm:$0xff]  ;;  %v616_v32 = vld [vmem:[%s9611_s3 + $0x10] sm:$0xff]  ;;  %v6471_v33 = vld [vmem:[%s9609_s1 + $0x8] sm:$0xff] }
  0x1b   : > { %s5796_s20 = sshll.u32 %s376_s22, 2  ;;  %v614_v34 = vld [vmem:[%s9611_s3] sm:$0xff]  ;;  %v633_v35 = vpack.c.bf16 %v617_v31, %v617_v31  ;;  %v632_v36 = vpack.c.bf16 %v616_v32, %v616_v32  ;;  %v1157_v38 = vld [vmem:[%s9613_s5 + $0x70] sm:$0xff]  ;;  %v615_v39 = vld [vmem:[%s9611_s3 + $0x8] sm:$0xff] }
  0x1c   : > { %s378_s28 = scalar_lea.vmem %s9608_s0, %s5796_s20  ;;  %v630_v37 = vpack.c.bf16 %v614_v34, %v614_v34  ;;  %v1158_v40 = vld [vmem:[%s9613_s5 + $0x78] sm:$0xff]  ;;  %v1189_v41 = vpack.c.bf16 %v1157_v38, %v1157_v38  ;;  %v631_v42 = vpack.c.bf16 %v615_v39, %v615_v39  ;;  %v1156_v44 = vld [vmem:[%s9613_s5 + $0x68] sm:$0xff]  ;;  %v1155_v45 = vld [vmem:[%s9613_s5 + $0x60] sm:$0xff]  ;;  %s368_s20 = sand.u32 1, %s6742_s13  }
  0x1d   : > { %v380_v13 = vld [vmem:[%s378_s28] sm:$0xf]  ;;  %v1190_v43 = vpack.c.bf16 %v1158_v40, %v1158_v40  ;;  %v1153_v46 = vld [vmem:[%s9613_s5 + $0x50] sm:$0xff]  ;;  %v1188_v47 = vpack.c.bf16 %v1156_v44, %v1156_v44  ;;  %v1187_v48 = vpack.c.bf16 %v1155_v45, %v1155_v45  ;;  %v1154_v51 = vld [vmem:[%s9613_s5 + $0x58] sm:$0xff]  ;;  %s5794_s28 = sshll.u32 %s368_s20, 4  ;;  %s6466_s13 = sshll.u32 (%p6871_p5), %s6754_s16, 2 }
  0x1e   : > { %v381_v14 = vpack.c.bf16 %v380_v13, %v380_v13  ;;  %v1185_v49 = vpack.c.bf16 %v1153_v46, %v1153_v46  ;;  %v1151_v50 = vld [vmem:[%s9613_s5 + $0x40] sm:$0xff]  ;;  %v1152_v52 = vld [vmem:[%s9613_s5 + $0x48] sm:$0xff]  ;;  %v1186_v54 = vpack.c.bf16 %v1154_v51, %v1154_v51  ;;  %v1150_v56 = vld [vmem:[%s9613_s5 + $0x38] sm:$0xff]  ;;  %s370_s21 = scalar_lea.vmem [#allocation2], %s5794_s28  ;;  %s5679_s29 = sadd.s32 (%p6871_p5), %s6750_s15, %s6466_s13 }
  0x1f   : > { %v1183_v53 = vpack.c.bf16 %v1151_v50, %v1151_v50  ;;  %v1184_v55 = vpack.c.bf16 %v1152_v52, %v1152_v52  ;;  %v1149_v57 = vld [vmem:[%s9613_s5 + $0x30] sm:$0xff]  ;;  %v1147_v58 = vld [vmem:[%s9613_s5 + $0x20] sm:$0xff]  ;;  %v1182_v59 = vpack.c.bf16 %v1150_v56, %v1150_v56  ;;  %v1148_v63 = vld [vmem:[%s9613_s5 + $0x28] sm:$0xff]  ;;  %s6467_s30 = sshll.u32 (%p6871_p5), %s5679_s29, 3 }
  0x20   : > { %783 = vperm.xlu0 %6709, %v645_v10   ;;  %765 = vperm.xlu1 %6710, %v643_v11   ;;  %v425_v15 = vsel %vm423_vm0, %v381_v14, 0  ;;  %v1181_v60 = vpack.c.bf16 %v1149_v57, %v1149_v57  ;;  %v1179_v61 = vpack.c.bf16 %v1147_v58, %v1147_v58  ;;  %v1145_v62 = vld [vmem:[%s9613_s5 + $0x10] sm:$0xff]  ;;  %v1146_v0 = vld [vmem:[%s9613_s5 + $0x18] sm:$0xff]  ;;  %v1180_v2 = vpack.c.bf16 %v1148_v63, %v1148_v63  ;;  %v1143_v6 = vld [vmem:[%s9613_s5] sm:$0xff]  ;;  %s5681_s22 = scalar_lea.vmem (%p6871_p5), %s9618_s10, %s6467_s30 }
  0x21   : > { %747 = vperm.xlu2 %6711, %v641_v12   ;;  %6634 = vmatpush.bf16.msra.mxu2 %v425_v15  ;;  %v1177_v1 = vpack.c.bf16 %v1145_v62, %v1145_v62  ;;  %v1178_v3 = vpack.c.bf16 %v1146_v0, %v1146_v0  ;;  %v1174_v4 = vld [vmem:[%s9613_s5 + $0xf8] sm:$0xff]  ;;  %v1173_v5 = vld [vmem:[%s9613_s5 + $0xf0] sm:$0xff]  ;;  %v1175_v9 = vpack.c.bf16 %v1143_v6, %v1143_v6  ;;  %v1171_v10 = vld [vmem:[%s9613_s5 + $0xe0] sm:$0xff] }
  0x22   : > { %434 = vmatpush.bf16.msra.mxu0 %v425_v15  ;;  %v1206_v7 = vpack.c.bf16 %v1174_v4, %v1174_v4  ;;  %v1205_v8 = vpack.c.bf16 %v1173_v5, %v1173_v5  ;;  %v1144_v11 = vld [vmem:[%s9613_s5 + $0x8] sm:$0xff]  ;;  %v1203_v13 = vpack.c.bf16 %v1171_v10, %v1171_v10  ;;  %v1169_v17 = vld [vmem:[%s9613_s5 + $0xd0] sm:$0xff]  ;;  %v1167_v18 = vld [vmem:[%s9613_s5 + $0xc0] sm:$0xff] }
  0x23   : > { %v1172_v12 = vld [vmem:[%s9613_s5 + $0xe8] sm:$0xff]  ;;  %v1176_v14 = vpack.c.bf16 %v1144_v11, %v1144_v11  ;;  %v1201_v20 = vpack.c.bf16 %v1169_v17, %v1169_v17  ;;  %v1166_v24 = vld [vmem:[%s9613_s5 + $0xb8] sm:$0xff]  ;;  %v1159_v34 = vld [vmem:[%s9613_s5 + $0x80] sm:$0xff] }
  0x24   : > { %5815 = vmatmul.msk.bf16.vlgmr.msra.gmra.mxu2 %vm410_vm1, %v6472_v16  ;;  %v1204_v15 = vpack.c.bf16 %v1172_v12, %v1172_v12  ;;  %v1170_v16 = vld [vmem:[%s9613_s5 + $0xd8] sm:$0xff]  ;;  %v3258_v40 = vld [vmem:[%s9615_s7 + $0x8] sm:$0xff]  ;;  %v3261_v46 = vld [vmem:[%s9615_s7 + $0x20] sm:$0xff] }
  0x25   : > { %5813 = vmatmul.msk.bf16.vlgmr.msra.gmra.mxu0 %vm410_vm1, %v6470_v19  ;;  %v1202_v19 = vpack.c.bf16 %v1170_v16, %v1170_v16  ;;  %v3264_v52 = vld [vmem:[%s9615_s7 + $0x38] sm:$0xff]  ;;  %v3270_v4 = vld [vmem:[%s9615_s7 + $0x68] sm:$0xff]  ;;  %v3269_v5 = vld [vmem:[%s9615_s7 + $0x60] sm:$0xff] }
  0x26   : > { %v3268_v62 = vld [vmem:[%s9615_s7 + $0x58] sm:$0xff]  ;;  %v3271_v6 = vld [vmem:[%s9615_s7 + $0x70] sm:$0xff]  ;;  %v3273_v11 = vld [vmem:[%s9615_s7 + $0x80] sm:$0xff] }
  0x27   : > { %v3272_v12 = vld [vmem:[%s9615_s7 + $0x78] sm:$0xff] }
  0x28   : > { %729 = vperm.xlu1 %6710, %v639_v21   ;;  %720 = vperm.xlu0 %6709, %v638_v22   ;;  %v1199_v21 = vpack.c.bf16 %v1167_v18, %v1167_v18  ;;  %v1165_v22 = vld [vmem:[%s9613_s5 + $0xb0] sm:$0xff]  ;;  %v3400_v16 = vpack.c.bf16 %v3272_v12, %v3272_v12 }
  0x29   : > { %702 = vperm.xlu2 %6711, %v636_v23   ;;  %v1168_v23 = vld [vmem:[%s9613_s5 + $0xc8] sm:$0xff]  ;;  %v1197_v25 = vpack.c.bf16 %v1165_v22, %v1165_v22  ;;  %v3275_v22 = vld [vmem:[%s9615_s7 + $0x90] sm:$0xff] }
  0x2a   : > { %v1200_v26 = vpack.c.bf16 %v1168_v23, %v1168_v23 }
  0x30   : > { %711 = vperm.xlu0 %6709, %v637_v27   ;;  %684 = vperm.xlu1 %6710, %v634_v28   ;;  %v1198_v27 = vpack.c.bf16 %v1166_v24, %v1166_v24  ;;  %v1164_v28 = vld [vmem:[%s9613_s5 + $0xa8] sm:$0xff]  ;;  %v3277_v24 = vld [vmem:[%s9615_s7 + $0xa0] sm:$0xff] }
  0x31   : > { %693 = vperm.xlu2 %6711, %v635_v29   ;;  %v1163_v29 = vld [vmem:[%s9613_s5 + $0xa0] sm:$0xff]  ;;  %v1196_v31 = vpack.c.bf16 %v1164_v28, %v1164_v28  ;;  %v3403_v28 = vpack.c.bf16 %v3275_v22, %v3275_v22 }
  0x32   : > { %v1195_v32 = vpack.c.bf16 %v1163_v29, %v1163_v29  ;;  %v3301_v22 = vld [vmem:[%s9615_s7 + $0x160] sm:$0xff] }
  0x34   : > { %5816 = vmatmul.msk.bf16.gmra.mxu2 %vm410_vm1, %v6473_v30  ;;  %v1161_v30 = vld [vmem:[%s9613_s5 + $0x90] sm:$0xff] }
  0x35   : > { %5814 = vmatmul.msk.bf16.gmra.mxu0 %vm410_vm1, %v6471_v33  ;;  %v1193_v33 = vpack.c.bf16 %v1161_v30, %v1161_v30  ;;  %v3405_v30 = vpack.c.bf16 %v3277_v24, %v3277_v24 }
  0x38   : > { %675 = vperm.xlu1 %6710, %v633_v35   ;;  %666 = vperm.xlu0 %6709, %v632_v36   ;;  %v1162_v35 = vld [vmem:[%s9613_s5 + $0x98] sm:$0xff]  ;;  %v1160_v36 = vld [vmem:[%s9613_s5 + $0x88] sm:$0xff] }
  0x39   : > { %648 = vperm.xlu2 %6711, %v630_v37   ;;  %v1191_v37 = vpack.c.bf16 %v1159_v34, %v1159_v34  ;;  %v1194_v38 = vpack.c.bf16 %v1162_v35, %v1162_v35  ;;  %v1192_v39 = vpack.c.bf16 %v1160_v36, %v1160_v36  ;;  %v3279_v34 = vld [vmem:[%s9615_s7 + $0xb0] sm:$0xff]  ;;  %v3278_v35 = vld [vmem:[%s9615_s7 + $0xa8] sm:$0xff]  ;;  %v3280_v36 = vld [vmem:[%s9615_s7 + $0xb8] sm:$0xff] }
  0x40   : > { %1335 = vperm.xlu1 %6710, %v1189_v41   ;;  %657 = vperm.xlu0 %6709, %v631_v42   ;;  %v3257_v41 = vld [vmem:[%s9615_s7] sm:$0xff]  ;;  %v3259_v42 = vld [vmem:[%s9615_s7 + $0x10] sm:$0xff] }
  0x41   : > { %1344 = vperm.xlu2 %6711, %v1190_v43   ;;  %v3386_v43 = vpack.c.bf16 %v3258_v40, %v3258_v40  ;;  %v3385_v44 = vpack.c.bf16 %v3257_v41, %v3257_v41  ;;  %v3387_v45 = vpack.c.bf16 %v3259_v42, %v3259_v42  ;;  %v3407_v40 = vpack.c.bf16 %v3279_v34, %v3279_v34  ;;  %v3305_v34 = vld [vmem:[%s9615_s7 + $0x180] sm:$0xff] }
  0x42   : > { %v3406_v41 = vpack.c.bf16 %v3278_v35, %v3278_v35  ;;  %v3408_v42 = vpack.c.bf16 %v3280_v36, %v3280_v36  ;;  %v3307_v35 = vld [vmem:[%s9615_s7 + $0x190] sm:$0xff] }
  0x48   : > { %1326 = vperm.xlu1 %6710, %v1188_v47   ;;  %1317 = vperm.xlu0 %6709, %v1187_v48   ;;  %v3260_v47 = vld [vmem:[%s9615_s7 + $0x18] sm:$0xff]  ;;  %v3262_v48 = vld [vmem:[%s9615_s7 + $0x28] sm:$0xff] }
  0x49   : > { %1299 = vperm.xlu2 %6711, %v1185_v49   ;;  %v3389_v49 = vpack.c.bf16 %v3261_v46, %v3261_v46  ;;  %v3388_v50 = vpack.c.bf16 %v3260_v47, %v3260_v47  ;;  %v3390_v51 = vpack.c.bf16 %v3262_v48, %v3262_v48  ;;  %v3281_v46 = vld [vmem:[%s9615_s7 + $0xc0] sm:$0xff]  ;;  %v3283_v47 = vld [vmem:[%s9615_s7 + $0xd0] sm:$0xff] }
  0x50   : > { %1281 = vperm.xlu1 %6710, %v1183_v53   ;;  %1308 = vperm.xlu0 %6709, %v1186_v54   ;;  %v3263_v53 = vld [vmem:[%s9615_s7 + $0x30] sm:$0xff]  ;;  %v3265_v54 = vld [vmem:[%s9615_s7 + $0x40] sm:$0xff] }
  0x51   : > { %1290 = vperm.xlu2 %6711, %v1184_v55   ;;  %v3392_v55 = vpack.c.bf16 %v3264_v52, %v3264_v52  ;;  %v3391_v56 = vpack.c.bf16 %v3263_v53, %v3263_v53  ;;  %v3393_v57 = vpack.c.bf16 %v3265_v54, %v3265_v54  ;;  %v3284_v52 = vld [vmem:[%s9615_s7 + $0xd8] sm:$0xff]  ;;  %v3286_v53 = vld [vmem:[%s9615_s7 + $0xe8] sm:$0xff] }
  0x58   : > { %1272 = vperm.xlu1 %6710, %v1182_v59   ;;  %1263 = vperm.xlu0 %6709, %v1181_v60   ;;  %v3267_v60 = vld [vmem:[%s9615_s7 + $0x50] sm:$0xff] }
  0x59   : > { %1245 = vperm.xlu2 %6711, %v1179_v61   ;;  %v3266_v61 = vld [vmem:[%s9615_s7 + $0x48] sm:$0xff]  ;;  %v3395_v63 = vpack.c.bf16 %v3267_v60, %v3267_v60  ;;  %v3289_v60 = vld [vmem:[%s9615_s7 + $0x100] sm:$0xff] }
  0x5a   : > { %v3394_v0 = vpack.c.bf16 %v3266_v61, %v3266_v61 }
  0x60   : > { %1227 = vperm.xlu1 %6710, %v1177_v1   ;;  %1254 = vperm.xlu0 %6709, %v1180_v2   ;;  %v3396_v1 = vpack.c.bf16 %v3268_v62, %v3268_v62 }
  0x61   : > { %1236 = vperm.xlu2 %6711, %v1178_v3  }
  0x68   : > { %1488 = vperm.xlu1 %6710, %v1206_v7   ;;  %1479 = vperm.xlu0 %6709, %v1205_v8   ;;  %v3398_v7 = vpack.c.bf16 %v3270_v4, %v3270_v4  ;;  %v3397_v8 = vpack.c.bf16 %v3269_v5, %v3269_v5 }
  0x69   : > { %1209 = vperm.xlu2 %6711, %v1175_v9   ;;  %v3399_v9 = vpack.c.bf16 %v3271_v6, %v3271_v6  ;;  %v6476_v6 = vld [vmem:[%s9610_s2 + $0x10] sm:$0xff] }
  0x70   : > { %1461 = vperm.xlu1 %6710, %v1203_v13   ;;  %1218 = vperm.xlu0 %6709, %v1176_v14   ;;  %v3274_v14 = vld [vmem:[%s9615_s7 + $0x88] sm:$0xff] }
  0x71   : > { %1470 = vperm.xlu2 %6711, %v1204_v15   ;;  %v3401_v15 = vpack.c.bf16 %v3273_v11, %v3273_v11  ;;  %v3402_v17 = vpack.c.bf16 %v3274_v14, %v3274_v14  ;;  %v3296_v14 = vld [vmem:[%s9615_s7 + $0x138] sm:$0xff] }
  0x78   : > { %1452 = vperm.xlu1 %6710, %v1202_v19   ;;  %1443 = vperm.xlu0 %6709, %v1201_v20  }
  0x79   : > { %1425 = vperm.xlu2 %6711, %v1199_v21   ;;  %v3276_v21 = vld [vmem:[%s9615_s7 + $0x98] sm:$0xff] }
  0x80   : > { %1407 = vperm.xlu1 %6710, %v1197_v25   ;;  %1434 = vperm.xlu0 %6709, %v1200_v26  }
  0x81   : > { %1416 = vperm.xlu2 %6711, %v1198_v27   ;;  %v3404_v27 = vpack.c.bf16 %v3276_v21, %v3276_v21  ;;  %v3299_v21 = vld [vmem:[%s9615_s7 + $0x150] sm:$0xff] }
  0x82   : > { %v3427_v24 = vpack.c.bf16 %v3299_v21, %v3299_v21  ;;  %v3330_v21 = vld [vmem:[%s9615_s7 + $0x248] sm:$0xff] }
  0x88   : > { %1398 = vperm.xlu1 %6710, %v1196_v31   ;;  %1389 = vperm.xlu0 %6709, %v1195_v32  }
  0x89   : > { %1371 = vperm.xlu2 %6711, %v1193_v33  }
  0x90   : > { %1353 = vperm.xlu1 %6710, %v1191_v37   ;;  %1380 = vperm.xlu0 %6709, %v1194_v38  }
  0x91   : > { %1362 = vperm.xlu2 %6711, %v1192_v39  }
  0x98   : > { %3524 = vperm.xlu1 %6710, %v3386_v43   ;;  %3515 = vperm.xlu0 %6709, %v3385_v44   ;;  %v6474_v44 = vld [vmem:[%s9610_s2] sm:$0xff] }
  0x99   : > { %3533 = vperm.xlu2 %6711, %v3387_v45   ;;  %v3282_v45 = vld [vmem:[%s9615_s7 + $0xc8] sm:$0xff] }
  0x9a   : > { %v3410_v48 = vpack.c.bf16 %v3282_v45, %v3282_v45  ;;  %v6479_v45 = vld [vmem:[%s9610_s2 + $0x28] sm:$0xff] }
  0xa0   : > { %3551 = vperm.xlu1 %6710, %v3389_v49   ;;  %3542 = vperm.xlu0 %6709, %v3388_v50   ;;  %v3409_v49 = vpack.c.bf16 %v3281_v46, %v3281_v46  ;;  %v3411_v50 = vpack.c.bf16 %v3283_v47, %v3283_v47  ;;  %v3312_v46 = vld [vmem:[%s9615_s7 + $0x1b8] sm:$0xff]  ;;  %v3311_v47 = vld [vmem:[%s9615_s7 + $0x1b0] sm:$0xff] }
  0xa1   : > { %3560 = vperm.xlu2 %6711, %v3390_v51   ;;  %v3285_v51 = vld [vmem:[%s9615_s7 + $0xe0] sm:$0xff] }
  0xa2   : > { %v7078_v58 = vpop.f32.mrf.mxu0  ;;  %v3413_v54 = vpack.c.bf16 %v3285_v51, %v3285_v51 }
  0xa3   : > { %v456_v37 = vmax.f32 %v7078_v58, 0.0  ;;  %v3288_v58 = vld [vmem:[%s9615_s7 + $0xf8] sm:$0xff] }
  0xa4   : > { %v3416_v61 = vpack.c.bf16 %v3288_v58, %v3288_v58  ;;  %v6480_v58 = vld [vmem:[%s9610_s2 + $0x30] sm:$0xff] }
  0xa7   : > { %v446_v59 = vpop.f32.mrf.mxu2 }
  0xa8   : > { %3578 = vperm.xlu1 %6710, %v3392_v55   ;;  %3569 = vperm.xlu0 %6709, %v3391_v56   ;;  %v460_v29 = vmax.f32 %v446_v59, 0.0  ;;  %v3412_v55 = vpack.c.bf16 %v3284_v52, %v3284_v52  ;;  %v3414_v56 = vpack.c.bf16 %v3286_v53, %v3286_v53  ;;  %v3287_v59 = vld [vmem:[%s9615_s7 + $0xf0] sm:$0xff]  ;;  %v3314_v53 = vld [vmem:[%s9615_s7 + $0x1c8] sm:$0xff] }
  0xa9   : > { %3587 = vperm.xlu2 %6711, %v3393_v57   ;;  %v6475_v57 = vld [vmem:[%s9610_s2 + $0x8] sm:$0xff]  ;;  %v3415_v62 = vpack.c.bf16 %v3287_v59, %v3287_v59  ;;  %v3315_v52 = vld [vmem:[%s9615_s7 + $0x1d0] sm:$0xff] }
  0xaa   : > { %v438_v3 = vpop.f32.mrf.mxu0  ;;  %v3318_v59 = vld [vmem:[%s9615_s7 + $0x1e8] sm:$0xff] }
  0xab   : > { %v457_v38 = vmax.f32 %v438_v3, 0.0 }
  0xad   : > { %v464_v43 = vpack.c.bf16 %v457_v38, %v456_v37  ;;  %v3433_v37 = vpack.c.bf16 %v3305_v34, %v3305_v34  ;;  %v3435_v38 = vpack.c.bf16 %v3307_v35, %v3307_v35  ;;  %v3336_v35 = vld [vmem:[%s9615_s7 + $0x278] sm:$0xff] }
  0xaf   : > { %v448_v2 = vpop.f32.mrf.mxu2 }
  0xb0   : > { %3605 = vperm.xlu1 %6710, %v3395_v63   ;;  %3596 = vperm.xlu0 %6709, %v3394_v0   ;;  %v461_v25 = vmax.f32 %v448_v2, 0.0  ;;  %v3417_v63 = vpack.c.bf16 %v3289_v60, %v3289_v60  ;;  %v3291_v0 = vld [vmem:[%s9615_s7 + $0x110] sm:$0xff]  ;;  %v3292_v2 = vld [vmem:[%s9615_s7 + $0x118] sm:$0xff]  ;;  %v3317_v60 = vld [vmem:[%s9615_s7 + $0x1e0] sm:$0xff] }
  0xb1   : > { %3614 = vperm.xlu2 %6711, %v3396_v1   ;;  %v3290_v1 = vld [vmem:[%s9615_s7 + $0x108] sm:$0xff]  ;;  %v3419_v3 = vpack.c.bf16 %v3291_v0, %v3291_v0  ;;  %v3420_v5 = vpack.c.bf16 %v3292_v2, %v3292_v2  ;;  %v3320_v2 = vld [vmem:[%s9615_s7 + $0x1f8] sm:$0xff] }
  0xb2   : > { %v441_v13 = vpop.f32.mrf.mxu0  ;;  %v466_v33 = vpack.c.bf16 %v461_v25, %v460_v29  ;;  %v3418_v4 = vpack.c.bf16 %v3290_v1, %v3290_v1  ;;  %v3429_v25 = vpack.c.bf16 %v3301_v22, %v3301_v22  ;;  %v3321_v1 = vld [vmem:[%s9615_s7 + $0x200] sm:$0xff] }
  0xb3   : > { %v458_v31 = vmax.f32 %v441_v13, 0.0  ;;  %v3297_v13 = vld [vmem:[%s9615_s7 + $0x140] sm:$0xff] }
  0xb4   : > { %v3329_v22 = vld [vmem:[%s9615_s7 + $0x240] sm:$0xff] }
  0xb7   : > { %v451_v10 = vpop.f32.mrf.mxu2 }
  0xb8   : > { %3632 = vperm.xlu1 %6710, %v3398_v7   ;;  %3623 = vperm.xlu0 %6709, %v3397_v8   ;;  %v462_v19 = vmax.f32 %v451_v10, 0.0  ;;  %v3294_v7 = vld [vmem:[%s9615_s7 + $0x128] sm:$0xff]  ;;  %v3293_v8 = vld [vmem:[%s9615_s7 + $0x120] sm:$0xff] }
  0xb9   : > { %3641 = vperm.xlu2 %6711, %v3399_v9   ;;  %v3295_v9 = vld [vmem:[%s9615_s7 + $0x130] sm:$0xff]  ;;  %v3422_v10 = vpack.c.bf16 %v3294_v7, %v3294_v7  ;;  %v3421_v11 = vpack.c.bf16 %v3293_v8, %v3293_v8  ;;  %v6481_v7 = vld [vmem:[%s9610_s2 + $0x38] sm:$0xff] }
  0xba   : > { %v443_v26 = vpop.f32.mrf.mxu0  ;;  %v3423_v12 = vpack.c.bf16 %v3295_v9, %v3295_v9  ;;  %v3324_v8 = vld [vmem:[%s9615_s7 + $0x218] sm:$0xff]  ;;  %v3323_v9 = vld [vmem:[%s9615_s7 + $0x210] sm:$0xff] }
  0xbb   : > { %v459_v32 = vmax.f32 %v443_v26, 0.0  ;;  %v3303_v26 = vld [vmem:[%s9615_s7 + $0x170] sm:$0xff] }
  0xbc   : > { %v3431_v29 = vpack.c.bf16 %v3303_v26, %v3303_v26 }
  0xbd   : > { %v465_v39 = vpack.c.bf16 %v459_v32, %v458_v31  ;;  %v6478_v32 = vld [vmem:[%s9610_s2 + $0x20] sm:$0xff] }
  0xbf   : > { %v453_v18 = vpop.f32.mrf.mxu2 }
  0xc0   : > { %v463_v20 = vmax.f32 %v453_v18, 0.0  ;;  %3659 = vperm.xlu1 %6710, %v3401_v15   ;;  %3650 = vperm.xlu0 %6709, %v3400_v16   ;;  %v3298_v15 = vld [vmem:[%s9615_s7 + $0x148] sm:$0xff]  ;;  %v3425_v16 = vpack.c.bf16 %v3297_v13, %v3297_v13 }
  0xc1   : > { %3668 = vperm.xlu2 %6711, %v3402_v17   ;;  %v3424_v17 = vpack.c.bf16 %v3296_v14, %v3296_v14  ;;  %v3426_v18 = vpack.c.bf16 %v3298_v15, %v3298_v15  ;;  %v3327_v14 = vld [vmem:[%s9615_s7 + $0x230] sm:$0xff]  ;;  %v3326_v15 = vld [vmem:[%s9615_s7 + $0x228] sm:$0xff] }
  0xc2   : > { %v467_v23 = vpack.c.bf16 %v463_v20, %v462_v19  ;;  %v6477_v19 = vld [vmem:[%s9610_s2 + $0x18] sm:$0xff] }
  0xc3   : > { %v3300_v20 = vld [vmem:[%s9615_s7 + $0x158] sm:$0xff] }
  0xc4   : > { %553 = vmatpush.bf16.msra.mxu1 %v467_v23  ;;  %v3428_v23 = vpack.c.bf16 %v3300_v20, %v3300_v20 }
  0xc8   : > { %3686 = vperm.xlu1 %6710, %v3404_v27   ;;  %3677 = vperm.xlu0 %6709, %v3403_v28   ;;  %v3302_v27 = vld [vmem:[%s9615_s7 + $0x168] sm:$0xff]  ;;  %v3304_v28 = vld [vmem:[%s9615_s7 + $0x178] sm:$0xff] }
  0xc9   : > { %3695 = vperm.xlu2 %6711, %v3405_v30   ;;  %554 = vmatpush.bf16.msra.mxu1 %v466_v33  ;;  %v3430_v30 = vpack.c.bf16 %v3302_v27, %v3302_v27  ;;  %v3432_v31 = vpack.c.bf16 %v3304_v28, %v3304_v28  ;;  %v3306_v33 = vld [vmem:[%s9615_s7 + $0x188] sm:$0xff]  ;;  %v3333_v28 = vld [vmem:[%s9615_s7 + $0x260] sm:$0xff] }
  0xca   : > { %v3434_v36 = vpack.c.bf16 %v3306_v33, %v3306_v33 }
  0xcd   : > { %555 = vmatpush.bf16.msra.mxu1 %v465_v39  ;;  %v3309_v39 = vld [vmem:[%s9615_s7 + $0x1a0] sm:$0xff] }
  0xd0   : > { %3713 = vperm.xlu1 %6710, %v3407_v40   ;;  %3704 = vperm.xlu0 %6709, %v3406_v41   ;;  %v3308_v40 = vld [vmem:[%s9615_s7 + $0x198] sm:$0xff]  ;;  %v3310_v41 = vld [vmem:[%s9615_s7 + $0x1a8] sm:$0xff] }
  0xd1   : > { %3722 = vperm.xlu2 %6711, %v3408_v42   ;;  %556 = vmatpush.bf16.msra.mxu1 %v464_v43  ;;  %v3437_v42 = vpack.c.bf16 %v3309_v39, %v3309_v39  ;;  %v3436_v43 = vpack.c.bf16 %v3308_v40, %v3308_v40 }
  0xd4   : > { %5849 = vmatmul.msk.bf16.vlgmr.msra.gmra.mxu1 %vm524_vm2, %v6474_v44  ;;  %v3438_v44 = vpack.c.bf16 %v3310_v41, %v3310_v41 }
  0xd8   : > { %3740 = vperm.xlu1 %6710, %v3410_v48   ;;  %3731 = vperm.xlu0 %6709, %v3409_v49   ;;  %v3313_v48 = vld [vmem:[%s9615_s7 + $0x1c0] sm:$0xff]  ;;  %v3440_v49 = vpack.c.bf16 %v3312_v46, %v3312_v46 }
  0xd9   : > { %3749 = vperm.xlu2 %6711, %v3411_v50   ;;  %v3439_v50 = vpack.c.bf16 %v3311_v47, %v3311_v47  ;;  %v3441_v51 = vpack.c.bf16 %v3313_v48, %v3313_v48 }
  0xe0   : > { %3767 = vperm.xlu1 %6710, %v3413_v54   ;;  %3758 = vperm.xlu0 %6709, %v3412_v55   ;;  %v3316_v54 = vld [vmem:[%s9615_s7 + $0x1d8] sm:$0xff]  ;;  %v3443_v55 = vpack.c.bf16 %v3315_v52, %v3315_v52 }
  0xe1   : > { %3776 = vperm.xlu2 %6711, %v3414_v56   ;;  %v3442_v56 = vpack.c.bf16 %v3314_v53, %v3314_v53 }
  0xe4   : > { %5850 = vmatmul.msk.bf16.gmra.mxu1 %vm524_vm2, %v6475_v57  ;;  %v3444_v57 = vpack.c.bf16 %v3316_v54, %v3316_v54 }
  0xe8   : > { %3794 = vperm.xlu1 %6710, %v3416_v61   ;;  %3785 = vperm.xlu0 %6709, %v3415_v62   ;;  %v3319_v61 = vld [vmem:[%s9615_s7 + $0x1f0] sm:$0xff]  ;;  %v3446_v62 = vpack.c.bf16 %v3318_v59, %v3318_v59 }
  0xe9   : > { %3803 = vperm.xlu2 %6711, %v3417_v63   ;;  %v3445_v63 = vpack.c.bf16 %v3317_v60, %v3317_v60  ;;  %v3447_v0 = vpack.c.bf16 %v3319_v61, %v3319_v61 }
  0xf0   : > { %3821 = vperm.xlu1 %6710, %v3419_v3   ;;  %3812 = vperm.xlu0 %6709, %v3418_v4   ;;  %v3322_v3 = vld [vmem:[%s9615_s7 + $0x208] sm:$0xff]  ;;  %v3449_v4 = vpack.c.bf16 %v3321_v1, %v3321_v1  ;;  %v3352_v1 = vld [vmem:[%s9615_s7 + $0x2f8] sm:$0xff] }
  0xf1   : > { %3830 = vperm.xlu2 %6711, %v3420_v5   ;;  %v3448_v5 = vpack.c.bf16 %v3320_v2, %v3320_v2 }
  0xf4   : > { %5851 = vmatmul.msk.bf16.gmra.mxu1 %vm524_vm2, %v6476_v6  ;;  %v3450_v6 = vpack.c.bf16 %v3322_v3, %v3322_v3 }
  0xf8   : > { %3848 = vperm.xlu1 %6710, %v3422_v10   ;;  %3839 = vperm.xlu0 %6709, %v3421_v11   ;;  %v3325_v10 = vld [vmem:[%s9615_s7 + $0x220] sm:$0xff]  ;;  %v3452_v11 = vpack.c.bf16 %v3324_v8, %v3324_v8  ;;  %v3348_v8 = vld [vmem:[%s9615_s7 + $0x2d8] sm:$0xff] }
  0xf9   : > { %3857 = vperm.xlu2 %6711, %v3423_v12   ;;  %v3451_v12 = vpack.c.bf16 %v3323_v9, %v3323_v9  ;;  %v3453_v13 = vpack.c.bf16 %v3325_v10, %v3325_v10 }
 0x100   : > { %3875 = vperm.xlu1 %6710, %v3425_v16   ;;  %3866 = vperm.xlu0 %6709, %v3424_v17   ;;  %v3328_v16 = vld [vmem:[%s9615_s7 + $0x238] sm:$0xff]  ;;  %v3455_v17 = vpack.c.bf16 %v3327_v14, %v3327_v14  ;;  %v7394_v14 = vpop.permute.xlu2 %738 }
 0x101   : > { %3884 = vperm.xlu2 %6711, %v3426_v18   ;;  %v3454_v18 = vpack.c.bf16 %v3326_v15, %v3326_v15 }
 0x104   : > { %5852 = vmatmul.msk.bf16.gmra.mxu1 %vm524_vm2, %v6477_v19  ;;  %v3456_v19 = vpack.c.bf16 %v3328_v16, %v3328_v16  ;;  %v3384_v16 = vld [vmem:[%s9615_s7 + $0x3f8] sm:$0xff] }
 0x108   : > { %3902 = vperm.xlu1 %6710, %v3428_v23   ;;  %3893 = vperm.xlu0 %6709, %v3427_v24   ;;  %v3331_v23 = vld [vmem:[%s9615_s7 + $0x250] sm:$0xff]  ;;  %v3458_v24 = vpack.c.bf16 %v3330_v21, %v3330_v21 }
 0x109   : > { %3911 = vperm.xlu2 %6711, %v3429_v25   ;;  %v3457_v25 = vpack.c.bf16 %v3329_v22, %v3329_v22  ;;  %v3459_v26 = vpack.c.bf16 %v3331_v23, %v3331_v23 }
 0x110   : > { %3929 = vperm.xlu1 %6710, %v3431_v29   ;;  %3920 = vperm.xlu0 %6709, %v3430_v30   ;;  %v3332_v29 = vld [vmem:[%s9615_s7 + $0x258] sm:$0xff]  ;;  %v3334_v30 = vld [vmem:[%s9615_s7 + $0x268] sm:$0xff] }
 0x111   : > { %3938 = vperm.xlu2 %6711, %v3432_v31   ;;  %v3461_v31 = vpack.c.bf16 %v3333_v28, %v3333_v28  ;;  %v3462_v33 = vpack.c.bf16 %v3334_v30, %v3334_v30  ;;  %v3381_v28 = vld [vmem:[%s9615_s7 + $0x3e0] sm:$0xff]  ;;  %v3382_v30 = vld [vmem:[%s9615_s7 + $0x3e8] sm:$0xff] }
 0x114   : > { %5853 = vmatmul.msk.bf16.gmra.mxu1 %vm524_vm2, %v6478_v32  ;;  %v3460_v32 = vpack.c.bf16 %v3332_v29, %v3332_v29  ;;  %v3368_v29 = vld [vmem:[%s9615_s7 + $0x378] sm:$0xff] }
 0x118   : > { %3956 = vperm.xlu1 %6710, %v3434_v36   ;;  %3947 = vperm.xlu0 %6709, %v3433_v37   ;;  %v3335_v36 = vld [vmem:[%s9615_s7 + $0x270] sm:$0xff]  ;;  %v3337_v37 = vld [vmem:[%s9615_s7 + $0x280] sm:$0xff] }
 0x119   : > { %3965 = vperm.xlu2 %6711, %v3435_v38   ;;  %v3464_v38 = vpack.c.bf16 %v3336_v35, %v3336_v35  ;;  %v3463_v39 = vpack.c.bf16 %v3335_v36, %v3335_v36  ;;  %v3465_v40 = vpack.c.bf16 %v3337_v37, %v3337_v37  ;;  %v3366_v37 = vld [vmem:[%s9615_s7 + $0x368] sm:$0xff] }
 0x120   : > { %3983 = vperm.xlu1 %6710, %v3437_v42   ;;  %3974 = vperm.xlu0 %6709, %v3436_v43   ;;  %v3339_v42 = vld [vmem:[%s9615_s7 + $0x290] sm:$0xff]  ;;  %v3338_v43 = vld [vmem:[%s9615_s7 + $0x288] sm:$0xff] }
 0x121   : > { %3992 = vperm.xlu2 %6711, %v3438_v44   ;;  %v3340_v44 = vld [vmem:[%s9615_s7 + $0x298] sm:$0xff]  ;;  %v3466_v46 = vpack.c.bf16 %v3338_v43, %v3338_v43  ;;  %v3494_v43 = vpack.c.bf16 %v3366_v37, %v3366_v37 }
 0x122   : > { %v3468_v47 = vpack.c.bf16 %v3340_v44, %v3340_v44 }
 0x124   : > { %5854 = vmatmul.msk.bf16.gmra.mxu1 %vm524_vm2, %v6479_v45  ;;  %v3467_v45 = vpack.c.bf16 %v3339_v42, %v3339_v42 }
 0x128   : > { %4010 = vperm.xlu1 %6710, %v3440_v49   ;;  %4001 = vperm.xlu0 %6709, %v3439_v50   ;;  %v3342_v49 = vld [vmem:[%s9615_s7 + $0x2a8] sm:$0xff]  ;;  %v3341_v50 = vld [vmem:[%s9615_s7 + $0x2a0] sm:$0xff] }
 0x129   : > { %4019 = vperm.xlu2 %6711, %v3441_v51   ;;  %v3343_v51 = vld [vmem:[%s9615_s7 + $0x2b0] sm:$0xff]  ;;  %v3470_v52 = vpack.c.bf16 %v3342_v49, %v3342_v49  ;;  %v3469_v53 = vpack.c.bf16 %v3341_v50, %v3341_v50  ;;  %v3380_v49 = vld [vmem:[%s9615_s7 + $0x3d8] sm:$0xff] }
 0x12a   : > { %v3471_v54 = vpack.c.bf16 %v3343_v51, %v3343_v51  ;;  %v3364_v50 = vld [vmem:[%s9615_s7 + $0x358] sm:$0xff] }
 0x130   : > { %4037 = vperm.xlu1 %6710, %v3443_v55   ;;  %4028 = vperm.xlu0 %6709, %v3442_v56   ;;  %v3345_v56 = vld [vmem:[%s9615_s7 + $0x2c0] sm:$0xff] }
 0x131   : > { %4046 = vperm.xlu2 %6711, %v3444_v57   ;;  %v3344_v57 = vld [vmem:[%s9615_s7 + $0x2b8] sm:$0xff]  ;;  %v3473_v59 = vpack.c.bf16 %v3345_v56, %v3345_v56 }
 0x132   : > { %v3472_v60 = vpack.c.bf16 %v3344_v57, %v3344_v57  ;;  %v3492_v57 = vpack.c.bf16 %v3364_v50, %v3364_v50 }
 0x134   : > { %5855 = vmatmul.msk.bf16.gmra.mxu1 %vm524_vm2, %v6480_v58  ;;  %v3346_v58 = vld [vmem:[%s9615_s7 + $0x2c8] sm:$0xff] }
 0x135   : > { %v3474_v61 = vpack.c.bf16 %v3346_v58, %v3346_v58 }
 0x138   : > { %4064 = vperm.xlu1 %6710, %v3446_v62   ;;  %4055 = vperm.xlu0 %6709, %v3445_v63   ;;  %v3351_v63 = vld [vmem:[%s9615_s7 + $0x2f0] sm:$0xff] }
 0x139   : > { %4073 = vperm.xlu2 %6711, %v3447_v0   ;;  %v3347_v0 = vld [vmem:[%s9615_s7 + $0x2d0] sm:$0xff]  ;;  %v3479_v2 = vpack.c.bf16 %v3351_v63, %v3351_v63 }
 0x13a   : > { %v3475_v3 = vpack.c.bf16 %v3347_v0, %v3347_v0 }
 0x140   : > { %4091 = vperm.xlu1 %6710, %v3449_v4   ;;  %4082 = vperm.xlu0 %6709, %v3448_v5   ;;  %v3480_v4 = vpack.c.bf16 %v3352_v1, %v3352_v1 }
 0x141   : > { %4100 = vperm.xlu2 %6711, %v3450_v6   ;;  %v3350_v6 = vld [vmem:[%s9615_s7 + $0x2e8] sm:$0xff] }
 0x142   : > { %v3478_v9 = vpack.c.bf16 %v3350_v6, %v3350_v6 }
 0x144   : > { %5856 = vmatmul.msk.bf16.gmra.mxu1 %vm524_vm2, %v6481_v7  ;;  %v3349_v7 = vld [vmem:[%s9615_s7 + $0x2e0] sm:$0xff] }
 0x145   : > { %v3477_v10 = vpack.c.bf16 %v3349_v7, %v3349_v7  ;;  %v3375_v7 = vld [vmem:[%s9615_s7 + $0x3b0] sm:$0xff] }
 0x148   : > { %4118 = vperm.xlu1 %6710, %v3452_v11   ;;  %4109 = vperm.xlu0 %6709, %v3451_v12   ;;  %v7390_v11 = vpop.permute.xlu0 %774  ;;  %v3476_v12 = vpack.c.bf16 %v3348_v8, %v3348_v8  ;;  %v3362_v8 = vld [vmem:[%s9615_s7 + $0x348] sm:$0xff] }
 0x149   : > { %4127 = vperm.xlu2 %6711, %v3453_v13   ;;  %v7392_v13 = vpop.permute.xlu1 %756 }
 0x150   : > { %4145 = vperm.xlu1 %6710, %v3455_v17   ;;  %4136 = vperm.xlu0 %6709, %v3454_v18   ;;  %v3383_v17 = vld [vmem:[%s9615_s7 + $0x3f0] sm:$0xff]  ;;  %v7407_v23 = vpop.permute.xlu0 %783 }
 0x151   : > { %4154 = vperm.xlu2 %6711, %v3456_v19   ;;  %v7302_v20 = vpop.f32.mrf.mxu1  ;;  %v3367_v18 = vld [vmem:[%s9615_s7 + $0x370] sm:$0xff]  ;;  %v3512_v19 = vpack.c.bf16 %v3384_v16, %v3384_v16  ;;  %v3511_v21 = vpack.c.bf16 %v3383_v17, %v3383_v17  ;;  %v6769_v17 = vmov 839922192  }
 0x152   : > { %v3495_v22 = vpack.c.bf16 %v3367_v18, %v3367_v18  ;;  %v652_v18 = vunpack.c.l.s4 %v6769_v17 }
 0x158   : > { %4172 = vperm.xlu1 %6710, %v3458_v24   ;;  %4163 = vperm.xlu0 %6709, %v3457_v25   ;;  %v7409_v24 = vpop.permute.xlu1 %765  ;;  %v7411_v25 = vpop.permute.xlu2 %747 }
 0x159   : > { %4181 = vperm.xlu2 %6711, %v3459_v26   ;;  %v7313_v27 = vpop.f32.mrf.mxu1  ;;  %v7424_v35 = vpop.permute.xlu0 %720 }
 0x160   : > { %4199 = vperm.xlu1 %6710, %v3461_v31   ;;  %4190 = vperm.xlu0 %6709, %v3460_v32   ;;  %v3509_v31 = vpack.c.bf16 %v3381_v28, %v3381_v28  ;;  %v3496_v32 = vpack.c.bf16 %v3368_v29, %v3368_v29  ;;  %v7439_v42 = vpop.permute.xlu2 %702  ;;  %v3360_v29 = vld [vmem:[%s9615_s7 + $0x338] sm:$0xff] }
 0x161   : > { %4208 = vperm.xlu2 %6711, %v3462_v33   ;;  %v7324_v34 = vpop.f32.mrf.mxu1  ;;  %v3510_v33 = vpack.c.bf16 %v3382_v30, %v3382_v30  ;;  %v7452_v51 = vpop.permute.xlu0 %711  ;;  %v3359_v30 = vld [vmem:[%s9615_s7 + $0x330] sm:$0xff]  ;;  %v3488_v37 = vpack.c.bf16 %v3360_v29, %v3360_v29 }
 0x168   : > { %4226 = vperm.xlu1 %6710, %v3464_v38   ;;  %4217 = vperm.xlu0 %6709, %v3463_v39   ;;  %v3365_v38 = vld [vmem:[%s9615_s7 + $0x360] sm:$0xff]  ;;  %v7434_v39 = vpop.permute.xlu1 %729  ;;  %v7456_v56 = vpop.permute.xlu2 %693 }
 0x169   : > { %4235 = vperm.xlu2 %6711, %v3465_v40   ;;  %v7335_v41 = vpop.f32.mrf.mxu1  ;;  %v3379_v40 = vld [vmem:[%s9615_s7 + $0x3d0] sm:$0xff]  ;;  %v3493_v44 = vpack.c.bf16 %v3365_v38, %v3365_v38  ;;  %v7469_v1 = vpop.permute.xlu0 %666  ;;  %v3487_v38 = vpack.c.bf16 %v3359_v30, %v3359_v30 }
 0x170   : > { %4253 = vperm.xlu1 %6710, %v3467_v45   ;;  %4244 = vperm.xlu0 %6709, %v3466_v46   ;;  %v3507_v45 = vpack.c.bf16 %v3379_v40, %v3379_v40 }
 0x171   : > { %4262 = vperm.xlu2 %6711, %v3468_v47   ;;  %v7346_v48 = vpop.f32.mrf.mxu1  ;;  %v3363_v47 = vld [vmem:[%s9615_s7 + $0x350] sm:$0xff] }
 0x178   : > { %4280 = vperm.xlu1 %6710, %v3470_v52   ;;  %4271 = vperm.xlu0 %6709, %v3469_v53   ;;  %v7454_v52 = vpop.permute.xlu1 %684  ;;  %v3491_v53 = vpack.c.bf16 %v3363_v47, %v3363_v47 }
 0x179   : > { %4289 = vperm.xlu2 %6711, %v3471_v54   ;;  %v7357_v55 = vpop.f32.mrf.mxu1  ;;  %v3508_v54 = vpack.c.bf16 %v3380_v49, %v3380_v49 }
 0x180   : > { %4307 = vperm.xlu1 %6710, %v3473_v59   ;;  %4298 = vperm.xlu0 %6709, %v3472_v60   ;;  %v3378_v59 = vld [vmem:[%s9615_s7 + $0x3c8] sm:$0xff]  ;;  %v3377_v60 = vld [vmem:[%s9615_s7 + $0x3c0] sm:$0xff] }
 0x181   : > { %4316 = vperm.xlu2 %6711, %v3474_v61   ;;  %v7368_v62 = vpop.f32.mrf.mxu1  ;;  %v3361_v61 = vld [vmem:[%s9615_s7 + $0x340] sm:$0xff]  ;;  %v3506_v63 = vpack.c.bf16 %v3378_v59, %v3378_v59  ;;  %v3505_v0 = vpack.c.bf16 %v3377_v60, %v3377_v60 }
 0x188   : > { %4361 = vperm.xlu1 %6710, %v3479_v2   ;;  %4325 = vperm.xlu0 %6709, %v3475_v3   ;;  %v3489_v2 = vpack.c.bf16 %v3361_v61, %v3361_v61  ;;  %v7471_v3 = vpop.permute.xlu1 %675 }
 0x189   : > { %4370 = vperm.xlu2 %6711, %v3480_v4   ;;  %v7379_v5 = vpop.f32.mrf.mxu1  ;;  %v7473_v4 = vpop.permute.xlu2 %648 }
 0x190   : > { %4352 = vperm.xlu1 %6710, %v3478_v9   ;;  %4343 = vperm.xlu0 %6709, %v3477_v10   ;;  %v3376_v9 = vld [vmem:[%s9615_s7 + $0x3b8] sm:$0xff]  ;;  %v3503_v10 = vpack.c.bf16 %v3375_v7, %v3375_v7 }
 0x191   : > { %4334 = vperm.xlu2 %6711, %v3476_v12   ;;  %v7396_v15 = vpop.f32.mrf.mxu1  ;;  %v3490_v12 = vpack.c.bf16 %v3362_v8, %v3362_v8  ;;  %v3504_v16 = vpack.c.bf16 %v3376_v9, %v3376_v9 }
 0x198   : > { %4658 = vperm.xlu1 %6710, %v3512_v19   ;;  %4649 = vperm.xlu0 %6709, %v3511_v21   ;;  %v7484_v19 = vpop.permute.xlu0 %657  ;;  %v7486_v21 = vpop.permute.xlu1 %1335 }
 0x199   : > { %4505 = vperm.xlu2 %6711, %v3495_v22   ;;  %v7413_v26 = vpop.f32.mrf.mxu1  ;;  %v7488_v22 = vpop.permute.xlu2 %1344 }
 0x1a0   : > { %4631 = vperm.xlu1 %6710, %v3509_v31   ;;  %4514 = vperm.xlu0 %6709, %v3496_v32   ;;  %v3373_v31 = vld [vmem:[%s9615_s7 + $0x3a0] sm:$0xff]  ;;  %v7499_v32 = vunpack.c.0.s8 %v652_v18  ;;  %v7523_v60 = vpop.permute.xlu1 %1326 }
 0x1a1   : > { %4640 = vperm.xlu2 %6711, %v3510_v33   ;;  %v7426_v36 = vpop.f32.mrf.mxu1 }
 0x1a2   : > { %v780_v40 = vperm.slane %v7390_v11, %v7499_v32  ;;  %v762_v47 = vperm.slane %v7392_v13, %v7499_v32  ;;  %v789_v49 = vperm.slane %v7407_v23, %v7499_v32  ;;  %v3357_v11 = vld [vmem:[%s9615_s7 + $0x320] sm:$0xff]  ;;  %v608_v7 = vpack.c.bf16 %v7426_v36, %v7426_v36 }
 0x1a3   : > { %v3485_v8 = vpack.c.bf16 %v3357_v11, %v3357_v11  ;;  %v726_v36 = vperm.slane %v7424_v35, %v7499_v32  ;;  %v3372_v35 = vld [vmem:[%s9615_s7 + $0x398] sm:$0xff]  ;;  %v699_v11 = vperm.slane %v7456_v56, %v7499_v32 }
 0x1a4   : > { %v820_v13 = vunpack.c.l.bf16 %v780_v40 }
 0x1a8   : > { %4496 = vperm.xlu1 %6710, %v3494_v43   ;;  %4487 = vperm.xlu0 %6709, %v3493_v44   ;;  %v3501_v43 = vpack.c.bf16 %v3373_v31, %v3373_v31  ;;  %v771_v44 = vperm.slane %v7409_v24, %v7499_v32  ;;  %v744_v24 = vperm.slane %v7394_v14, %v7499_v32 }
 0x1a9   : > { %4613 = vperm.xlu2 %6711, %v3507_v45   ;;  %v7441_v46 = vpop.f32.mrf.mxu1 }
 0x1aa   : > { %v819_v59 = vunpack.c.l.bf16 %v771_v44  ;;  %v609_v61 = vpack.c.bf16 %v7441_v46, %v7441_v46  ;;  %v735_v46 = vperm.slane %v7434_v39, %v7499_v32 }
 0x1ac   : > { %v801_v29 = vunpack.c.l.bf16 %v609_v61  ;;  %v815_v44 = vunpack.c.l.bf16 %v735_v46 }
 0x1b0   : > { %4469 = vperm.xlu1 %6710, %v3491_v53   ;;  %4622 = vperm.xlu0 %6709, %v3508_v54   ;;  %v753_v54 = vperm.slane %v7411_v25, %v7499_v32  ;;  %v3358_v25 = vld [vmem:[%s9615_s7 + $0x328] sm:$0xff] }
 0x1b1   : > { %4478 = vperm.xlu2 %6711, %v3492_v57   ;;  %v7458_v58 = vpop.f32.mrf.mxu1  ;;  %v7518_v57 = vpop.permute.xlu0 %1317  ;;  %v3486_v18 = vpack.c.bf16 %v3358_v25, %v3358_v25 }
 0x1b2   : > { %v610_v50 = vpack.c.bf16 %v7458_v58, %v7458_v58  ;;  %v3374_v58 = vld [vmem:[%s9615_s7 + $0x3a8] sm:$0xff]  ;;  %v817_v17 = vunpack.c.l.bf16 %v753_v54 }
 0x1b4   : > { %v802_v9 = vunpack.c.l.bf16 %v610_v50  ;;  %v3371_v50 = vld [vmem:[%s9615_s7 + $0x390] sm:$0xff] }
 0x1b5   : > { %v3499_v56 = vpack.c.bf16 %v3371_v50, %v3371_v50 }
 0x1b8   : > { %4604 = vperm.xlu1 %6710, %v3506_v63   ;;  %4595 = vperm.xlu0 %6709, %v3505_v0   ;;  %v818_v0 = vunpack.c.l.bf16 %v762_v47 }
 0x1b9   : > { %4451 = vperm.xlu2 %6711, %v3489_v2   ;;  %v590_v6 = vpop.f32.mrf.mxu1  ;;  %v821_v2 = vunpack.c.l.bf16 %v789_v49  ;;  %v7559_v54 = vpop.permute.xlu0 %1308 }
 0x1ba   : > { %v611_v45 = vpack.c.bf16 %v590_v6, %v590_v6  ;;  %v7530_v6 = vpop.permute.xlu2 %1299  ;;  %v834_v40 = vadd.f32 %v818_v0, %v802_v9 }
 0x1bc   : > { %v803_v63 = vunpack.c.l.bf16 %v611_v45  ;;  %v605_v45 = vpack.c.bf16 %v7379_v5, %v7379_v5  ;;  %v708_v5 = vperm.slane %v7439_v42, %v7499_v32  ;;  %v882_v61 = vmax.f32 %v834_v40, 0.0 }
 0x1bd   : > { %v603_v42 = vpack.c.bf16 %v7357_v55, %v7357_v55 }
 0x1be   : > { %v835_v31 = vadd.f32 %v819_v59, %v803_v63  ;;  %v3500_v63 = vpack.c.bf16 %v3372_v35, %v3372_v35  ;;  %v599_v35 = vpack.c.bf16 %v7313_v27, %v7313_v27 }
 0x1c0   : > { %4577 = vperm.xlu1 %6710, %v3503_v10   ;;  %4460 = vperm.xlu0 %6709, %v3490_v12   ;;  %v883_v49 = vmax.f32 %v835_v31, 0.0  ;;  %v3370_v31 = vld [vmem:[%s9615_s7 + $0x388] sm:$0xff] }
 0x1c1   : > { %4586 = vperm.xlu2 %6711, %v3504_v16   ;;  %v593_v28 = vpop.f32.mrf.mxu1  ;;  %v3502_v16 = vpack.c.bf16 %v3374_v58, %v3374_v58 }
 0x1c2   : > { %v612_v33 = vpack.c.bf16 %v593_v28, %v593_v28  ;;  %v607_v28 = vpack.c.bf16 %v7413_v26, %v7413_v26  ;;  %v717_v26 = vperm.slane %v7452_v51, %v7499_v32  ;;  %v833_v51 = vadd.f32 %v817_v17, %v801_v29  ;;  %v7565_v25 = vpop.permute.xlu2 %1290 }
 0x1c3   : > { %v795_v29 = vunpack.c.l.bf16 %v603_v42 }
 0x1c4   : > { %v804_v53 = vunpack.c.l.bf16 %v612_v33  ;;  %v816_v33 = vunpack.c.l.bf16 %v744_v24  ;;  %v799_v47 = vunpack.c.l.bf16 %v607_v28  ;;  %v814_v24 = vunpack.c.l.bf16 %v726_v36 }
 0x1c5   : > { %v601_v28 = vpack.c.bf16 %v7335_v41, %v7335_v41 }
 0x1c6   : > { %v836_v10 = vadd.f32 %v820_v13, %v804_v53  ;;  %v3355_v53 = vld [vmem:[%s9615_s7 + $0x310] sm:$0xff]  ;;  %v604_v13 = vpack.c.bf16 %v7368_v62, %v7368_v62  ;;  %v831_v9 = vadd.f32 %v815_v44, %v799_v47  ;;  %v812_v62 = vunpack.c.l.bf16 %v708_v5 }
 0x1c7   : > { %v3483_v0 = vpack.c.bf16 %v3355_v53, %v3355_v53 }
 0x1c8   : > { %4442 = vperm.xlu1 %6710, %v3488_v37   ;;  %4433 = vperm.xlu0 %6709, %v3487_v38   ;;  %v606_v37 = vpack.c.bf16 %v7396_v15, %v7396_v15  ;;  %v800_v38 = vunpack.c.l.bf16 %v608_v7  ;;  %v892_v7 = vpack.c.bf16 %v883_v49, %v882_v61  ;;  %v796_v17 = vunpack.c.l.bf16 %v604_v13 }
 0x1c9   : > { %4559 = vperm.xlu2 %6711, %v3501_v43   ;;  %v595_v23 = vpop.f32.mrf.mxu1  ;;  %v884_v43 = vmax.f32 %v836_v10, 0.0  ;;  %v690_v10 = vperm.slane %v7454_v52, %v7499_v32  ;;  %v3369_v52 = vld [vmem:[%s9615_s7 + $0x380] sm:$0xff]  ;;  %v791_v61 = vunpack.c.l.bf16 %v599_v35 }
 0x1ca   : > { %v613_v14 = vpack.c.bf16 %v595_v23, %v595_v23  ;;  %v7563_v23 = vpop.permute.xlu1 %1281  ;;  %v798_v58 = vunpack.c.l.bf16 %v606_v37  ;;  %v832_v59 = vadd.f32 %v816_v33, %v800_v38  ;;  %v672_v37 = vperm.slane %v7469_v1, %v7499_v32 }
 0x1cb   : > { %v810_v36 = vunpack.c.l.bf16 %v690_v10  ;;  %v600_v38 = vpack.c.bf16 %v7324_v34, %v7324_v34  ;;  %v3497_v44 = vpack.c.bf16 %v3369_v52, %v3369_v52  ;;  %v793_v1 = vunpack.c.l.bf16 %v601_v28 }
 0x1cc   : > { %v805_v12 = vunpack.c.l.bf16 %v613_v14  ;;  %v813_v14 = vunpack.c.l.bf16 %v717_v26  ;;  %v830_v46 = vadd.f32 %v814_v24, %v798_v58  ;;  %v880_v55 = vmax.f32 %v832_v59, 0.0  ;;  %v3354_v59 = vld [vmem:[%s9615_s7 + $0x308] sm:$0xff] }
 0x1cd   : > { %v663_v26 = vperm.slane %v7484_v19, %v7499_v32  ;;  %v808_v5 = vunpack.c.l.bf16 %v672_v37  ;;  %v598_v19 = vpack.c.bf16 %v7302_v20, %v7302_v20  ;;  %v792_v24 = vunpack.c.l.bf16 %v600_v38  ;;  %v6486_v37 = vld [vmem:[%s9612_s4 + $0x20] sm:$0xff]  ;;  %v6487_v38 = vld [vmem:[%s9612_s4 + $0x28] sm:$0xff] }
 0x1ce   : > { %v837_v30 = vadd.f32 %v821_v2, %v805_v12  ;;  %v797_v2 = vunpack.c.l.bf16 %v605_v45  ;;  %v681_v12 = vperm.slane %v7471_v3, %v7499_v32  ;;  %v7592_v45 = vpop.permute.xlu0 %1263 }
 0x1cf   : > { %v807_v58 = vunpack.c.l.bf16 %v663_v26 }
 0x1d0   : > { %4415 = vperm.xlu1 %6710, %v3485_v8   ;;  %4568 = vperm.xlu0 %6709, %v3502_v16   ;;  %v885_v39 = vmax.f32 %v837_v30, 0.0  ;;  %v881_v8 = vmax.f32 %v833_v51, 0.0  ;;  %v602_v16 = vpack.c.bf16 %v7346_v48, %v7346_v48  ;;  %v879_v30 = vmax.f32 %v831_v9, 0.0  ;;  %v3356_v48 = vld [vmem:[%s9615_s7 + $0x318] sm:$0xff] }
 0x1d1   : > { %4424 = vperm.xlu2 %6711, %v3486_v18   ;;  %v811_v18 = vunpack.c.l.bf16 %v699_v11  ;;  %v829_v33 = vadd.f32 %v813_v14, %v797_v2  ;;  %v809_v41 = vunpack.c.l.bf16 %v681_v12  ;;  %v3484_v47 = vpack.c.bf16 %v3356_v48, %v3356_v48  ;;  %v7600_v11 = vpop.permute.xlu2 %1245  ;;  %v3353_v14 = vld [vmem:[%s9615_s7 + $0x300] sm:$0xff] }
 0x1d2   : > { %v893_v15 = vpack.c.bf16 %v885_v39, %v884_v43  ;;  %v891_v3 = vpack.c.bf16 %v881_v8, %v880_v55  ;;  %v794_v40 = vunpack.c.l.bf16 %v602_v16  ;;  %v828_v43 = vadd.f32 %v812_v62, %v796_v17  ;;  %v7596_v49 = vpop.permute.xlu1 %1272  ;;  %v5505_v62 = vld [vmem:[%s9617_s9] sm:$0xff] }
 0x1d3   : > { %v878_v39 = vmax.f32 %v830_v46, 0.0  ;;  %v877_v34 = vmax.f32 %v829_v33, 0.0  ;;  %v827_v53 = vadd.f32 %v811_v18, %v795_v29  ;;  %v654_v51 = vperm.slane %v7473_v4, %v7499_v32  ;;  %v6482_v48 = vld [vmem:[%s9612_s4] sm:$0xff]  ;;  %v6483_v33 = vld [vmem:[%s9612_s4 + $0x8] sm:$0xff] }
 0x1d4   : > { %1022 = vmatpush.bf16.msrb.mxu2 %v893_v15  ;;  %v3498_v15 = vpack.c.bf16 %v3370_v31, %v3370_v31  ;;  %v826_v13 = vadd.f32 %v810_v36, %v794_v40  ;;  %v876_v27 = vmax.f32 %v828_v43, 0.0  ;;  %v825_v20 = vadd.f32 %v809_v41, %v793_v1  ;;  %v6484_v36 = vld [vmem:[%s9612_s4 + $0x10] sm:$0xff]  ;;  %v6485_v41 = vld [vmem:[%s9612_s4 + $0x18] sm:$0xff] }
 0x1d5   : > { %v890_v50 = vpack.c.bf16 %v879_v30, %v878_v39  ;;  %v806_v42 = vunpack.c.l.bf16 %v654_v51  ;;  %v3481_v8 = vpack.c.bf16 %v3353_v14, %v3353_v14  ;;  %v823_v12 = vadd.f32 %v807_v58, %v791_v61  ;;  %v5506_v30 = vld [vmem:[%s9617_s9 + $0x8] sm:$0xf]  ;;  %v6488_v40 = vld [vmem:[%s9612_s4 + $0x30] sm:$0xff]  ;;  %v6489_v43 = vld [vmem:[%s9612_s4 + $0x38] sm:$0xff] }
 0x1d6   : > { %v889_v4 = vpack.c.bf16 %v877_v34, %v876_v27  ;;  %v874_v2 = vmax.f32 %v826_v13, 0.0  ;;  %v873_v10 = vmax.f32 %v825_v20, 0.0  ;;  %v7613_v16 = vpop.permute.xlu0 %1254  ;;  %v6490_v39 = vld [vmem:[%s9612_s4 + $0x40] sm:$0xff] }
 0x1d7   : > { %v871_v52 = vmax.f32 %v823_v12, 0.0 }
 0x1d8   : > { %1023 = vmatpush.bf16.msrb.mxu2 %v892_v7  ;;  %4550 = vperm.xlu1 %6710, %v3500_v63   ;;  %v875_v63 = vmax.f32 %v827_v53, 0.0  ;;  %v3482_v7 = vpack.c.bf16 %v3354_v59, %v3354_v59 }
 0x1d9   : > { %4541 = vperm.xlu0 %6709, %v3499_v56   ;;  %4397 = vperm.xlu2 %6711, %v3483_v0   ;;  %v790_v56 = vunpack.c.l.bf16 %v598_v19  ;;  %v824_v0 = vadd.f32 %v808_v5, %v792_v24  ;;  %v1237_v18 = vpop.permute.xlu2 %1236  ;;  %v6491_v5 = vld [vmem:[%s9612_s4 + $0x48] sm:$0xff] }
 0x1da   : > { %v888_v9 = vpack.c.bf16 %v875_v63, %v874_v2  ;;  %v1228_v17 = vpop.permute.xlu1 %1227  ;;  %v1242_v20 = vperm.slane %v1237_v18, %v7499_v32  ;;  %v1251_v18 = vperm.slane %v7600_v11, %v7499_v32 }
 0x1db   : > { %v822_v46 = vadd.f32 %v806_v42, %v790_v56  ;;  %v872_v55 = vmax.f32 %v824_v0, 0.0  ;;  %v1233_v14 = vperm.slane %v1228_v17, %v7499_v32 }
 0x1dc   : > { %1024 = vmatpush.bf16.msrb.mxu2 %v891_v3 }
 0x1dd   : > { %v887_v28 = vpack.c.bf16 %v873_v10, %v872_v55  ;;  %v870_v29 = vmax.f32 %v822_v46, 0.0  ;;  %v1529_v0 = vunpack.c.l.bf16 %v1233_v14 }
 0x1de   : > { %v7621_v31 = vpop.permute.xlu0 %1479 }
 0x1df   : > { %v886_v3 = vpack.c.bf16 %v871_v52, %v870_v29  ;;  %v1260_v52 = vperm.slane %v7613_v16, %v7499_v32  ;;  %v1269_v16 = vperm.slane %v7592_v45, %v7499_v32 }
 0x1e0   : > { %1025 = vmatpush.bf16.msrb.mxu2 %v890_v50  ;;  %4523 = vperm.xlu1 %6710, %v3497_v44  }
 0x1e1   : > { %4406 = vperm.xlu0 %6709, %v3484_v47   ;;  %4532 = vperm.xlu2 %6711, %v3498_v15   ;;  %v1210_v35 = vpop.permute.xlu2 %1209 }
 0x1e2   : > { %v1215_v47 = vperm.slane %v1210_v35, %v7499_v32 }
 0x1e4   : > { %1026 = vmatpush.bf16.msrb.mxu2 %v889_v4  ;;  %v1527_v53 = vunpack.c.l.bf16 %v1215_v47 }
 0x1e6   : > { %v1219_v15 = vpop.permute.xlu0 %1218 }
 0x1e7   : > { %v1224_v1 = vperm.slane %v1219_v15, %v7499_v32  ;;  %v1533_v15 = vunpack.c.l.bf16 %v1269_v16 }
 0x1e8   : > { %1027 = vmatpush.bf16.msrb.mxu2 %v888_v9  ;;  %4388 = vperm.xlu1 %6710, %v3482_v7   ;;  %v6492_v7 = vld [vmem:[%s9612_s4 + $0x50] sm:$0xff] }
 0x1e9   : > { %4379 = vperm.xlu0 %6709, %v3481_v8   ;;  %5509 = vperm.xlu2 %6711, %v5505_v62   ;;  %v1528_v19 = vunpack.c.l.bf16 %v1224_v1  ;;  %v1530_v8 = vunpack.c.l.bf16 %v1242_v20  ;;  %v6497_v20 = vld [vmem:[%s9612_s4 + $0x78] sm:$0xff] }
 0x1ec   : > { %1028 = vmatpush.bf16.msrb.mxu2 %v887_v28 }
 0x1f0   : > { %1029 = vmatpush.bf16.msrb.mxu2 %v886_v3 }
 0x1f1   : > { %5514 = vperm.xlu0 %6709, %v5506_v30   ;;  %v1531_v30 = vunpack.c.l.bf16 %v1251_v18 }
 0x1f3   : > { %1030 = vmatmul.bf16.vlgmr.msrb.gmra.mxu2 %v6482_v48 }
 0x203   : > { %1035 = vmatmul.bf16.gmra.mxu2 %v6483_v33  ;;  %v6493_v33 = vld [vmem:[%s9612_s4 + $0x58] sm:$0xff] }
 0x213   : > { %1040 = vmatmul.bf16.gmra.mxu2 %v6484_v36  ;;  %v1532_v36 = vunpack.c.l.bf16 %v1260_v52 }
 0x223   : > { %1045 = vmatmul.bf16.gmra.mxu2 %v6485_v41 }
 0x233   : > { %1050 = vmatmul.bf16.gmra.mxu2 %v6486_v37 }
 0x243   : > { %1055 = vmatmul.bf16.gmra.mxu2 %v6487_v38 }
 0x253   : > { %1060 = vmatmul.bf16.gmra.mxu2 %v6488_v40 }
 0x263   : > { %1065 = vmatmul.bf16.gmra.mxu2 %v6489_v43 }
 0x273   : > { %1070 = vmatmul.bf16.gmra.mxu2 %v6490_v39 }
 0x276   : > { %v1031_v44 = vpop.f32.mrf.mxu2 }
 0x277   : > { %v1111_v26 = vpack.c.bf16 %v1031_v44, %v1031_v44 }
 0x279   : > { %v1495_v50 = vunpack.c.l.bf16 %v1111_v26  ;;  %v1278_v26 = vperm.slane %v7596_v49, %v7499_v32  ;;  %v6495_v49 = vld [vmem:[%s9612_s4 + $0x68] sm:$0xff] }
 0x27b   : > { %v1559_v24 = vadd.f32 %v1527_v53, %v1495_v50  ;;  %v6494_v50 = vld [vmem:[%s9612_s4 + $0x60] sm:$0xff] }
 0x27d   : > { %v1655_v58 = vmax.f32 %v1559_v24, 0.0 }
 0x27e   : > { %v1033_v34 = vpop.f32.mrf.mxu2 }
 0x27f   : > { %v1112_v51 = vpack.c.bf16 %v1033_v34, %v1033_v34  ;;  %v1534_v34 = vunpack.c.l.bf16 %v1278_v26 }
 0x281   : > { %v1496_v13 = vunpack.c.l.bf16 %v1112_v51 }
 0x283   : > { %v1560_v27 = vadd.f32 %v1528_v19, %v1496_v13  ;;  %1075 = vmatmul.bf16.gmra.mxu2 %v6491_v5 }
 0x285   : > { %v1656_v59 = vmax.f32 %v1560_v27, 0.0 }
 0x286   : > { %v1036_v61 = vpop.f32.mrf.mxu2 }
 0x287   : > { %v7652_v4 = vpack.c.bf16 %v1656_v59, %v1655_v58  ;;  %v1113_v63 = vpack.c.bf16 %v1036_v61, %v1036_v61  ;;  %v6496_v61 = vld [vmem:[%s9612_s4 + $0x70] sm:$0xff] }
 0x289   : > { %v1497_v42 = vunpack.c.l.bf16 %v1113_v63 }
 0x28b   : > { %v1561_v9 = vadd.f32 %v1529_v0, %v1497_v42  ;;  %v1341_v0 = vperm.slane %v7486_v21, %v7499_v32  ;;  %v1314_v21 = vperm.slane %v7559_v54, %v7499_v32 }
 0x28d   : > { %v1657_v12 = vmax.f32 %v1561_v9, 0.0 }
 0x28e   : > { %v1038_v56 = vpop.f32.mrf.mxu2 }
 0x28f   : > { %v1114_v2 = vpack.c.bf16 %v1038_v56, %v1038_v56 }
 0x291   : > { %v1498_v62 = vunpack.c.l.bf16 %v1114_v2 }
 0x293   : > { %v1562_v10 = vadd.f32 %v1530_v8, %v1498_v62  ;;  %1080 = vmatmul.bf16.gmra.mxu2 %v6492_v7  ;;  %v1350_v7 = vperm.slane %v7488_v22, %v7499_v32  ;;  %v1332_v8 = vperm.slane %v7523_v60, %v7499_v32  ;;  %v1305_v60 = vperm.slane %v7530_v6, %v7499_v32 }
 0x295   : > { %v1658_v46 = vmax.f32 %v1562_v10, 0.0  ;;  %v1323_v10 = vperm.slane %v7518_v57, %v7499_v32  ;;  %v1542_v52 = vunpack.c.l.bf16 %v1350_v7  ;;  %v1537_v26 = vunpack.c.l.bf16 %v1305_v60  ;;  %v1471_v60 = vpop.permute.xlu2 %1470 }
 0x296   : > { %v1041_v55 = vpop.f32.mrf.mxu2 }
 0x297   : > { %v7659_v28 = vpack.c.bf16 %v1658_v46, %v1657_v12  ;;  %v1115_v17 = vpack.c.bf16 %v1041_v55, %v1041_v55  ;;  %v1541_v46 = vunpack.c.l.bf16 %v1341_v0 }
 0x299   : > { %v1499_v29 = vunpack.c.l.bf16 %v1115_v17 }
 0x29b   : > { %v1563_v41 = vadd.f32 %v1531_v30, %v1499_v29  ;;  %v1540_v29 = vunpack.c.l.bf16 %v1332_v8 }
 0x29d   : > { %v1659_v40 = vmax.f32 %v1563_v41, 0.0 }
 0x29e   : > { %v1043_v3 = vpop.f32.mrf.mxu2 }
 0x29f   : > { %v1116_v48 = vpack.c.bf16 %v1043_v3, %v1043_v3 }
 0x2a1   : > { %v1500_v37 = vunpack.c.l.bf16 %v1116_v48 }
 0x2a3   : > { %v1564_v38 = vadd.f32 %v1532_v36, %v1500_v37  ;;  %1085 = vmatmul.bf16.gmra.mxu2 %v6493_v33  ;;  %v1539_v33 = vunpack.c.l.bf16 %v1323_v10 }
 0x2a5   : > { %v1660_v43 = vmax.f32 %v1564_v38, 0.0  ;;  %v1296_v38 = vperm.slane %v7565_v25, %v7499_v32 }
 0x2a6   : > { %v1046_v39 = vpop.f32.mrf.mxu2 }
 0x2a7   : > { %v7668_v11 = vpack.c.bf16 %v1660_v43, %v1659_v40  ;;  %v1117_v44 = vpack.c.bf16 %v1046_v39, %v1046_v39  ;;  %v1538_v40 = vunpack.c.l.bf16 %v1314_v21  ;;  %v6131_v21 = vld [vmem:[%s9614_s6 + $0x1a0] sm:$0xf] }
 0x2a9   : > { %v1501_v35 = vunpack.c.l.bf16 %v1117_v44 }
 0x2ab   : > { %v1565_v53 = vadd.f32 %v1533_v15, %v1501_v35  ;;  %v1287_v35 = vperm.slane %v7563_v23, %v7499_v32 }
 0x2ad   : > { %v1661_v19 = vmax.f32 %v1565_v53, 0.0 }
 0x2ae   : > { %v1048_v47 = vpop.f32.mrf.mxu2 }
 0x2af   : > { %v1118_v1 = vpack.c.bf16 %v1048_v47, %v1048_v47 }
 0x2b1   : > { %v1502_v51 = vunpack.c.l.bf16 %v1118_v1 }
 0x2b3   : > { %v1566_v5 = vadd.f32 %v1534_v34, %v1502_v51  ;;  %1090 = vmatmul.bf16.gmra.mxu2 %v6494_v50  ;;  %v1536_v34 = vunpack.c.l.bf16 %v1296_v38 }
 0x2b5   : > { %v1662_v24 = vmax.f32 %v1566_v5, 0.0  ;;  %v1535_v5 = vunpack.c.l.bf16 %v1287_v35  ;;  %v1485_v35 = vperm.slane %v7621_v31, %v7499_v32 }
 0x2b6   : > { %v1051_v13 = vpop.f32.mrf.mxu2 }
 0x2b7   : > { %v7677_v45 = vpack.c.bf16 %v1662_v24, %v1661_v19  ;;  %v1119_v43 = vpack.c.bf16 %v1051_v13, %v1051_v13 }
 0x2b9   : > { %v1503_v53 = vunpack.c.l.bf16 %v1119_v43 }
 0x2be   : > { %v1053_v27 = vpop.f32.mrf.mxu2 }
 0x2bf   : > { %v1120_v36 = vpack.c.bf16 %v1053_v27, %v1053_v27  ;;  %v1567_v27 = vadd.f32 %v1535_v5, %v1503_v53  ;;  %v1557_v5 = vunpack.c.l.bf16 %v1485_v35 }
 0x2c1   : > { %v1504_v6 = vunpack.c.l.bf16 %v1120_v36 }
 0x2c3   : > { %1095 = vmatmul.bf16.gmra.mxu2 %v6495_v49  ;;  %v1568_v19 = vadd.f32 %v1536_v34, %v1504_v6 }
 0x2c6   : > { %v1056_v58 = vpop.f32.mrf.mxu2 }
 0x2c7   : > { %v1121_v3 = vpack.c.bf16 %v1056_v58, %v1056_v58  ;;  %v1664_v58 = vmax.f32 %v1568_v19, 0.0 }
 0x2c9   : > { %v1505_v39 = vunpack.c.l.bf16 %v1121_v3  ;;  %v6551_v3 = vld [vmem:[%s9614_s6 + $0x1a4] sm:$0xf0] }
 0x2cb   : > { %v1569_v51 = vadd.f32 %v1537_v26, %v1505_v39 }
 0x2cd   : > { %v1665_v49 = vmax.f32 %v1569_v51, 0.0 }
 0x2ce   : > { %v1058_v59 = vpop.f32.mrf.mxu2 }
 0x2cf   : > { %v1122_v55 = vpack.c.bf16 %v1058_v59, %v1058_v59 }
 0x2d1   : > { %v1506_v57 = vunpack.c.l.bf16 %v1122_v55  ;;  %v6123_v55 = vld [vmem:[%s9614_s6 + $0x190] sm:$0xf] }
 0x2d3   : > { %1100 = vmatmul.bf16.gmra.mxu2 %v6496_v61  ;;  %v1570_v15 = vadd.f32 %v1538_v40, %v1506_v57  ;;  %v1663_v61 = vmax.f32 %v1567_v27, 0.0  ;;  %v1444_v57 = vpop.permute.xlu0 %1443  ;;  %v7768_v40 = vpop.permute.xlu2 %1425 }
 0x2d5   : > { %v1666_v24 = vmax.f32 %v1570_v15, 0.0 }
 0x2d6   : > { %v1061_v63 = vpop.f32.mrf.mxu2 }
 0x2d7   : > { %v1123_v9 = vpack.c.bf16 %v1061_v63, %v1061_v63  ;;  %v1692_v59 = vpack.c.bf16 %v1666_v24, %v1665_v49  ;;  %v1691_v63 = vpack.c.bf16 %v1664_v58, %v1663_v61 }
 0x2d9   : > { %v1507_v22 = vunpack.c.l.bf16 %v1123_v9 }
 0x2db   : > { %v1571_v44 = vadd.f32 %v1539_v33, %v1507_v22  ;;  %v1489_v22 = vpop.permute.xlu1 %1488  ;;  %v1435_v6 = vpop.permute.xlu0 %1434 }
 0x2dc   : > { %v1417_v19 = vpop.permute.xlu2 %1416 }
 0x2dd   : > { %v1667_v25 = vmax.f32 %v1571_v44, 0.0 }
 0x2de   : > { %v1063_v14 = vpop.f32.mrf.mxu2 }
 0x2df   : > { %v1124_v2 = vpack.c.bf16 %v1063_v14, %v1063_v14 }
 0x2e1   : > { %v1508_v17 = vunpack.c.l.bf16 %v1124_v2  ;;  %v6545_v2 = vld [vmem:[%s9614_s6 + $0x174] sm:$0xf0] }
 0x2e3   : > { %1105 = vmatmul.bf16.gmra.mxu2 %v6497_v20  ;;  %v1572_v41 = vadd.f32 %v1540_v29, %v1508_v17  ;;  %v6549_v17 = vld [vmem:[%s9614_s6 + $0x194] sm:$0xf0]  ;;  %v1462_v33 = vpop.permute.xlu1 %1461 }
 0x2e4   : > { %v1467_v51 = vperm.slane %v1462_v33, %v7499_v32 }
 0x2e5   : > { %v1668_v1 = vmax.f32 %v1572_v41, 0.0  ;;  %v6139_v41 = vld [vmem:[%s9614_s6 + $0x1b0] sm:$0xf] }
 0x2e6   : > { %v1066_v42 = vpop.f32.mrf.mxu2 }
 0x2e7   : > { %v1125_v56 = vpack.c.bf16 %v1066_v42, %v1066_v42  ;;  %v1693_v13 = vpack.c.bf16 %v1668_v1, %v1667_v25  ;;  %v6099_v42 = vld [vmem:[%s9614_s6 + $0x160] sm:$0xf]  ;;  %v1476_v1 = vperm.slane %v1471_v60, %v7499_v32  ;;  %v1431_v60 = vperm.slane %v7768_v40, %v7499_v32  ;;  %v6501_v40 = vld [vmem:[%s9614_s6 + $0x14] sm:$0xf0] }
 0x2e9   : > { %v1509_v62 = vunpack.c.l.bf16 %v1125_v56  ;;  %v6543_v56 = vld [vmem:[%s9614_s6 + $0x164] sm:$0xf0]  ;;  %v1556_v49 = vunpack.c.l.bf16 %v1476_v1  ;;  %v1551_v35 = vunpack.c.l.bf16 %v1431_v60 }
 0x2ea   : > { %v6100_v0 = vor.u32 %v6543_v56, %v6099_v42 }
 0x2eb   : > { %v1573_v30 = vadd.f32 %v1541_v46, %v1509_v62  ;;  %v6547_v62 = vld [vmem:[%s9614_s6 + $0x184] sm:$0xf0]  ;;  %v1453_v39 = vpop.permute.xlu1 %1452 }
 0x2ec   : > { %v1458_v31 = vperm.slane %v1453_v39, %v7499_v32  ;;  %v5931_v39 = vld [vmem:[%s9614_s6 + $0x10] sm:$0xf] }
 0x2ed   : > { %v1669_v54 = vmax.f32 %v1573_v30, 0.0  ;;  %v6132_v30 = vor.u32 %v6551_v3, %v6131_v21  ;;  %v1390_v21 = vpop.permute.xlu0 %1389 }
 0x2ee   : > { %v1068_v12 = vpop.f32.mrf.mxu2 }
 0x2ef   : > { %v1126_v18 = vpack.c.bf16 %v1068_v12, %v1068_v12 }
 0x2f1   : > { %v1510_v48 = vunpack.c.l.bf16 %v1126_v18  ;;  %v6124_v18 = vor.u32 %v6549_v17, %v6123_v55  ;;  %v1554_v17 = vunpack.c.l.bf16 %v1458_v31 }
 0x2f3   : > { %v1574_v37 = vadd.f32 %v1542_v52, %v1510_v48 }
 0x2f5   : > { %v1670_v16 = vmax.f32 %v1574_v37, 0.0  ;;  %v6553_v37 = vld [vmem:[%s9614_s6 + $0x1b4] sm:$0xf0] }
 0x2f6   : > { %v7704_v47 = vpop.f32.mrf.mxu2  ;;  %v6140_v38 = vor.u32 %v6553_v37, %v6139_v41 }
 0x2f7   : > { %v1694_v50 = vpack.c.bf16 %v1670_v16, %v1669_v54  ;;  %v5923_v54 = vld [vmem:[%s9614_s6] sm:$0xf]  ;;  %v6499_v16 = vld [vmem:[%s9614_s6 + $0x4] sm:$0xf0] }
 0x2f8   : > { %v5924_v26 = vor.u32 %v6499_v16, %v5923_v54 }
 0x2f9   : > { %2471 = vmatpush.bf16.msra.mxu2 %v1694_v50  ;;  %6635 = vmatpush.bf16.msra.mxu3 %v1694_v50  ;;  %v1494_v50 = vperm.slane %v1489_v22, %v7499_v32 }
 0x2fb   : > { %v1558_v58 = vunpack.c.l.bf16 %v1494_v50 }
 0x2fd   : > { %2472 = vmatpush.bf16.msra.mxu2 %v1693_v13  ;;  %6636 = vmatpush.bf16.msra.mxu3 %v1693_v13 }
 0x2fe   : > { %v7706_v23 = vpop.f32.mrf.mxu2 }
 0x301   : > { %2473 = vmatpush.bf16.msra.mxu2 %v1692_v59  ;;  %6637 = vmatpush.bf16.msra.mxu3 %v1692_v59  ;;  %v1408_v59 = vpop.permute.xlu1 %1407 }
 0x305   : > { %2474 = vmatpush.bf16.msra.mxu2 %v1691_v63  ;;  %6638 = vmatpush.bf16.msra.mxu3 %v1691_v63 }
 0x306   : > { %v7708_v14 = vpop.f32.mrf.mxu2 }
 0x309   : > { %2475 = vmatpush.bf16.msra.mxu2 %v7677_v45  ;;  %6639 = vmatpush.bf16.msra.mxu3 %v7677_v45 }
 0x30d   : > { %2476 = vmatpush.bf16.msra.mxu2 %v7668_v11  ;;  %6640 = vmatpush.bf16.msra.mxu3 %v7668_v11 }
 0x30e   : > { %v7714_v20 = vpop.f32.mrf.mxu2 }
 0x311   : > { %2477 = vmatpush.bf16.msra.mxu2 %v7659_v28  ;;  %6641 = vmatpush.bf16.msra.mxu3 %v7659_v28  ;;  %v6107_v28 = vld [vmem:[%s9614_s6 + $0x170] sm:$0xf] }
 0x312   : > { %v6108_v7 = vor.u32 %v6545_v2, %v6107_v28  ;;  %v6555_v28 = vld [vmem:[%s9614_s6 + $0x1c4] sm:$0xf0]  ;;  %v1555_v2 = vunpack.c.l.bf16 %v1467_v51 }
 0x315   : > { %2478 = vmatpush.bf16.msra.mxu2 %v7652_v4  ;;  %6642 = vmatpush.bf16.msra.mxu3 %v7652_v4  ;;  %v6115_v4 = vld [vmem:[%s9614_s6 + $0x180] sm:$0xf] }
 0x316   : > { %v7726_v11 = vpop.f32.mrf.mxu2  ;;  %v6116_v10 = vor.u32 %v6547_v62, %v6115_v4 }
 0x318   : > { %2589 = vmatmul.bf16.vlgmr.msra.gmra.mxu3 %v6100_v0  ;;  %2479 = vmatmul.bf16.vlgmr.msra.gmra.mxu2 %v5924_v26  ;;  %v6147_v0 = vld [vmem:[%s9614_s6 + $0x1c0] sm:$0xf]  ;;  %v5932_v26 = vor.u32 %v6501_v40, %v5931_v39 }
 0x31e   : > { %v7728_v45 = vpop.f32.mrf.mxu2 }
 0x326   : > { %v7736_v8 = vpop.f32.mrf.mxu2 }
 0x328   : > { %2594 = vmatmul.bf16.gmra.mxu3 %v6108_v7  ;;  %v1449_v7 = vperm.slane %v1444_v57, %v7499_v32  ;;  %2484 = vmatmul.bf16.gmra.mxu2 %v5932_v26 }
 0x32a   : > { %v1553_v33 = vunpack.c.l.bf16 %v1449_v7  ;;  %v6557_v7 = vld [vmem:[%s9614_s6 + $0x1d4] sm:$0xf0] }
 0x32e   : > { %v7738_v9 = vpop.f32.mrf.mxu2 }
 0x336   : > { %v7746_v12 = vpop.f32.mrf.mxu2 }
 0x338   : > { %2599 = vmatmul.bf16.gmra.mxu3 %v6116_v10 }
 0x33e   : > { %v7748_v46 = vpop.f32.mrf.mxu2 }
 0x33f   : > { %v1136_v4 = vpack.c.bf16 %v7748_v46, %v7748_v46  ;;  %v1134_v46 = vpack.c.bf16 %v7738_v9, %v7738_v9  ;;  %v1372_v9 = vpop.permute.xlu2 %1371 }
 0x341   : > { %v1518_v1 = vunpack.c.l.bf16 %v1134_v46 }
 0x346   : > { %v1096_v52 = vpop.f32.mrf.mxu2 }
 0x347   : > { %v1137_v61 = vpack.c.bf16 %v1096_v52, %v1096_v52  ;;  %v1135_v52 = vpack.c.bf16 %v7746_v12, %v7746_v12 }
 0x348   : > { %2604 = vmatmul.bf16.gmra.mxu3 %v6124_v18  ;;  %v1440_v18 = vperm.slane %v1435_v6, %v7499_v32  ;;  %v1413_v6 = vperm.slane %v1408_v59, %v7499_v32 }
 0x349   : > { %v1521_v3 = vunpack.c.l.bf16 %v1137_v61 }
 0x34a   : > { %v1552_v12 = vunpack.c.l.bf16 %v1440_v18 }
 0x34b   : > { %v1585_v54 = vadd.f32 %v1553_v33, %v1521_v3 }
 0x34e   : > { %v1098_v29 = vpop.f32.mrf.mxu2 }
 0x34f   : > { %v1138_v24 = vpack.c.bf16 %v1098_v29, %v1098_v29  ;;  %v6148_v29 = vor.u32 %v6555_v28, %v6147_v0 }
 0x351   : > { %v1522_v62 = vunpack.c.l.bf16 %v1138_v24 }
 0x353   : > { %v1586_v37 = vadd.f32 %v1554_v17, %v1522_v62 }
 0x356   : > { %v1101_v48 = vpop.f32.mrf.mxu2 }
 0x357   : > { %v1139_v34 = vpack.c.bf16 %v1101_v48, %v1101_v48 }
 0x358   : > { %2609 = vmatmul.bf16.gmra.mxu3 %v6132_v30 }
 0x359   : > { %v1523_v63 = vunpack.c.l.bf16 %v1139_v34  ;;  %v1682_v34 = vmax.f32 %v1586_v37, 0.0 }
 0x35b   : > { %v1587_v22 = vadd.f32 %v1555_v2, %v1523_v63 }
 0x35d   : > { %v1683_v16 = vmax.f32 %v1587_v22, 0.0 }
 0x35e   : > { %v1103_v36 = vpop.f32.mrf.mxu2 }
 0x35f   : > { %v1140_v15 = vpack.c.bf16 %v1103_v36, %v1103_v36  ;;  %v1520_v36 = vunpack.c.l.bf16 %v1136_v4  ;;  %v1377_v4 = vperm.slane %v1372_v9, %v7499_v32 }
 0x361   : > { %v1524_v13 = vunpack.c.l.bf16 %v1140_v15  ;;  %v1399_v15 = vpop.permute.xlu1 %1398  ;;  %v1545_v46 = vunpack.c.l.bf16 %v1377_v4 }
 0x363   : > { %v1588_v55 = vadd.f32 %v1556_v49, %v1524_v13  ;;  %v1681_v13 = vmax.f32 %v1585_v54, 0.0  ;;  %v1130_v49 = vpack.c.bf16 %v7714_v20, %v7714_v20  ;;  %v6155_v20 = vld [vmem:[%s9614_s6 + $0x1d0] sm:$0xf] }
 0x364   : > { %v6156_v3 = vor.u32 %v6557_v7, %v6155_v20  ;;  %v6507_v20 = vld [vmem:[%s9614_s6 + $0x44] sm:$0xf0] }
 0x365   : > { %v1684_v41 = vmax.f32 %v1588_v55, 0.0  ;;  %v1700_v59 = vpack.c.bf16 %v1682_v34, %v1681_v13  ;;  %v1514_v55 = vunpack.c.l.bf16 %v1130_v49  ;;  %v6559_v34 = vld [vmem:[%s9614_s6 + $0x1e4] sm:$0xf0]  ;;  %v6505_v13 = vld [vmem:[%s9614_s6 + $0x34] sm:$0xf0] }
 0x366   : > { %v1106_v43 = vpop.f32.mrf.mxu2 }
 0x367   : > { %v1141_v44 = vpack.c.bf16 %v1106_v43, %v1106_v43  ;;  %v1133_v43 = vpack.c.bf16 %v7736_v8, %v7736_v8  ;;  %v1132_v8 = vpack.c.bf16 %v7728_v45, %v7728_v45  ;;  %v1701_v50 = vpack.c.bf16 %v1684_v41, %v1683_v16 }
 0x368   : > { %2614 = vmatmul.bf16.gmra.mxu3 %v6140_v38  ;;  %v1422_v38 = vperm.slane %v1417_v19, %v7499_v32  ;;  %v1395_v45 = vperm.slane %v1390_v21, %v7499_v32  ;;  %v1127_v21 = vpack.c.bf16 %v7704_v47, %v7704_v47  ;;  %v5939_v47 = vld [vmem:[%s9614_s6 + $0x20] sm:$0xf] }
 0x369   : > { %v1525_v53 = vunpack.c.l.bf16 %v1141_v44  ;;  %v1519_v44 = vunpack.c.l.bf16 %v1135_v52  ;;  %v1517_v19 = vunpack.c.l.bf16 %v1133_v43  ;;  %v1516_v31 = vunpack.c.l.bf16 %v1132_v8  ;;  %v1354_v22 = vpop.permute.xlu1 %1353 }
 0x36a   : > { %v1550_v51 = vunpack.c.l.bf16 %v1422_v38  ;;  %v1547_v62 = vunpack.c.l.bf16 %v1395_v45  ;;  %v1511_v38 = vunpack.c.l.bf16 %v1127_v21 }
 0x36b   : > { %v1589_v42 = vadd.f32 %v1557_v5, %v1525_v53  ;;  %v1584_v53 = vadd.f32 %v1552_v12, %v1520_v36  ;;  %v1131_v5 = vpack.c.bf16 %v7726_v11, %v7726_v11  ;;  %v1583_v24 = vadd.f32 %v1551_v35, %v1519_v44  ;;  %v6503_v12 = vld [vmem:[%s9614_s6 + $0x24] sm:$0xf0] }
 0x36c   : > { %v1582_v63 = vadd.f32 %v1550_v51, %v1518_v1  ;;  %v1129_v11 = vpack.c.bf16 %v7708_v14, %v7708_v14  ;;  %v1363_v14 = vpop.permute.xlu2 %1362  ;;  %v5940_v9 = vor.u32 %v6503_v12, %v5939_v47  ;;  %v5925_v51 = vld [vmem:[%s9614_s6 + $0x8] sm:$0xf0] }
 0x36d   : > { %v1685_v30 = vmax.f32 %v1589_v42, 0.0  ;;  %v1680_v61 = vmax.f32 %v1584_v53, 0.0  ;;  %v1515_v0 = vunpack.c.l.bf16 %v1131_v5  ;;  %v1679_v2 = vmax.f32 %v1583_v24, 0.0  ;;  %v6498_v53 = vld [vmem:[%s9614_s6 + $0x4] sm:$0xf] }
 0x36e   : > { %v1108_v25 = vpop.f32.mrf.mxu2  ;;  %v1678_v18 = vmax.f32 %v1582_v63, 0.0  ;;  %2489 = vmatmul.bf16.gmra.mxu2 %v5940_v9  ;;  %v5947_v24 = vld [vmem:[%s9614_s6 + $0x30] sm:$0xf]  ;;  %v5933_v63 = vld [vmem:[%s9614_s6 + $0x18] sm:$0xf0] }
 0x36f   : > { %v1142_v27 = vpack.c.bf16 %v1108_v25, %v1108_v25  ;;  %v1404_v25 = vperm.slane %v1399_v15, %v7499_v32  ;;  %v1699_v17 = vpack.c.bf16 %v1680_v61, %v1679_v2  ;;  %v1579_v60 = vadd.f32 %v1547_v62, %v1515_v0  ;;  %v6500_v61 = vld [vmem:[%s9614_s6 + $0x14] sm:$0xf]  ;;  %v5955_v2 = vld [vmem:[%s9614_s6 + $0x40] sm:$0xf]  ;;  %v6511_v9 = vld [vmem:[%s9614_s6 + $0x64] sm:$0xf0] }
 0x370   : > { %v5936_v0 = vor.u32 %v6500_v61, %v5933_v63  ;;  %v5956_v7 = vor.u32 %v6507_v20, %v5955_v2  ;;  %v6203_v61 = vld [vmem:[%s9614_s6 + $0x230] sm:$0xf]  ;;  %v6569_v63 = vld [vmem:[%s9614_s6 + $0x234] sm:$0xf0] }
 0x371   : > { %v1526_v56 = vunpack.c.l.bf16 %v1142_v27  ;;  %v1549_v27 = vunpack.c.l.bf16 %v1413_v6  ;;  %v1548_v42 = vunpack.c.l.bf16 %v1404_v25  ;;  %v1675_v40 = vmax.f32 %v1579_v60, 0.0 }
 0x373   : > { %v1590_v10 = vadd.f32 %v1558_v58, %v1526_v56  ;;  %v1381_v58 = vpop.permute.xlu0 %1380  ;;  %v1581_v28 = vadd.f32 %v1549_v27, %v1517_v19  ;;  %v1580_v52 = vadd.f32 %v1548_v42, %v1516_v31  ;;  %v5928_v19 = vor.u32 %v6498_v53, %v5925_v51  ;;  %v6171_v31 = vld [vmem:[%s9614_s6 + $0x1f0] sm:$0xf] }
 0x374   : > { %v1386_v56 = vperm.slane %v1381_v58, %v7499_v32  ;;  %v5948_v27 = vor.u32 %v6505_v13, %v5947_v24  ;;  %v7860_v58 = vpop.permute.xlu1 %3524  ;;  %v6513_v24 = vld [vmem:[%s9614_s6 + $0x74] sm:$0xf0] }
 0x375   : > { %v1686_v48 = vmax.f32 %v1590_v10, 0.0  ;;  %v1128_v10 = vpack.c.bf16 %v7706_v23, %v7706_v23  ;;  %v1677_v33 = vmax.f32 %v1581_v28, 0.0  ;;  %v1359_v23 = vperm.slane %v1354_v22, %v7499_v32 }
 0x376   : > { %v1676_v41 = vmax.f32 %v1580_v52, 0.0 }
 0x377   : > { %v1702_v57 = vpack.c.bf16 %v1686_v48, %v1685_v30  ;;  %v1546_v30 = vunpack.c.l.bf16 %v1386_v56  ;;  %v1513_v48 = vunpack.c.l.bf16 %v1129_v11  ;;  %v1512_v36 = vunpack.c.l.bf16 %v1128_v10 }
 0x378   : > { %2619 = vmatmul.bf16.gmra.mxu3 %v6148_v29  ;;  %v1368_v29 = vperm.slane %v1363_v14, %v7499_v32  ;;  %v1543_v44 = vunpack.c.l.bf16 %v1359_v23  ;;  %v1697_v54 = vpack.c.bf16 %v1676_v41, %v1675_v40  ;;  %v6179_v14 = vld [vmem:[%s9614_s6 + $0x200] sm:$0xf]  ;;  %v6504_v41 = vld [vmem:[%s9614_s6 + $0x34] sm:$0xf] }
 0x379   : > { %2800 = vmatpush.bf16.msrb.mxu0 %v1702_v57  ;;  %6643 = vmatpush.bf16.msrb.mxu1 %v1702_v57  ;;  %v1698_v57 = vpack.c.bf16 %v1678_v18, %v1677_v33  ;;  %v1578_v37 = vadd.f32 %v1546_v30, %v1514_v55  ;;  %v1577_v39 = vadd.f32 %v1545_v46, %v1513_v48  ;;  %v6563_v55 = vld [vmem:[%s9614_s6 + $0x204] sm:$0xf0]  ;;  %v5941_v18 = vld [vmem:[%s9614_s6 + $0x28] sm:$0xf0]  ;;  %v5963_v30 = vld [vmem:[%s9614_s6 + $0x50] sm:$0xf] }
 0x37a   : > { %v1544_v43 = vunpack.c.l.bf16 %v1368_v29  ;;  %v1575_v35 = vadd.f32 %v1543_v44, %v1511_v38  ;;  %v6180_v29 = vor.u32 %v6563_v55, %v6179_v14  ;;  %v6509_v48 = vld [vmem:[%s9614_s6 + $0x54] sm:$0xf0]  ;;  %v5971_v40 = vld [vmem:[%s9614_s6 + $0x60] sm:$0xf] }
 0x37b   : > { %v1674_v16 = vmax.f32 %v1578_v37, 0.0  ;;  %v1673_v6 = vmax.f32 %v1577_v39, 0.0  ;;  %v7856_v45 = vpop.permute.xlu0 %3515  ;;  %v5964_v60 = vor.u32 %v6509_v48, %v5963_v30  ;;  %v5949_v37 = vld [vmem:[%s9614_s6 + $0x38] sm:$0xf0]  ;;  %v5972_v44 = vor.u32 %v6511_v9, %v5971_v40 }
 0x37c   : > { %v1576_v26 = vadd.f32 %v1544_v43, %v1512_v36  ;;  %v1671_v1 = vmax.f32 %v1575_v35, 0.0  ;;  %v7878_v28 = vpop.permute.xlu1 %3551  ;;  %v6187_v36 = vld [vmem:[%s9614_s6 + $0x210] sm:$0xf]  ;;  %v5952_v39 = vor.u32 %v6504_v41, %v5949_v37  ;;  %v6510_v41 = vld [vmem:[%s9614_s6 + $0x64] sm:$0xf] }
 0x37d   : > { %2801 = vmatpush.bf16.msrb.mxu0 %v1701_v50  ;;  %6644 = vmatpush.bf16.msrb.mxu1 %v1701_v50  ;;  %v1696_v8 = vpack.c.bf16 %v1674_v16, %v1673_v6  ;;  %v6163_v50 = vld [vmem:[%s9614_s6 + $0x1e0] sm:$0xf]  ;;  %v5973_v37 = vld [vmem:[%s9614_s6 + $0x68] sm:$0xf0] }
 0x37e   : > { %v1672_v15 = vmax.f32 %v1576_v26, 0.0  ;;  %v6164_v5 = vor.u32 %v6559_v34, %v6163_v50  ;;  %2494 = vmatmul.bf16.gmra.mxu2 %v5948_v27  ;;  %v6195_v6 = vld [vmem:[%s9614_s6 + $0x220] sm:$0xf] }
 0x380   : > { %v1695_v25 = vpack.c.bf16 %v1672_v15, %v1671_v1  ;;  %v6506_v15 = vld [vmem:[%s9614_s6 + $0x44] sm:$0xf]  ;;  %v5957_v1 = vld [vmem:[%s9614_s6 + $0x48] sm:$0xf0] }
 0x381   : > { %2802 = vmatpush.bf16.msrb.mxu0 %v1700_v59  ;;  %6645 = vmatpush.bf16.msrb.mxu1 %v1700_v59  ;;  %v6561_v59 = vld [vmem:[%s9614_s6 + $0x1f4] sm:$0xf0]  ;;  %v5960_v51 = vor.u32 %v6506_v15, %v5957_v1 }
 0x382   : > { %v6172_v11 = vor.u32 %v6561_v59, %v6171_v31 }
 0x383   : > { %v7876_v56 = vpop.permute.xlu0 %3542 }
 0x384   : > { %v7890_v10 = vpop.permute.xlu1 %3578 }
 0x385   : > { %2803 = vmatpush.bf16.msrb.mxu0 %v1699_v17  ;;  %6646 = vmatpush.bf16.msrb.mxu1 %v1699_v17  ;;  %v6502_v17 = vld [vmem:[%s9614_s6 + $0x24] sm:$0xf] }
 0x386   : > { %v5944_v21 = vor.u32 %v6502_v17, %v5941_v18 }
 0x388   : > { %2624 = vmatmul.bf16.gmra.mxu3 %v6156_v3  ;;  %v7906_v3 = vpop.permute.xlu2 %3533 }
 0x389   : > { %2804 = vmatpush.bf16.msrb.mxu0 %v1698_v57  ;;  %6647 = vmatpush.bf16.msrb.mxu1 %v1698_v57  ;;  %v6565_v57 = vld [vmem:[%s9614_s6 + $0x214] sm:$0xf0] }
 0x38a   : > { %v6188_v43 = vor.u32 %v6565_v57, %v6187_v36  ;;  %v6211_v36 = vld [vmem:[%s9614_s6 + $0x240] sm:$0xf]  ;;  %v6571_v57 = vld [vmem:[%s9614_s6 + $0x244] sm:$0xf0] }
 0x38b   : > { %v7888_v62 = vpop.permute.xlu0 %3569  ;;  %v6212_v9 = vor.u32 %v6571_v57, %v6211_v36 }
 0x38c   : > { %v7916_v33 = vpop.permute.xlu1 %3605 }
 0x38d   : > { %2805 = vmatpush.bf16.msrb.mxu0 %v1697_v54  ;;  %6648 = vmatpush.bf16.msrb.mxu1 %v1697_v54 }
 0x38e   : > { %2499 = vmatmul.bf16.gmra.mxu2 %v5956_v7  ;;  %v6204_v7 = vor.u32 %v6569_v63, %v6203_v61  ;;  %v6219_v61 = vld [vmem:[%s9614_s6 + $0x250] sm:$0xf] }
 0x390   : > { %v7920_v23 = vpop.permute.xlu2 %3560 }
 0x391   : > { %2806 = vmatpush.bf16.msrb.mxu0 %v1696_v8  ;;  %6649 = vmatpush.bf16.msrb.mxu1 %v1696_v8  ;;  %v6567_v8 = vld [vmem:[%s9614_s6 + $0x224] sm:$0xf0] }
 0x392   : > { %v6196_v53 = vor.u32 %v6567_v8, %v6195_v6 }
 0x393   : > { %v7908_v22 = vpop.permute.xlu0 %3596 }
 0x394   : > { %v7938_v12 = vpop.permute.xlu1 %3632 }
 0x395   : > { %2807 = vmatpush.bf16.msrb.mxu0 %v1695_v25  ;;  %6650 = vmatpush.bf16.msrb.mxu1 %v1695_v25 }
 0x398   : > { %2629 = vmatmul.bf16.gmra.mxu3 %v6164_v5  ;;  %2808 = vmatmul.bf16.vlgmr.msrb.gmra.mxu0 %v5928_v19  ;;  %v7946_v54 = vpop.permute.xlu2 %3587  ;;  %v5979_v19 = vld [vmem:[%s9614_s6 + $0x70] sm:$0xf] }
 0x399   : > { %v5980_v13 = vor.u32 %v6513_v24, %v5979_v19  ;;  %v5995_v19 = vld [vmem:[%s9614_s6 + $0x90] sm:$0xf]  ;;  %v6517_v24 = vld [vmem:[%s9614_s6 + $0x94] sm:$0xf0] }
 0x39a   : > { %v5996_v63 = vor.u32 %v6517_v24, %v5995_v19  ;;  %v6519_v19 = vld [vmem:[%s9614_s6 + $0xa4] sm:$0xf0] }
 0x39b   : > { %v7858_v49 = vpop.f32.mrf.mxu3  ;;  %v7934_v38 = vpop.permute.xlu0 %3623 }
 0x39c   : > { %9629 = vst [vmem:[#allocation8_spill] sm:$0xff] %v7858_v49  ;;  %v7952_v35 = vpop.permute.xlu1 %3659 }
 0x39e   : > { %2504 = vmatmul.bf16.gmra.mxu2 %v5964_v60  ;;  %v2480_v60 = vpop.f32.mrf.mxu2 }
 0x3a0   : > { %v7968_v34 = vpop.permute.xlu2 %3614 }
 0x3a3   : > { %v7874_v42 = vpop.f32.mrf.mxu3  ;;  %v7950_v26 = vpop.permute.xlu0 %3650 }
 0x3a4   : > { %9630 = vst [vmem:[#allocation9_spill] sm:$0xff] %v7874_v42  ;;  %v7972_v5 = vpop.permute.xlu1 %3686 }
 0x3a6   : > { %v2482_v8 = vpop.f32.mrf.mxu2 }
 0x3a8   : > { %2634 = vmatmul.bf16.gmra.mxu3 %v6172_v11  ;;  %2813 = vmatmul.bf16.gmra.mxu0 %v5936_v0  ;;  %v7982_v31 = vpop.permute.xlu2 %3641  ;;  %v6508_v11 = vld [vmem:[%s9614_s6 + $0x54] sm:$0xf]  ;;  %v5965_v0 = vld [vmem:[%s9614_s6 + $0x58] sm:$0xf0] }
 0x3a9   : > { %v5968_v14 = vor.u32 %v6508_v11, %v5965_v0  ;;  %v6573_v11 = vld [vmem:[%s9614_s6 + $0x254] sm:$0xf0]  ;;  %v6512_v0 = vld [vmem:[%s9614_s6 + $0x74] sm:$0xf] }
 0x3ab   : > { %v7886_v4 = vpop.f32.mrf.mxu3  ;;  %v7970_v25 = vpop.permute.xlu0 %3677 }
 0x3ac   : > { %9631 = vst [vmem:[#allocation10_spill] sm:$0xff] %v7886_v4  ;;  %v7998_v2 = vpop.permute.xlu1 %3713 }
 0x3ae   : > { %2509 = vmatmul.bf16.gmra.mxu2 %v5972_v44  ;;  %v5976_v44 = vor.u32 %v6510_v41, %v5973_v37 }
 0x3b0   : > { %v8002_v55 = vpop.permute.xlu2 %3668 }
 0x3b3   : > { %v7904_v52 = vpop.f32.mrf.mxu3  ;;  %v7984_v59 = vpop.permute.xlu0 %3704 }
 0x3b4   : > { %9632 = vst [vmem:[#allocation11_spill] sm:$0xff] %v7904_v52  ;;  %v8014_v30 = vpop.permute.xlu1 %3740 }
 0x3b8   : > { %2639 = vmatmul.bf16.gmra.mxu3 %v6180_v29  ;;  %2818 = vmatmul.bf16.gmra.mxu0 %v5944_v21  ;;  %v5987_v29 = vld [vmem:[%s9614_s6 + $0x80] sm:$0xf]  ;;  %v6515_v21 = vld [vmem:[%s9614_s6 + $0x84] sm:$0xf0] }
 0x3b9   : > { %v5988_v48 = vor.u32 %v6515_v21, %v5987_v29  ;;  %v6220_v29 = vor.u32 %v6573_v11, %v6219_v61  ;;  %v6227_v61 = vld [vmem:[%s9614_s6 + $0x260] sm:$0xf]  ;;  %v6575_v11 = vld [vmem:[%s9614_s6 + $0x264] sm:$0xf0] }
 0x3bb   : > { %v7918_v46 = vpop.f32.mrf.mxu3  ;;  %v8004_v17 = vpop.permute.xlu0 %3731 }
 0x3bc   : > { %9633 = vst [vmem:[#allocation12_spill] sm:$0xff] %v7918_v46  ;;  %v8034_v6 = vpop.permute.xlu1 %3767  ;;  %v3539_v46 = vperm.slane %v7906_v3, %v7499_v32  ;;  %v6580_v3 = vld [vmem:[%s9614_s6 + $0x294] sm:$0xf] }
 0x3be   : > { %2514 = vmatmul.bf16.gmra.mxu2 %v5980_v13 }
 0x3c3   : > { %v7936_v47 = vpop.f32.mrf.mxu3  ;;  %v8032_v40 = vpop.permute.xlu0 %3758 }
 0x3c4   : > { %9634 = vst [vmem:[#allocation13_spill] sm:$0xff] %v7936_v47  ;;  %v8050_v13 = vpop.permute.xlu1 %3794 }
 0x3c8   : > { %2644 = vmatmul.bf16.gmra.mxu3 %v6188_v43  ;;  %2823 = vmatmul.bf16.gmra.mxu0 %v5952_v39  ;;  %v8028_v43 = vpop.permute.xlu2 %3695 }
 0x3cb   : > { %v7948_v16 = vpop.f32.mrf.mxu3 }
 0x3cc   : > { %9635 = vst [vmem:[#allocation14_spill] sm:$0xff] %v7948_v16  ;;  %v8072_v41 = vpop.permute.xlu1 %3821 }
 0x3ce   : > { %2519 = vmatmul.bf16.gmra.mxu2 %v5988_v48 }
 0x3d0   : > { %v8038_v1 = vpop.permute.xlu2 %3722 }
 0x3d3   : > { %v7966_v50 = vpop.f32.mrf.mxu3 }
 0x3d4   : > { %9636 = vst [vmem:[#allocation15_spill] sm:$0xff] %v7966_v50 }
 0x3d8   : > { %2649 = vmatmul.bf16.gmra.mxu3 %v6196_v53  ;;  %2828 = vmatmul.bf16.gmra.mxu0 %v5960_v51  ;;  %v8040_v53 = vpop.permute.xlu0 %3785  ;;  %v8042_v51 = vpop.f32.mrf.mxu2 }
 0x3d9   : > { %v8066_v48 = vpop.permute.xlu2 %3749 }
 0x3db   : > { %v7980_v27 = vpop.f32.mrf.mxu3 }
 0x3dc   : > { %9637 = vst [vmem:[#allocation16_spill] sm:$0xff] %v7980_v27 }
 0x3de   : > { %2524 = vmatmul.bf16.gmra.mxu2 %v5996_v63 }
 0x3e0   : > { %v8068_v36 = vpop.f32.mrf.mxu2  ;;  %v8070_v57 = vpop.permute.xlu0 %3812 }
 0x3e1   : > { %v8084_v24 = vpop.permute.xlu2 %3776 }
 0x3e3   : > { %v8000_v20 = vpop.f32.mrf.mxu3 }
 0x3e4   : > { %9638 = vst [vmem:[#allocation17_spill] sm:$0xff] %v8000_v20 }
 0x3e8   : > { %2654 = vmatmul.bf16.gmra.mxu3 %v6204_v7  ;;  %2833 = vmatmul.bf16.gmra.mxu0 %v5968_v14  ;;  %v5981_v7 = vld [vmem:[%s9614_s6 + $0x78] sm:$0xf0] }
 0x3e9   : > { %v5984_v21 = vor.u32 %v6512_v0, %v5981_v7  ;;  %v6514_v0 = vld [vmem:[%s9614_s6 + $0x84] sm:$0xf]  ;;  %v5989_v7 = vld [vmem:[%s9614_s6 + $0x88] sm:$0xf0]  ;;  %v8108_v50 = vpop.permute.xlu2 %3803 }
 0x3eb   : > { %v8006_v18 = vpop.f32.mrf.mxu3 }
 0x3ec   : > { %9639 = vst [vmem:[#allocation18_spill] sm:$0xff] %v8006_v18 }
 0x3f3   : > { %v8030_v39 = vpop.f32.mrf.mxu3 }
 0x3f4   : > { %9640 = vst [vmem:[#allocation19_spill] sm:$0xff] %v8030_v39 }
 0x3f8   : > { %2659 = vmatmul.bf16.gmra.mxu3 %v6212_v9  ;;  %2838 = vmatmul.bf16.gmra.mxu0 %v5976_v44  ;;  %v8076_v9 = vpop.f32.mrf.mxu2  ;;  %v6003_v44 = vld [vmem:[%s9614_s6 + $0xa0] sm:$0xf] }
 0x3f9   : > { %v6004_v63 = vor.u32 %v6519_v19, %v6003_v44  ;;  %v6228_v44 = vor.u32 %v6575_v11, %v6227_v61  ;;  %v5992_v19 = vor.u32 %v6514_v0, %v5989_v7  ;;  %v6578_v61 = vld [vmem:[%s9614_s6 + $0x284] sm:$0xf] }
 0x3fb   : > { %v8036_v15 = vpop.f32.mrf.mxu3  ;;  %2529 = vmatmul.bf16.gmra.mxu2 %v6004_v63 }
 0x3fc   : > { %9641 = vst [vmem:[#allocation20_spill] sm:$0xff] %v8036_v15  ;;  %v3521_v15 = vperm.slane %v7856_v45, %v7499_v32  ;;  %v6245_v45 = vld [vmem:[%s9614_s6 + $0x288] sm:$0xf0] }
 0x3fe   : > { %v4793_v27 = vunpack.c.l.bf16 %v3521_v15  ;;  %v3530_v15 = vperm.slane %v7860_v58, %v7499_v32 }
 0x400   : > { %v8106_v18 = vpop.f32.mrf.mxu2 }
 0x403   : > { %v8064_v14 = vpop.f32.mrf.mxu3 }
 0x404   : > { %9642 = vst [vmem:[#allocation21_spill] sm:$0xff] %v8064_v14 }
 0x408   : > { %2664 = vmatmul.bf16.gmra.mxu3 %v6220_v29  ;;  %2843 = vmatmul.bf16.gmra.mxu0 %v5984_v21  ;;  %v8098_v29 = vpop.permute.xlu0 %3839  ;;  %v8124_v7 = vpop.f32.mrf.mxu2 }
 0x40b   : > { %v8074_v37 = vpop.f32.mrf.mxu3 }
 0x40c   : > { %9643 = vst [vmem:[#allocation22_spill] sm:$0xff] %v8074_v37  ;;  %v8102_v37 = vpop.permute.xlu1 %3848 }
 0x413   : > { %v8100_v21 = vpop.f32.mrf.mxu3 }
 0x414   : > { %9644 = vst [vmem:[#allocation23_spill] sm:$0xff] %v8100_v21  ;;  %v8122_v0 = vpop.permute.xlu1 %3875 }
 0x415   : > { %v2809_v14 = vpop.f32.mrf.mxu0  ;;  %9647 = vst [vmem:[#allocation26_spill] sm:$0xff] %v8122_v0 }
 0x416   : > { %v2810_v39 = vadd.f32 %v2809_v14, %v2480_v60  ;;  %v8118_v60 = vpop.permute.xlu0 %3866 }
 0x417   : > { %9646 = vst [vmem:[#allocation25_spill] sm:$0xff] %v8118_v60 }
 0x418   : > { %v3129_v20 = vpack.c.bf16 %v2810_v39, %v2810_v39  ;;  %2669 = vmatmul.bf16.gmra.mxu3 %v6228_v44  ;;  %2848 = vmatmul.bf16.gmra.mxu0 %v5992_v19  ;;  %v6248_v39 = vor.u32 %v6578_v61, %v6245_v45  ;;  %v6011_v44 = vld [vmem:[%s9614_s6 + $0xb0] sm:$0xf]  ;;  %v6521_v19 = vld [vmem:[%s9614_s6 + $0xb4] sm:$0xf0]  ;;  %v6516_v61 = vld [vmem:[%s9614_s6 + $0x94] sm:$0xf] }
 0x419   : > { %v6012_v58 = vor.u32 %v6521_v19, %v6011_v44  ;;  %v5997_v45 = vld [vmem:[%s9614_s6 + $0x98] sm:$0xf0] }
 0x41a   : > { %v4665_v63 = vunpack.c.l.bf16 %v3129_v20  ;;  %3008 = vmatmul.bf16.vlgmr.msrb.gmra.mxu1 %v6248_v39  ;;  %v4794_v39 = vunpack.c.l.bf16 %v3530_v15  ;;  %v6000_v21 = vor.u32 %v6516_v61, %v5997_v45  ;;  %v8153_v15 = vpop.f32.mrf.mxu2 }
 0x41b   : > { %v8110_v16 = vpop.f32.mrf.mxu3  ;;  %2534 = vmatmul.bf16.gmra.mxu2 %v6012_v58 }
 0x41c   : > { %9645 = vst [vmem:[#allocation24_spill] sm:$0xff] %v8110_v16  ;;  %v4921_v14 = vadd.f32 %v4793_v27, %v4665_v63  ;;  %v6235_v63 = vld [vmem:[%s9614_s6 + $0x270] sm:$0xf]  ;;  %v8146_v16 = vpop.permute.xlu2 %3830 }
 0x41d   : > { %v2811_v11 = vpop.f32.mrf.mxu0 }
 0x41e   : > { %v2812_v20 = vadd.f32 %v2811_v11, %v2482_v8  ;;  %v6577_v8 = vld [vmem:[%s9614_s6 + $0x274] sm:$0xf0]  ;;  %v8150_v52 = vpop.permute.xlu0 %3893  ;;  %v5305_v4 = vmax.f32 %v4921_v14, 0.0 }
 0x41f   : > { %v6236_v19 = vor.u32 %v6577_v8, %v6235_v63  ;;  %9649 = vst [vmem:[#allocation28_spill] sm:$0xff] %v8150_v52  ;;  %v4795_v63 = vunpack.c.l.bf16 %v3539_v46 }
 0x420   : > { %v3130_v27 = vpack.c.bf16 %v2812_v20, %v2812_v20 }
 0x422   : > { %v4666_v11 = vunpack.c.l.bf16 %v3130_v27  ;;  %v8155_v27 = vpop.permute.xlu1 %3902  ;;  %v8172_v46 = vpop.f32.mrf.mxu2 }
 0x423   : > { %v8144_v20 = vpop.f32.mrf.mxu3  ;;  %9650 = vst [vmem:[#allocation29_spill] sm:$0xff] %v8155_v27 }
 0x424   : > { %9648 = vst [vmem:[#allocation27_spill] sm:$0xff] %v8144_v20  ;;  %v4922_v44 = vadd.f32 %v4794_v39, %v4666_v11  ;;  %v6523_v11 = vld [vmem:[%s9614_s6 + $0xc4] sm:$0xf0]  ;;  %v3557_v20 = vperm.slane %v7878_v28, %v7499_v32  ;;  %v6582_v28 = vld [vmem:[%s9614_s6 + $0x2a4] sm:$0xf] }
 0x425   : > { %v2814_v47 = vpop.f32.mrf.mxu0 }
 0x426   : > { %v5306_v42 = vmax.f32 %v4922_v44, 0.0  ;;  %v2815_v49 = vadd.f32 %v2814_v47, %v8042_v51  ;;  %v6253_v47 = vld [vmem:[%s9614_s6 + $0x298] sm:$0xf0]  ;;  %v8180_v44 = vpop.permute.xlu0 %3920 }
 0x427   : > { %v6256_v14 = vor.u32 %v6580_v3, %v6253_v47  ;;  %9652 = vst [vmem:[#allocation31_spill] sm:$0xff] %v8180_v44 }
 0x428   : > { %v3131_v58 = vpack.c.bf16 %v2815_v49, %v2815_v49  ;;  %2674 = vmatmul.bf16.gmra.mxu3 %v6236_v19  ;;  %2853 = vmatmul.bf16.gmra.mxu0 %v6000_v21  ;;  %v8157_v39 = vpack.c.bf16 %v5306_v42, %v5305_v4  ;;  %v3548_v49 = vperm.slane %v7876_v56, %v7499_v32  ;;  %v8169_v42 = vpop.permute.xlu2 %3857  ;;  %v6019_v21 = vld [vmem:[%s9614_s6 + $0xc0] sm:$0xf] }
 0x429   : > { %v6243_v56 = vld [vmem:[%s9614_s6 + $0x280] sm:$0xf] }
 0x42a   : > { %v4667_v8 = vunpack.c.l.bf16 %v3131_v58  ;;  %3013 = vmatmul.bf16.gmra.mxu1 %v6256_v14  ;;  %v6020_v58 = vor.u32 %v6523_v11, %v6019_v21  ;;  %v4796_v3 = vunpack.c.l.bf16 %v3548_v49  ;;  %v8194_v47 = vpop.permute.xlu1 %3929  ;;  %v8201_v0 = vpop.f32.mrf.mxu2 }
 0x42b   : > { %v8159_v61 = vpop.f32.mrf.mxu3  ;;  %9653 = vst [vmem:[#allocation32_spill] sm:$0xff] %v8194_v47 }
 0x42c   : > { %9651 = vst [vmem:[#allocation30_spill] sm:$0xff] %v8159_v61  ;;  %v4923_v51 = vadd.f32 %v4795_v63, %v4667_v8  ;;  %v6518_v63 = vld [vmem:[%s9614_s6 + $0xa4] sm:$0xf]  ;;  %v6005_v8 = vld [vmem:[%s9614_s6 + $0xa8] sm:$0xf0]  ;;  %2539 = vmatmul.bf16.gmra.mxu2 %v6020_v58  ;;  %v4797_v58 = vunpack.c.l.bf16 %v3557_v20  ;;  %v3566_v20 = vperm.slane %v7920_v23, %v7499_v32 }
 0x42d   : > { %v2816_v45 = vpop.f32.mrf.mxu0  ;;  %v6008_v11 = vor.u32 %v6518_v63, %v6005_v8  ;;  %v6581_v23 = vld [vmem:[%s9614_s6 + $0x294] sm:$0xf0] }
 0x42e   : > { %v2817_v4 = vadd.f32 %v2816_v45, %v8068_v36  ;;  %v6579_v36 = vld [vmem:[%s9614_s6 + $0x284] sm:$0xf0]  ;;  %v5307_v44 = vmax.f32 %v4923_v51, 0.0 }
 0x42f   : > { %v6244_v21 = vor.u32 %v6579_v36, %v6243_v56  ;;  %v8207_v56 = vpop.permute.xlu0 %3947 }
 0x430   : > { %v3132_v19 = vpack.c.bf16 %v2817_v4, %v2817_v4  ;;  %v8203_v49 = vpop.permute.xlu2 %3884  ;;  %9656 = vst [vmem:[#allocation35_spill] sm:$0xff] %v8207_v56 }
 0x431   : > { %9655 = vst [vmem:[#allocation34_spill] sm:$0xff] %v8203_v49 }
 0x432   : > { %v4668_v14 = vunpack.c.l.bf16 %v3132_v19  ;;  %v8222_v8 = vpop.f32.mrf.mxu2 }
 0x433   : > { %v8196_v45 = vpop.f32.mrf.mxu3 }
 0x434   : > { %9654 = vst [vmem:[#allocation33_spill] sm:$0xff] %v8196_v45  ;;  %v4924_v4 = vadd.f32 %v4796_v3, %v4668_v14  ;;  %v6027_v3 = vld [vmem:[%s9614_s6 + $0xd0] sm:$0xf] }
 0x435   : > { %v2819_v61 = vpop.f32.mrf.mxu0 }
 0x436   : > { %v5308_v27 = vmax.f32 %v4924_v4, 0.0  ;;  %v2820_v52 = vadd.f32 %v2819_v61, %v8076_v9  ;;  %v6261_v9 = vld [vmem:[%s9614_s6 + $0x2a8] sm:$0xf0]  ;;  %v8217_v61 = vpop.permute.xlu1 %3956  ;;  %v6251_v4 = vld [vmem:[%s9614_s6 + $0x290] sm:$0xf] }
 0x437   : > { %9658 = vst [vmem:[#allocation37_spill] sm:$0xff] %v8217_v61  ;;  %v6264_v51 = vor.u32 %v6582_v28, %v6261_v9 }
 0x438   : > { %v3133_v47 = vpack.c.bf16 %v2820_v52, %v2820_v52  ;;  %2679 = vmatmul.bf16.gmra.mxu3 %v6244_v21  ;;  %2858 = vmatmul.bf16.gmra.mxu0 %v6008_v11  ;;  %v8205_v19 = vpack.c.bf16 %v5308_v27, %v5307_v44  ;;  %v6013_v11 = vld [vmem:[%s9614_s6 + $0xb8] sm:$0xf0] }
 0x43a   : > { %v4669_v36 = vunpack.c.l.bf16 %v3133_v47  ;;  %3018 = vmatmul.bf16.gmra.mxu1 %v6264_v51  ;;  %v6525_v47 = vld [vmem:[%s9614_s6 + $0xd4] sm:$0xf0]  ;;  %v8246_v51 = vpop.permute.xlu0 %3974 }
 0x43b   : > { %v8209_v63 = vpop.f32.mrf.mxu3  ;;  %v6028_v21 = vor.u32 %v6525_v47, %v6027_v3  ;;  %9661 = vst [vmem:[#allocation40_spill] sm:$0xff] %v8246_v51 }
 0x43c   : > { %9657 = vst [vmem:[#allocation36_spill] sm:$0xff] %v8209_v63  ;;  %v4925_v52 = vadd.f32 %v4797_v58, %v4669_v36  ;;  %v4798_v58 = vunpack.c.l.bf16 %v3566_v20  ;;  %v8242_v36 = vpop.permute.xlu2 %3911  ;;  %v3575_v63 = vperm.slane %v7888_v62, %v7499_v32  ;;  %v6584_v62 = vld [vmem:[%s9614_s6 + $0x2b4] sm:$0xf] }
 0x43d   : > { %v2821_v27 = vpop.f32.mrf.mxu0  ;;  %9659 = vst [vmem:[#allocation38_spill] sm:$0xff] %v8242_v36  ;;  %2544 = vmatmul.bf16.gmra.mxu2 %v6028_v21  ;;  %v8253_v36 = vpop.f32.mrf.mxu2 }
 0x43e   : > { %v2822_v44 = vadd.f32 %v2821_v27, %v8106_v18  ;;  %v6520_v18 = vld [vmem:[%s9614_s6 + $0xb4] sm:$0xf]  ;;  %v8250_v45 = vpop.permute.xlu1 %3983  ;;  %v5309_v61 = vmax.f32 %v4925_v52, 0.0  ;;  %v6269_v52 = vld [vmem:[%s9614_s6 + $0x2b8] sm:$0xf0] }
 0x43f   : > { %v6016_v3 = vor.u32 %v6520_v18, %v6013_v11  ;;  %9662 = vst [vmem:[#allocation41_spill] sm:$0xff] %v8250_v45  ;;  %v6272_v11 = vor.u32 %v6584_v62, %v6269_v52 }
 0x440   : > { %v3134_v14 = vpack.c.bf16 %v2822_v44, %v2822_v44  ;;  %v6252_v44 = vor.u32 %v6581_v23, %v6251_v4 }
 0x442   : > { %v4670_v28 = vunpack.c.l.bf16 %v3134_v14 }
 0x443   : > { %v8244_v9 = vpop.f32.mrf.mxu3 }
 0x444   : > { %9660 = vst [vmem:[#allocation39_spill] sm:$0xff] %v8244_v9  ;;  %v4926_v27 = vadd.f32 %v4798_v58, %v4670_v28  ;;  %v4799_v58 = vunpack.c.l.bf16 %v3575_v63  ;;  %v8269_v63 = vpop.permute.xlu0 %4001 }
 0x445   : > { %v2824_v47 = vpop.f32.mrf.mxu0  ;;  %9665 = vst [vmem:[#allocation44_spill] sm:$0xff] %v8269_v63 }
 0x446   : > { %v5310_v56 = vmax.f32 %v4926_v27, 0.0  ;;  %v2825_v20 = vadd.f32 %v2824_v47, %v8124_v7  ;;  %v8265_v7 = vpop.permute.xlu2 %3938  ;;  %v8272_v27 = vpop.f32.mrf.mxu2 }
 0x447   : > { %9664 = vst [vmem:[#allocation43_spill] sm:$0xff] %v8265_v7  ;;  %v8280_v47 = vpop.permute.xlu1 %4010 }
 0x448   : > { %v3135_v14 = vpack.c.bf16 %v2825_v20, %v2825_v20  ;;  %2684 = vmatmul.bf16.gmra.mxu3 %v6252_v44  ;;  %2863 = vmatmul.bf16.gmra.mxu0 %v6016_v3  ;;  %v8255_v21 = vpack.c.bf16 %v5310_v56, %v5309_v61  ;;  %v3584_v56 = vperm.slane %v7890_v10, %v7499_v32  ;;  %v6035_v44 = vld [vmem:[%s9614_s6 + $0xe0] sm:$0xf]  ;;  %v6527_v3 = vld [vmem:[%s9614_s6 + $0xe4] sm:$0xf0] }
 0x449   : > { %9666 = vst [vmem:[#allocation45_spill] sm:$0xff] %v8280_v47  ;;  %v6259_v10 = vld [vmem:[%s9614_s6 + $0x2a0] sm:$0xf] }
 0x44a   : > { %v4671_v4 = vunpack.c.l.bf16 %v3135_v14  ;;  %3023 = vmatmul.bf16.gmra.mxu1 %v6272_v11  ;;  %v6036_v14 = vor.u32 %v6527_v3, %v6035_v44  ;;  %v4800_v62 = vunpack.c.l.bf16 %v3584_v56 }
 0x44b   : > { %v8257_v23 = vpop.f32.mrf.mxu3 }
 0x44c   : > { %9663 = vst [vmem:[#allocation42_spill] sm:$0xff] %v8257_v23  ;;  %v4927_v18 = vadd.f32 %v4799_v58, %v4671_v4  ;;  %v6522_v58 = vld [vmem:[%s9614_s6 + $0xc4] sm:$0xf]  ;;  %v6021_v4 = vld [vmem:[%s9614_s6 + $0xc8] sm:$0xf0]  ;;  %v3593_v23 = vperm.slane %v7946_v54, %v7499_v32  ;;  %v8303_v56 = vpop.permute.xlu0 %4028 }
 0x44d   : > { %v2826_v28 = vpop.f32.mrf.mxu0  ;;  %2549 = vmatmul.bf16.gmra.mxu2 %v6036_v14  ;;  %v6024_v44 = vor.u32 %v6522_v58, %v6021_v4  ;;  %9669 = vst [vmem:[#allocation48_spill] sm:$0xff] %v8303_v56 }
 0x44e   : > { %v2827_v61 = vadd.f32 %v2826_v28, %v8153_v15  ;;  %v6583_v15 = vld [vmem:[%s9614_s6 + $0x2a4] sm:$0xf0]  ;;  %v8298_v9 = vpop.permute.xlu2 %3965  ;;  %v5311_v47 = vmax.f32 %v4927_v18, 0.0  ;;  %v8301_v51 = vpop.f32.mrf.mxu2  ;;  %v6586_v18 = vld [vmem:[%s9614_s6 + $0x2c4] sm:$0xf] }
 0x44f   : > { %9668 = vst [vmem:[#allocation47_spill] sm:$0xff] %v8298_v9 }
 0x450   : > { %v3136_v20 = vpack.c.bf16 %v2827_v61, %v2827_v61  ;;  %v6260_v61 = vor.u32 %v6583_v15, %v6259_v10  ;;  %v4801_v10 = vunpack.c.l.bf16 %v3593_v23  ;;  %v8307_v15 = vpop.permute.xlu1 %4037 }
 0x451   : > { %9670 = vst [vmem:[#allocation49_spill] sm:$0xff] %v8307_v15 }
 0x452   : > { %v4672_v52 = vunpack.c.l.bf16 %v3136_v20 }
 0x453   : > { %v8294_v11 = vpop.f32.mrf.mxu3 }
 0x454   : > { %9667 = vst [vmem:[#allocation46_spill] sm:$0xff] %v8294_v11  ;;  %v4928_v28 = vadd.f32 %v4800_v62, %v4672_v52  ;;  %v6529_v52 = vld [vmem:[%s9614_s6 + $0xf4] sm:$0xf0] }
 0x455   : > { %v2829_v3 = vpop.f32.mrf.mxu0 }
 0x456   : > { %v5312_v63 = vmax.f32 %v4928_v28, 0.0  ;;  %v2830_v45 = vadd.f32 %v2829_v3, %v8172_v46  ;;  %v6277_v46 = vld [vmem:[%s9614_s6 + $0x2c8] sm:$0xf0]  ;;  %v8326_v28 = vpop.permute.xlu2 %3992 }
 0x457   : > { %9672 = vst [vmem:[#allocation51_spill] sm:$0xff] %v8326_v28 }
 0x458   : > { %v3137_v20 = vpack.c.bf16 %v2830_v45, %v2830_v45  ;;  %2689 = vmatmul.bf16.gmra.mxu3 %v6260_v61  ;;  %2868 = vmatmul.bf16.gmra.mxu0 %v6024_v44  ;;  %v8305_v14 = vpack.c.bf16 %v5312_v63, %v5311_v47  ;;  %v6280_v45 = vor.u32 %v6586_v18, %v6277_v46  ;;  %v6043_v47 = vld [vmem:[%s9614_s6 + $0xf0] sm:$0xf]  ;;  %v8342_v18 = vpop.permute.xlu0 %4055 }
 0x459   : > { %v3602_v63 = vperm.slane %v7908_v22, %v7499_v32  ;;  %v6267_v44 = vld [vmem:[%s9614_s6 + $0x2b0] sm:$0xf]  ;;  %v6044_v3 = vor.u32 %v6529_v52, %v6043_v47  ;;  %v6585_v22 = vld [vmem:[%s9614_s6 + $0x2b4] sm:$0xf0]  ;;  %9673 = vst [vmem:[#allocation52_spill] sm:$0xff] %v8342_v18 }
 0x45a   : > { %v4673_v58 = vunpack.c.l.bf16 %v3137_v20  ;;  %3028 = vmatmul.bf16.gmra.mxu1 %v6280_v45  ;;  %v6029_v20 = vld [vmem:[%s9614_s6 + $0xd8] sm:$0xf0]  ;;  %v6268_v47 = vor.u32 %v6585_v22, %v6267_v44 }
 0x45b   : > { %v8309_v54 = vpop.f32.mrf.mxu3  ;;  %v6285_v44 = vld [vmem:[%s9614_s6 + $0x2d8] sm:$0xf0] }
 0x45c   : > { %9671 = vst [vmem:[#allocation50_spill] sm:$0xff] %v8309_v54  ;;  %v4929_v4 = vadd.f32 %v4801_v10, %v4673_v58  ;;  %v8340_v10 = vpop.f32.mrf.mxu2  ;;  %v4802_v58 = vunpack.c.l.bf16 %v3602_v63 }
 0x45d   : > { %v2831_v62 = vpop.f32.mrf.mxu0  ;;  %2554 = vmatmul.bf16.gmra.mxu2 %v6044_v3  ;;  %v6588_v3 = vld [vmem:[%s9614_s6 + $0x2d4] sm:$0xf] }
 0x45e   : > { %v2832_v23 = vadd.f32 %v2831_v62, %v8201_v0  ;;  %v6524_v0 = vld [vmem:[%s9614_s6 + $0xd4] sm:$0xf]  ;;  %v8346_v62 = vpop.permute.xlu1 %4064  ;;  %v5313_v11 = vmax.f32 %v4929_v4, 0.0  ;;  %v8352_v63 = vpop.permute.xlu2 %4019  ;;  %v6288_v22 = vor.u32 %v6588_v3, %v6285_v44 }
 0x45f   : > { %9675 = vst [vmem:[#allocation54_spill] sm:$0xff] %v8346_v62  ;;  %v6032_v52 = vor.u32 %v6524_v0, %v6029_v20  ;;  %v6531_v20 = vld [vmem:[%s9614_s6 + $0x104] sm:$0xf0] }
 0x460   : > { %v3138_v61 = vpack.c.bf16 %v2832_v23, %v2832_v23  ;;  %9676 = vst [vmem:[#allocation55_spill] sm:$0xff] %v8352_v63  ;;  %v8364_v4 = vpop.permute.xlu0 %4082 }
 0x461   : > { %9678 = vst [vmem:[#allocation57_spill] sm:$0xff] %v8364_v4 }
 0x462   : > { %v4674_v46 = vunpack.c.l.bf16 %v3138_v61 }
 0x463   : > { %v8344_v45 = vpop.f32.mrf.mxu3 }
 0x464   : > { %9674 = vst [vmem:[#allocation53_spill] sm:$0xff] %v8344_v45  ;;  %v4930_v23 = vadd.f32 %v4802_v58, %v4674_v46  ;;  %v8356_v61 = vpop.f32.mrf.mxu2  ;;  %v6275_v58 = vld [vmem:[%s9614_s6 + $0x2c0] sm:$0xf] }
 0x465   : > { %v8348_v54 = vpop.f32.mrf.mxu0 }
 0x466   : > { %v5314_v15 = vmax.f32 %v4930_v23, 0.0  ;;  %v6587_v23 = vld [vmem:[%s9614_s6 + $0x2c4] sm:$0xf0]  ;;  %v8388_v44 = vpop.permute.xlu2 %4046 }
 0x467   : > { %9681 = vst [vmem:[#allocation60_spill] sm:$0xff] %v8388_v44 }
 0x468   : > { %2694 = vmatmul.bf16.gmra.mxu3 %v6268_v47  ;;  %2873 = vmatmul.bf16.gmra.mxu0 %v6032_v52  ;;  %v8350_v56 = vpack.c.bf16 %v5314_v15, %v5313_v11  ;;  %v8366_v11 = vpop.permute.xlu1 %4091  ;;  %v6051_v15 = vld [vmem:[%s9614_s6 + $0x100] sm:$0xf]  ;;  %v6526_v47 = vld [vmem:[%s9614_s6 + $0xe4] sm:$0xf]  ;;  %v6037_v52 = vld [vmem:[%s9614_s6 + $0xe8] sm:$0xf0]  ;;  %v8392_v45 = vpop.permute.xlu0 %4109 }
 0x469   : > { %9679 = vst [vmem:[#allocation58_spill] sm:$0xff] %v8366_v11  ;;  %v6052_v46 = vor.u32 %v6531_v20, %v6051_v15 }
 0x46a   : > { %3033 = vmatmul.bf16.gmra.mxu1 %v6288_v22  ;;  %v6276_v22 = vor.u32 %v6587_v23, %v6275_v58  ;;  %9682 = vst [vmem:[#allocation61_spill] sm:$0xff] %v8392_v45  ;;  %v6293_v58 = vld [vmem:[%s9614_s6 + $0x2e8] sm:$0xf0]  ;;  %v6045_v45 = vld [vmem:[%s9614_s6 + $0xf8] sm:$0xf0] }
 0x46b   : > { %v8354_v18 = vpop.f32.mrf.mxu3 }
 0x46c   : > { %9677 = vst [vmem:[#allocation56_spill] sm:$0xff] %v8354_v18  ;;  %v6040_v18 = vor.u32 %v6526_v47, %v6037_v52  ;;  %v8390_v20 = vpop.f32.mrf.mxu2 }
 0x46d   : > { %v2836_v0 = vpop.f32.mrf.mxu0  ;;  %2559 = vmatmul.bf16.gmra.mxu2 %v6052_v46  ;;  %v6590_v46 = vld [vmem:[%s9614_s6 + $0x2e4] sm:$0xf] }
 0x46e   : > { %v6296_v23 = vor.u32 %v6590_v46, %v6293_v58  ;;  %v6283_v46 = vld [vmem:[%s9614_s6 + $0x2d0] sm:$0xf] }
 0x470   : > { %v8394_v11 = vpop.permute.xlu1 %4118 }
 0x471   : > { %9683 = vst [vmem:[#allocation62_spill] sm:$0xff] %v8394_v11  ;;  %v6589_v11 = vld [vmem:[%s9614_s6 + $0x2d4] sm:$0xf0] }
 0x472   : > { %v6284_v62 = vor.u32 %v6589_v11, %v6283_v46 }
 0x473   : > { %v8386_v3 = vpop.f32.mrf.mxu3 }
 0x474   : > { %9680 = vst [vmem:[#allocation59_spill] sm:$0xff] %v8386_v3  ;;  %v8404_v52 = vpop.f32.mrf.mxu2  ;;  %v8406_v3 = vpop.permute.xlu2 %4073 }
 0x475   : > { %v2839_v15 = vpop.f32.mrf.mxu0  ;;  %9685 = vst [vmem:[#allocation64_spill] sm:$0xff] %v8406_v3 }
 0x478   : > { %2699 = vmatmul.bf16.gmra.mxu3 %v6276_v22  ;;  %2878 = vmatmul.bf16.gmra.mxu0 %v6040_v18  ;;  %v6059_v18 = vld [vmem:[%s9614_s6 + $0x110] sm:$0xf]  ;;  %v6533_v22 = vld [vmem:[%s9614_s6 + $0x114] sm:$0xf0]  ;;  %v8428_v3 = vpop.permute.xlu1 %4145 }
 0x479   : > { %v6060_v58 = vor.u32 %v6533_v22, %v6059_v18  ;;  %9687 = vst [vmem:[#allocation66_spill] sm:$0xff] %v8428_v3  ;;  %v2840_v3 = vadd.f32 %v2839_v15, %v8272_v27 }
 0x47a   : > { %3038 = vmatmul.bf16.gmra.mxu1 %v6296_v23  ;;  %v6528_v23 = vld [vmem:[%s9614_s6 + $0xf4] sm:$0xf] }
 0x47b   : > { %v8396_v4 = vpop.f32.mrf.mxu3  ;;  %v6048_v44 = vor.u32 %v6528_v23, %v6045_v45  ;;  %v6592_v45 = vld [vmem:[%s9614_s6 + $0x2f4] sm:$0xf]  ;;  %v3141_v46 = vpack.c.bf16 %v2840_v3, %v2840_v3 }
 0x47c   : > { %9684 = vst [vmem:[#allocation63_spill] sm:$0xff] %v8396_v4  ;;  %v8414_v4 = vpop.permute.xlu0 %4136  ;;  %v8432_v22 = vpop.f32.mrf.mxu2 }
 0x47d   : > { %v2841_v47 = vpop.f32.mrf.mxu0  ;;  %9686 = vst [vmem:[#allocation65_spill] sm:$0xff] %v8414_v4  ;;  %2564 = vmatmul.bf16.gmra.mxu2 %v6060_v58  ;;  %v8435_v28 = vpop.permute.xlu2 %4100 }
 0x47e   : > { %9689 = vst [vmem:[#allocation68_spill] sm:$0xff] %v8435_v28  ;;  %v2842_v9 = vadd.f32 %v2841_v47, %v8301_v51  ;;  %v3647_v51 = vperm.slane %v7982_v31, %v7499_v32  ;;  %v3656_v47 = vperm.slane %v7950_v26, %v7499_v32 }
 0x483   : > { %v8430_v4 = vpop.f32.mrf.mxu3 }
 0x484   : > { %9688 = vst [vmem:[#allocation67_spill] sm:$0xff] %v8430_v4  ;;  %v8438_v7 = vpop.permute.xlu0 %4163  ;;  %v2837_v4 = vadd.f32 %v2836_v0, %v8253_v36  ;;  %v3638_v36 = vperm.slane %v7938_v12, %v7499_v32  ;;  %v8458_v15 = vpop.f32.mrf.mxu2  ;;  %v6067_v12 = vld [vmem:[%s9614_s6 + $0x120] sm:$0xf] }
 0x485   : > { %v2844_v18 = vpop.f32.mrf.mxu0  ;;  %9690 = vst [vmem:[#allocation69_spill] sm:$0xff] %v8438_v7 }
 0x486   : > { %v2845_v63 = vadd.f32 %v2844_v18, %v8340_v10  ;;  %v6301_v10 = vld [vmem:[%s9614_s6 + $0x2f8] sm:$0xf0]  ;;  %v3140_v18 = vpack.c.bf16 %v2837_v4, %v2837_v4  ;;  %v4806_v4 = vunpack.c.l.bf16 %v3638_v36  ;;  %v3611_v36 = vperm.slane %v7916_v33, %v7499_v32 }
 0x487   : > { %v6304_v27 = vor.u32 %v6592_v45, %v6301_v10  ;;  %v6591_v10 = vld [vmem:[%s9614_s6 + $0x2e4] sm:$0xf0] }
 0x488   : > { %2704 = vmatmul.bf16.gmra.mxu3 %v6284_v62  ;;  %2883 = vmatmul.bf16.gmra.mxu0 %v6048_v44  ;;  %v3143_v58 = vpack.c.bf16 %v2845_v63, %v2845_v63  ;;  %v8452_v62 = vpop.permute.xlu1 %4172  ;;  %v3142_v44 = vpack.c.bf16 %v2842_v9, %v2842_v9  ;;  %v2835_v63 = vadd.f32 %v8348_v54, %v8222_v8  ;;  %v6535_v8 = vld [vmem:[%s9614_s6 + $0x124] sm:$0xf0]  ;;  %v4807_v54 = vunpack.c.l.bf16 %v3647_v51  ;;  %v6530_v51 = vld [vmem:[%s9614_s6 + $0x104] sm:$0xf] }
 0x489   : > { %9692 = vst [vmem:[#allocation71_spill] sm:$0xff] %v8452_v62  ;;  %v3629_v9 = vperm.slane %v7934_v38, %v7499_v32  ;;  %v6068_v3 = vor.u32 %v6535_v8, %v6067_v12  ;;  %v3620_v38 = vperm.slane %v7968_v34, %v7499_v32  ;;  %v4676_v8 = vunpack.c.l.bf16 %v3140_v18 }
 0x48a   : > { %v4679_v23 = vunpack.c.l.bf16 %v3143_v58  ;;  %3043 = vmatmul.bf16.gmra.mxu1 %v6304_v27  ;;  %v4678_v45 = vunpack.c.l.bf16 %v3142_v44  ;;  %v3139_v58 = vpack.c.bf16 %v2835_v63, %v2835_v63  ;;  %v6053_v44 = vld [vmem:[%s9614_s6 + $0x108] sm:$0xf0]  ;;  %v4808_v27 = vunpack.c.l.bf16 %v3656_v47 }
 0x48b   : > { %v8442_v11 = vpop.f32.mrf.mxu3  ;;  %v4805_v63 = vunpack.c.l.bf16 %v3629_v9  ;;  %v6056_v60 = vor.u32 %v6530_v51, %v6053_v44  ;;  %v4804_v47 = vunpack.c.l.bf16 %v3620_v38 }
 0x48c   : > { %9691 = vst [vmem:[#allocation70_spill] sm:$0xff] %v8442_v11  ;;  %v4935_v12 = vadd.f32 %v4807_v54, %v4679_v23  ;;  %v8491_v62 = vpop.permute.xlu0 %4190  ;;  %v4934_v7 = vadd.f32 %v4806_v4, %v4678_v45  ;;  %v4675_v23 = vunpack.c.l.bf16 %v3139_v58 }
 0x48d   : > { %v2846_v0 = vpop.f32.mrf.mxu0  ;;  %2569 = vmatmul.bf16.gmra.mxu2 %v6068_v3  ;;  %9695 = vst [vmem:[#allocation74_spill] sm:$0xff] %v8491_v62  ;;  %v4803_v62 = vunpack.c.l.bf16 %v3611_v36  ;;  %v4932_v45 = vadd.f32 %v4804_v47, %v4676_v8  ;;  %v6075_v47 = vld [vmem:[%s9614_s6 + $0x130] sm:$0xf] }
 0x48e   : > { %v2847_v31 = vadd.f32 %v2846_v0, %v8356_v61  ;;  %v6291_v61 = vld [vmem:[%s9614_s6 + $0x2e0] sm:$0xf]  ;;  %v8485_v0 = vpop.permute.xlu2 %4127  ;;  %v5319_v9 = vmax.f32 %v4935_v12, 0.0  ;;  %v5318_v4 = vmax.f32 %v4934_v7, 0.0  ;;  %v6309_v7 = vld [vmem:[%s9614_s6 + $0x308] sm:$0xf0] }
 0x48f   : > { %9693 = vst [vmem:[#allocation72_spill] sm:$0xff] %v8485_v0  ;;  %v6292_v49 = vor.u32 %v6591_v10, %v6291_v61 }
 0x490   : > { %v3144_v26 = vpack.c.bf16 %v2847_v31, %v2847_v31  ;;  %v4677_v31 = vunpack.c.l.bf16 %v3141_v46  ;;  %v3665_v46 = vperm.slane %v7952_v35, %v7499_v32  ;;  %v8497_v3 = vpop.permute.xlu1 %4199  ;;  %v4931_v35 = vadd.f32 %v4803_v62, %v4675_v23 }
 0x491   : > { %9696 = vst [vmem:[#allocation75_spill] sm:$0xff] %v8497_v3 }
 0x492   : > { %v4680_v34 = vunpack.c.l.bf16 %v3144_v26  ;;  %v8495_v26 = vpop.f32.mrf.mxu2  ;;  %v4933_v33 = vadd.f32 %v4805_v63, %v4677_v31  ;;  %v4809_v38 = vunpack.c.l.bf16 %v3665_v46  ;;  %v5315_v63 = vmax.f32 %v4931_v35, 0.0  ;;  %v6537_v46 = vld [vmem:[%s9614_s6 + $0x134] sm:$0xf0] }
 0x493   : > { %v8489_v11 = vpop.f32.mrf.mxu3 }
 0x494   : > { %9694 = vst [vmem:[#allocation73_spill] sm:$0xff] %v8489_v11  ;;  %v4936_v28 = vadd.f32 %v4808_v27, %v4680_v34  ;;  %v5317_v58 = vmax.f32 %v4933_v33, 0.0  ;;  %v3674_v34 = vperm.slane %v8002_v55, %v7499_v32  ;;  %v8516_v36 = vpop.permute.xlu0 %4217  ;;  %v6299_v55 = vld [vmem:[%s9614_s6 + $0x2f0] sm:$0xf] }
 0x495   : > { %v2849_v54 = vpop.f32.mrf.mxu0  ;;  %9699 = vst [vmem:[#allocation78_spill] sm:$0xff] %v8516_v36  ;;  %v3719_v36 = vperm.slane %v7998_v2, %v7499_v32 }
 0x496   : > { %v5320_v18 = vmax.f32 %v4936_v28, 0.0  ;;  %v2850_v11 = vadd.f32 %v2849_v54, %v8390_v20  ;;  %v6594_v28 = vld [vmem:[%s9614_s6 + $0x304] sm:$0xf]  ;;  %v8510_v20 = vpop.permute.xlu2 %4154 }
 0x497   : > { %v8502_v27 = vpop.f32.mrf.mxu1  ;;  %9698 = vst [vmem:[#allocation77_spill] sm:$0xff] %v8510_v20  ;;  %v6312_v62 = vor.u32 %v6594_v28, %v6309_v7 }
 0x498   : > { %v5440_v61 = vpack.c.bf16 %v5320_v18, %v5319_v9  ;;  %v3145_v10 = vpack.c.bf16 %v2850_v11, %v2850_v11  ;;  %2709 = vmatmul.bf16.gmra.mxu3 %v6292_v49  ;;  %2888 = vmatmul.bf16.gmra.mxu0 %v6056_v60  ;;  %v5316_v60 = vmax.f32 %v4932_v45, 0.0  ;;  %v5439_v11 = vpack.c.bf16 %v5318_v4, %v5317_v58  ;;  %v8525_v23 = vpop.permute.xlu1 %4226  ;;  %v6532_v18 = vld [vmem:[%s9614_s6 + $0x114] sm:$0xf]  ;;  %v6061_v45 = vld [vmem:[%s9614_s6 + $0x118] sm:$0xf0] }
 0x499   : > { %9700 = vst [vmem:[#allocation79_spill] sm:$0xff] %v8525_v23  ;;  %v6076_v9 = vor.u32 %v6537_v46, %v6075_v47  ;;  %v4810_v4 = vunpack.c.l.bf16 %v3674_v34 }
 0x49a   : > { %v4681_v51 = vunpack.c.l.bf16 %v3145_v10  ;;  %5557 = vmatpush.bf16.msra.mxu0 %v5440_v61  ;;  %v8512_v12 = vpop.f32.mrf.mxu2  ;;  %3048 = vmatmul.bf16.gmra.mxu1 %v6312_v62  ;;  %v5438_v33 = vpack.c.bf16 %v5316_v60, %v5315_v63  ;;  %v3683_v60 = vperm.slane %v7970_v25, %v7499_v32 }
 0x49b   : > { %v8500_v44 = vpop.f32.mrf.mxu3 }
 0x49c   : > { %9697 = vst [vmem:[#allocation76_spill] sm:$0xff] %v8500_v44  ;;  %v4937_v49 = vadd.f32 %v4809_v38, %v4681_v51  ;;  %v6064_v51 = vor.u32 %v6532_v18, %v6061_v45  ;;  %v8551_v63 = vpop.permute.xlu0 %4244  ;;  %v4811_v46 = vunpack.c.l.bf16 %v3683_v60 }
 0x49d   : > { %v2851_v31 = vpop.f32.mrf.mxu0  ;;  %2574 = vmatmul.bf16.gmra.mxu2 %v6076_v9 }
 0x49e   : > { %v2852_v8 = vadd.f32 %v2851_v31, %v8404_v52  ;;  %5558 = vmatpush.bf16.msra.mxu0 %v5439_v11  ;;  %v6593_v52 = vld [vmem:[%s9614_s6 + $0x2f4] sm:$0xf0]  ;;  %v8547_v11 = vpop.permute.xlu2 %4181  ;;  %v5321_v62 = vmax.f32 %v4937_v49, 0.0 }
 0x49f   : > { %v8541_v38 = vpop.f32.mrf.mxu1  ;;  %v6300_v58 = vor.u32 %v6593_v52, %v6299_v55  ;;  %9702 = vst [vmem:[#allocation81_spill] sm:$0xff] %v8547_v11 }
 0x4a0   : > { %v3146_v54 = vpack.c.bf16 %v2852_v8, %v2852_v8 }
 0x4a2   : > { %v4682_v61 = vunpack.c.l.bf16 %v3146_v54  ;;  %5559 = vmatpush.bf16.msra.mxu0 %v5438_v33  ;;  %v8543_v7 = vpop.f32.mrf.mxu2  ;;  %v8555_v54 = vpop.permute.xlu1 %4253 }
 0x4a3   : > { %v8539_v10 = vpop.f32.mrf.mxu3 }
 0x4a4   : > { %9701 = vst [vmem:[#allocation80_spill] sm:$0xff] %v8539_v10  ;;  %v4938_v35 = vadd.f32 %v4810_v4, %v4682_v61  ;;  %v6083_v4 = vld [vmem:[%s9614_s6 + $0x140] sm:$0xf]  ;;  %v6539_v61 = vld [vmem:[%s9614_s6 + $0x144] sm:$0xf0] }
 0x4a5   : > { %v2854_v28 = vpop.f32.mrf.mxu0 }
 0x4a6   : > { %v5322_v31 = vmax.f32 %v4938_v35, 0.0  ;;  %v2855_v34 = vadd.f32 %v2854_v28, %v8432_v22  ;;  %5560 = vmatpush.bf16.msra.mxu0 %v8350_v56  ;;  %v6596_v56 = vld [vmem:[%s9614_s6 + $0x314] sm:$0xf]  ;;  %v6317_v22 = vld [vmem:[%s9614_s6 + $0x318] sm:$0xf0]  ;;  %v8580_v35 = vpop.permute.xlu2 %4208 }
 0x4a7   : > { %v8560_v49 = vpop.f32.mrf.mxu1  ;;  %v6320_v9 = vor.u32 %v6596_v56, %v6317_v22  ;;  %9704 = vst [vmem:[#allocation83_spill] sm:$0xff] %v8580_v35  ;;  %v6069_v28 = vld [vmem:[%s9614_s6 + $0x128] sm:$0xf0] }
 0x4a8   : > { %v3147_v8 = vpack.c.bf16 %v2855_v34, %v2855_v34  ;;  %2714 = vmatmul.bf16.gmra.mxu3 %v6300_v58  ;;  %2893 = vmatmul.bf16.gmra.mxu0 %v6064_v51  ;;  %v8553_v47 = vpack.c.bf16 %v5322_v31, %v5321_v62  ;;  %v6084_v51 = vor.u32 %v6539_v61, %v6083_v4  ;;  %v8594_v62 = vpop.permute.xlu0 %4271 }
 0x4aa   : > { %v4683_v33 = vunpack.c.l.bf16 %v3147_v8  ;;  %5561 = vmatpush.bf16.msra.mxu0 %v8305_v14  ;;  %v8568_v18 = vpop.f32.mrf.mxu2  ;;  %v3692_v14 = vperm.slane %v7972_v5, %v7499_v32  ;;  %3053 = vmatmul.bf16.gmra.mxu1 %v6320_v9  ;;  %v6307_v5 = vld [vmem:[%s9614_s6 + $0x300] sm:$0xf] }
 0x4ab   : > { %v8558_v25 = vpop.f32.mrf.mxu3 }
 0x4ac   : > { %9703 = vst [vmem:[#allocation82_spill] sm:$0xff] %v8558_v25  ;;  %v4939_v55 = vadd.f32 %v4811_v46, %v4683_v33  ;;  %v4812_v60 = vunpack.c.l.bf16 %v3692_v14  ;;  %v8601_v46 = vpop.permute.xlu1 %4280  ;;  %v3701_v14 = vperm.slane %v8028_v43, %v7499_v32  ;;  %v6598_v43 = vld [vmem:[%s9614_s6 + $0x324] sm:$0xf] }
 0x4ad   : > { %v2856_v52 = vpop.f32.mrf.mxu0  ;;  %2579 = vmatmul.bf16.gmra.mxu2 %v6084_v51 }
 0x4ae   : > { %v2857_v45 = vadd.f32 %v2856_v52, %v8458_v15  ;;  %5562 = vmatpush.bf16.msra.mxu0 %v8255_v21  ;;  %v6595_v21 = vld [vmem:[%s9614_s6 + $0x304] sm:$0xf0]  ;;  %v6534_v15 = vld [vmem:[%s9614_s6 + $0x124] sm:$0xf]  ;;  %v4813_v51 = vunpack.c.l.bf16 %v3701_v14 }
 0x4af   : > { %v8599_v8 = vpop.f32.mrf.mxu1  ;;  %v6308_v56 = vor.u32 %v6595_v21, %v6307_v5  ;;  %v6072_v22 = vor.u32 %v6534_v15, %v6069_v28  ;;  %v4236_v5 = vpop.permute.xlu2 %4235 }
 0x4b0   : > { %v3148_v58 = vpack.c.bf16 %v2857_v45, %v2857_v45  ;;  %v5323_v45 = vmax.f32 %v4939_v55, 0.0 }
 0x4b2   : > { %v4684_v31 = vunpack.c.l.bf16 %v3148_v58  ;;  %5563 = vmatpush.bf16.msra.mxu0 %v8205_v19  ;;  %v8603_v52 = vpop.f32.mrf.mxu2 }
 0x4b3   : > { %v8597_v34 = vpop.f32.mrf.mxu3 }
 0x4b4   : > { %9705 = vst [vmem:[#allocation84_spill] sm:$0xff] %v8597_v34  ;;  %v4940_v33 = vadd.f32 %v4812_v60, %v4684_v31 }
 0x4b5   : > { %v2859_v9 = vpop.f32.mrf.mxu0 }
 0x4b6   : > { %v5324_v4 = vmax.f32 %v4940_v33, 0.0  ;;  %v2860_v19 = vadd.f32 %v2859_v9, %v8495_v26  ;;  %5564 = vmatpush.bf16.msra.mxu0 %v8157_v39  ;;  %v6325_v26 = vld [vmem:[%s9614_s6 + $0x328] sm:$0xf0]  ;;  %v8619_v39 = vpop.permute.xlu0 %4298  ;;  %v8626_v9 = vpop.permute.xlu1 %4307 }
 0x4b7   : > { %v8611_v28 = vpop.f32.mrf.mxu1  ;;  %v6328_v31 = vor.u32 %v6598_v43, %v6325_v26 }
 0x4b8   : > { %v3149_v61 = vpack.c.bf16 %v2860_v19, %v2860_v19  ;;  %2719 = vmatmul.bf16.gmra.mxu3 %v6308_v56  ;;  %2898 = vmatmul.bf16.gmra.mxu0 %v6072_v22  ;;  %v8609_v58 = vpack.c.bf16 %v5324_v4, %v5323_v45  ;;  %v3710_v22 = vperm.slane %v7984_v59, %v7499_v32  ;;  %v6091_v4 = vld [vmem:[%s9614_s6 + $0x150] sm:$0xf] }
 0x4ba   : > { %v4685_v21 = vunpack.c.l.bf16 %v3149_v61  ;;  %v8622_v56 = vpop.f32.mrf.mxu2  ;;  %3058 = vmatmul.bf16.gmra.mxu1 %v6328_v31  ;;  %v6315_v61 = vld [vmem:[%s9614_s6 + $0x310] sm:$0xf]  ;;  %v4814_v43 = vunpack.c.l.bf16 %v3710_v22 }
 0x4bb   : > { %v2680_v15 = vpop.f32.mrf.mxu3 }
 0x4bc   : > { %v4941_v55 = vadd.f32 %v4813_v51, %v4685_v21  ;;  %v3010_v60 = vadd.f32 %v8502_v27, %v2680_v15  ;;  %v6541_v27 = vld [vmem:[%s9614_s6 + $0x154] sm:$0xf0]  ;;  %v4241_v51 = vperm.slane %v4236_v5, %v7499_v32  ;;  %v6536_v21 = vld [vmem:[%s9614_s6 + $0x134] sm:$0xf]  ;;  %v6077_v15 = vld [vmem:[%s9614_s6 + $0x138] sm:$0xf0] }
 0x4bd   : > { %v2861_v33 = vpop.f32.mrf.mxu0  ;;  %v6092_v59 = vor.u32 %v6541_v27, %v6091_v4  ;;  %v6080_v23 = vor.u32 %v6536_v21, %v6077_v15 }
 0x4be   : > { %v2862_v14 = vadd.f32 %v2861_v33, %v8512_v12  ;;  %v3209_v45 = vpack.c.bf16 %v3010_v60, %v3010_v60  ;;  %v6597_v12 = vld [vmem:[%s9614_s6 + $0x314] sm:$0xf0]  ;;  %v4250_v60 = vperm.slane %v8551_v63, %v7499_v32  ;;  %v4873_v22 = vunpack.c.l.bf16 %v4241_v51  ;;  %v8659_v25 = vpop.permute.xlu0 %4325 }
 0x4bf   : > { %2584 = vmatmul.bf16.gmra.mxu2 %v6092_v59  ;;  %v8650_v33 = vpop.f32.mrf.mxu1  ;;  %v6316_v34 = vor.u32 %v6597_v12, %v6315_v61  ;;  %v5325_v63 = vmax.f32 %v4941_v55, 0.0  ;;  %v4815_v51 = vunpack.c.l.bf16 %v3719_v36 }
 0x4c0   : > { %v3150_v19 = vpack.c.bf16 %v2862_v14, %v2862_v14  ;;  %v4745_v31 = vunpack.c.l.bf16 %v3209_v45  ;;  %v8652_v14 = vpop.permute.xlu2 %4262 }
 0x4c2   : > { %v4686_v26 = vunpack.c.l.bf16 %v3150_v19  ;;  %v8657_v59 = vpop.f32.mrf.mxu2  ;;  %v5001_v3 = vadd.f32 %v4873_v22, %v4745_v31 }
 0x4c3   : > { %v2682_v5 = vpop.f32.mrf.mxu3 }
 0x4c4   : > { %v4942_v4 = vadd.f32 %v4814_v43, %v4686_v26  ;;  %v3012_v27 = vadd.f32 %v8541_v38, %v2682_v5  ;;  %v4874_v43 = vunpack.c.l.bf16 %v4250_v60  ;;  %v8662_v26 = vpop.permute.xlu1 %4361  ;;  %v5385_v15 = vmax.f32 %v5001_v3, 0.0 }
 0x4c5   : > { %v2864_v19 = vpop.f32.mrf.mxu0  ;;  %v3728_v3 = vperm.slane %v8038_v1, %v7499_v32  ;;  %v6599_v1 = vld [vmem:[%s9614_s6 + $0x324] sm:$0xf0] }
 0x4c6   : > { %v5326_v45 = vmax.f32 %v4942_v4, 0.0  ;;  %v3210_v10 = vpack.c.bf16 %v3012_v27, %v3012_v27  ;;  %v2865_v35 = vadd.f32 %v2864_v19, %v8543_v7  ;;  %v6600_v7 = vld [vmem:[%s9614_s6 + $0x334] sm:$0xf] }
 0x4c7   : > { %v8666_v55 = vpop.f32.mrf.mxu1 }
 0x4c8   : > { %v4746_v38 = vunpack.c.l.bf16 %v3210_v10  ;;  %v3151_v61 = vpack.c.bf16 %v2865_v35, %v2865_v35  ;;  %2724 = vmatmul.bf16.gmra.mxu3 %v6316_v34  ;;  %2903 = vmatmul.bf16.gmra.mxu0 %v6080_v23  ;;  %v8664_v2 = vpack.c.bf16 %v5326_v45, %v5325_v63  ;;  %v6333_v10 = vld [vmem:[%s9614_s6 + $0x338] sm:$0xf0]  ;;  %v8679_v4 = vpop.permute.xlu2 %4289  ;;  %v8684_v63 = vpop.permute.xlu0 %4343 }
 0x4c9   : > { %v6336_v60 = vor.u32 %v6600_v7, %v6333_v10 }
 0x4ca   : > { %v5002_v12 = vadd.f32 %v4874_v43, %v4746_v38  ;;  %v4687_v21 = vunpack.c.l.bf16 %v3151_v61  ;;  %v8675_v31 = vpop.f32.mrf.mxu2  ;;  %v4259_v43 = vperm.slane %v8555_v54, %v7499_v32  ;;  %v6085_v38 = vld [vmem:[%s9614_s6 + $0x148] sm:$0xf0]  ;;  %v4816_v61 = vunpack.c.l.bf16 %v3728_v3 }
 0x4cb   : > { %v2685_v5 = vpop.f32.mrf.mxu3  ;;  %3063 = vmatmul.bf16.gmra.mxu1 %v6336_v60  ;;  %v3737_v60 = vperm.slane %v8004_v17, %v7499_v32 }
 0x4cc   : > { %v5386_v35 = vmax.f32 %v5002_v12, 0.0  ;;  %v4943_v34 = vadd.f32 %v4815_v51, %v4687_v21  ;;  %v3015_v23 = vadd.f32 %v8560_v49, %v2685_v5  ;;  %v6323_v49 = vld [vmem:[%s9614_s6 + $0x320] sm:$0xf]  ;;  %v8700_v51 = vpop.permute.xlu1 %4352  ;;  %v4268_v21 = vperm.slane %v8652_v14, %v7499_v32 }
 0x4cd   : > { %v2866_v36 = vpop.f32.mrf.mxu0  ;;  %v4817_v17 = vunpack.c.l.bf16 %v3737_v60 }
 0x4ce   : > { %v2867_v27 = vadd.f32 %v2866_v36, %v8568_v18  ;;  %v8682_v22 = vpack.c.bf16 %v5386_v35, %v5385_v15  ;;  %v3211_v19 = vpack.c.bf16 %v3015_v23, %v3015_v23  ;;  %v6538_v18 = vld [vmem:[%s9614_s6 + $0x144] sm:$0xf]  ;;  %v6324_v35 = vor.u32 %v6599_v1, %v6323_v49 }
 0x4cf   : > { %v8704_v5 = vpop.f32.mrf.mxu1  ;;  %v6088_v23 = vor.u32 %v6538_v18, %v6085_v38  ;;  %v4875_v36 = vunpack.c.l.bf16 %v4259_v43  ;;  %v4876_v20 = vunpack.c.l.bf16 %v4268_v21 }
 0x4d0   : > { %v3152_v45 = vpack.c.bf16 %v2867_v27, %v2867_v27  ;;  %v4747_v54 = vunpack.c.l.bf16 %v3211_v19  ;;  %v8712_v0 = vpop.permute.xlu2 %4316  ;;  %v8716_v43 = vpop.permute.xlu0 %4649 }
 0x4d1   : > { %9706 = vst [vmem:[#allocation85_spill] sm:$0xff] %v8716_v43 }
 0x4d2   : > { %v4688_v12 = vunpack.c.l.bf16 %v3152_v45  ;;  %v8709_v27 = vpop.f32.mrf.mxu2  ;;  %v5327_v45 = vmax.f32 %v4943_v34, 0.0  ;;  %v5003_v19 = vadd.f32 %v4875_v36, %v4747_v54 }
 0x4d3   : > { %v2687_v15 = vpop.f32.mrf.mxu3 }
 0x4d4   : > { %v4944_v7 = vadd.f32 %v4816_v61, %v4688_v12  ;;  %v3017_v10 = vadd.f32 %v8599_v8, %v2687_v15  ;;  %v5387_v34 = vmax.f32 %v5003_v19, 0.0  ;;  %v8726_v21 = vpop.permute.xlu1 %4658 }
 0x4d5   : > { %v2869_v3 = vpop.f32.mrf.mxu0  ;;  %9707 = vst [vmem:[#allocation86_spill] sm:$0xff] %v8726_v21 }
 0x4d6   : > { %v5328_v44 = vmax.f32 %v4944_v7, 0.0  ;;  %v3212_v11 = vpack.c.bf16 %v3017_v10, %v3017_v10  ;;  %v2870_v14 = vadd.f32 %v2869_v3, %v8603_v52  ;;  %v6602_v52 = vld [vmem:[%s9614_s6 + $0x344] sm:$0xf]  ;;  %v3746_v10 = vperm.slane %v8014_v30, %v7499_v32 }
 0x4d7   : > { %v8718_v12 = vpop.f32.mrf.mxu1  ;;  %v4277_v30 = vperm.slane %v8594_v62, %v7499_v32 }
 0x4d8   : > { %v4748_v61 = vunpack.c.l.bf16 %v3212_v11  ;;  %v3153_v8 = vpack.c.bf16 %v2870_v14, %v2870_v14  ;;  %2729 = vmatmul.bf16.gmra.mxu3 %v6324_v35  ;;  %2908 = vmatmul.bf16.gmra.mxu0 %v6088_v23  ;;  %v8714_v49 = vpack.c.bf16 %v5328_v44, %v5327_v45  ;;  %v6341_v11 = vld [vmem:[%s9614_s6 + $0x348] sm:$0xf0]  ;;  %v6331_v45 = vld [vmem:[%s9614_s6 + $0x330] sm:$0xf]  ;;  %v6093_v14 = vld [vmem:[%s9614_s6 + $0x158] sm:$0xf0]  ;;  %v4818_v19 = vunpack.c.l.bf16 %v3746_v10  ;;  %v8756_v62 = vpop.permute.xlu0 %4514 }
 0x4d9   : > { %9708 = vst [vmem:[#allocation87_spill] sm:$0xff] %v8756_v62 }
 0x4da   : > { %v5004_v1 = vadd.f32 %v4876_v20, %v4748_v61  ;;  %v4689_v18 = vunpack.c.l.bf16 %v3153_v8  ;;  %v6344_v20 = vor.u32 %v6602_v52, %v6341_v11  ;;  %v8732_v23 = vpop.f32.mrf.mxu2  ;;  %v8750_v61 = vpop.permute.xlu2 %4370 }
 0x4db   : > { %v2690_v38 = vpop.f32.mrf.mxu3 }
 0x4dc   : > { %v5388_v44 = vmax.f32 %v5004_v1, 0.0  ;;  %v4945_v54 = vadd.f32 %v4817_v17, %v4689_v18  ;;  %v3020_v15 = vadd.f32 %v8611_v28, %v2690_v38  ;;  %3068 = vmatmul.bf16.gmra.mxu1 %v6344_v20  ;;  %v6601_v28 = vld [vmem:[%s9614_s6 + $0x334] sm:$0xf0]  ;;  %v4286_v17 = vperm.slane %v8601_v46, %v7499_v32 }
 0x4dd   : > { %v2871_v7 = vpop.f32.mrf.mxu0  ;;  %v6332_v18 = vor.u32 %v6601_v28, %v6331_v45 }
 0x4de   : > { %v2872_v35 = vadd.f32 %v2871_v7, %v8622_v56  ;;  %v8734_v60 = vpack.c.bf16 %v5388_v44, %v5387_v34  ;;  %v3213_v36 = vpack.c.bf16 %v3020_v15, %v3020_v15  ;;  %v6540_v56 = vld [vmem:[%s9614_s6 + $0x154] sm:$0xf]  ;;  %v4877_v15 = vunpack.c.l.bf16 %v4277_v30  ;;  %v8759_v7 = vpop.permute.xlu1 %4631 }
 0x4df   : > { %v8754_v34 = vpop.f32.mrf.mxu1  ;;  %v6096_v44 = vor.u32 %v6540_v56, %v6093_v14  ;;  %9709 = vst [vmem:[#allocation88_spill] sm:$0xff] %v8759_v7  ;;  %v5329_v10 = vmax.f32 %v4945_v54, 0.0  ;;  %v4878_v21 = vunpack.c.l.bf16 %v4286_v17  ;;  %v3755_v30 = vperm.slane %v8066_v48, %v7499_v32 }
 0x4e0   : > { %v3154_v3 = vpack.c.bf16 %v2872_v35, %v2872_v35  ;;  %v4749_v38 = vunpack.c.l.bf16 %v3213_v36  ;;  %v3764_v48 = vperm.slane %v8032_v40, %v7499_v32  ;;  %v6603_v40 = vld [vmem:[%s9614_s6 + $0x344] sm:$0xf0] }
 0x4e2   : > { %v4690_v8 = vunpack.c.l.bf16 %v3154_v3  ;;  %v5005_v45 = vadd.f32 %v4877_v15, %v4749_v38  ;;  %v8762_v43 = vpop.f32.mrf.mxu2 }
 0x4e3   : > { %v2692_v1 = vpop.f32.mrf.mxu3 }
 0x4e4   : > { %v4946_v52 = vadd.f32 %v4818_v19, %v4690_v8  ;;  %v3022_v11 = vadd.f32 %v8650_v33, %v2692_v1  ;;  %v6349_v19 = vld [vmem:[%s9614_s6 + $0x358] sm:$0xf0]  ;;  %v8776_v8 = vpop.permute.xlu2 %4334  ;;  %v5389_v17 = vmax.f32 %v5005_v45, 0.0  ;;  %v6101_v45 = vld [vmem:[%s9614_s6 + $0x168] sm:$0xf0] }
 0x4e5   : > { %v2874_v20 = vpop.f32.mrf.mxu0 }
 0x4e6   : > { %v5330_v35 = vmax.f32 %v4946_v52, 0.0  ;;  %v3214_v3 = vpack.c.bf16 %v3022_v11, %v3022_v11  ;;  %v2875_v46 = vadd.f32 %v2874_v20, %v8657_v59  ;;  %v6604_v59 = vld [vmem:[%s9614_s6 + $0x354] sm:$0xf]  ;;  %v8781_v52 = vpop.permute.xlu0 %4487  ;;  %v4819_v20 = vunpack.c.l.bf16 %v3755_v30 }
 0x4e7   : > { %v8768_v54 = vpop.f32.mrf.mxu1  ;;  %9710 = vst [vmem:[#allocation89_spill] sm:$0xff] %v8781_v52 }
 0x4e8   : > { %v4750_v28 = vunpack.c.l.bf16 %v3214_v3  ;;  %2734 = vmatmul.bf16.gmra.mxu3 %v6332_v18  ;;  %2913 = vmatmul.bf16.gmra.mxu0 %v6096_v44  ;;  %v8764_v36 = vpack.c.bf16 %v5330_v35, %v5329_v10  ;;  %v3155_v56 = vpack.c.bf16 %v2875_v46, %v2875_v46  ;;  %v6352_v18 = vor.u32 %v6604_v59, %v6349_v19  ;;  %v8786_v10 = vpop.permute.xlu1 %4496 }
 0x4e9   : > { %9711 = vst [vmem:[#allocation90_spill] sm:$0xff] %v8786_v10  ;;  %v4295_v46 = vperm.slane %v8679_v4, %v7499_v32 }
 0x4ea   : > { %v5006_v33 = vadd.f32 %v4878_v21, %v4750_v28  ;;  %v4691_v11 = vunpack.c.l.bf16 %v3155_v56  ;;  %v4820_v28 = vunpack.c.l.bf16 %v3764_v48  ;;  %v8802_v30 = vpop.f32.mrf.mxu2 }
 0x4eb   : > { %v2695_v14 = vpop.f32.mrf.mxu3 }
 0x4ec   : > { %v5390_v1 = vmax.f32 %v5006_v33, 0.0  ;;  %v3025_v21 = vadd.f32 %v8666_v55, %v2695_v14  ;;  %3073 = vmatmul.bf16.gmra.mxu1 %v6352_v18  ;;  %v6339_v55 = vld [vmem:[%s9614_s6 + $0x340] sm:$0xf]  ;;  %v4947_v33 = vadd.f32 %v4819_v20, %v4691_v11  ;;  %v4304_v14 = vperm.slane %v8619_v39, %v7499_v32  ;;  %v8809_v7 = vpop.permute.xlu2 %4505 }
 0x4ed   : > { %v2876_v38 = vpop.f32.mrf.mxu0  ;;  %v6340_v19 = vor.u32 %v6603_v40, %v6339_v55  ;;  %9712 = vst [vmem:[#allocation91_spill] sm:$0xff] %v8809_v7 }
 0x4ee   : > { %v2877_v44 = vadd.f32 %v2876_v38, %v8675_v31  ;;  %v8784_v15 = vpack.c.bf16 %v5390_v1, %v5389_v17  ;;  %v3215_v35 = vpack.c.bf16 %v3025_v21, %v3025_v21  ;;  %v6542_v31 = vld [vmem:[%s9614_s6 + $0x164] sm:$0xf]  ;;  %v4879_v38 = vunpack.c.l.bf16 %v4295_v46  ;;  %v8812_v39 = vpop.permute.xlu0 %4622 }
 0x4ef   : > { %v8806_v17 = vpop.f32.mrf.mxu1  ;;  %v6104_v18 = vor.u32 %v6542_v31, %v6101_v45  ;;  %v5331_v48 = vmax.f32 %v4947_v33, 0.0  ;;  %v4880_v62 = vunpack.c.l.bf16 %v4304_v14  ;;  %9713 = vst [vmem:[#allocation92_spill] sm:$0xff] %v8812_v39  ;;  %v3773_v45 = vperm.slane %v8034_v6, %v7499_v32 }
 0x4f0   : > { %v3156_v3 = vpack.c.bf16 %v2877_v44, %v2877_v44  ;;  %v4751_v4 = vunpack.c.l.bf16 %v3215_v35 }
 0x4f2   : > { %v4692_v56 = vunpack.c.l.bf16 %v3156_v3  ;;  %v5007_v55 = vadd.f32 %v4879_v38, %v4751_v4 }
 0x4f3   : > { %v2697_v59 = vpop.f32.mrf.mxu3 }
 0x4f4   : > { %v4948_v1 = vadd.f32 %v4820_v28, %v4692_v56  ;;  %v3027_v21 = vadd.f32 %v8704_v5, %v2697_v59  ;;  %v8816_v5 = vpop.permute.xlu1 %4469  ;;  %v6357_v56 = vld [vmem:[%s9614_s6 + $0x368] sm:$0xf0]  ;;  %v5391_v14 = vmax.f32 %v5007_v55, 0.0 }
 0x4f5   : > { %v2879_v44 = vpop.f32.mrf.mxu0  ;;  %9714 = vst [vmem:[#allocation93_spill] sm:$0xff] %v8816_v5 }
 0x4f6   : > { %v5332_v11 = vmax.f32 %v4948_v1, 0.0  ;;  %v3216_v20 = vpack.c.bf16 %v3027_v21, %v3027_v21  ;;  %v2880_v3 = vadd.f32 %v2879_v44, %v8709_v27  ;;  %v6606_v27 = vld [vmem:[%s9614_s6 + $0x364] sm:$0xf]  ;;  %v3782_v1 = vperm.slane %v8084_v24, %v7499_v32  ;;  %v6544_v24 = vld [vmem:[%s9614_s6 + $0x174] sm:$0xf]  ;;  %v8852_v55 = vpop.permute.xlu0 %4595 }
 0x4f7   : > { %v8820_v33 = vpop.f32.mrf.mxu1  ;;  %v6360_v4 = vor.u32 %v6606_v27, %v6357_v56  ;;  %v4821_v44 = vunpack.c.l.bf16 %v3773_v45  ;;  %9716 = vst [vmem:[#allocation95_spill] sm:$0xff] %v8852_v55 }
 0x4f8   : > { %v4752_v40 = vunpack.c.l.bf16 %v3216_v20  ;;  %2739 = vmatmul.bf16.gmra.mxu3 %v6340_v19  ;;  %2918 = vmatmul.bf16.gmra.mxu0 %v6104_v18  ;;  %v8814_v35 = vpack.c.bf16 %v5332_v11, %v5331_v48  ;;  %v3157_v31 = vpack.c.bf16 %v2880_v3, %v2880_v3  ;;  %v8838_v48 = vpop.permute.xlu2 %4640  ;;  %v6605_v20 = vld [vmem:[%s9614_s6 + $0x354] sm:$0xf0]  ;;  %v4822_v3 = vunpack.c.l.bf16 %v3782_v1 }
 0x4f9   : > { %9715 = vst [vmem:[#allocation94_spill] sm:$0xff] %v8838_v48  ;;  %v3809_v48 = vperm.slane %v8108_v50, %v7499_v32  ;;  %v6610_v50 = vld [vmem:[%s9614_s6 + $0x384] sm:$0xf] }
 0x4fa   : > { %v5008_v46 = vadd.f32 %v4880_v62, %v4752_v40  ;;  %v8831_v62 = vpop.f32.mrf.mxu2  ;;  %v4693_v21 = vunpack.c.l.bf16 %v3157_v31 }
 0x4fb   : > { %v2700_v28 = vpop.f32.mrf.mxu3 }
 0x4fc   : > { %v5392_v59 = vmax.f32 %v5008_v46, 0.0  ;;  %v8829_v19 = vadd.f32 %v8718_v12, %v2700_v28  ;;  %3078 = vmatmul.bf16.gmra.mxu1 %v6360_v4  ;;  %v6347_v12 = vld [vmem:[%s9614_s6 + $0x350] sm:$0xf]  ;;  %v4949_v40 = vadd.f32 %v4821_v44, %v4693_v21  ;;  %v8858_v28 = vpop.permute.xlu1 %4604 }
 0x4fd   : > { %v2881_v6 = vpop.f32.mrf.mxu0  ;;  %9717 = vst [vmem:[#allocation96_spill] sm:$0xff] %v8858_v28  ;;  %v6348_v56 = vor.u32 %v6605_v20, %v6347_v12  ;;  %v6608_v12 = vld [vmem:[%s9614_s6 + $0x374] sm:$0xf]  ;;  %v6365_v20 = vld [vmem:[%s9614_s6 + $0x378] sm:$0xf0] }
 0x4fe   : > { %v2882_v18 = vadd.f32 %v2881_v6, %v8732_v23  ;;  %v8836_v38 = vpack.c.bf16 %v5392_v59, %v5391_v14  ;;  %v6109_v23 = vld [vmem:[%s9614_s6 + $0x178] sm:$0xf0]  ;;  %v5333_v4 = vmax.f32 %v4949_v40, 0.0  ;;  %v3800_v40 = vperm.slane %v8050_v13, %v7499_v32  ;;  %v6546_v13 = vld [vmem:[%s9614_s6 + $0x184] sm:$0xf] }
 0x4ff   : > { %v8856_v45 = vpop.f32.mrf.mxu1  ;;  %v6112_v14 = vor.u32 %v6544_v24, %v6109_v23  ;;  %v8875_v24 = vpop.permute.xlu0 %4460  ;;  %v6368_v23 = vor.u32 %v6608_v12, %v6365_v20 }
 0x500   : > { %v3158_v11 = vpack.c.bf16 %v2882_v18, %v2882_v18  ;;  %v8861_v21 = vpop.permute.xlu2 %4613 }
 0x501   : > { %9718 = vst [vmem:[#allocation97_spill] sm:$0xff] %v8861_v21 }
 0x502   : > { %v4694_v46 = vunpack.c.l.bf16 %v3158_v11  ;;  %v2562_v39 = vpop.f32.mrf.mxu2 }
 0x503   : > { %v8854_v31 = vpop.f32.mrf.mxu3 }
 0x504   : > { %v4950_v27 = vadd.f32 %v4822_v3, %v4694_v46  ;;  %v8879_v46 = vpop.permute.xlu1 %4577 }
 0x505   : > { %v2884_v59 = vpop.f32.mrf.mxu0  ;;  %9719 = vst [vmem:[#allocation98_spill] sm:$0xff] %v8879_v46 }
 0x506   : > { %v5334_v6 = vmax.f32 %v4950_v27, 0.0  ;;  %v2885_v18 = vadd.f32 %v2884_v59, %v8762_v43  ;;  %v3791_v43 = vperm.slane %v8040_v53, %v7499_v32 }
 0x507   : > { %v8865_v55 = vpop.f32.mrf.mxu1  ;;  %v8902_v46 = vpop.permute.xlu0 %4433 }
 0x508   : > { %2744 = vmatmul.bf16.gmra.mxu3 %v6348_v56  ;;  %2923 = vmatmul.bf16.gmra.mxu0 %v6112_v14  ;;  %v5447_v1 = vpack.c.bf16 %v5334_v6, %v5333_v4  ;;  %v3159_v44 = vpack.c.bf16 %v2885_v18, %v2885_v18  ;;  %v4823_v14 = vunpack.c.l.bf16 %v3791_v43  ;;  %v6355_v4 = vld [vmem:[%s9614_s6 + $0x360] sm:$0xf]  ;;  %v6607_v6 = vld [vmem:[%s9614_s6 + $0x364] sm:$0xf0]  ;;  %v4824_v18 = vunpack.c.l.bf16 %v3800_v40  ;;  %v8898_v28 = vpop.permute.xlu2 %4478 }
 0x509   : > { %9720 = vst [vmem:[#allocation99_spill] sm:$0xff] %v8898_v28 }
 0x50a   : > { %v4695_v27 = vunpack.c.l.bf16 %v3159_v44  ;;  %v2565_v53 = vpop.f32.mrf.mxu2 }
 0x50b   : > { %v8863_v11 = vpop.f32.mrf.mxu3 }
 0x50c   : > { %3083 = vmatmul.bf16.gmra.mxu1 %v6368_v23  ;;  %v4951_v44 = vadd.f32 %v4823_v14, %v4695_v27  ;;  %v8905_v27 = vpop.permute.xlu1 %4442 }
 0x50d   : > { %v2886_v3 = vpop.f32.mrf.mxu0 }
 0x50e   : > { %v2887_v56 = vadd.f32 %v2886_v3, %v8802_v30  ;;  %v6117_v30 = vld [vmem:[%s9614_s6 + $0x188] sm:$0xf0]  ;;  %v6356_v3 = vor.u32 %v6607_v6, %v6355_v4  ;;  %v5335_v7 = vmax.f32 %v4951_v44, 0.0  ;;  %v4825_v4 = vunpack.c.l.bf16 %v3809_v48 }
 0x50f   : > { %v8896_v43 = vpop.f32.mrf.mxu1  ;;  %v3818_v48 = vperm.slane %v8070_v57, %v7499_v32  ;;  %v6548_v57 = vld [vmem:[%s9614_s6 + $0x194] sm:$0xf] }
 0x510   : > { %v3160_v59 = vpack.c.bf16 %v2887_v56, %v2887_v56  ;;  %v6120_v56 = vor.u32 %v6546_v13, %v6117_v30 }
 0x512   : > { %v4696_v12 = vunpack.c.l.bf16 %v3160_v59  ;;  %v2567_v13 = vpop.f32.mrf.mxu2 }
 0x513   : > { %v8894_v20 = vpop.f32.mrf.mxu3 }
 0x514   : > { %v4952_v23 = vadd.f32 %v4824_v18, %v4696_v12  ;;  %v8917_v12 = vpop.permute.xlu2 %4451 }
 0x515   : > { %v2889_v21 = vpop.f32.mrf.mxu0 }
 0x516   : > { %v5336_v10 = vmax.f32 %v4952_v23, 0.0  ;;  %v2890_v40 = vadd.f32 %v2889_v21, %v8831_v62  ;;  %v6373_v62 = vld [vmem:[%s9614_s6 + $0x388] sm:$0xf0]  ;;  %v8919_v23 = vpop.permute.xlu0 %4568 }
 0x517   : > { %v8907_v18 = vpop.f32.mrf.mxu1  ;;  %9721 = vst [vmem:[#allocation100_spill] sm:$0xff] %v8919_v23  ;;  %v3827_v23 = vperm.slane %v8072_v41, %v7499_v32 }
 0x518   : > { %v5448_v14 = vpack.c.bf16 %v5336_v10, %v5335_v7  ;;  %v3161_v59 = vpack.c.bf16 %v2890_v40, %v2890_v40  ;;  %2749 = vmatmul.bf16.gmra.mxu3 %v6356_v3  ;;  %2928 = vmatmul.bf16.gmra.mxu0 %v6120_v56  ;;  %v6376_v7 = vor.u32 %v6610_v50, %v6373_v62  ;;  %v6363_v56 = vld [vmem:[%s9614_s6 + $0x370] sm:$0xf]  ;;  %v6609_v40 = vld [vmem:[%s9614_s6 + $0x374] sm:$0xf0] }
 0x519   : > { %v6364_v62 = vor.u32 %v6609_v40, %v6363_v56  ;;  %v4827_v56 = vunpack.c.l.bf16 %v3827_v23  ;;  %v3836_v23 = vperm.slane %v8146_v16, %v7499_v32  ;;  %v6371_v16 = vld [vmem:[%s9614_s6 + $0x380] sm:$0xf] }
 0x51a   : > { %v4697_v6 = vunpack.c.l.bf16 %v3161_v59  ;;  %5571 = vmatpush.bf16.msra.mxu1 %v5448_v14  ;;  %v8933_v14 = vpop.permute.xlu1 %4415 }
 0x51b   : > { %v2710_v30 = vpop.f32.mrf.mxu3 }
 0x51c   : > { %v4953_v21 = vadd.f32 %v4825_v4, %v4697_v6  ;;  %3088 = vmatmul.bf16.gmra.mxu1 %v6376_v7  ;;  %v8945_v5 = vpop.permute.xlu2 %4586 }
 0x51d   : > { %v2891_v10 = vpop.f32.mrf.mxu0 }
 0x51e   : > { %v2892_v44 = vadd.f32 %v2891_v10, %v2562_v39  ;;  %5572 = vmatpush.bf16.msra.mxu1 %v5447_v1  ;;  %v6125_v39 = vld [vmem:[%s9614_s6 + $0x198] sm:$0xf0]  ;;  %v4826_v1 = vunpack.c.l.bf16 %v3818_v48  ;;  %v5337_v52 = vmax.f32 %v4953_v21, 0.0  ;;  %v8947_v40 = vpop.permute.xlu0 %4541 }
 0x51f   : > { %v8936_v6 = vpop.f32.mrf.mxu1  ;;  %v6128_v7 = vor.u32 %v6548_v57, %v6125_v39 }
 0x520   : > { %v3162_v3 = vpack.c.bf16 %v2892_v44, %v2892_v44  ;;  %v8938_v44 = vpop.f32.mrf.mxu2 }
 0x522   : > { %v4698_v59 = vunpack.c.l.bf16 %v3162_v3  ;;  %5573 = vmatpush.bf16.msra.mxu1 %v8814_v35  ;;  %v8950_v41 = vpop.permute.xlu1 %4550 }
 0x523   : > { %v2712_v4 = vpop.f32.mrf.mxu3 }
 0x524   : > { %v4954_v50 = vadd.f32 %v4826_v1, %v4698_v59 }
 0x525   : > { %v2894_v10 = vpop.f32.mrf.mxu0 }
 0x526   : > { %v5338_v28 = vmax.f32 %v4954_v50, 0.0  ;;  %v2895_v48 = vadd.f32 %v2894_v10, %v2565_v53  ;;  %5574 = vmatpush.bf16.msra.mxu1 %v8764_v36 }
 0x527   : > { %v8953_v36 = vpop.f32.mrf.mxu1 }
 0x528   : > { %v3163_v3 = vpack.c.bf16 %v2895_v48, %v2895_v48  ;;  %2754 = vmatmul.bf16.gmra.mxu3 %v6364_v62  ;;  %2933 = vmatmul.bf16.gmra.mxu0 %v6128_v7  ;;  %v8943_v35 = vpack.c.bf16 %v5338_v28, %v5337_v52  ;;  %v6612_v52 = vld [vmem:[%s9614_s6 + $0x394] sm:$0xf]  ;;  %v6381_v28 = vld [vmem:[%s9614_s6 + $0x398] sm:$0xf0]  ;;  %v3040_v62 = vadd.f32 %v8820_v33, %v2710_v30  ;;  %v8968_v7 = vpop.f32.mrf.mxu2  ;;  %v6550_v33 = vld [vmem:[%s9614_s6 + $0x1a4] sm:$0xf] }
 0x529   : > { %v6384_v59 = vor.u32 %v6612_v52, %v6381_v28  ;;  %v3854_v30 = vperm.slane %v8102_v37, %v7499_v32  ;;  %v3863_v37 = vperm.slane %v8169_v42, %v7499_v32 }
 0x52a   : > { %v4699_v57 = vunpack.c.l.bf16 %v3163_v3  ;;  %5575 = vmatpush.bf16.msra.mxu1 %v8714_v49  ;;  %v3042_v49 = vadd.f32 %v8856_v45, %v2712_v4  ;;  %v6611_v45 = vld [vmem:[%s9614_s6 + $0x384] sm:$0xf0]  ;;  %v4828_v4 = vunpack.c.l.bf16 %v3836_v23  ;;  %v3845_v3 = vperm.slane %v8098_v29, %v7499_v32 }
 0x52b   : > { %v2715_v39 = vpop.f32.mrf.mxu3  ;;  %v3221_v52 = vpack.c.bf16 %v3040_v62, %v3040_v62  ;;  %v6372_v23 = vor.u32 %v6611_v45, %v6371_v16  ;;  %v9004_v62 = vpop.permute.xlu1 %4523 }
 0x52c   : > { %v4955_v21 = vadd.f32 %v4827_v56, %v4699_v57  ;;  %v3045_v53 = vadd.f32 %v8865_v55, %v2715_v39  ;;  %v4376_v55 = vperm.slane %v8750_v61, %v7499_v32  ;;  %3093 = vmatmul.bf16.gmra.mxu1 %v6384_v59  ;;  %v4367_v61 = vperm.slane %v8662_v26, %v7499_v32  ;;  %v8991_v39 = vpop.permute.xlu2 %4559 }
 0x52d   : > { %v2896_v1 = vpop.f32.mrf.mxu0  ;;  %v4358_v26 = vperm.slane %v8700_v51, %v7499_v32  ;;  %v4349_v51 = vperm.slane %v8684_v63, %v7499_v32  ;;  %v4757_v63 = vunpack.c.l.bf16 %v3221_v52  ;;  %v4331_v52 = vperm.slane %v8659_v25, %v7499_v32  ;;  %v6389_v25 = vld [vmem:[%s9614_s6 + $0x3a8] sm:$0xf0] }
 0x52e   : > { %v2897_v50 = vadd.f32 %v2896_v1, %v2567_v13  ;;  %5576 = vmatpush.bf16.msra.mxu1 %v8664_v2  ;;  %v3223_v10 = vpack.c.bf16 %v3045_v53, %v3045_v53  ;;  %v3222_v2 = vpack.c.bf16 %v3042_v49, %v3042_v49  ;;  %v6133_v13 = vld [vmem:[%s9614_s6 + $0x1a8] sm:$0xf0]  ;;  %v4888_v56 = vunpack.c.l.bf16 %v4376_v55  ;;  %v8995_v49 = vpop.permute.xlu0 %4406 }
 0x52f   : > { %v3037_v53 = vadd.f32 %v8806_v17, %v8894_v20  ;;  %v6136_v55 = vor.u32 %v6550_v33, %v6133_v13  ;;  %v5339_v16 = vmax.f32 %v4955_v21, 0.0  ;;  %v4829_v21 = vunpack.c.l.bf16 %v3845_v3 }
 0x530   : > { %v3164_v48 = vpack.c.bf16 %v2897_v50, %v2897_v50  ;;  %v4759_v1 = vunpack.c.l.bf16 %v3223_v10  ;;  %v8998_v50 = vpop.f32.mrf.mxu1  ;;  %v4758_v17 = vunpack.c.l.bf16 %v3222_v2  ;;  %v4340_v2 = vperm.slane %v8776_v8, %v7499_v32 }
 0x531   : > { %v3220_v33 = vpack.c.bf16 %v3037_v53, %v3037_v53 }
 0x532   : > { %v4700_v57 = vunpack.c.l.bf16 %v3164_v48  ;;  %5577 = vmatpush.bf16.msra.mxu1 %v8609_v58  ;;  %v4887_v58 = vunpack.c.l.bf16 %v4367_v61  ;;  %v3035_v48 = vadd.f32 %v8768_v54, %v8863_v11  ;;  %v3032_v61 = vadd.f32 %v8754_v34, %v8854_v31 }
 0x533   : > { %v2717_v28 = vpop.f32.mrf.mxu3  ;;  %v4322_v34 = vperm.slane %v8712_v0, %v7499_v32  ;;  %v6614_v0 = vld [vmem:[%s9614_s6 + $0x3a4] sm:$0xf] }
 0x534   : > { %v4956_v59 = vadd.f32 %v4828_v4, %v4700_v57  ;;  %v3047_v29 = vadd.f32 %v8896_v43, %v2717_v28  ;;  %v4886_v43 = vunpack.c.l.bf16 %v4358_v26  ;;  %v5015_v13 = vadd.f32 %v4887_v58, %v4759_v1 }
 0x535   : > { %v2899_v20 = vpop.f32.mrf.mxu0  ;;  %v3219_v28 = vpack.c.bf16 %v3035_v48, %v3035_v48  ;;  %v4756_v1 = vunpack.c.l.bf16 %v3220_v33  ;;  %v3217_v48 = vpack.c.bf16 %v8829_v19, %v8829_v19  ;;  %v4883_v33 = vunpack.c.l.bf16 %v4331_v52 }
 0x536   : > { %v5340_v45 = vmax.f32 %v4956_v59, 0.0  ;;  %v3224_v10 = vpack.c.bf16 %v3047_v29, %v3047_v29  ;;  %v2900_v4 = vadd.f32 %v2899_v20, %v8938_v44  ;;  %5578 = vmatpush.bf16.msra.mxu1 %v8553_v47  ;;  %v4885_v44 = vunpack.c.l.bf16 %v4349_v51  ;;  %v9014_v47 = vpop.f32.mrf.mxu2 }
 0x537   : > { %v5014_v31 = vadd.f32 %v4886_v43, %v4758_v17  ;;  %v5399_v29 = vmax.f32 %v5015_v13, 0.0  ;;  %v4755_v17 = vunpack.c.l.bf16 %v3219_v28  ;;  %v4753_v28 = vunpack.c.l.bf16 %v3217_v48 }
 0x538   : > { %v4760_v57 = vunpack.c.l.bf16 %v3224_v10  ;;  %v3165_v54 = vpack.c.bf16 %v2900_v4, %v2900_v4  ;;  %2759 = vmatmul.bf16.gmra.mxu3 %v6372_v23  ;;  %2938 = vmatmul.bf16.gmra.mxu0 %v6136_v55  ;;  %v9010_v11 = vpack.c.bf16 %v5340_v45, %v5339_v16  ;;  %v3218_v23 = vpack.c.bf16 %v3032_v61, %v3032_v61  ;;  %v9023_v51 = vpop.f32.mrf.mxu1  ;;  %v9035_v45 = vpop.permute.xlu2 %4424 }
 0x539   : > { %v5013_v59 = vadd.f32 %v4885_v44, %v4757_v63  ;;  %v6392_v16 = vor.u32 %v6614_v0, %v6389_v25  ;;  %v4380_v10 = vpop.permute.xlu0 %4379  ;;  %v5398_v4 = vmax.f32 %v5014_v31, 0.0  ;;  %v4882_v44 = vunpack.c.l.bf16 %v4322_v34 }
 0x53a   : > { %v5016_v26 = vadd.f32 %v4888_v56, %v4760_v57  ;;  %v4701_v53 = vunpack.c.l.bf16 %v3165_v54  ;;  %v4884_v56 = vunpack.c.l.bf16 %v4340_v2  ;;  %v4754_v63 = vunpack.c.l.bf16 %v3218_v23  ;;  %v4389_v57 = vpop.permute.xlu1 %4388  ;;  %v6613_v2 = vld [vmem:[%s9614_s6 + $0x394] sm:$0xf0] }
 0x53b   : > { %v2720_v3 = vpop.f32.mrf.mxu3  ;;  %v5397_v54 = vmax.f32 %v5013_v59, 0.0  ;;  %v5011_v31 = vadd.f32 %v4883_v33, %v4755_v17  ;;  %v4830_v52 = vunpack.c.l.bf16 %v3854_v30  ;;  %v4394_v34 = vperm.slane %v4389_v57, %v7499_v32 }
 0x53c   : > { %v5400_v55 = vmax.f32 %v5016_v26, 0.0  ;;  %v9020_v8 = vadd.f32 %v4829_v21, %v4701_v53  ;;  %v3050_v58 = vadd.f32 %v8907_v18, %v2720_v3  ;;  %v4313_v18 = vperm.slane %v8626_v9, %v7499_v32  ;;  %3098 = vmatmul.bf16.gmra.mxu1 %v6392_v16  ;;  %v6379_v9 = vld [vmem:[%s9614_s6 + $0x390] sm:$0xf]  ;;  %v6552_v26 = vld [vmem:[%s9614_s6 + $0x1b4] sm:$0xf] }
 0x53d   : > { %v2901_v20 = vpop.f32.mrf.mxu0  ;;  %v5012_v13 = vadd.f32 %v4884_v56, %v4756_v1  ;;  %v6141_v53 = vld [vmem:[%s9614_s6 + $0x1b8] sm:$0xf0]  ;;  %v5479_v59 = vpack.c.bf16 %v5398_v4, %v5397_v54  ;;  %v5010_v3 = vadd.f32 %v4882_v44, %v4754_v63  ;;  %v4890_v63 = vunpack.c.l.bf16 %v4394_v34 }
 0x53e   : > { %v5480_v43 = vpack.c.bf16 %v5400_v55, %v5399_v29  ;;  %v2902_v61 = vadd.f32 %v2901_v20, %v8968_v7  ;;  %v3225_v19 = vpack.c.bf16 %v3050_v58, %v3050_v58  ;;  %v4385_v7 = vperm.slane %v4380_v10, %v7499_v32  ;;  %v2577_v0 = vpop.f32.mrf.mxu2 }
 0x53f   : > { %v4881_v23 = vunpack.c.l.bf16 %v4313_v18  ;;  %v5396_v29 = vmax.f32 %v5012_v13, 0.0  ;;  %v6380_v58 = vor.u32 %v6613_v2, %v6379_v9  ;;  %v6144_v17 = vor.u32 %v6552_v26, %v6141_v53 }
 0x540   : > { %v3166_v21 = vpack.c.bf16 %v2902_v61, %v2902_v61  ;;  %5627 = vmatpush.bf16.msrb.mxu2 %v5480_v43  ;;  %v4761_v25 = vunpack.c.l.bf16 %v3225_v19  ;;  %v9056_v20 = vpop.f32.mrf.mxu1  ;;  %v4889_v30 = vunpack.c.l.bf16 %v4385_v7  ;;  %v5395_v18 = vmax.f32 %v5011_v31, 0.0  ;;  %v4398_v57 = vpop.permute.xlu2 %4397 }
 0x541   : > { %v5009_v16 = vadd.f32 %v4881_v23, %v4753_v28  ;;  %v5341_v4 = vmax.f32 %v9020_v8, 0.0  ;;  %v5394_v13 = vmax.f32 %v5010_v3, 0.0  ;;  %v4831_v2 = vunpack.c.l.bf16 %v3863_v37 }
 0x542   : > { %v4702_v1 = vunpack.c.l.bf16 %v3166_v21  ;;  %v5017_v54 = vadd.f32 %v4889_v30, %v4761_v25  ;;  %v4403_v7 = vperm.slane %v4398_v57, %v7499_v32  ;;  %v6387_v30 = vld [vmem:[%s9614_s6 + $0x3a0] sm:$0xf] }
 0x543   : > { %v2722_v55 = vpop.f32.mrf.mxu3  ;;  %v5393_v9 = vmax.f32 %v5009_v16, 0.0  ;;  %v6615_v16 = vld [vmem:[%s9614_s6 + $0x3a4] sm:$0xf0] }
 0x544   : > { %v4958_v56 = vadd.f32 %v4830_v52, %v4702_v1  ;;  %v3052_v48 = vadd.f32 %v8936_v6, %v2722_v55  ;;  %5628 = vmatpush.bf16.msrb.mxu2 %v5479_v59  ;;  %v5478_v6 = vpack.c.bf16 %v5396_v29, %v5395_v18  ;;  %v5401_v31 = vmax.f32 %v5017_v54, 0.0  ;;  %v6616_v1 = vld [vmem:[%s9614_s6 + $0x3b4] sm:$0xf]  ;;  %v6397_v59 = vld [vmem:[%s9614_s6 + $0x3b8] sm:$0xf0]  ;;  %v9722_v55 = vld [vmem:[#allocation25_spill] sm:$0xff] }
 0x545   : > { %v2904_v10 = vpop.f32.mrf.mxu0  ;;  %v6400_v29 = vor.u32 %v6616_v1, %v6397_v59  ;;  %v6149_v18 = vld [vmem:[%s9614_s6 + $0x1c8] sm:$0xf0]  ;;  %v9723_v54 = vld [vmem:[#allocation26_spill] sm:$0xff] }
 0x546   : > { %v5342_v43 = vmax.f32 %v4958_v56, 0.0  ;;  %v3226_v61 = vpack.c.bf16 %v3052_v48, %v3052_v48  ;;  %v2905_v33 = vadd.f32 %v2904_v10, %v9014_v47  ;;  %v5477_v47 = vpack.c.bf16 %v5394_v13, %v5393_v9  ;;  %v2580_v3 = vpop.f32.mrf.mxu2 }
 0x547   : > { %v4891_v48 = vunpack.c.l.bf16 %v4403_v7  ;;  %v6388_v13 = vor.u32 %v6615_v16, %v6387_v30 }
 0x548   : > { %v4762_v19 = vunpack.c.l.bf16 %v3226_v61  ;;  %v3167_v21 = vpack.c.bf16 %v2905_v33, %v2905_v33  ;;  %2764 = vmatmul.bf16.gmra.mxu3 %v6380_v58  ;;  %2943 = vmatmul.bf16.gmra.mxu0 %v6144_v17  ;;  %v9062_v42 = vpack.c.bf16 %v5342_v43, %v5341_v4  ;;  %v9066_v23 = vpop.f32.mrf.mxu1  ;;  %v3872_v58 = vperm.slane %v9722_v55, %v7499_v32  ;;  %v6618_v55 = vld [vmem:[%s9614_s6 + $0x3c4] sm:$0xf] }
 0x549   : > { %5629 = vmatpush.bf16.msrb.mxu2 %v5478_v6  ;;  %v4412_v61 = vperm.slane %v8995_v49, %v7499_v32 }
 0x54a   : > { %v5018_v44 = vadd.f32 %v4890_v63, %v4762_v19  ;;  %v4703_v8 = vunpack.c.l.bf16 %v3167_v21  ;;  %v4832_v10 = vunpack.c.l.bf16 %v3872_v58  ;;  %v3881_v19 = vperm.slane %v9723_v54, %v7499_v32 }
 0x54b   : > { %v2725_v28 = vpop.f32.mrf.mxu3  ;;  %v4892_v49 = vunpack.c.l.bf16 %v4412_v61 }
 0x54c   : > { %v5402_v26 = vmax.f32 %v5018_v44, 0.0  ;;  %v4959_v53 = vadd.f32 %v4831_v2, %v4703_v8  ;;  %v3055_v52 = vadd.f32 %v8953_v36, %v2725_v28  ;;  %3103 = vmatmul.bf16.gmra.mxu1 %v6400_v29 }
 0x54d   : > { %5630 = vmatpush.bf16.msrb.mxu2 %v5477_v47  ;;  %v2906_v34 = vpop.f32.mrf.mxu0 }
 0x54e   : > { %v3227_v25 = vpack.c.bf16 %v3055_v52, %v3055_v52  ;;  %v2907_v56 = vadd.f32 %v2906_v34, %v2577_v0  ;;  %v9076_v36 = vpack.c.bf16 %v5402_v26, %v5401_v31  ;;  %v6554_v0 = vld [vmem:[%s9614_s6 + $0x1c4] sm:$0xf]  ;;  %v5343_v9 = vmax.f32 %v4959_v53, 0.0  ;;  %v2582_v7 = vpop.f32.mrf.mxu2 }
 0x54f   : > { %v6152_v6 = vor.u32 %v6554_v0, %v6149_v18  ;;  %v4833_v31 = vunpack.c.l.bf16 %v3881_v19  ;;  %v6395_v0 = vld [vmem:[%s9614_s6 + $0x3b0] sm:$0xf] }
 0x550   : > { %v4763_v17 = vunpack.c.l.bf16 %v3227_v25  ;;  %v3168_v37 = vpack.c.bf16 %v2907_v56, %v2907_v56  ;;  %v9094_v57 = vpop.f32.mrf.mxu1  ;;  %v9724_v25 = vld [vmem:[#allocation34_spill] sm:$0xff] }
 0x551   : > { %5631 = vmatpush.bf16.msrb.mxu2 %v8836_v38  ;;  %v3890_v56 = vperm.slane %v9724_v25, %v7499_v32 }
 0x552   : > { %v5019_v4 = vadd.f32 %v4891_v48, %v4763_v17  ;;  %v4704_v43 = vunpack.c.l.bf16 %v3168_v37 }
 0x553   : > { %v2727_v33 = vpop.f32.mrf.mxu3 }
 0x554   : > { %v4960_v38 = vadd.f32 %v4832_v10, %v4704_v43  ;;  %v3057_v63 = vadd.f32 %v8998_v50, %v2727_v33  ;;  %v5403_v1 = vmax.f32 %v5019_v4, 0.0  ;;  %v6556_v10 = vld [vmem:[%s9614_s6 + $0x1d4] sm:$0xf]  ;;  %v6157_v4 = vld [vmem:[%s9614_s6 + $0x1d8] sm:$0xf0]  ;;  %v4834_v43 = vunpack.c.l.bf16 %v3890_v56 }
 0x555   : > { %5632 = vmatpush.bf16.msrb.mxu2 %v8784_v15  ;;  %v2909_v21 = vpop.f32.mrf.mxu0  ;;  %v4421_v15 = vperm.slane %v8933_v14, %v7499_v32  ;;  %v6160_v19 = vor.u32 %v6556_v10, %v6157_v4  ;;  %v6558_v10 = vld [vmem:[%s9614_s6 + $0x1e4] sm:$0xf]  ;;  %v6165_v4 = vld [vmem:[%s9614_s6 + $0x1e8] sm:$0xf0] }
 0x556   : > { %v5344_v2 = vmax.f32 %v4960_v38, 0.0  ;;  %v3228_v44 = vpack.c.bf16 %v3057_v63, %v3057_v63  ;;  %v2910_v8 = vadd.f32 %v2909_v21, %v2580_v3  ;;  %v2585_v18 = vpop.f32.mrf.mxu2  ;;  %v4430_v38 = vperm.slane %v9035_v45, %v7499_v32 }
 0x557   : > { %v4893_v37 = vunpack.c.l.bf16 %v4421_v15 }
 0x558   : > { %v4764_v28 = vunpack.c.l.bf16 %v3228_v44  ;;  %v3169_v47 = vpack.c.bf16 %v2910_v8, %v2910_v8  ;;  %2769 = vmatmul.bf16.gmra.mxu3 %v6388_v13  ;;  %2948 = vmatmul.bf16.gmra.mxu0 %v6152_v6  ;;  %v9099_v50 = vpack.c.bf16 %v5344_v2, %v5343_v9 }
 0x559   : > { %5633 = vmatpush.bf16.msrb.mxu2 %v8734_v60  ;;  %v9105_v29 = vpop.f32.mrf.mxu1  ;;  %v6405_v60 = vld [vmem:[%s9614_s6 + $0x3c8] sm:$0xf0] }
 0x55a   : > { %v5020_v26 = vadd.f32 %v4892_v49, %v4764_v28  ;;  %v4705_v52 = vunpack.c.l.bf16 %v3169_v47  ;;  %v6408_v14 = vor.u32 %v6618_v55, %v6405_v60  ;;  %v4894_v49 = vunpack.c.l.bf16 %v4430_v38  ;;  %v6620_v55 = vld [vmem:[%s9614_s6 + $0x3d4] sm:$0xf]  ;;  %v6413_v60 = vld [vmem:[%s9614_s6 + $0x3d8] sm:$0xf0] }
 0x55b   : > { %v2730_v53 = vpop.f32.mrf.mxu3  ;;  %v6416_v56 = vor.u32 %v6620_v55, %v6413_v60 }
 0x55c   : > { %v5404_v59 = vmax.f32 %v5020_v26, 0.0  ;;  %v4961_v34 = vadd.f32 %v4833_v31, %v4705_v52  ;;  %v3060_v3 = vadd.f32 %v9023_v51, %v2730_v53  ;;  %3108 = vmatmul.bf16.gmra.mxu1 %v6408_v14  ;;  %v9725_v26 = vld [vmem:[#allocation28_spill] sm:$0xff]  ;;  %v4439_v53 = vperm.slane %v8902_v46, %v7499_v32 }
 0x55d   : > { %5634 = vmatpush.bf16.msrb.mxu2 %v8682_v22  ;;  %v2911_v58 = vpop.f32.mrf.mxu0  ;;  %v6617_v22 = vld [vmem:[%s9614_s6 + $0x3b4] sm:$0xf0] }
 0x55e   : > { %v3229_v48 = vpack.c.bf16 %v3060_v3, %v3060_v3  ;;  %v2912_v17 = vadd.f32 %v2911_v58, %v2582_v7  ;;  %v9116_v51 = vpack.c.bf16 %v5404_v59, %v5403_v1  ;;  %v6396_v54 = vor.u32 %v6617_v22, %v6395_v0  ;;  %v2587_v15 = vpop.f32.mrf.mxu2  ;;  %v9726_v58 = vld [vmem:[#allocation29_spill] sm:$0xff] }
 0x55f   : > { %v5345_v2 = vmax.f32 %v4961_v34, 0.0  ;;  %v3908_v14 = vperm.slane %v9726_v58, %v7499_v32  ;;  %v6619_v22 = vld [vmem:[%s9614_s6 + $0x3c4] sm:$0xf0]  ;;  %v6622_v58 = vld [vmem:[%s9614_s6 + $0x3e4] sm:$0xf] }
 0x560   : > { %v4765_v30 = vunpack.c.l.bf16 %v3229_v48  ;;  %v3170_v16 = vpack.c.bf16 %v2912_v17, %v2912_v17 }
 0x561   : > { %v9133_v21 = vpop.f32.mrf.mxu1 }
 0x562   : > { %v5021_v61 = vadd.f32 %v4893_v37, %v4765_v30  ;;  %v4706_v33 = vunpack.c.l.bf16 %v3170_v16  ;;  %v4895_v30 = vunpack.c.l.bf16 %v4439_v53 }
 0x563   : > { %v2732_v63 = vpop.f32.mrf.mxu3 }
 0x564   : > { %v4962_v13 = vadd.f32 %v4834_v43, %v4706_v33  ;;  %v3062_v6 = vadd.f32 %v9056_v20, %v2732_v63  ;;  %v3899_v20 = vperm.slane %v9725_v26, %v7499_v32  ;;  %v5405_v1 = vmax.f32 %v5021_v61, 0.0 }
 0x565   : > { %v2914_v9 = vpop.f32.mrf.mxu0  ;;  %v4836_v43 = vunpack.c.l.bf16 %v3908_v14  ;;  %v4448_v63 = vperm.slane %v8905_v27, %v7499_v32  ;;  %v6421_v14 = vld [vmem:[%s9614_s6 + $0x3e8] sm:$0xf0] }
 0x566   : > { %v5346_v44 = vmax.f32 %v4962_v13, 0.0  ;;  %v3230_v8 = vpack.c.bf16 %v3062_v6, %v3062_v6  ;;  %v2915_v7 = vadd.f32 %v2914_v9, %v2585_v18  ;;  %v6403_v18 = vld [vmem:[%s9614_s6 + $0x3c0] sm:$0xf]  ;;  %v6168_v9 = vor.u32 %v6558_v10, %v6165_v4  ;;  %v6411_v10 = vld [vmem:[%s9614_s6 + $0x3d0] sm:$0xf] }
 0x567   : > { %v6621_v4 = vld [vmem:[%s9614_s6 + $0x3d4] sm:$0xf0] }
 0x568   : > { %v4766_v28 = vunpack.c.l.bf16 %v3230_v8  ;;  %2774 = vmatmul.bf16.gmra.mxu3 %v6396_v54  ;;  %2953 = vmatmul.bf16.gmra.mxu0 %v6160_v19  ;;  %v9135_v47 = vpack.c.bf16 %v5346_v44, %v5345_v2  ;;  %v3171_v31 = vpack.c.bf16 %v2915_v7, %v2915_v7  ;;  %v6404_v19 = vor.u32 %v6619_v22, %v6403_v18 }
 0x569   : > { %v9142_v3 = vpop.f32.mrf.mxu1 }
 0x56a   : > { %v5022_v45 = vadd.f32 %v4894_v49, %v4766_v28  ;;  %v4707_v46 = vunpack.c.l.bf16 %v3171_v31  ;;  %v9727_v28 = vld [vmem:[#allocation8_spill] sm:$0xff]  ;;  %v4896_v31 = vunpack.c.l.bf16 %v4448_v63 }
 0x56b   : > { %v2735_v52 = vpop.f32.mrf.mxu3 }
 0x56c   : > { %v5406_v59 = vmax.f32 %v5022_v45, 0.0  ;;  %v3065_v34 = vadd.f32 %v9066_v23, %v2735_v52  ;;  %3113 = vmatmul.bf16.gmra.mxu1 %v6416_v56  ;;  %v4835_v23 = vunpack.c.l.bf16 %v3899_v20 }
 0x56d   : > { %v2916_v25 = vpop.f32.mrf.mxu0 }
 0x56e   : > { %v3231_v48 = vpack.c.bf16 %v3065_v34, %v3065_v34  ;;  %v2917_v17 = vadd.f32 %v2916_v25, %v2587_v15  ;;  %v9152_v37 = vpack.c.bf16 %v5406_v59, %v5405_v1  ;;  %v4963_v61 = vadd.f32 %v4835_v23, %v4707_v46  ;;  %v9729_v25 = vld [vmem:[#allocation31_spill] sm:$0xff]  ;;  %v9730_v23 = vld [vmem:[#allocation9_spill] sm:$0xff] }
 0x56f   : > { %v4457_v1 = vperm.slane %v8917_v12, %v7499_v32  ;;  %v3926_v56 = vperm.slane %v9729_v25, %v7499_v32 }
 0x570   : > { %v4767_v16 = vunpack.c.l.bf16 %v3231_v48  ;;  %v3172_v0 = vpack.c.bf16 %v2917_v17, %v2917_v17  ;;  %v5347_v8 = vmax.f32 %v4963_v61, 0.0  ;;  %v6424_v48 = vor.u32 %v6622_v58, %v6421_v14  ;;  %v6173_v61 = vld [vmem:[%s9614_s6 + $0x1f8] sm:$0xf0] }
 0x571   : > { %v9169_v2 = vpop.f32.mrf.mxu1 }
 0x572   : > { %v5023_v33 = vadd.f32 %v4895_v30, %v4767_v16  ;;  %v4708_v38 = vunpack.c.l.bf16 %v3172_v0  ;;  %v4897_v0 = vunpack.c.l.bf16 %v4457_v1 }
 0x573   : > { %v2737_v13 = vpop.f32.mrf.mxu3 }
 0x574   : > { %v4964_v6 = vadd.f32 %v4836_v43, %v4708_v38  ;;  %v3067_v54 = vadd.f32 %v9094_v57, %v2737_v13  ;;  %v9728_v57 = vld [vmem:[#allocation38_spill] sm:$0xff]  ;;  %v5407_v59 = vmax.f32 %v5023_v33, 0.0  ;;  %v4838_v33 = vunpack.c.l.bf16 %v3926_v56 }
 0x575   : > { %v2919_v44 = vpop.f32.mrf.mxu0  ;;  %v3917_v15 = vperm.slane %v9728_v57, %v7499_v32  ;;  %v6560_v43 = vld [vmem:[%s9614_s6 + $0x1f4] sm:$0xf] }
 0x576   : > { %v5348_v7 = vmax.f32 %v4964_v6, 0.0  ;;  %v3232_v49 = vpack.c.bf16 %v3067_v54, %v3067_v54  ;;  %v2920_v45 = vadd.f32 %v2919_v44, %v9727_v28  ;;  %v4466_v6 = vperm.slane %v8875_v24, %v7499_v32 }
 0x577   : > { %v4837_v16 = vunpack.c.l.bf16 %v3917_v15  ;;  %v6412_v44 = vor.u32 %v6621_v4, %v6411_v10 }
 0x578   : > { %v4768_v26 = vunpack.c.l.bf16 %v3232_v49  ;;  %2779 = vmatmul.bf16.gmra.mxu3 %v6404_v19  ;;  %2958 = vmatmul.bf16.gmra.mxu0 %v6168_v9  ;;  %v9172_v20 = vpack.c.bf16 %v5348_v7, %v5347_v8  ;;  %v3173_v52 = vpack.c.bf16 %v2920_v45, %v2920_v45  ;;  %v6176_v8 = vor.u32 %v6560_v43, %v6173_v61 }
 0x579   : > { %v9179_v60 = vpop.f32.mrf.mxu1 }
 0x57a   : > { %v5024_v27 = vadd.f32 %v4896_v31, %v4768_v26  ;;  %v4709_v12 = vunpack.c.l.bf16 %v3173_v52  ;;  %v9731_v26 = vld [vmem:[#allocation10_spill] sm:$0xff]  ;;  %v4898_v52 = vunpack.c.l.bf16 %v4466_v6 }
 0x57b   : > { %v2740_v53 = vpop.f32.mrf.mxu3 }
 0x57c   : > { %v5408_v34 = vmax.f32 %v5024_v27, 0.0  ;;  %v3070_v55 = vadd.f32 %v9105_v29, %v2740_v53  ;;  %3118 = vmatmul.bf16.gmra.mxu1 %v6424_v48  ;;  %v4965_v38 = vadd.f32 %v4837_v16, %v4709_v12  ;;  %v6429_v48 = vld [vmem:[%s9614_s6 + $0x3f8] sm:$0xf0] }
 0x57d   : > { %v2921_v46 = vpop.f32.mrf.mxu0  ;;  %v9734_v12 = vld [vmem:[#allocation43_spill] sm:$0xff] }
 0x57e   : > { %v3233_v17 = vpack.c.bf16 %v3070_v55, %v3070_v55  ;;  %v2922_v30 = vadd.f32 %v2921_v46, %v9730_v23  ;;  %v9190_v29 = vpack.c.bf16 %v5408_v34, %v5407_v59  ;;  %v5349_v28 = vmax.f32 %v4965_v38, 0.0  ;;  %v9733_v34 = vld [vmem:[#allocation93_spill] sm:$0xff]  ;;  %v6624_v46 = vld [vmem:[%s9614_s6 + $0x3f4] sm:$0xf] }
 0x57f   : > { %v4475_v55 = vperm.slane %v9733_v34, %v7499_v32  ;;  %v6623_v38 = vld [vmem:[%s9614_s6 + $0x3e4] sm:$0xf0] }
 0x580   : > { %v4769_v18 = vunpack.c.l.bf16 %v3233_v17  ;;  %v3174_v22 = vpack.c.bf16 %v2922_v30, %v2922_v30  ;;  %v3944_v17 = vperm.slane %v9734_v12, %v7499_v32  ;;  %v6432_v30 = vor.u32 %v6624_v46, %v6429_v48  ;;  %v9739_v12 = vld [vmem:[#allocation89_spill] sm:$0xff] }
 0x581   : > { %v9207_v7 = vpop.f32.mrf.mxu1  ;;  %v4899_v4 = vunpack.c.l.bf16 %v4475_v55 }
 0x582   : > { %v5025_v63 = vadd.f32 %v4897_v0, %v4769_v18  ;;  %v4710_v13 = vunpack.c.l.bf16 %v3174_v22  ;;  %v9735_v18 = vld [vmem:[#allocation11_spill] sm:$0xff]  ;;  %v4840_v6 = vunpack.c.l.bf16 %v3944_v17  ;;  %v4493_v17 = vperm.slane %v9739_v12, %v7499_v32 }
 0x583   : > { %v2742_v54 = vpop.f32.mrf.mxu3 }
 0x584   : > { %v4966_v19 = vadd.f32 %v4838_v33, %v4710_v13  ;;  %v3072_v9 = vadd.f32 %v9133_v21, %v2742_v54  ;;  %v9732_v21 = vld [vmem:[#allocation32_spill] sm:$0xff]  ;;  %v5409_v58 = vmax.f32 %v5025_v63, 0.0  ;;  %v6181_v13 = vld [vmem:[%s9614_s6 + $0x208] sm:$0xf0] }
 0x585   : > { %v2924_v49 = vpop.f32.mrf.mxu0  ;;  %v3935_v1 = vperm.slane %v9732_v21, %v7499_v32  ;;  %v6419_v33 = vld [vmem:[%s9614_s6 + $0x3e0] sm:$0xf]  ;;  %v6562_v63 = vld [vmem:[%s9614_s6 + $0x204] sm:$0xf] }
 0x586   : > { %v5350_v45 = vmax.f32 %v4966_v19, 0.0  ;;  %v3234_v31 = vpack.c.bf16 %v3072_v9, %v3072_v9  ;;  %v2925_v27 = vadd.f32 %v2924_v49, %v9731_v26  ;;  %v6184_v26 = vor.u32 %v6562_v63, %v6181_v13 }
 0x587   : > { %v4839_v10 = vunpack.c.l.bf16 %v3935_v1  ;;  %v4901_v13 = vunpack.c.l.bf16 %v4493_v17 }
 0x588   : > { %v4770_v57 = vunpack.c.l.bf16 %v3234_v31  ;;  %2784 = vmatmul.bf16.gmra.mxu3 %v6412_v44  ;;  %2963 = vmatmul.bf16.gmra.mxu0 %v6176_v8  ;;  %v9210_v15 = vpack.c.bf16 %v5350_v45, %v5349_v28  ;;  %v3175_v53 = vpack.c.bf16 %v2925_v27, %v2925_v27  ;;  %v9736_v44 = vld [vmem:[#allocation99_spill] sm:$0xff]  ;;  %v6420_v31 = vor.u32 %v6623_v38, %v6419_v33  ;;  %v9741_v33 = vld [vmem:[#allocation13_spill] sm:$0xff] }
 0x589   : > { %v9217_v56 = vpop.f32.mrf.mxu1  ;;  %v4484_v8 = vperm.slane %v9736_v44, %v7499_v32 }
 0x58a   : > { %v5026_v24 = vadd.f32 %v4898_v52, %v4770_v57  ;;  %v4711_v16 = vunpack.c.l.bf16 %v3175_v53  ;;  %v9737_v52 = vld [vmem:[#allocation35_spill] sm:$0xff] }
 0x58b   : > { %v2745_v59 = vpop.f32.mrf.mxu3  ;;  %v3953_v57 = vperm.slane %v9737_v52, %v7499_v32  ;;  %v4900_v55 = vunpack.c.l.bf16 %v4484_v8 }
 0x58c   : > { %v5410_v14 = vmax.f32 %v5026_v24, 0.0  ;;  %v3075_v25 = vadd.f32 %v9142_v3, %v2745_v59  ;;  %3123 = vmatmul.bf16.gmra.mxu1 %v6432_v30  ;;  %v4967_v54 = vadd.f32 %v4839_v10, %v4711_v16  ;;  %v9738_v59 = vld [vmem:[#allocation12_spill] sm:$0xff] }
 0x58d   : > { %v2926_v23 = vpop.f32.mrf.mxu0 }
 0x58e   : > { %v3235_v0 = vpack.c.bf16 %v3075_v25, %v3075_v25  ;;  %v2927_v22 = vadd.f32 %v2926_v23, %v9735_v18  ;;  %v9228_v3 = vpack.c.bf16 %v5410_v14, %v5409_v58  ;;  %v5351_v53 = vmax.f32 %v4967_v54, 0.0 }
 0x590   : > { %v4771_v43 = vunpack.c.l.bf16 %v3235_v0  ;;  %v3176_v61 = vpack.c.bf16 %v2927_v22, %v2927_v22 }
 0x591   : > { %v9245_v27 = vpop.f32.mrf.mxu1 }
 0x592   : > { %v5027_v19 = vadd.f32 %v4899_v4, %v4771_v43  ;;  %v4712_v9 = vunpack.c.l.bf16 %v3176_v61  ;;  %v9740_v4 = vld [vmem:[#allocation37_spill] sm:$0xff] }
 0x593   : > { %v2747_v49 = vpop.f32.mrf.mxu3  ;;  %v3962_v43 = vperm.slane %v9740_v4, %v7499_v32 }
 0x594   : > { %v4968_v28 = vadd.f32 %v4840_v6, %v4712_v9  ;;  %v3077_v45 = vadd.f32 %v9169_v2, %v2747_v49  ;;  %v4841_v2 = vunpack.c.l.bf16 %v3953_v57  ;;  %v5411_v30 = vmax.f32 %v5027_v19, 0.0  ;;  %v6625_v19 = vld [vmem:[%s9614_s6 + $0x3f4] sm:$0xf0]  ;;  %v6564_v9 = vld [vmem:[%s9614_s6 + $0x214] sm:$0xf] }
 0x595   : > { %v2929_v24 = vpop.f32.mrf.mxu0  ;;  %v4842_v44 = vunpack.c.l.bf16 %v3962_v43  ;;  %v9746_v43 = vld [vmem:[#allocation40_spill] sm:$0xff] }
 0x596   : > { %v5352_v21 = vmax.f32 %v4968_v28, 0.0  ;;  %v3236_v1 = vpack.c.bf16 %v3077_v45, %v3077_v45  ;;  %v2930_v34 = vadd.f32 %v2929_v24, %v9738_v59  ;;  %v9742_v28 = vld [vmem:[#allocation90_spill] sm:$0xff] }
 0x597   : > { %v4502_v45 = vperm.slane %v9742_v28, %v7499_v32 }
 0x598   : > { %v5456_v58 = vpack.c.bf16 %v5352_v21, %v5351_v53  ;;  %v4772_v14 = vunpack.c.l.bf16 %v3236_v1  ;;  %v3177_v25 = vpack.c.bf16 %v2930_v34, %v2930_v34  ;;  %2789 = vmatmul.bf16.gmra.mxu3 %v6420_v31  ;;  %2968 = vmatmul.bf16.gmra.mxu0 %v6184_v26  ;;  %v9743_v53 = vld [vmem:[#allocation47_spill] sm:$0xff] }
 0x599   : > { %v9253_v22 = vpop.f32.mrf.mxu1  ;;  %v3971_v21 = vperm.slane %v9743_v53, %v7499_v32 }
 0x59a   : > { %v5028_v46 = vadd.f32 %v4900_v55, %v4772_v14  ;;  %v4713_v48 = vunpack.c.l.bf16 %v3177_v25  ;;  %5585 = vmatpush.bf16.msrb.mxu1 %v5456_v58  ;;  %v9744_v14 = vld [vmem:[#allocation14_spill] sm:$0xff]  ;;  %v4902_v25 = vunpack.c.l.bf16 %v4502_v45 }
 0x59b   : > { %v2750_v23 = vpop.f32.mrf.mxu3 }
 0x59c   : > { %v5412_v16 = vmax.f32 %v5028_v46, 0.0  ;;  %v4969_v0 = vadd.f32 %v4841_v2, %v4713_v48  ;;  %v3080_v18 = vadd.f32 %v9179_v60, %v2750_v23  ;;  %v6427_v60 = vld [vmem:[%s9614_s6 + $0x3f0] sm:$0xf]  ;;  %v4843_v48 = vunpack.c.l.bf16 %v3971_v21  ;;  %v9745_v23 = vld [vmem:[#allocation91_spill] sm:$0xff] }
 0x59d   : > { %v2931_v10 = vpop.f32.mrf.mxu0  ;;  %v6428_v57 = vor.u32 %v6625_v19, %v6427_v60 }
 0x59e   : > { %v3237_v61 = vpack.c.bf16 %v3080_v18, %v3080_v18  ;;  %v2932_v38 = vadd.f32 %v2931_v10, %v9741_v33  ;;  %5586 = vmatpush.bf16.msrb.mxu1 %v9210_v15  ;;  %v9259_v63 = vpack.c.bf16 %v5412_v16, %v5411_v30  ;;  %v6189_v15 = vld [vmem:[%s9614_s6 + $0x218] sm:$0xf0]  ;;  %v5353_v34 = vmax.f32 %v4969_v0, 0.0 }
 0x59f   : > { %v6192_v24 = vor.u32 %v6564_v9, %v6189_v15  ;;  %v4511_v30 = vperm.slane %v9745_v23, %v7499_v32  ;;  %v6197_v9 = vld [vmem:[%s9614_s6 + $0x228] sm:$0xf0] }
 0x5a0   : > { %v4773_v6 = vunpack.c.l.bf16 %v3237_v61  ;;  %v3178_v54 = vpack.c.bf16 %v2932_v38, %v2932_v38  ;;  %v3980_v61 = vperm.slane %v9746_v43, %v7499_v32  ;;  %v9747_v38 = vld [vmem:[#allocation15_spill] sm:$0xff] }
 0x5a1   : > { %v9279_v59 = vpop.f32.mrf.mxu1 }
 0x5a2   : > { %v5029_v8 = vadd.f32 %v4901_v13, %v4773_v6  ;;  %v4714_v49 = vunpack.c.l.bf16 %v3178_v54  ;;  %5587 = vmatpush.bf16.msrb.mxu1 %v9172_v20  ;;  %v4903_v54 = vunpack.c.l.bf16 %v4511_v30  ;;  %v4844_v15 = vunpack.c.l.bf16 %v3980_v61 }
 0x5a3   : > { %v2752_v31 = vpop.f32.mrf.mxu3 }
 0x5a4   : > { %v4970_v26 = vadd.f32 %v4842_v44, %v4714_v49  ;;  %v3082_v52 = vadd.f32 %v9207_v7, %v2752_v31  ;;  %v5413_v0 = vmax.f32 %v5029_v8, 0.0  ;;  %v9748_v49 = vld [vmem:[#allocation87_spill] sm:$0xff] }
 0x5a5   : > { %v2934_v1 = vpop.f32.mrf.mxu0  ;;  %v4520_v28 = vperm.slane %v9748_v49, %v7499_v32 }
 0x5a6   : > { %v5354_v55 = vmax.f32 %v4970_v26, 0.0  ;;  %v3238_v58 = vpack.c.bf16 %v3082_v52, %v3082_v52  ;;  %v2935_v20 = vadd.f32 %v2934_v1, %v9744_v14  ;;  %5588 = vmatpush.bf16.msrb.mxu1 %v9135_v47  ;;  %v9749_v52 = vld [vmem:[#allocation41_spill] sm:$0xff] }
 0x5a8   : > { %v4774_v2 = vunpack.c.l.bf16 %v3238_v58  ;;  %v3179_v46 = vpack.c.bf16 %v2935_v20, %v2935_v20  ;;  %2794 = vmatmul.bf16.gmra.mxu3 %v6428_v57  ;;  %2973 = vmatmul.bf16.gmra.mxu0 %v6192_v24  ;;  %v9283_v7 = vpack.c.bf16 %v5354_v55, %v5353_v34  ;;  %v3989_v57 = vperm.slane %v9749_v52, %v7499_v32  ;;  %v9750_v34 = vld [vmem:[#allocation16_spill] sm:$0xff]  ;;  %v9754_v52 = vld [vmem:[#allocation18_spill] sm:$0xff] }
 0x5aa   : > { %v5030_v12 = vadd.f32 %v4902_v25, %v4774_v2  ;;  %v4715_v17 = vunpack.c.l.bf16 %v3179_v46  ;;  %5589 = vmatpush.bf16.msrb.mxu1 %v9099_v50  ;;  %v9295_v50 = vpop.f32.mrf.mxu1 }
 0x5ab   : > { %v2755_v16 = vpop.f32.mrf.mxu3 }
 0x5ac   : > { %v5414_v18 = vmax.f32 %v5030_v12, 0.0  ;;  %v4971_v10 = vadd.f32 %v4843_v48, %v4715_v17  ;;  %v3085_v47 = vadd.f32 %v9217_v56, %v2755_v16  ;;  %v6566_v56 = vld [vmem:[%s9614_s6 + $0x224] sm:$0xf] }
 0x5ad   : > { %v2936_v4 = vpop.f32.mrf.mxu0  ;;  %v6200_v26 = vor.u32 %v6566_v56, %v6197_v9 }
 0x5ae   : > { %v3239_v33 = vpack.c.bf16 %v3085_v47, %v3085_v47  ;;  %v2937_v13 = vadd.f32 %v2936_v4, %v9747_v38  ;;  %5590 = vmatpush.bf16.msrb.mxu1 %v9062_v42  ;;  %v9293_v6 = vpack.c.bf16 %v5414_v18, %v5413_v0  ;;  %v5355_v53 = vmax.f32 %v4971_v10, 0.0  ;;  %v9752_v10 = vld [vmem:[#allocation17_spill] sm:$0xff]  ;;  %v4533_v4 = vpop.permute.xlu2 %4532  ;;  %v6568_v38 = vld [vmem:[%s9614_s6 + $0x234] sm:$0xf] }
 0x5b0   : > { %v4775_v60 = vunpack.c.l.bf16 %v3239_v33  ;;  %v3180_v19 = vpack.c.bf16 %v2937_v13, %v2937_v13  ;;  %v4529_v33 = vperm.slane %v9004_v62, %v7499_v32 }
 0x5b2   : > { %v5031_v44 = vadd.f32 %v4903_v54, %v4775_v60  ;;  %v4716_v8 = vunpack.c.l.bf16 %v3180_v19  ;;  %5591 = vmatpush.bf16.msrb.mxu1 %v9010_v11  ;;  %v4904_v11 = vunpack.c.l.bf16 %v4520_v28  ;;  %v9313_v25 = vpop.f32.mrf.mxu1  ;;  %v4538_v60 = vperm.slane %v4533_v4, %v7499_v32  ;;  %v6570_v4 = vld [vmem:[%s9614_s6 + $0x244] sm:$0xf] }
 0x5b3   : > { %v2757_v42 = vpop.f32.mrf.mxu3  ;;  %v4905_v49 = vunpack.c.l.bf16 %v4529_v33  ;;  %v4556_v33 = vperm.slane %v8950_v41, %v7499_v32 }
 0x5b4   : > { %v4972_v45 = vadd.f32 %v4844_v15, %v4716_v8  ;;  %v3087_v31 = vadd.f32 %v9245_v27, %v2757_v42  ;;  %v4845_v27 = vunpack.c.l.bf16 %v3989_v57  ;;  %v5415_v12 = vmax.f32 %v5031_v44, 0.0  ;;  %v9753_v8 = vld [vmem:[#allocation44_spill] sm:$0xff] }
 0x5b5   : > { %v2939_v24 = vpop.f32.mrf.mxu0  ;;  %v4007_v42 = vperm.slane %v9753_v8, %v7499_v32 }
 0x5b6   : > { %v5356_v21 = vmax.f32 %v4972_v45, 0.0  ;;  %v3240_v1 = vpack.c.bf16 %v3087_v31, %v3087_v31  ;;  %v2940_v55 = vadd.f32 %v2939_v24, %v9750_v34  ;;  %5592 = vmatpush.bf16.msrb.mxu1 %v8943_v35  ;;  %v9751_v35 = vld [vmem:[#allocation51_spill] sm:$0xff]  ;;  %v4906_v24 = vunpack.c.l.bf16 %v4538_v60 }
 0x5b7   : > { %v3998_v0 = vperm.slane %v9751_v35, %v7499_v32 }
 0x5b8   : > { %v4776_v58 = vunpack.c.l.bf16 %v3240_v1  ;;  %v3181_v14 = vpack.c.bf16 %v2940_v55, %v2940_v55  ;;  %2978 = vmatmul.bf16.gmra.mxu0 %v6200_v26  ;;  %v9311_v20 = vpack.c.bf16 %v5356_v21, %v5355_v53  ;;  %v4847_v55 = vunpack.c.l.bf16 %v4007_v42  ;;  %v9758_v42 = vld [vmem:[#allocation20_spill] sm:$0xff] }
 0x5b9   : > { %v4846_v13 = vunpack.c.l.bf16 %v3998_v0 }
 0x5ba   : > { %v5032_v2 = vadd.f32 %v4904_v11, %v4776_v58  ;;  %v4717_v46 = vunpack.c.l.bf16 %v3181_v14  ;;  %v9330_v56 = vpop.f32.mrf.mxu1 }
 0x5bb   : > { %v2760_v48 = vpop.f32.mrf.mxu3 }
 0x5bc   : > { %v5416_v17 = vmax.f32 %v5032_v2, 0.0  ;;  %v4973_v23 = vadd.f32 %v4845_v27, %v4717_v46  ;;  %v3090_v30 = vadd.f32 %v9253_v22, %v2760_v48  ;;  %v6205_v22 = vld [vmem:[%s9614_s6 + $0x238] sm:$0xf0] }
 0x5bd   : > { %v2941_v16 = vpop.f32.mrf.mxu0  ;;  %v6208_v62 = vor.u32 %v6568_v38, %v6205_v22 }
 0x5be   : > { %v9318_v18 = vpack.c.bf16 %v5416_v17, %v5415_v12  ;;  %v2942_v47 = vadd.f32 %v2941_v16, %v9752_v10  ;;  %v3241_v43 = vpack.c.bf16 %v3090_v30, %v3090_v30  ;;  %v5357_v45 = vmax.f32 %v4973_v23, 0.0  ;;  %v9755_v17 = vld [vmem:[#allocation45_spill] sm:$0xff]  ;;  %v9756_v30 = vld [vmem:[#allocation19_spill] sm:$0xff] }
 0x5bf   : > { %v4016_v23 = vperm.slane %v9755_v17, %v7499_v32 }
 0x5c0   : > { %v3182_v61 = vpack.c.bf16 %v2942_v47, %v2942_v47  ;;  %v4777_v9 = vunpack.c.l.bf16 %v3241_v43  ;;  %v4547_v47 = vperm.slane %v8947_v40, %v7499_v32  ;;  %v9757_v40 = vld [vmem:[#allocation55_spill] sm:$0xff] }
 0x5c1   : > { %v4848_v43 = vunpack.c.l.bf16 %v4016_v23  ;;  %v4565_v23 = vperm.slane %v8991_v39, %v7499_v32 }
 0x5c2   : > { %v4718_v54 = vunpack.c.l.bf16 %v3182_v61  ;;  %v5033_v53 = vadd.f32 %v4905_v49, %v4777_v9  ;;  %v3101_v12 = vpop.f32.mrf.mxu1  ;;  %v4907_v9 = vunpack.c.l.bf16 %v4547_v47  ;;  %v9761_v47 = vld [vmem:[#allocation100_spill] sm:$0xff] }
 0x5c3   : > { %v2762_v19 = vpop.f32.mrf.mxu3  ;;  %v4909_v39 = vunpack.c.l.bf16 %v4565_v23 }
 0x5c4   : > { %v4974_v15 = vadd.f32 %v4846_v13, %v4718_v54  ;;  %v3092_v44 = vadd.f32 %v9279_v59, %v2762_v19  ;;  %v5417_v14 = vmax.f32 %v5033_v53, 0.0  ;;  %v4025_v19 = vperm.slane %v9757_v40, %v7499_v32  ;;  %v9762_v40 = vld [vmem:[#allocation22_spill] sm:$0xff] }
 0x5c5   : > { %v2944_v28 = vpop.f32.mrf.mxu0 }
 0x5c6   : > { %v5358_v31 = vmax.f32 %v4974_v15, 0.0  ;;  %v3242_v26 = vpack.c.bf16 %v3092_v44, %v3092_v44  ;;  %v2945_v57 = vadd.f32 %v2944_v28, %v9754_v52  ;;  %v4908_v28 = vunpack.c.l.bf16 %v4556_v33 }
 0x5c8   : > { %v4778_v21 = vunpack.c.l.bf16 %v3242_v26  ;;  %v3183_v1 = vpack.c.bf16 %v2945_v57, %v2945_v57  ;;  %2983 = vmatmul.bf16.gmra.mxu0 %v6208_v62  ;;  %v9336_v34 = vpack.c.bf16 %v5358_v31, %v5357_v45 }
 0x5ca   : > { %v5034_v59 = vadd.f32 %v4906_v24, %v4778_v21  ;;  %v4719_v11 = vunpack.c.l.bf16 %v3183_v1  ;;  %v3104_v45 = vpop.f32.mrf.mxu1 }
 0x5cb   : > { %v2765_v58 = vpop.f32.mrf.mxu3 }
 0x5cc   : > { %v5418_v27 = vmax.f32 %v5034_v59, 0.0  ;;  %v4975_v2 = vadd.f32 %v4847_v55, %v4719_v11  ;;  %v3095_v46 = vadd.f32 %v9295_v50, %v2765_v58  ;;  %v6213_v50 = vld [vmem:[%s9614_s6 + $0x248] sm:$0xf0]  ;;  %v9759_v58 = vld [vmem:[#allocation48_spill] sm:$0xff] }
 0x5cd   : > { %v2946_v48 = vpop.f32.mrf.mxu0  ;;  %v6216_v60 = vor.u32 %v6570_v4, %v6213_v50  ;;  %v4574_v4 = vperm.slane %v9761_v47, %v7499_v32  ;;  %v4592_v47 = vperm.slane %v8945_v5, %v7499_v32 }
 0x5ce   : > { %v2947_v16 = vadd.f32 %v2946_v48, %v9756_v30  ;;  %v9342_v35 = vpack.c.bf16 %v5418_v27, %v5417_v14  ;;  %v3243_v0 = vpack.c.bf16 %v3095_v46, %v3095_v46  ;;  %v5359_v44 = vmax.f32 %v4975_v2, 0.0  ;;  %v9760_v27 = vld [vmem:[#allocation21_spill] sm:$0xff]  ;;  %v6572_v30 = vld [vmem:[%s9614_s6 + $0x254] sm:$0xf] }
 0x5cf   : > { %v4034_v14 = vperm.slane %v9759_v58, %v7499_v32 }
 0x5d0   : > { %v3184_v10 = vpack.c.bf16 %v2947_v16, %v2947_v16  ;;  %v4779_v22 = vunpack.c.l.bf16 %v3243_v0 }
 0x5d1   : > { %v4850_v0 = vunpack.c.l.bf16 %v4034_v14 }
 0x5d2   : > { %v4720_v61 = vunpack.c.l.bf16 %v3184_v10  ;;  %v5035_v31 = vadd.f32 %v4907_v9, %v4779_v22  ;;  %v3106_v16 = vpop.f32.mrf.mxu1  ;;  %v4910_v9 = vunpack.c.l.bf16 %v4574_v4 }
 0x5d3   : > { %v2767_v38 = vpop.f32.mrf.mxu3 }
 0x5d4   : > { %v4976_v13 = vadd.f32 %v4848_v43, %v4720_v61  ;;  %v3097_v54 = vadd.f32 %v9313_v25, %v2767_v38  ;;  %v4849_v25 = vunpack.c.l.bf16 %v4025_v19  ;;  %v5419_v21 = vmax.f32 %v5035_v31, 0.0 }
 0x5d5   : > { %v2949_v15 = vpop.f32.mrf.mxu0 }
 0x5d6   : > { %v5360_v62 = vmax.f32 %v4976_v13, 0.0  ;;  %v3244_v8 = vpack.c.bf16 %v3097_v54, %v3097_v54  ;;  %v2950_v49 = vadd.f32 %v2949_v15, %v9758_v42 }
 0x5d8   : > { %v4780_v41 = vunpack.c.l.bf16 %v3244_v8  ;;  %v3185_v26 = vpack.c.bf16 %v2950_v49, %v2950_v49  ;;  %2988 = vmatmul.bf16.gmra.mxu0 %v6216_v60  ;;  %v9358_v52 = vpack.c.bf16 %v5360_v62, %v5359_v44  ;;  %v6437_v49 = vld [vmem:[%s9616_s8 + $0x20] sm:$0x30] }
 0x5da   : > { %v5036_v57 = vadd.f32 %v4908_v28, %v4780_v41  ;;  %v4721_v24 = vunpack.c.l.bf16 %v3185_v26  ;;  %v3109_v31 = vpop.f32.mrf.mxu1  ;;  %v9763_v26 = vld [vmem:[#allocation49_spill] sm:$0xff] }
 0x5db   : > { %v2770_v53 = vpop.f32.mrf.mxu3 }
 0x5dc   : > { %v5420_v1 = vmax.f32 %v5036_v57, 0.0  ;;  %v4977_v55 = vadd.f32 %v4849_v25, %v4721_v24  ;;  %v3100_v59 = vadd.f32 %v9330_v56, %v2770_v53  ;;  %v6221_v56 = vld [vmem:[%s9614_s6 + $0x258] sm:$0xf0]  ;;  %v4043_v25 = vperm.slane %v9763_v26, %v7499_v32 }
 0x5dd   : > { %v2951_v11 = vpop.f32.mrf.mxu0  ;;  %v6224_v38 = vor.u32 %v6572_v30, %v6221_v56  ;;  %v6229_v30 = vld [vmem:[%s9614_s6 + $0x268] sm:$0xf0] }
 0x5de   : > { %v2952_v2 = vadd.f32 %v2951_v11, %v9760_v27  ;;  %v9364_v46 = vpack.c.bf16 %v5420_v1, %v5419_v21  ;;  %v3245_v48 = vpack.c.bf16 %v3100_v59, %v3100_v59  ;;  %v5361_v13 = vmax.f32 %v4977_v55, 0.0  ;;  %v9764_v1 = vld [vmem:[#allocation60_spill] sm:$0xff]  ;;  %v9765_v11 = vld [vmem:[#allocation23_spill] sm:$0xff] }
 0x5df   : > { %v4052_v55 = vperm.slane %v9764_v1, %v7499_v32  ;;  %v4851_v27 = vunpack.c.l.bf16 %v4043_v25 }
 0x5e0   : > { %v3186_v17 = vpack.c.bf16 %v2952_v2, %v2952_v2  ;;  %v4781_v43 = vunpack.c.l.bf16 %v3245_v48 }
 0x5e1   : > { %v4852_v56 = vunpack.c.l.bf16 %v4052_v55 }
 0x5e2   : > { %v4722_v10 = vunpack.c.l.bf16 %v3186_v17  ;;  %v5037_v15 = vadd.f32 %v4909_v39, %v4781_v43  ;;  %v9766_v17 = vld [vmem:[#allocation98_spill] sm:$0xff] }
 0x5e3   : > { %v2772_v50 = vpop.f32.mrf.mxu3  ;;  %v4583_v23 = vperm.slane %v9766_v17, %v7499_v32  ;;  %v6576_v17 = vld [vmem:[%s9614_s6 + $0x274] sm:$0xf] }
 0x5e4   : > { %v4978_v61 = vadd.f32 %v4850_v0, %v4722_v10  ;;  %v3102_v33 = vadd.f32 %v3101_v12, %v2772_v50  ;;  %v6626_v12 = vld [vmem:[%s9616_s8 + $0x4] sm:$0xf]  ;;  %v5421_v57 = vmax.f32 %v5037_v15, 0.0 }
 0x5e5   : > { %v2954_v22 = vpop.f32.mrf.mxu0  ;;  %v6440_v41 = vor.u32 %v6626_v12, %v6437_v49  ;;  %v6631_v12 = vld [vmem:[%s9616_s8 + $0x24] sm:$0x30] }
 0x5e6   : > { %v5362_v54 = vmax.f32 %v4978_v61, 0.0  ;;  %v3246_v60 = vpack.c.bf16 %v3102_v33, %v3102_v33  ;;  %v2955_v19 = vadd.f32 %v2954_v22, %v9762_v40  ;;  %v9402_v22 = vpop.f32.mrf.mxu1  ;;  %v9767_v40 = vld [vmem:[#allocation24_spill] sm:$0xff] }
 0x5e7   : > { %5579 = vmatmul.bf16.vlgmr.msra.gmra.mxu1 %v6440_v41  ;;  %v9768_v41 = vld [vmem:[#allocation52_spill] sm:$0xff] }
 0x5e8   : > { %v4782_v44 = vunpack.c.l.bf16 %v3246_v60  ;;  %2993 = vmatmul.bf16.gmra.mxu0 %v6224_v38  ;;  %v9377_v62 = vpack.c.bf16 %v5362_v54, %v5361_v13  ;;  %v3187_v42 = vpack.c.bf16 %v2955_v19, %v2955_v19  ;;  %v4911_v38 = vunpack.c.l.bf16 %v4583_v23 }
 0x5e9   : > { %v4061_v26 = vperm.slane %v9768_v41, %v7499_v32 }
 0x5ea   : > { %v5038_v8 = vadd.f32 %v4910_v9, %v4782_v44  ;;  %v4723_v59 = vunpack.c.l.bf16 %v3187_v42  ;;  %v4912_v9 = vunpack.c.l.bf16 %v4592_v47 }
 0x5eb   : > { %v2775_v28 = vpop.f32.mrf.mxu3 }
 0x5ec   : > { %v5422_v24 = vmax.f32 %v5038_v8, 0.0  ;;  %v3105_v53 = vadd.f32 %v3104_v45, %v2775_v28  ;;  %v6574_v45 = vld [vmem:[%s9614_s6 + $0x264] sm:$0xf]  ;;  %v4979_v0 = vadd.f32 %v4851_v27, %v4723_v59  ;;  %v9770_v59 = vld [vmem:[#allocation27_spill] sm:$0xff] }
 0x5ed   : > { %v2956_v21 = vpop.f32.mrf.mxu0  ;;  %v6232_v33 = vor.u32 %v6574_v45, %v6229_v30 }
 0x5ee   : > { %v2957_v58 = vadd.f32 %v2956_v21, %v9765_v11  ;;  %v9390_v14 = vpack.c.bf16 %v5422_v24, %v5421_v57  ;;  %v3247_v2 = vpack.c.bf16 %v3105_v53, %v3105_v53  ;;  %v5363_v13 = vmax.f32 %v4979_v0, 0.0  ;;  %v9769_v21 = vld [vmem:[#allocation54_spill] sm:$0xff]  ;;  %v9422_v27 = vpop.f32.mrf.mxu1 }
 0x5ef   : > { %v4070_v1 = vperm.slane %v9769_v21, %v7499_v32 }
 0x5f0   : > { %v3188_v48 = vpack.c.bf16 %v2957_v58, %v2957_v58  ;;  %v4783_v50 = vunpack.c.l.bf16 %v3247_v2  ;;  %v4853_v2 = vunpack.c.l.bf16 %v4061_v26 }
 0x5f1   : > { %v4854_v23 = vunpack.c.l.bf16 %v4070_v1 }
 0x5f2   : > { %v4724_v10 = vunpack.c.l.bf16 %v3188_v48  ;;  %v5039_v15 = vadd.f32 %v4911_v38, %v4783_v50 }
 0x5f3   : > { %v2777_v4 = vpop.f32.mrf.mxu3 }
 0x5f4   : > { %v4980_v43 = vadd.f32 %v4852_v56, %v4724_v10  ;;  %v3107_v61 = vadd.f32 %v3106_v16, %v2777_v4  ;;  %v6443_v16 = vld [vmem:[%s9616_s8 + $0x8] sm:$0xf]  ;;  %v5423_v25 = vmax.f32 %v5039_v15, 0.0 }
 0x5f5   : > { %v2959_v39 = vpop.f32.mrf.mxu0  ;;  %v6444_v28 = vor.u32 %v6631_v12, %v6443_v16  ;;  %v6435_v12 = vld [vmem:[%s9616_s8] sm:$0xf] }
 0x5f6   : > { %v5364_v54 = vmax.f32 %v4980_v43, 0.0  ;;  %v3248_v60 = vpack.c.bf16 %v3107_v61, %v3107_v61  ;;  %v2960_v19 = vadd.f32 %v2959_v39, %v9767_v40  ;;  %v9771_v43 = vld [vmem:[#allocation30_spill] sm:$0xff]  ;;  %v9433_v38 = vpop.f32.mrf.mxu1 }
 0x5f7   : > { %5593 = vmatmul.bf16.vlgmr.msrb.gmra.mxu1 %v6444_v28 }
 0x5f8   : > { %v4784_v44 = vunpack.c.l.bf16 %v3248_v60  ;;  %2998 = vmatmul.bf16.gmra.mxu0 %v6232_v33  ;;  %v9405_v8 = vpack.c.bf16 %v5364_v54, %v5363_v13  ;;  %v3189_v42 = vpack.c.bf16 %v2960_v19, %v2960_v19  ;;  %v9772_v54 = vld [vmem:[#allocation64_spill] sm:$0xff]  ;;  %v9773_v19 = vld [vmem:[#allocation57_spill] sm:$0xff] }
 0x5f9   : > { %v4079_v60 = vperm.slane %v9772_v54, %v7499_v32 }
 0x5fa   : > { %v5040_v5 = vadd.f32 %v4912_v9, %v4784_v44  ;;  %v4725_v55 = vunpack.c.l.bf16 %v3189_v42  ;;  %v4088_v9 = vperm.slane %v9773_v19, %v7499_v32  ;;  %v9774_v44 = vld [vmem:[#allocation33_spill] sm:$0xff] }
 0x5fb   : > { %v2780_v49 = vpop.f32.mrf.mxu3  ;;  %v4855_v42 = vunpack.c.l.bf16 %v4079_v60 }
 0x5fc   : > { %v5424_v57 = vmax.f32 %v5040_v5, 0.0  ;;  %v9415_v24 = vadd.f32 %v3109_v31, %v2780_v49  ;;  %v6237_v31 = vld [vmem:[%s9614_s6 + $0x278] sm:$0xf0]  ;;  %v4981_v45 = vadd.f32 %v4853_v2, %v4725_v55  ;;  %v6630_v49 = vld [vmem:[%s9616_s8 + $0x1c] sm:$0x30]  ;;  %v4856_v28 = vunpack.c.l.bf16 %v4088_v9  ;;  %v9775_v55 = vld [vmem:[#allocation58_spill] sm:$0xff] }
 0x5fd   : > { %v2961_v53 = vpop.f32.mrf.mxu0  ;;  %v6240_v10 = vor.u32 %v6576_v17, %v6237_v31  ;;  %v6436_v21 = vor.u32 %v6630_v49, %v6435_v12  ;;  %v9780_v12 = vld [vmem:[#allocation42_spill] sm:$0xff] }
 0x5fe   : > { %v2962_v11 = vadd.f32 %v2961_v53, %v9770_v59  ;;  %v9420_v58 = vpack.c.bf16 %v5424_v57, %v5423_v25  ;;  %v5365_v4 = vmax.f32 %v4981_v45, 0.0  ;;  %v3119_v57 = vpop.f32.mrf.mxu1  ;;  %v4097_v59 = vperm.slane %v9775_v55, %v7499_v32 }
 0x600   : > { %v3190_v48 = vpack.c.bf16 %v2962_v11, %v2962_v11  ;;  %v4857_v45 = vunpack.c.l.bf16 %v4097_v59 }
 0x602   : > { %v4726_v30 = vunpack.c.l.bf16 %v3190_v48  ;;  %v9776_v48 = vld [vmem:[#allocation36_spill] sm:$0xff] }
 0x603   : > { %v9430_v56 = vpop.f32.mrf.mxu3 }
 0x604   : > { %v4982_v0 = vadd.f32 %v4854_v23, %v4726_v30 }
 0x605   : > { %v2964_v47 = vpop.f32.mrf.mxu0 }
 0x606   : > { %v5366_v50 = vmax.f32 %v4982_v0, 0.0  ;;  %v2965_v61 = vadd.f32 %v2964_v47, %v9771_v43 }
 0x608   : > { %3003 = vmatmul.bf16.gmra.mxu0 %v6240_v10  ;;  %v5463_v33 = vpack.c.bf16 %v5366_v50, %v5365_v4  ;;  %v3191_v39 = vpack.c.bf16 %v2965_v61, %v2965_v61  ;;  %v3121_v4 = vpop.f32.mrf.mxu1  ;;  %v9777_v50 = vld [vmem:[#allocation68_spill] sm:$0xff]  ;;  %v9778_v61 = vld [vmem:[#allocation39_spill] sm:$0xff] }
 0x609   : > { %v4106_v43 = vperm.slane %v9777_v50, %v7499_v32 }
 0x60a   : > { %v4727_v15 = vunpack.c.l.bf16 %v3191_v39 }
 0x60b   : > { %v9435_v13 = vpop.f32.mrf.mxu3  ;;  %v4858_v60 = vunpack.c.l.bf16 %v4106_v43  ;;  %v9785_v43 = vld [vmem:[#allocation72_spill] sm:$0xff] }
 0x60c   : > { %v4983_v41 = vadd.f32 %v4855_v42, %v4727_v15 }
 0x60d   : > { %v2966_v40 = vpop.f32.mrf.mxu0 }
 0x60e   : > { %v2967_v5 = vadd.f32 %v2966_v40, %v9774_v44  ;;  %v5367_v11 = vmax.f32 %v4983_v41, 0.0  ;;  %v9779_v44 = vld [vmem:[#allocation61_spill] sm:$0xff] }
 0x610   : > { %v3192_v16 = vpack.c.bf16 %v2967_v5, %v2967_v5  ;;  %v4115_v5 = vperm.slane %v9779_v44, %v7499_v32 }
 0x612   : > { %v4728_v26 = vunpack.c.l.bf16 %v3192_v16 }
 0x613   : > { %v2787_v25 = vpop.f32.mrf.mxu3 }
 0x614   : > { %v4984_v53 = vadd.f32 %v4856_v28, %v4728_v26  ;;  %v3124_v28 = vpop.f32.mrf.mxu1  ;;  %v4859_v26 = vunpack.c.l.bf16 %v4115_v5 }
 0x615   : > { %v2969_v1 = vpop.f32.mrf.mxu0 }
 0x616   : > { %v5368_v2 = vmax.f32 %v4984_v53, 0.0  ;;  %v2970_v17 = vadd.f32 %v2969_v1, %v9776_v48  ;;  %v9782_v48 = vld [vmem:[#allocation94_spill] sm:$0xff] }
 0x618   : > { %v5464_v31 = vpack.c.bf16 %v5368_v2, %v5367_v11  ;;  %v3193_v23 = vpack.c.bf16 %v2970_v17, %v2970_v17  ;;  %5565 = vmatmul.bf16.vlgmr.msra.gmra.mxu0 %v6436_v21  ;;  %v9781_v11 = vld [vmem:[#allocation62_spill] sm:$0xff]  ;;  %v4646_v17 = vperm.slane %v9782_v48, %v7499_v32 }
 0x619   : > { %v4124_v2 = vperm.slane %v9781_v11, %v7499_v32 }
 0x61a   : > { %v4729_v30 = vunpack.c.l.bf16 %v3193_v23  ;;  %5599 = vmatpush.bf16.msra.mxu1 %v5464_v31  ;;  %v9784_v23 = vld [vmem:[#allocation85_spill] sm:$0xff] }
 0x61b   : > { %v2790_v0 = vpop.f32.mrf.mxu3 }
 0x61c   : > { %v4985_v10 = vadd.f32 %v4857_v45, %v4729_v30  ;;  %v4655_v45 = vperm.slane %v9784_v23, %v7499_v32  ;;  %v3120_v30 = vadd.f32 %v3119_v57, %v2790_v0  ;;  %v3126_v50 = vpop.f32.mrf.mxu1  ;;  %v6445_v57 = vld [vmem:[%s9616_s8 + $0x28] sm:$0x30] }
 0x61d   : > { %v2971_v47 = vpop.f32.mrf.mxu0 }
 0x61e   : > { %v2972_v39 = vadd.f32 %v2971_v47, %v9778_v61  ;;  %5600 = vmatpush.bf16.msra.mxu1 %v5463_v33  ;;  %v5369_v42 = vmax.f32 %v4985_v10, 0.0  ;;  %v3117_v47 = vadd.f32 %v9433_v38, %v2787_v25  ;;  %v4133_v61 = vperm.slane %v9785_v43, %v7499_v32  ;;  %v9786_v38 = vld [vmem:[#allocation86_spill] sm:$0xff] }
 0x61f   : > { %v4664_v25 = vperm.slane %v9786_v38, %v7499_v32  ;;  %v4919_v0 = vunpack.c.l.bf16 %v4655_v45  ;;  %v3249_v43 = vpack.c.bf16 %v9415_v24, %v9415_v24  ;;  %v9792_v38 = vld [vmem:[#allocation65_spill] sm:$0xff] }
 0x620   : > { %v3194_v54 = vpack.c.bf16 %v2972_v39, %v2972_v39  ;;  %v4860_v39 = vunpack.c.l.bf16 %v4124_v2 }
 0x622   : > { %v4730_v40 = vunpack.c.l.bf16 %v3194_v54  ;;  %5601 = vmatpush.bf16.msra.mxu1 %v9405_v8  ;;  %v4918_v54 = vunpack.c.l.bf16 %v4646_v17 }
 0x623   : > { %v2792_v19 = vpop.f32.mrf.mxu3 }
 0x624   : > { %v4986_v9 = vadd.f32 %v4858_v60, %v4730_v40  ;;  %v3122_v55 = vadd.f32 %v3121_v4, %v2792_v19  ;;  %v3115_v40 = vadd.f32 %v9422_v27, %v9435_v13  ;;  %v3253_v19 = vpack.c.bf16 %v3120_v30, %v3120_v30 }
 0x625   : > { %v2974_v15 = vpop.f32.mrf.mxu0  ;;  %v4920_v13 = vunpack.c.l.bf16 %v4664_v25  ;;  %v4142_v25 = vperm.slane %v9792_v38, %v7499_v32 }
 0x626   : > { %v5370_v16 = vmax.f32 %v4986_v9, 0.0  ;;  %v2975_v49 = vadd.f32 %v2974_v15, %v9780_v12  ;;  %5602 = vmatpush.bf16.msra.mxu1 %v9377_v62  ;;  %v9783_v62 = vld [vmem:[#allocation46_spill] sm:$0xff]  ;;  %v3254_v4 = vpack.c.bf16 %v3122_v55, %v3122_v55  ;;  %v9787_v15 = vld [vmem:[#allocation88_spill] sm:$0xff]  ;;  %v3252_v12 = vpack.c.bf16 %v3117_v47, %v3117_v47 }
 0x627   : > { %v9789_v55 = vld [vmem:[#allocation92_spill] sm:$0xff]  ;;  %v3251_v11 = vpack.c.bf16 %v3115_v40, %v3115_v40  ;;  %v4789_v2 = vunpack.c.l.bf16 %v3253_v19 }
 0x628   : > { %v3195_v41 = vpack.c.bf16 %v2975_v49, %v2975_v49  ;;  %v9459_v33 = vpack.c.bf16 %v5370_v16, %v5369_v42  ;;  %v3112_v16 = vadd.f32 %v9402_v22, %v9430_v56  ;;  %v4790_v49 = vunpack.c.l.bf16 %v3254_v4  ;;  %v9791_v4 = vld [vmem:[#allocation96_spill] sm:$0xff] }
 0x629   : > { %v4788_v30 = vunpack.c.l.bf16 %v3252_v12 }
 0x62a   : > { %v4731_v53 = vunpack.c.l.bf16 %v3195_v41  ;;  %5603 = vmatpush.bf16.msra.mxu1 %v9358_v52  ;;  %v3250_v45 = vpack.c.bf16 %v3112_v16, %v3112_v16  ;;  %v4785_v16 = vunpack.c.l.bf16 %v3249_v43  ;;  %v9797_v43 = vld [vmem:[#allocation77_spill] sm:$0xff] }
 0x62b   : > { %v2795_v8 = vpop.f32.mrf.mxu3 }
 0x62c   : > { %v4987_v21 = vadd.f32 %v4859_v26, %v4731_v53  ;;  %v3125_v1 = vadd.f32 %v3124_v28, %v2795_v8  ;;  %v4786_v19 = vunpack.c.l.bf16 %v3250_v45 }
 0x62d   : > { %v2976_v59 = vpop.f32.mrf.mxu0 }
 0x62e   : > { %v2977_v31 = vadd.f32 %v2976_v59, %v9783_v62  ;;  %5604 = vmatpush.bf16.msra.mxu1 %v9336_v34  ;;  %v3255_v52 = vpack.c.bf16 %v3125_v1, %v3125_v1  ;;  %v6627_v34 = vld [vmem:[%s9616_s8 + $0xc] sm:$0xf]  ;;  %v5371_v26 = vmax.f32 %v4987_v21, 0.0  ;;  %v9788_v1 = vld [vmem:[#allocation50_spill] sm:$0xff]  ;;  %v4628_v59 = vperm.slane %v9789_v55, %v7499_v32 }
 0x62f   : > { %v6448_v41 = vor.u32 %v6627_v34, %v6445_v57  ;;  %v4861_v62 = vunpack.c.l.bf16 %v4133_v61  ;;  %v9790_v21 = vld [vmem:[#allocation97_spill] sm:$0xff] }
 0x630   : > { %v3196_v10 = vpack.c.bf16 %v2977_v31, %v2977_v31  ;;  %v4791_v44 = vunpack.c.l.bf16 %v3255_v52  ;;  %v4619_v31 = vperm.slane %v9790_v21, %v7499_v32  ;;  %v4916_v47 = vunpack.c.l.bf16 %v4628_v59  ;;  %v9796_v21 = vld [vmem:[#allocation56_spill] sm:$0xff] }
 0x632   : > { %v4732_v60 = vunpack.c.l.bf16 %v3196_v10  ;;  %5605 = vmatpush.bf16.msra.mxu1 %v9311_v20  ;;  %v4637_v20 = vperm.slane %v9787_v15, %v7499_v32  ;;  %v5047_v48 = vadd.f32 %v4919_v0, %v4791_v44  ;;  %v4915_v0 = vunpack.c.l.bf16 %v4619_v31 }
 0x633   : > { %v2797_v9 = vpop.f32.mrf.mxu3  ;;  %v5044_v15 = vadd.f32 %v4916_v47, %v4788_v30 }
 0x634   : > { %v4988_v5 = vadd.f32 %v4860_v39, %v4732_v60  ;;  %v3127_v42 = vadd.f32 %v3126_v50, %v2797_v9  ;;  %v4917_v23 = vunpack.c.l.bf16 %v4637_v20  ;;  %v4610_v50 = vperm.slane %v9791_v4, %v7499_v32 }
 0x635   : > { %v2979_v28 = vpop.f32.mrf.mxu0  ;;  %v4787_v39 = vunpack.c.l.bf16 %v3251_v11  ;;  %v5431_v61 = vmax.f32 %v5047_v48, 0.0  ;;  %v9795_v11 = vld [vmem:[#allocation66_spill] sm:$0xff] }
 0x636   : > { %v5372_v53 = vmax.f32 %v4988_v5, 0.0  ;;  %v3256_v8 = vpack.c.bf16 %v3127_v42, %v3127_v42  ;;  %v2980_v27 = vadd.f32 %v2979_v28, %v9788_v1  ;;  %5606 = vmatpush.bf16.msra.mxu1 %v9283_v7  ;;  %v5046_v7 = vadd.f32 %v4918_v54, %v4790_v49  ;;  %v9793_v54 = vld [vmem:[#allocation95_spill] sm:$0xff]  ;;  %v9794_v5 = vld [vmem:[#allocation53_spill] sm:$0xff] }
 0x637   : > { %v5045_v60 = vadd.f32 %v4917_v23, %v4789_v2  ;;  %v4601_v40 = vperm.slane %v9793_v54, %v7499_v32  ;;  %v4914_v24 = vunpack.c.l.bf16 %v4610_v50  ;;  %v5043_v12 = vadd.f32 %v4915_v0, %v4787_v39  ;;  %v9799_v54 = vld [vmem:[#allocation69_spill] sm:$0xff] }
 0x638   : > { %v4792_v17 = vunpack.c.l.bf16 %v3256_v8  ;;  %v3197_v22 = vpack.c.bf16 %v2980_v27, %v2980_v27  ;;  %v9492_v56 = vpack.c.bf16 %v5372_v53, %v5371_v26  ;;  %v5430_v20 = vmax.f32 %v5046_v7, 0.0 }
 0x639   : > { %5607 = vmatmul.bf16.vlgmr.msra.gmra.mxu1 %v6448_v41  ;;  %v5429_v49 = vmax.f32 %v5045_v60, 0.0  ;;  %v4862_v41 = vunpack.c.l.bf16 %v4142_v25  ;;  %v5042_v26 = vadd.f32 %v4914_v24, %v4786_v19  ;;  %v4913_v53 = vunpack.c.l.bf16 %v4601_v40  ;;  %v9798_v60 = vld [vmem:[#allocation59_spill] sm:$0xff] }
 0x63a   : > { %v5048_v52 = vadd.f32 %v4920_v13, %v4792_v17  ;;  %v4733_v10 = vunpack.c.l.bf16 %v3197_v22  ;;  %v5428_v8 = vmax.f32 %v5044_v15, 0.0  ;;  %v5427_v55 = vmax.f32 %v5043_v12, 0.0  ;;  %v9800_v15 = vld [vmem:[#allocation63_spill] sm:$0xff] }
 0x63b   : > { %v5495_v27 = vpack.c.bf16 %v5430_v20, %v5429_v49  ;;  %v5041_v13 = vadd.f32 %v4913_v53, %v4785_v16  ;;  %v4151_v2 = vperm.slane %v9795_v11, %v7499_v32  ;;  %v5426_v48 = vmax.f32 %v5042_v26, 0.0  ;;  %v9802_v49 = vld [vmem:[#allocation67_spill] sm:$0xff] }
 0x63c   : > { %v5432_v34 = vmax.f32 %v5048_v52, 0.0  ;;  %v4989_v57 = vadd.f32 %v4861_v62, %v4733_v10  ;;  %v5494_v23 = vpack.c.bf16 %v5428_v8, %v5427_v55  ;;  %v4160_v39 = vperm.slane %v9797_v43, %v7499_v32 }
 0x63d   : > { %v2981_v9 = vpop.f32.mrf.mxu0  ;;  %v5425_v45 = vmax.f32 %v5041_v13, 0.0  ;;  %v4863_v52 = vunpack.c.l.bf16 %v4151_v2  ;;  %v4169_v40 = vperm.slane %v9799_v54, %v7499_v32  ;;  %v9803_v13 = vld [vmem:[#allocation70_spill] sm:$0xff]  ;;  %v9804_v2 = vld [vmem:[#allocation81_spill] sm:$0xff] }
 0x63e   : > { %v5496_v44 = vpack.c.bf16 %v5432_v34, %v5431_v61  ;;  %v2982_v42 = vadd.f32 %v2981_v9, %v9794_v5  ;;  %v5373_v22 = vmax.f32 %v4989_v57, 0.0  ;;  %v4864_v57 = vunpack.c.l.bf16 %v4160_v39  ;;  %v9807_v39 = vld [vmem:[#allocation76_spill] sm:$0xff] }
 0x63f   : > { %v5493_v47 = vpack.c.bf16 %v5426_v48, %v5425_v45 }
 0x640   : > { %v3198_v28 = vpack.c.bf16 %v2982_v42, %v2982_v42  ;;  %5655 = vmatpush.bf16.msra.mxu2 %v5496_v44  ;;  %v4865_v42 = vunpack.c.l.bf16 %v4169_v40 }
 0x642   : > { %v4734_v1 = vunpack.c.l.bf16 %v3198_v28 }
 0x644   : > { %v4990_v59 = vadd.f32 %v4862_v41, %v4734_v1  ;;  %5656 = vmatpush.bf16.msra.mxu2 %v5495_v27 }
 0x645   : > { %v2984_v17 = vpop.f32.mrf.mxu0 }
 0x646   : > { %v5374_v62 = vmax.f32 %v4990_v59, 0.0  ;;  %v2985_v31 = vadd.f32 %v2984_v17, %v9796_v21  ;;  %v9805_v17 = vld [vmem:[#allocation74_spill] sm:$0xff]  ;;  %v9806_v21 = vld [vmem:[#allocation73_spill] sm:$0xff] }
 0x648   : > { %v3199_v30 = vpack.c.bf16 %v2985_v31, %v2985_v31  ;;  %5657 = vmatpush.bf16.msra.mxu2 %v5494_v23  ;;  %v9508_v7 = vpack.c.bf16 %v5374_v62, %v5373_v22  ;;  %v4196_v22 = vperm.slane %v9805_v17, %v7499_v32 }
 0x64a   : > { %v4735_v10 = vunpack.c.l.bf16 %v3199_v30  ;;  %v4868_v30 = vunpack.c.l.bf16 %v4196_v22 }
 0x64c   : > { %v4991_v4 = vadd.f32 %v4863_v52, %v4735_v10  ;;  %5658 = vmatpush.bf16.msra.mxu2 %v5493_v47 }
 0x64d   : > { %v2986_v50 = vpop.f32.mrf.mxu0 }
 0x64e   : > { %v2987_v61 = vadd.f32 %v2986_v50, %v9798_v60  ;;  %v5375_v19 = vmax.f32 %v4991_v4, 0.0 }
 0x650   : > { %v3200_v34 = vpack.c.bf16 %v2987_v61, %v2987_v61  ;;  %5659 = vmatpush.bf16.msra.mxu2 %v9420_v58 }
 0x652   : > { %v4736_v38 = vunpack.c.l.bf16 %v3200_v34 }
 0x654   : > { %v4992_v25 = vadd.f32 %v4864_v57, %v4736_v38  ;;  %5660 = vmatpush.bf16.msra.mxu2 %v9390_v14  ;;  %v9801_v14 = vld [vmem:[#allocation71_spill] sm:$0xff] }
 0x655   : > { %v2989_v0 = vpop.f32.mrf.mxu0  ;;  %v4178_v12 = vperm.slane %v9801_v14, %v7499_v32  ;;  %v9808_v57 = vld [vmem:[#allocation75_spill] sm:$0xff] }
 0x656   : > { %v5376_v9 = vmax.f32 %v4992_v25, 0.0  ;;  %v2990_v20 = vadd.f32 %v2989_v0, %v9800_v15  ;;  %v4205_v38 = vperm.slane %v9808_v57, %v7499_v32  ;;  %v9809_v0 = vld [vmem:[#allocation83_spill] sm:$0xff]  ;;  %v5515_v57 = vpop.permute.xlu0 %5514 }
 0x657   : > { %v4866_v26 = vunpack.c.l.bf16 %v4178_v12  ;;  %v4214_v54 = vperm.slane %v9809_v0, %v7499_v32 }
 0x658   : > { %v3201_v44 = vpack.c.bf16 %v2990_v20, %v2990_v20  ;;  %5661 = vmatpush.bf16.msra.mxu2 %v9364_v46  ;;  %v9519_v5 = vpack.c.bf16 %v5376_v9, %v5375_v19  ;;  %v9810_v19 = vld [vmem:[#allocation80_spill] sm:$0xff]  ;;  %v4869_v15 = vunpack.c.l.bf16 %v4205_v38 }
 0x65a   : > { %v4737_v58 = vunpack.c.l.bf16 %v3201_v44  ;;  %v4870_v44 = vunpack.c.l.bf16 %v4214_v54 }
 0x65c   : > { %v4993_v24 = vadd.f32 %v4865_v42, %v4737_v58  ;;  %5662 = vmatpush.bf16.msra.mxu2 %v9342_v35  ;;  %v4187_v35 = vperm.slane %v9804_v2, %v7499_v32 }
 0x65d   : > { %v2991_v16 = vpop.f32.mrf.mxu0 }
 0x65e   : > { %v2992_v28 = vadd.f32 %v2991_v16, %v9802_v49  ;;  %v5377_v27 = vmax.f32 %v4993_v24, 0.0  ;;  %v4867_v23 = vunpack.c.l.bf16 %v4187_v35  ;;  %v9811_v49 = vld [vmem:[#allocation82_spill] sm:$0xff] }
 0x660   : > { %v3202_v41 = vpack.c.bf16 %v2992_v28, %v2992_v28 }
 0x662   : > { %v4738_v53 = vunpack.c.l.bf16 %v3202_v41 }
 0x664   : > { %v4994_v8 = vadd.f32 %v4866_v26, %v4738_v53  ;;  %v9812_v53 = vld [vmem:[#allocation78_spill] sm:$0xff] }
 0x665   : > { %v2994_v1 = vpop.f32.mrf.mxu0 }
 0x666   : > { %v5378_v46 = vmax.f32 %v4994_v8, 0.0  ;;  %v2995_v55 = vadd.f32 %v2994_v1, %v9803_v13  ;;  %v4223_v8 = vperm.slane %v9812_v53, %v7499_v32 }
 0x668   : > { %v5469_v59 = vpack.c.bf16 %v5378_v46, %v5377_v27  ;;  %v3203_v11 = vpack.c.bf16 %v2995_v55, %v2995_v55  ;;  %v9813_v27 = vld [vmem:[#allocation79_spill] sm:$0xff]  ;;  %v9814_v55 = vld [vmem:[#allocation84_spill] sm:$0xff]  ;;  %v4871_v2 = vunpack.c.l.bf16 %v4223_v8 }
 0x669   : > { %v4232_v46 = vperm.slane %v9813_v27, %v7499_v32 }
 0x66a   : > { %v4739_v62 = vunpack.c.l.bf16 %v3203_v11 }
 0x66c   : > { %v4995_v52 = vadd.f32 %v4867_v23, %v4739_v62  ;;  %v6628_v62 = vld [vmem:[%s9616_s8 + $0x14] sm:$0xf] }
 0x66d   : > { %v2996_v48 = vpop.f32.mrf.mxu0 }
 0x66e   : > { %v2997_v31 = vadd.f32 %v2996_v48, %v9806_v21  ;;  %v5379_v50 = vmax.f32 %v4995_v52, 0.0  ;;  %v4872_v48 = vunpack.c.l.bf16 %v4232_v46  ;;  %v6453_v21 = vld [vmem:[%s9616_s8 + $0x30] sm:$0x30]  ;;  %v6629_v52 = vld [vmem:[%s9616_s8 + $0x1c] sm:$0xf] }
 0x670   : > { %v3204_v45 = vpack.c.bf16 %v2997_v31, %v2997_v31  ;;  %v6456_v31 = vor.u32 %v6628_v62, %v6453_v21 }
 0x672   : > { %v4740_v10 = vunpack.c.l.bf16 %v3204_v45  ;;  %5635 = vmatmul.bf16.vlgmr.msrb.gmra.mxu2 %v6456_v31 }
 0x674   : > { %v4996_v47 = vadd.f32 %v4868_v30, %v4740_v10  ;;  %v6461_v10 = vld [vmem:[%s9616_s8 + $0x38] sm:$0x30] }
 0x675   : > { %v2999_v4 = vpop.f32.mrf.mxu0 }
 0x676   : > { %v5380_v43 = vmax.f32 %v4996_v47, 0.0  ;;  %v3000_v60 = vadd.f32 %v2999_v4, %v9807_v39  ;;  %v6464_v47 = vor.u32 %v6629_v52, %v6461_v10  ;;  %v6632_v4 = vld [vmem:[%s9616_s8 + $0x2c] sm:$0x30] }
 0x678   : > { %v5470_v61 = vpack.c.bf16 %v5380_v43, %v5379_v50  ;;  %v3205_v34 = vpack.c.bf16 %v3000_v60, %v3000_v60 }
 0x67a   : > { %v4741_v40 = vunpack.c.l.bf16 %v3205_v34 }
 0x67c   : > { %v4997_v42 = vadd.f32 %v4869_v15, %v4741_v40 }
 0x67d   : > { %v3001_v25 = vpop.f32.mrf.mxu0 }
 0x67e   : > { %v3002_v9 = vadd.f32 %v3001_v25, %v9810_v19  ;;  %v5381_v14 = vmax.f32 %v4997_v42, 0.0 }
 0x680   : > { %v3206_v20 = vpack.c.bf16 %v3002_v9, %v3002_v9 }
 0x682   : > { %v4742_v58 = vunpack.c.l.bf16 %v3206_v20  ;;  %5663 = vmatmul.bf16.vlgmr.msra.gmra.mxu2 %v6464_v47 }
 0x684   : > { %v4998_v24 = vadd.f32 %v4870_v44, %v4742_v58 }
 0x685   : > { %v3004_v16 = vpop.f32.mrf.mxu0 }
 0x686   : > { %v5382_v12 = vmax.f32 %v4998_v24, 0.0  ;;  %v3005_v28 = vadd.f32 %v3004_v16, %v9811_v49 }
 0x688   : > { %v5471_v41 = vpack.c.bf16 %v5382_v12, %v5381_v14  ;;  %v3207_v26 = vpack.c.bf16 %v3005_v28, %v3005_v28 }
 0x68a   : > { %v4743_v13 = vunpack.c.l.bf16 %v3207_v26 }
 0x68c   : > { %v4999_v17 = vadd.f32 %v4871_v2, %v4743_v13 }
 0x68d   : > { %v3006_v1 = vpop.f32.mrf.mxu0 }
 0x68e   : > { %v3007_v11 = vadd.f32 %v3006_v1, %v9814_v55  ;;  %v5383_v32 = vmax.f32 %v4999_v17, 0.0 }
 0x690   : > { %v3208_v35 = vpack.c.bf16 %v3007_v11, %v3007_v11 }
 0x692   : > { %v4744_v22 = vunpack.c.l.bf16 %v3208_v35 }
 0x694   : > { %v5000_v23 = vadd.f32 %v4872_v48, %v4744_v22 }
 0x696   : > { %v5384_v45 = vmax.f32 %v5000_v23, 0.0 }
 0x698   : > { %v5472_v30 = vpack.c.bf16 %v5384_v45, %v5383_v32 }
 0x69a   : > { %5613 = vmatpush.bf16.msrb.mxu1 %v5472_v30 }
 0x69e   : > { %5614 = vmatpush.bf16.msrb.mxu1 %v5471_v41 }
 0x6a2   : > { %5615 = vmatpush.bf16.msrb.mxu1 %v5470_v61 }
 0x6a6   : > { %5616 = vmatpush.bf16.msrb.mxu1 %v5469_v59  ;;  %v6451_v59 = vld [vmem:[%s9616_s8 + $0x10] sm:$0xf] }
 0x6a7   : > { %v6452_v50 = vor.u32 %v6632_v4, %v6451_v59 }
 0x6aa   : > { %5617 = vmatpush.bf16.msrb.mxu1 %v9519_v5  ;;  %v5510_v5 = vpop.permute.xlu2 %5509 }
 0x6ae   : > { %5618 = vmatpush.bf16.msrb.mxu1 %v9508_v7 }
 0x6b2   : > { %5619 = vmatpush.bf16.msrb.mxu1 %v9492_v56  ;;  %v6459_v56 = vld [vmem:[%s9616_s8 + $0x18] sm:$0xf] }
 0x6b6   : > { %5620 = vmatpush.bf16.msrb.mxu1 %v9459_v33 }
 0x6b9   : > { %5621 = vmatmul.bf16.vlgmr.msrb.gmra.mxu1 %v6452_v50 }
 0x6ba   : > { %5641 = vmatpush.bf16.msra.mxu1 %v9318_v18  ;;  %v6633_v18 = vld [vmem:[%s9616_s8 + $0x34] sm:$0x30] }
 0x6bb   : > { %v6460_v33 = vor.u32 %v6633_v18, %v6459_v56 }
 0x6be   : > { %5642 = vmatpush.bf16.msra.mxu1 %v9293_v6 }
 0x6c2   : > { %5643 = vmatpush.bf16.msra.mxu1 %v9259_v63  ;;  %v5580_v63 = vpop.f32.mrf.mxu1 }
 0x6c6   : > { %5644 = vmatpush.bf16.msra.mxu1 %v9228_v3 }
 0x6ca   : > { %5645 = vmatpush.bf16.msra.mxu1 %v9190_v29  ;;  %v5582_v3 = vpop.f32.mrf.mxu1 }
 0x6ce   : > { %5646 = vmatpush.bf16.msra.mxu1 %v9152_v37 }
 0x6d2   : > { %5647 = vmatpush.bf16.msra.mxu1 %v9116_v51  ;;  %v5594_v6 = vpop.f32.mrf.mxu1  ;;  %v5566_v51 = vpop.f32.mrf.mxu0 }
 0x6d3   : > { %v5567_v60 = vadd.f32 %v5566_v51, %v5510_v5 }
 0x6d5   : > { %v5581_v61 = vadd.f32 %v5580_v63, %v5567_v60 }
 0x6d6   : > { %5648 = vmatpush.bf16.msra.mxu1 %v9076_v36 }
 0x6d7   : > { %v5595_v38 = vadd.f32 %v5594_v6, %v5581_v61 }
 0x6d9   : > { %5649 = vmatmul.bf16.vlgmr.msra.gmra.mxu1 %v6460_v33 }
 0x6da   : > { %v5596_v29 = vpop.f32.mrf.mxu1  ;;  %v5568_v34 = vpop.f32.mrf.mxu0 }
 0x6db   : > { %v5569_v25 = vadd.f32 %v5568_v34, %v5515_v57 }
 0x6dd   : > { %v5583_v40 = vadd.f32 %v5582_v3, %v5569_v25 }
 0x6df   : > { %v5597_v9 = vadd.f32 %v5596_v29, %v5583_v40 }
 0x6e2   : > { %v5608_v7 = vpop.f32.mrf.mxu1 }
 0x6e3   : > { %v5609_v54 = vadd.f32 %v5608_v7, %v5595_v38 }
 0x6ea   : > { %v5610_v37 = vpop.f32.mrf.mxu1 }
 0x6eb   : > { %v5611_v42 = vadd.f32 %v5610_v37, %v5597_v9 }
 0x6f5   : > { %v5636_v39 = vpop.f32.mrf.mxu2 }
 0x6fd   : > { %v5638_v36 = vpop.f32.mrf.mxu2 }
 0x705   : > { %v5664_v44 = vpop.f32.mrf.mxu2 }
 0x70d   : > { %v5666_v28 = vpop.f32.mrf.mxu2 }
 0x736   : > { %v5622_v43 = vpop.f32.mrf.mxu1 }
 0x737   : > { %v5623_v19 = vadd.f32 %v5622_v43, %v5609_v54 }
 0x739   : > { %v5637_v15 = vadd.f32 %v5636_v39, %v5623_v19 }
 0x73e   : > { %v5624_v0 = vpop.f32.mrf.mxu1 }
 0x73f   : > { %v5625_v24 = vadd.f32 %v5624_v0, %v5611_v42 }
 0x741   : > { %v5639_v14 = vadd.f32 %v5638_v36, %v5625_v24 }
 0x756   : > { %v5650_v20 = vpop.f32.mrf.mxu1 }
 0x757   : > { %v5651_v58 = vadd.f32 %v5650_v20, %v5637_v15 }
 0x759   : > { %v5665_v16 = vadd.f32 %v5664_v44, %v5651_v58 }
 0x75b   : > { %5669 = vst [vmem:[%s370_s21] sm:$0xff] %v5665_v16 }
 0x75e   : > { %v5652_v12 = vpop.f32.mrf.mxu1 }
 0x75f   : > { %v5653_v49 = vadd.f32 %v5652_v12, %v5639_v14  ;;  %5677 = sbr.rel (!%p6871_p5) target bundleno = 1900 (0x76c), region = 64 }
 0x761   : > { %v5667_v41 = vadd.f32 %v5666_v28, %v5653_v49 }
 0x762   : > { %v5712_v26 = vld [vmem:[%s370_s21] sm:$0xff] (%p6871_p5) }
 0x763   : > { %5670 = vst [vmem:[%s370_s21 + $0x8] sm:$0xf] %v5667_v41 }
 0x764   : > { %5713 = vst [vmem:[%s5681_s22] sm:$0xff] %v5712_v26 }
 0x76a   : > { %v5714_v53 = vld [vmem:[%s370_s21 + $0x8] sm:$0xff] }
 0x76b   : > { %5715 = vst [vmem:[%s5681_s22 + $0x10] sm:$0xff] %v5714_v53 }
 0x76c PF: > { %s20_s19 = sadd.s32 1, %s6766_s19   ;;  %s9815_s24 = sld [smem:[#allocation7_spill]] }
 0x76d   : > { %p17_p11 = scmp.ge.s32.totalorder %s20_s19, 6   ;;  %s9816_s15 = sld [smem:[#allocation3_spill]] }
 0x76e   : > { %s9817_s16 = sld [smem:[#allocation4_spill]]  ;;  %s9820_s13 = smov %s6746_s14 }
 0x76f   : > { %s9818_s17 = sld [smem:[#allocation5_spill]]  ;;  %19 = sbr.rel (!%p17_p11) target bundleno = 4 (0x4), region = 128 }
 0x770   : > { %s9819_s18 = sld [smem:[#allocation6_spill]] }
 0x772   : > { %s9821_s14 = smov %s9815_s24 }

</bundles_post_ra>
